<compile_context>
chip_gen: v7x
topology: tpu7x:2x2x1
jax: 0.10.0
libtpu: 0.0.40
codegen_flags: <defaults>
</compile_context>

<pallas_src>
import functools

import jax
import jax.numpy as jnp
from jax import lax
from jax.experimental import pallas as pl
from jax.experimental.pallas import tpu as pltpu

BN_EPS = 1e-5
LEAKY_SLOPE = 0.1
LANE = 128
ROW_TILE_BYTES = 8 * 1024 * 1024    # per-tile activation budget, pointwise kernels
ROW_BLOCK_BYTES = 4 * 1024 * 1024   # per-step activation budget, 3x3 row blocks


# ---------------------------------------------------------------------------
# small helpers
# ---------------------------------------------------------------------------
def _round_up(v, m):
    return ((v + m - 1) // m) * m


def _vmem_limit_bytes():
    # v5e/v6e have 128 MiB physical VMEM -> ~76 MiB scoped; v7x has 64 MiB
    # -> ~38 MiB.  Clamp to a safe range either way.
    try:
        cap = getattr(pltpu.get_tpu_info(), "vmem_capacity_bytes", 128 * 2**20)
    except Exception:  # conservative fallback (e.g. interpret mode)
        cap = 128 * 2**20
    return int(min(96 * 2**20, max(32 * 2**20, 0.6 * cap)))


VMEM_LIMIT = _vmem_limit_bytes()


def _mosaic_params(dimension_semantics):
    return pltpu.CompilerParams(dimension_semantics=dimension_semantics,
                                vmem_limit_bytes=VMEM_LIMIT)


def _choose_row_tile(m, bytes_per_row):
    """Row tile for the pointwise kernels: target 512-1024 rows, 8-aligned."""
    cap = max(8, min(1024, ROW_TILE_BYTES // max(1, bytes_per_row)))
    cap = (cap // 8) * 8
    return int(min(_round_up(m, 8), cap))


def _choose_h_tile(h, w, bytes_per_image_row):
    """Largest divisor TH of H with (TH*W) 8-aligned (or TH==H) within budget."""
    cands = [th for th in range(1, h + 1)
             if h % th == 0 and ((th * w) % 8 == 0 or th == h)]
    fitting = [th for th in cands if th * bytes_per_image_row <= ROW_BLOCK_BYTES]
    return max(fitting) if fitting else min(cands)


def _leaky(z):
    return jnp.where(z > 0, z, LEAKY_SLOPE * z)


def _masked_stats(y_f32, m_total):
    """Per-tile (sum, sum_sq) over valid rows of the f32 conv output."""
    tm = y_f32.shape[0]
    rows = lax.broadcasted_iota(jnp.int32, (tm, 1), 0) + pl.program_id(0) * tm
    ym = jnp.where(rows < m_total, y_f32, 0.0)
    return jnp.concatenate([jnp.sum(ym, axis=0, keepdims=True),
                            jnp.sum(ym * ym, axis=0, keepdims=True)], axis=0)


# ---------------------------------------------------------------------------
# Pallas kernels
# ---------------------------------------------------------------------------
def _conv1x1_kernel(m_total, x_ref, w_ref, y_ref, st_ref):
    """First repeat's 1x1 conv: y = x @ w (f32 accum) + BN1 partial stats."""
    y = jnp.dot(x_ref[...], w_ref[...], preferred_element_type=jnp.float32)
    y_ref[...] = y.astype(y_ref.dtype)
    st_ref[0] = _masked_stats(y, m_total)


def _fused_conv1x1_kernel(m_total, use_res, *refs):
    """BN2 + LeakyReLU (+residual) epilogue fused as next 1x1 conv prologue."""
    if use_res:
        y2_ref, res_ref, w_ref, s_ref, b_ref, x_ref, y1_ref, st_ref = refs
    else:
        y2_ref, w_ref, s_ref, b_ref, x_ref, y1_ref, st_ref = refs
        res_ref = None
    z = y2_ref[...].astype(jnp.float32) * s_ref[...] + b_ref[...]
    a = _leaky(z)
    if use_res:
        a = a + res_ref[...].astype(jnp.float32)
    xc = a.astype(x_ref.dtype)                   # next repeat's input / residual
    x_ref[...] = xc
    y = jnp.dot(xc, w_ref[...], preferred_element_type=jnp.float32)
    y1_ref[...] = y.astype(y1_ref.dtype)
    st_ref[0] = _masked_stats(y, m_total)


def _conv3x3_kernel(w_img, y1_ref, w_ref, s_ref, b_ref, y2_ref, st_ref):
    """3x3 conv over a TH-row block of one image (grid = (N, H // TH)).

    The y1 image stays resident in VMEM (constant block index over the row
    axis); BN1 + LeakyReLU is applied on the fly; the conv is computed as 9
    accumulating matmuls with column taps done via shift + edge mask.
    """
    hi = pl.program_id(1)
    nh = pl.num_programs(1)
    hw = y1_ref.shape[1]                          # H * W (flattened pixels)
    tw = y2_ref.shape[1]                          # TH * W (this row block)
    cin = y1_ref.shape[2]
    cout = w_ref.shape[2]
    cdt = w_ref.dtype

    scale = s_ref[...]                            # (1, cin) f32
    bias = b_ref[...]

    def bn_act(v):
        z = v.astype(jnp.float32) * scale + bias
        return _leaky(z)

    r0 = pl.multiple_of(hi * tw, tw)
    a_mid = bn_act(y1_ref[0, pl.ds(r0, tw)]).astype(cdt)        # rows of this block
    up_start = jnp.maximum(r0 - w_img, 0)
    dn_start = jnp.minimum(r0 + tw, hw - w_img)
    up_row = jnp.where(hi > 0,
                       bn_act(y1_ref[0, pl.ds(up_start, w_img)]), 0.0).astype(cdt)
    dn_row = jnp.where(hi < nh - 1,
                       bn_act(y1_ref[0, pl.ds(dn_start, w_img)]), 0.0).astype(cdt)

    if tw == w_img:                               # single-row block
        a_up, a_dn = up_row, dn_row
    else:
        a_up = jnp.concatenate([up_row, a_mid[:-w_img]], axis=0)   # pixel one row above
        a_dn = jnp.concatenate([a_mid[w_img:], dn_row], axis=0)    # pixel one row below

    col = lax.broadcasted_iota(jnp.int32, (tw, 1), 0) % w_img
    not_first_col = col != 0
    not_last_col = col != (w_img - 1)
    zrow = jnp.zeros((1, cin), cdt)

    def tap(a, kw):
        if kw == 0:      # column j-1 (zero at the image's left edge)
            return jnp.where(not_first_col,
                             jnp.concatenate([zrow, a[:-1]], axis=0), 0).astype(cdt)
        if kw == 2:      # column j+1 (zero at the image's right edge)
            return jnp.where(not_last_col,
                             jnp.concatenate([a[1:], zrow], axis=0), 0).astype(cdt)
        return a

    acc = jnp.zeros((tw, cout), jnp.float32)
    for kh, a in enumerate((a_up, a_mid, a_dn)):
        for kw in range(3):
            acc = acc + jnp.dot(tap(a, kw), w_ref[kh * 3 + kw],
                                preferred_element_type=jnp.float32)

    y2_ref[0] = acc.astype(y2_ref.dtype)
    ssum = jnp.sum(acc, axis=0, keepdims=True)
    ssq = jnp.sum(acc * acc, axis=0, keepdims=True)
    st_ref[0, 0] = jnp.concatenate([ssum, ssq], axis=0)


def _bn_leaky_kernel(use_res, *refs):
    """Final repeat's BN2 + LeakyReLU (+ residual) epilogue."""
    if use_res:
        y_ref, r_ref, s_ref, b_ref, o_ref = refs
    else:
        y_ref, s_ref, b_ref, o_ref = refs
        r_ref = None
    z = y_ref[...].astype(jnp.float32) * s_ref[...] + b_ref[...]
    a = _leaky(z)
    if use_res:
        a = a + r_ref[...].astype(jnp.float32)
    o_ref[...] = a.astype(o_ref.dtype)


# ---------------------------------------------------------------------------
# pallas_call wrappers
# ---------------------------------------------------------------------------
def conv1x1_first(x2d, w1m, store_dtype):
    m, cp = x2d.shape
    chp = w1m.shape[1]
    bpr = cp * x2d.dtype.itemsize + chp * (4 + jnp.dtype(store_dtype).itemsize)
    tm = _choose_row_tile(m, bpr)
    g = (m + tm - 1) // tm
    return pl.pallas_call(
        functools.partial(_conv1x1_kernel, m),
        grid=(g,),
        in_specs=[pl.BlockSpec((tm, cp), lambda i: (i, 0)),
                  pl.BlockSpec((cp, chp), lambda i: (0, 0))],        # resident weight
        out_specs=[pl.BlockSpec((tm, chp), lambda i: (i, 0)),
                   pl.BlockSpec((1, 2, chp), lambda i: (i, 0, 0))],
        out_shape=[jax.ShapeDtypeStruct((m, chp), store_dtype),
                   jax.ShapeDtypeStruct((g, 2, chp), jnp.float32)],
        compiler_params=_mosaic_params(("parallel",)),
    )(x2d, w1m)


def conv1x1_fused(y2_2d, scale2, bias2, residual, w1m_next, store_dtype,
                  compute_dtype):
    m, cp = y2_2d.shape
    chp = w1m_next.shape[1]
    cdt_b = jnp.dtype(compute_dtype).itemsize
    st_b = jnp.dtype(store_dtype).itemsize
    bpr = cp * (y2_2d.dtype.itemsize + 2 * cdt_b) + chp * (4 + st_b)
    use_res = residual is not None
    if use_res:
        bpr += cp * residual.dtype.itemsize
    tm = _choose_row_tile(m, bpr)
    g = (m + tm - 1) // tm
    tile_cp = pl.BlockSpec((tm, cp), lambda i: (i, 0))
    vec_cp = pl.BlockSpec((1, cp), lambda i: (0, 0))
    args = [y2_2d] + ([residual] if use_res else []) + [w1m_next, scale2, bias2]
    in_specs = ([tile_cp] + ([tile_cp] if use_res else [])
                + [pl.BlockSpec((cp, chp), lambda i: (0, 0)), vec_cp, vec_cp])
    return pl.pallas_call(
        functools.partial(_fused_conv1x1_kernel, m, use_res),
        grid=(g,),
        in_specs=in_specs,
        out_specs=[pl.BlockSpec((tm, cp), lambda i: (i, 0)),
                   pl.BlockSpec((tm, chp), lambda i: (i, 0)),
                   pl.BlockSpec((1, 2, chp), lambda i: (i, 0, 0))],
        out_shape=[jax.ShapeDtypeStruct((m, cp), compute_dtype),      # x_{k+1}
                   jax.ShapeDtypeStruct((m, chp), store_dtype),       # y1_{k+1}
                   jax.ShapeDtypeStruct((g, 2, chp), jnp.float32)],   # BN1 partials
        compiler_params=_mosaic_params(("parallel",)),
    )(*args)


def conv3x3(y1_2d, n, h, w, w2m, scale1, bias1, store_dtype, compute_dtype):
    chp = y1_2d.shape[1]
    cp = w2m.shape[2]
    cdt_b = jnp.dtype(compute_dtype).itemsize
    st_b = jnp.dtype(store_dtype).itemsize
    bytes_per_image_row = w * (cp * (4 + st_b) + chp * 4 * cdt_b)
    th = _choose_h_tile(h, w, bytes_per_image_row)
    nh = h // th
    tw = th * w
    y1_3d = y1_2d.reshape(n, h * w, chp)
    y2, st = pl.pallas_call(
        functools.partial(_conv3x3_kernel, w),
        grid=(n, nh),
        in_specs=[
            # whole y1 image resident across the row-tile axis (constant index)
            pl.BlockSpec((1, h * w, chp), lambda ni, hi: (ni, 0, 0)),
            pl.BlockSpec((9, chp, cp), lambda ni, hi: (0, 0, 0)),     # resident weight
            pl.BlockSpec((1, chp), lambda ni, hi: (0, 0)),            # folded BN1 scale
            pl.BlockSpec((1, chp), lambda ni, hi: (0, 0)),            # folded BN1 bias
        ],
        out_specs=[
            pl.BlockSpec((1, tw, cp), lambda ni, hi: (ni, hi, 0)),
            pl.BlockSpec((1, 1, 2, cp), lambda ni, hi: (ni, hi, 0, 0)),
        ],
        out_shape=[jax.ShapeDtypeStruct((n, h * w, cp), store_dtype),
                   jax.ShapeDtypeStruct((n, nh, 2, cp), jnp.float32)],
        compiler_params=_mosaic_params(("parallel", "parallel")),
    )(y1_3d, w2m, scale1, bias1)
    return y2.reshape(n * h * w, cp), st


def bn_leaky_apply(y2_2d, scale2, bias2, residual, out_dtype):
    m, cp = y2_2d.shape
    use_res = residual is not None
    res_b = residual.dtype.itemsize if use_res else 0
    bpr = cp * (y2_2d.dtype.itemsize + res_b + jnp.dtype(out_dtype).itemsize)
    tm = _choose_row_tile(m, bpr)
    g = (m + tm - 1) // tm
    tile = pl.BlockSpec((tm, cp), lambda i: (i, 0))
    vec = pl.BlockSpec((1, cp), lambda i: (0, 0))
    args = [y2_2d] + ([residual] if use_res else []) + [scale2, bias2]
    in_specs = [tile] + ([tile] if use_res else []) + [vec, vec]
    return pl.pallas_call(
        functools.partial(_bn_leaky_kernel, use_res),
        grid=(g,),
        in_specs=in_specs,
        out_specs=pl.BlockSpec((tm, cp), lambda i: (i, 0)),
        out_shape=jax.ShapeDtypeStruct((m, cp), out_dtype),
        compiler_params=_mosaic_params(("parallel",)),
    )(*args)


# ---------------------------------------------------------------------------
# BN fold + parameter preparation (tiny O(C) glue in plain JAX)
# ---------------------------------------------------------------------------
def _fold_bn(stats, gamma_p, beta_p, count):
    c = stats.shape[-1]
    tot = jnp.sum(stats.reshape(-1, 2, c), axis=0)
    mean = tot[0] / count
    var = jnp.maximum(tot[1] / count - mean * mean, 0.0)  # biased (torch BN train)
    # TODO(synk): compensated / two-pass variance for very large M.
    scale = gamma_p * lax.rsqrt(var + BN_EPS)
    bias = beta_p - mean * scale
    return scale.reshape(1, -1), bias.reshape(1, -1)


def _prepare_layer(layer, c, ch, cp, chp, compute_dtype):
    """Torch-layout params -> lane-padded matmul weights / padded gamma-beta."""
    w1, g1, b1, w2, g2, b2 = layer
    w1m = jnp.zeros((cp, chp), jnp.float32).at[:c, :ch].set(
        jnp.transpose(w1[:, :, 0, 0], (1, 0)))
    w2m = jnp.zeros((9, chp, cp), jnp.float32)
    for kh in range(3):
        for kw in range(3):
            w2m = w2m.at[kh * 3 + kw, :ch, :c].set(
                jnp.transpose(w2[:, :, kh, kw], (1, 0)))
    g1p = jnp.zeros((chp,), jnp.float32).at[:ch].set(g1)
    b1p = jnp.zeros((chp,), jnp.float32).at[:ch].set(b1)
    g2p = jnp.zeros((cp,), jnp.float32).at[:c].set(g2)
    b2p = jnp.zeros((cp,), jnp.float32).at[:c].set(b2)
    return (w1m.astype(compute_dtype), g1p, b1p,
            w2m.astype(compute_dtype), g2p, b2p)


# ---------------------------------------------------------------------------
# ResidualBlock forward (Pallas)
# ---------------------------------------------------------------------------
def residual_block_forward(x_nchw, params, use_residual=True,
                           compute_dtype=jnp.bfloat16):
    """params: per repeat (w1 (C/2,C,1,1), g1, b1, w2 (C,C/2,3,3), g2, b2)."""
    n, c, h, w = x_nchw.shape
    ch = c // 2
    cp, chp = _round_up(c, LANE), _round_up(ch, LANE)
    m = n * h * w
    store_dtype = (jnp.bfloat16 if jnp.dtype(compute_dtype) == jnp.bfloat16
                   else jnp.float32)

    prepped = [_prepare_layer(p, c, ch, cp, chp, compute_dtype) for p in params]

    # TODO(synk): fold the NCHW->NHWC transpose + channel zero-pad into the
    # first 1x1 conv kernel instead of doing them as standalone XLA copies.
    x_nhwc = jnp.transpose(x_nchw, (0, 2, 3, 1)).astype(jnp.float32)
    x2d = jnp.zeros((m, cp), jnp.float32).at[:, :c].set(x_nhwc.reshape(m, c))
    x2d = x2d.astype(compute_dtype)

    num = len(prepped)
    y1, st1 = conv1x1_first(x2d, prepped[0][0], store_dtype)
    for k, (w1m, g1p, b1p, w2m, g2p, b2p) in enumerate(prepped):
        scale1, bias1 = _fold_bn(st1, g1p, b1p, m)
        y2, st2 = conv3x3(y1, n, h, w, w2m, scale1, bias1,
                          store_dtype, compute_dtype)
        scale2, bias2 = _fold_bn(st2, g2p, b2p, m)
        residual = x2d if use_residual else None
        if k + 1 < num:
            # fuse this repeat's BN2/leaky/residual epilogue into the next
            # repeat's 1x1 conv (saves one full activation read per boundary).
            x2d, y1, st1 = conv1x1_fused(y2, scale2, bias2, residual,
                                         prepped[k + 1][0],
                                         store_dtype, compute_dtype)
        else:
            x2d = bn_leaky_apply(y2, scale2, bias2, residual, compute_dtype)

    out = x2d.astype(jnp.float32)[:, :c].reshape(n, h, w, c)
    return jnp.transpose(out, (0, 3, 1, 2))                # back to NCHW


# ---------------------------------------------------------------------------
# Pure-JAX reference (lax.conv) with matching precision policy
# ---------------------------------------------------------------------------
def _bn_train_ref(y, g, b):
    mean = jnp.mean(y, axis=(0, 2, 3), keepdims=True)
    var = jnp.mean((y - mean) ** 2, axis=(0, 2, 3), keepdims=True)
    return (g.reshape(1, -1, 1, 1) * (y - mean) * lax.rsqrt(var + BN_EPS)
            + b.reshape(1, -1, 1, 1))


def residual_block_reference(x_nchw, params, use_residual=True,
                             compute_dtype=jnp.float32):
    x = x_nchw.astype(compute_dtype)
    for (w1, g1, b1, w2, g2, b2) in params:
        inp = x
        y = lax.conv_general_dilated(
            inp, w1.astype(compute_dtype), (1, 1), 'VALID',
            dimension_numbers=('NCHW', 'OIHW', 'NCHW'),
            preferred_element_type=jnp.float32)
        a = _leaky(_bn_train_ref(y, g1, b1))
        z = lax.conv_general_dilated(
            a.astype(compute_dtype), w2.astype(compute_dtype), (1, 1),
            ((1, 1), (1, 1)), dimension_numbers=('NCHW', 'OIHW', 'NCHW'),
            preferred_element_type=jnp.float32)
        z = _leaky(_bn_train_ref(z, g2, b2))
        out = z + inp.astype(jnp.float32) if use_residual else z
        x = out.astype(compute_dtype)
    return x.astype(jnp.float32)


# ---------------------------------------------------------------------------
# Deterministic parameter construction (torch-shaped, synthetic values)
# ---------------------------------------------------------------------------
def make_params(key, channels, num_repeats):
    ch = channels // 2
    params = []
    for _ in range(num_repeats):
        key, k1, k2, k3, k4, k5, k6 = jax.random.split(key, 7)
        w1 = 0.3 * jax.random.normal(k1, (ch, channels, 1, 1), jnp.float32)
        g1 = 1.0 + 0.1 * jax.random.normal(k2, (ch,), jnp.float32)
        b1 = 0.1 * jax.random.normal(k3, (ch,), jnp.float32)
        w2 = 0.1 * jax.random.normal(k4, (channels, ch, 3, 3), jnp.float32)
        g2 = 1.0 + 0.1 * jax.random.normal(k5, (channels,), jnp.float32)
        b2 = 0.1 * jax.random.normal(k6, (channels,), jnp.float32)
        params.append((w1, g1, b1, w2, g2, b2))
    return params


if __name__ == "__main__":
    key = jax.random.PRNGKey(0)
    kx, kp = jax.random.split(key)

    batch, channels, spatial, num_repeats = 2, 4, 16, 2
    x = jax.random.normal(kx, (batch, channels, spatial, spatial), jnp.float32)
    params = make_params(kp, channels, num_repeats)

    fwd = jax.jit(residual_block_forward,
                  static_argnames=("use_residual", "compute_dtype"))
    ref_fwd = jax.jit(residual_block_reference,
                      static_argnames=("use_residual", "compute_dtype"))

    # f32 parity path (matches the PyTorch/f32 forward semantics).
    out = jax.block_until_ready(fwd(x, params, use_residual=True,
                                    compute_dtype=jnp.float32))
    assert out.shape == (batch, channels, spatial, spatial)
    ref = jax.block_until_ready(ref_fwd(x, params, use_residual=True,
                                        compute_dtype=jnp.float32))
    assert jnp.allclose(out, ref, rtol=2e-3, atol=2e-3), "f32 mismatch vs reference"

    # bf16 path: bf16 MXU operands and bf16 y1/y2 intermediates, f32 accum.
    out_bf = jax.block_until_ready(fwd(x, params, use_residual=True,
                                       compute_dtype=jnp.bfloat16))
    ref_bf = jax.block_until_ready(ref_fwd(x, params, use_residual=True,
                                           compute_dtype=jnp.bfloat16))
    assert jnp.allclose(out_bf, ref_bf, rtol=5e-2, atol=5e-2), "bf16 mismatch"

    # no-residual variant (no zero matrix is streamed through HBM).
    out_nr = jax.block_until_ready(fwd(x, params, use_residual=False,
                                       compute_dtype=jnp.float32))
    ref_nr = jax.block_until_ready(ref_fwd(x, params, use_residual=False,
                                           compute_dtype=jnp.float32))
    assert jnp.allclose(out_nr, ref_nr, rtol=2e-3, atol=2e-3), "no-residual mismatch"

    print("KERNEL_OK")
</pallas_src>

<mosaic_0001>
module attributes {stable_mosaic.version = 11 : i64} {
  func.func @_conv1x1_kernel(%arg0: i32, %arg1: memref<512x128xf32, #tpu.memory_space<vmem>>, %arg2: memref<128x128xf32, #tpu.memory_space<vmem>>, %arg3: memref<512x128xf32, #tpu.memory_space<vmem>>, %arg4: memref<1x2x128xf32, #tpu.memory_space<vmem>>) attributes {dimension_semantics = [#tpu.dimension_semantics<parallel>], iteration_bounds = array<i64: 1>, scalar_prefetch = 0 : i64, scratch_operands = 0 : i64, tpu.core_type = #tpu.core_type<tc>, window_params = [{transform_indices = @transform_0, window_bounds = array<i64: 512, 128>}, {pipeline_mode = #tpu.pipeline_mode<synchronous>, transform_indices = @transform_1, window_bounds = array<i64: 128, 128>}, {transform_indices = @transform_2, window_bounds = array<i64: 512, 128>}, {transform_indices = @transform_3, window_bounds = array<i64: 1, 2, 128>}]} {
    %c0 = arith.constant 0 : index
    %c0_0 = arith.constant 0 : index
    %0 = vector.load %arg1[%c0, %c0_0] : memref<512x128xf32, #tpu.memory_space<vmem>>, vector<512x128xf32>
    %c0_1 = arith.constant 0 : index
    %c0_2 = arith.constant 0 : index
    %1 = vector.load %arg2[%c0_1, %c0_2] : memref<128x128xf32, #tpu.memory_space<vmem>>, vector<128x128xf32>
    %cst = arith.constant dense<0.000000e+00> : vector<512x128xf32>
    %2 = tpu.matmul %0, %1, %cst {dimension_numbers = #tpu.dot_dimension_numbers<[1], [0], [0], [1], [0, 0, 1, 1], [], []>} : vector<512x128xf32>, vector<128x128xf32>, vector<512x128xf32> -> vector<512x128xf32>
    %c0_3 = arith.constant 0 : index
    %c0_4 = arith.constant 0 : index
    %3 = vector.load %arg3[%c0_3, %c0_4] : memref<512x128xf32, #tpu.memory_space<vmem>>, vector<512x128xf32>
    tpu.vector_store %arg3[%c0_3, %c0_4], %2 {strides = array<i32>} : memref<512x128xf32, #tpu.memory_space<vmem>>, vector<512x128xf32>,
    %4 = tpu.iota {dimensions = array<i32: 0>} : vector<512x1xi32>
    %c512_i32 = arith.constant 512 : i32
    %5 = arith.muli %arg0, %c512_i32 : i32
    %6 = vector.broadcast %5 : i32 to vector<512x1xi32>
    %7 = arith.addi %4, %6 : vector<512x1xi32>
    %c512_i32_5 = arith.constant 512 : i32
    %8 = vector.broadcast %c512_i32_5 : i32 to vector<512x1xi32>
    %9 = arith.cmpi slt, %7, %8 : vector<512x1xi32>
    %cst_6 = arith.constant 0.000000e+00 : f32
    %10 = vector.shape_cast %9 : vector<512x1xi1> to vector<512x1xi1>
    %11 = vector.broadcast %10 : vector<512x1xi1> to vector<512x128xi1>
    %12 = vector.broadcast %cst_6 : f32 to vector<512x128xf32>
    %13 = arith.select %11, %2, %12 : vector<512x128xi1>, vector<512x128xf32>
    %cst_7 = arith.constant dense<0.000000e+00> : vector<128xf32>
    %14 = vector.multi_reduction <add>, %13, %cst_7 [0] : vector<512x128xf32> to vector<128xf32>
    %15 = vector.shape_cast %14 : vector<128xf32> to vector<1x128xf32>
    %16 = arith.mulf %13, %13 : vector<512x128xf32>
    %cst_8 = arith.constant dense<0.000000e+00> : vector<128xf32>
    %17 = vector.multi_reduction <add>, %16, %cst_8 [0] : vector<512x128xf32> to vector<128xf32>
    %18 = vector.shape_cast %17 : vector<128xf32> to vector<1x128xf32>
    %19 = tpu.concatenate %15, %18 in 0 : vector<1x128xf32>, vector<1x128xf32> -> vector<2x128xf32>
    %c0_9 = arith.constant 0 : index
    %c0_10 = arith.constant 0 : index
    %c0_11 = arith.constant 0 : index
    %20 = vector.load %arg4[%c0_9, %c0_10, %c0_11] : memref<1x2x128xf32, #tpu.memory_space<vmem>>, vector<1x2x128xf32>
    %21 = vector.shape_cast %20 : vector<1x2x128xf32> to vector<2x128xf32>
    %22 = vector.shape_cast %19 : vector<2x128xf32> to vector<1x2x128xf32>
    tpu.vector_store %arg4[%c0_9, %c0_10, %c0_11], %22 {strides = array<i32>} : memref<1x2x128xf32, #tpu.memory_space<vmem>>, vector<1x2x128xf32>,
    return
  }
  func.func @transform_0(%arg0: i32) -> (i32, i32) {
    %c0_i32 = arith.constant 0 : i32
    %c0_i32_0 = arith.constant 0 : i32
    return %arg0, %c0_i32 : i32, i32
  }
  func.func @transform_1(%arg0: i32) -> (i32, i32) {
    %c0_i32 = arith.constant 0 : i32
    %c0_i32_0 = arith.constant 0 : i32
    %c0_i32_1 = arith.constant 0 : i32
    return %c0_i32, %c0_i32_0 : i32, i32
  }
  func.func @transform_2(%arg0: i32) -> (i32, i32) {
    %c0_i32 = arith.constant 0 : i32
    %c0_i32_0 = arith.constant 0 : i32
    return %arg0, %c0_i32 : i32, i32
  }
  func.func @transform_3(%arg0: i32) -> (i32, i32, i32) {
    %c0_i32 = arith.constant 0 : i32
    %c0_i32_0 = arith.constant 0 : i32
    %c0_i32_1 = arith.constant 0 : i32
    return %arg0, %c0_i32, %c0_i32_0 : i32, i32, i32
  }
}

module attributes {stable_mosaic.version = 11 : i64} {
  func.func @_conv3x3_kernel(%arg0: i32, %arg1: i32, %arg2: memref<1x256x128xf32, #tpu.memory_space<vmem>>, %arg3: memref<9x128x128xf32, #tpu.memory_space<vmem>>, %arg4: memref<1x128xf32, #tpu.memory_space<vmem>>, %arg5: memref<1x128xf32, #tpu.memory_space<vmem>>, %arg6: memref<1x256x128xf32, #tpu.memory_space<vmem>>, %arg7: memref<1x1x2x128xf32, #tpu.memory_space<vmem>>) attributes {dimension_semantics = [#tpu.dimension_semantics<parallel>, #tpu.dimension_semantics<parallel>], iteration_bounds = array<i64: 2, 1>, scalar_prefetch = 0 : i64, scratch_operands = 0 : i64, tpu.core_type = #tpu.core_type<tc>, window_params = [{transform_indices = @transform_0, window_bounds = array<i64: 1, 256, 128>}, {pipeline_mode = #tpu.pipeline_mode<synchronous>, transform_indices = @transform_1, window_bounds = array<i64: 9, 128, 128>}, {pipeline_mode = #tpu.pipeline_mode<synchronous>, transform_indices = @transform_2, window_bounds = array<i64: 1, 128>}, {pipeline_mode = #tpu.pipeline_mode<synchronous>, transform_indices = @transform_3, window_bounds = array<i64: 1, 128>}, {transform_indices = @transform_4, window_bounds = array<i64: 1, 256, 128>}, {transform_indices = @transform_5, window_bounds = array<i64: 1, 1, 2, 128>}]} {
    %c0 = arith.constant 0 : index
    %c0_0 = arith.constant 0 : index
    %0 = vector.load %arg4[%c0, %c0_0] : memref<1x128xf32, #tpu.memory_space<vmem>>, vector<1x128xf32>
    %c0_1 = arith.constant 0 : index
    %c0_2 = arith.constant 0 : index
    %1 = vector.load %arg5[%c0_1, %c0_2] : memref<1x128xf32, #tpu.memory_space<vmem>>, vector<1x128xf32>
    %c256_i32 = arith.constant 256 : i32
    %2 = arith.muli %arg1, %c256_i32 : i32
    %3 = tpu.assume_multiple %2, 256 : i32
    %c0_3 = arith.constant 0 : index
    %4 = arith.index_cast %3 : i32 to index
    %c0_4 = arith.constant 0 : index
    %5 = vector.load %arg2[%c0_3, %4, %c0_4] : memref<1x256x128xf32, #tpu.memory_space<vmem>>, vector<1x256x128xf32>
    %6 = vector.shape_cast %5 : vector<1x256x128xf32> to vector<256x128xf32>
    %7 = vector.broadcast %0 : vector<1x128xf32> to vector<256x128xf32>
    %8 = arith.mulf %6, %7 : vector<256x128xf32>
    %9 = vector.broadcast %1 : vector<1x128xf32> to vector<256x128xf32>
    %10 = arith.addf %8, %9 : vector<256x128xf32>
    %cst = arith.constant 0.000000e+00 : f32
    %11 = vector.broadcast %cst : f32 to vector<256x128xf32>
    %12 = arith.cmpf ogt, %10, %11 : vector<256x128xf32>
    %cst_5 = arith.constant 1.000000e-01 : f32
    %13 = vector.broadcast %cst_5 : f32 to vector<256x128xf32>
    %14 = arith.mulf %13, %10 : vector<256x128xf32>
    %15 = arith.select %12, %10, %14 : vector<256x128xi1>, vector<256x128xf32>
    %c16_i32 = arith.constant 16 : i32
    %16 = arith.subi %3, %c16_i32 : i32
    %c0_i32 = arith.constant 0 : i32
    %17 = arith.maxsi %16, %c0_i32 : i32
    %c256_i32_6 = arith.constant 256 : i32
    %18 = arith.addi %3, %c256_i32_6 : i32
    %c240_i32 = arith.constant 240 : i32
    %19 = arith.minsi %18, %c240_i32 : i32
    %c0_i32_7 = arith.constant 0 : i32
    %20 = arith.cmpi sgt, %arg1, %c0_i32_7 : i32
    %c0_8 = arith.constant 0 : index
    %21 = arith.index_cast %17 : i32 to index
    %c0_9 = arith.constant 0 : index
    %22 = vector.load %arg2[%c0_8, %21, %c0_9] : memref<1x256x128xf32, #tpu.memory_space<vmem>>, vector<1x16x128xf32>
    %23 = vector.shape_cast %22 : vector<1x16x128xf32> to vector<16x128xf32>
    %24 = vector.broadcast %0 : vector<1x128xf32> to vector<16x128xf32>
    %25 = arith.mulf %23, %24 : vector<16x128xf32>
    %26 = vector.broadcast %1 : vector<1x128xf32> to vector<16x128xf32>
    %27 = arith.addf %25, %26 : vector<16x128xf32>
    %cst_10 = arith.constant 0.000000e+00 : f32
    %28 = vector.broadcast %cst_10 : f32 to vector<16x128xf32>
    %29 = arith.cmpf ogt, %27, %28 : vector<16x128xf32>
    %cst_11 = arith.constant 1.000000e-01 : f32
    %30 = vector.broadcast %cst_11 : f32 to vector<16x128xf32>
    %31 = arith.mulf %30, %27 : vector<16x128xf32>
    %32 = arith.select %29, %27, %31 : vector<16x128xi1>, vector<16x128xf32>
    %cst_12 = arith.constant 0.000000e+00 : f32
    %33 = vector.broadcast %cst_12 : f32 to vector<16x128xf32>
    %34 = arith.select %20, %32, %33 : vector<16x128xf32>
    %c0_i32_13 = arith.constant 0 : i32
    %35 = arith.cmpi slt, %arg1, %c0_i32_13 : i32
    %c0_14 = arith.constant 0 : index
    %36 = arith.index_cast %19 : i32 to index
    %c0_15 = arith.constant 0 : index
    %37 = vector.load %arg2[%c0_14, %36, %c0_15] : memref<1x256x128xf32, #tpu.memory_space<vmem>>, vector<1x16x128xf32>
    %38 = vector.shape_cast %37 : vector<1x16x128xf32> to vector<16x128xf32>
    %39 = vector.broadcast %0 : vector<1x128xf32> to vector<16x128xf32>
    %40 = arith.mulf %38, %39 : vector<16x128xf32>
    %41 = vector.broadcast %1 : vector<1x128xf32> to vector<16x128xf32>
    %42 = arith.addf %40, %41 : vector<16x128xf32>
    %cst_16 = arith.constant 0.000000e+00 : f32
    %43 = vector.broadcast %cst_16 : f32 to vector<16x128xf32>
    %44 = arith.cmpf ogt, %42, %43 : vector<16x128xf32>
    %cst_17 = arith.constant 1.000000e-01 : f32
    %45 = vector.broadcast %cst_17 : f32 to vector<16x128xf32>
    %46 = arith.mulf %45, %42 : vector<16x128xf32>
    %47 = arith.select %44, %42, %46 : vector<16x128xi1>, vector<16x128xf32>
    %cst_18 = arith.constant 0.000000e+00 : f32
    %48 = vector.broadcast %cst_18 : f32 to vector<16x128xf32>
    %49 = arith.select %35, %47, %48 : vector<16x128xf32>
    %50 = vector.extract_strided_slice %15 {offsets = [0, 0], sizes = [240, 128], strides = [1, 1]} : vector<256x128xf32> to vector<240x128xf32>
    %51 = tpu.concatenate %34, %50 in 0 : vector<16x128xf32>, vector<240x128xf32> -> vector<256x128xf32>
    %52 = vector.extract_strided_slice %15 {offsets = [16, 0], sizes = [240, 128], strides = [1, 1]} : vector<256x128xf32> to vector<240x128xf32>
    %53 = tpu.concatenate %52, %49 in 0 : vector<240x128xf32>, vector<16x128xf32> -> vector<256x128xf32>
    %54 = tpu.iota {dimensions = array<i32: 0>} : vector<256x1xi32>
    %c16_i32_19 = arith.constant 16 : i32
    %c0_i32_20 = arith.constant 0 : i32
    %55 = arith.cmpi eq, %c16_i32_19, %c0_i32_20 : i32
    %c1_i32 = arith.constant 1 : i32
    %56 = arith.select %55, %c1_i32, %c16_i32_19 : i32
    %57 = vector.broadcast %56 : i32 to vector<256x1xi32>
    %58 = arith.remsi %54, %57 : vector<256x1xi32>
    %c0_i32_21 = arith.constant 0 : i32
    %59 = vector.broadcast %c0_i32_21 : i32 to vector<256x1xi32>
    %60 = arith.cmpi ne, %58, %59 : vector<256x1xi32>
    %c0_i32_22 = arith.constant 0 : i32
    %61 = vector.broadcast %c0_i32_22 : i32 to vector<256x1xi32>
    %62 = arith.cmpi slt, %58, %61 : vector<256x1xi32>
    %c0_i32_23 = arith.constant 0 : i32
    %63 = arith.cmpi slt, %56, %c0_i32_23 : i32
    %64 = vector.broadcast %63 : i1 to vector<256x1xi1>
    %65 = vector.broadcast %64 : vector<256x1xi1> to vector<256x1xi1>
    %66 = arith.xori %62, %65 : vector<256x1xi1>
    %67 = arith.andi %66, %60 : vector<256x1xi1>
    %68 = vector.broadcast %56 : i32 to vector<256x1xi32>
    %69 = arith.addi %58, %68 : vector<256x1xi32>
    %70 = arith.select %67, %69, %58 : vector<256x1xi1>, vector<256x1xi32>
    %c0_i32_24 = arith.constant 0 : i32
    %71 = vector.broadcast %c0_i32_24 : i32 to vector<256x1xi32>
    %72 = arith.cmpi ne, %70, %71 : vector<256x1xi32>
    %c15_i32 = arith.constant 15 : i32
    %73 = vector.broadcast %c15_i32 : i32 to vector<256x1xi32>
    %74 = arith.cmpi ne, %70, %73 : vector<256x1xi32>
    %cst_25 = arith.constant 0.000000e+00 : f32
    %75 = vector.broadcast %cst_25 : f32 to vector<1x128xf32>
    %cst_26 = arith.constant 0.000000e+00 : f32
    %76 = vector.broadcast %cst_26 : f32 to vector<256x128xf32>
    %77 = vector.extract_strided_slice %51 {offsets = [0, 0], sizes = [255, 128], strides = [1, 1]} : vector<256x128xf32> to vector<255x128xf32>
    %78 = tpu.concatenate %75, %77 in 0 : vector<1x128xf32>, vector<255x128xf32> -> vector<256x128xf32>
    %c0_i32_27 = arith.constant 0 : i32
    %79 = arith.sitofp %c0_i32_27 : i32 to f32
    %80 = vector.shape_cast %72 : vector<256x1xi1> to vector<256x1xi1>
    %81 = vector.broadcast %80 : vector<256x1xi1> to vector<256x128xi1>
    %82 = vector.broadcast %79 : f32 to vector<256x128xf32>
    %83 = arith.select %81, %78, %82 : vector<256x128xi1>, vector<256x128xf32>
    %c0_28 = arith.constant 0 : index
    %c0_29 = arith.constant 0 : index
    %c0_30 = arith.constant 0 : index
    %84 = vector.load %arg3[%c0_28, %c0_29, %c0_30] : memref<9x128x128xf32, #tpu.memory_space<vmem>>, vector<1x128x128xf32>
    %85 = vector.shape_cast %84 : vector<1x128x128xf32> to vector<128x128xf32>
    %cst_31 = arith.constant dense<0.000000e+00> : vector<256x128xf32>
    %86 = tpu.matmul %83, %85, %cst_31 {dimension_numbers = #tpu.dot_dimension_numbers<[1], [0], [0], [1], [0, 0, 1, 1], [], []>} : vector<256x128xf32>, vector<128x128xf32>, vector<256x128xf32> -> vector<256x128xf32>
    %87 = arith.addf %76, %86 : vector<256x128xf32>
    %c1 = arith.constant 1 : index
    %c0_32 = arith.constant 0 : index
    %c0_33 = arith.constant 0 : index
    %88 = vector.load %arg3[%c1, %c0_32, %c0_33] : memref<9x128x128xf32, #tpu.memory_space<vmem>>, vector<1x128x128xf32>
    %89 = vector.shape_cast %88 : vector<1x128x128xf32> to vector<128x128xf32>
    %cst_34 = arith.constant dense<0.000000e+00> : vector<256x128xf32>
    %90 = tpu.matmul %51, %89, %cst_34 {dimension_numbers = #tpu.dot_dimension_numbers<[1], [0], [0], [1], [0, 0, 1, 1], [], []>} : vector<256x128xf32>, vector<128x128xf32>, vector<256x128xf32> -> vector<256x128xf32>
    %91 = arith.addf %87, %90 : vector<256x128xf32>
    %92 = vector.extract_strided_slice %51 {offsets = [1, 0], sizes = [255, 128], strides = [1, 1]} : vector<256x128xf32> to vector<255x128xf32>
    %93 = tpu.concatenate %92, %75 in 0 : vector<255x128xf32>, vector<1x128xf32> -> vector<256x128xf32>
    %c0_i32_35 = arith.constant 0 : i32
    %94 = arith.sitofp %c0_i32_35 : i32 to f32
    %95 = vector.shape_cast %74 : vector<256x1xi1> to vector<256x1xi1>
    %96 = vector.broadcast %95 : vector<256x1xi1> to vector<256x128xi1>
    %97 = vector.broadcast %94 : f32 to vector<256x128xf32>
    %98 = arith.select %96, %93, %97 : vector<256x128xi1>, vector<256x128xf32>
    %c2 = arith.constant 2 : index
    %c0_36 = arith.constant 0 : index
    %c0_37 = arith.constant 0 : index
    %99 = vector.load %arg3[%c2, %c0_36, %c0_37] : memref<9x128x128xf32, #tpu.memory_space<vmem>>, vector<1x128x128xf32>
    %100 = vector.shape_cast %99 : vector<1x128x128xf32> to vector<128x128xf32>
    %cst_38 = arith.constant dense<0.000000e+00> : vector<256x128xf32>
    %101 = tpu.matmul %98, %100, %cst_38 {dimension_numbers = #tpu.dot_dimension_numbers<[1], [0], [0], [1], [0, 0, 1, 1], [], []>} : vector<256x128xf32>, vector<128x128xf32>, vector<256x128xf32> -> vector<256x128xf32>
    %102 = arith.addf %91, %101 : vector<256x128xf32>
    %103 = vector.extract_strided_slice %15 {offsets = [0, 0], sizes = [255, 128], strides = [1, 1]} : vector<256x128xf32> to vector<255x128xf32>
    %104 = tpu.concatenate %75, %103 in 0 : vector<1x128xf32>, vector<255x128xf32> -> vector<256x128xf32>
    %c0_i32_39 = arith.constant 0 : i32
    %105 = arith.sitofp %c0_i32_39 : i32 to f32
    %106 = vector.shape_cast %72 : vector<256x1xi1> to vector<256x1xi1>
    %107 = vector.broadcast %106 : vector<256x1xi1> to vector<256x128xi1>
    %108 = vector.broadcast %105 : f32 to vector<256x128xf32>
    %109 = arith.select %107, %104, %108 : vector<256x128xi1>, vector<256x128xf32>
    %c3 = arith.constant 3 : index
    %c0_40 = arith.constant 0 : index
    %c0_41 = arith.constant 0 : index
    %110 = vector.load %arg3[%c3, %c0_40, %c0_41] : memref<9x128x128xf32, #tpu.memory_space<vmem>>, vector<1x128x128xf32>
    %111 = vector.shape_cast %110 : vector<1x128x128xf32> to vector<128x128xf32>
    %cst_42 = arith.constant dense<0.000000e+00> : vector<256x128xf32>
    %112 = tpu.matmul %109, %111, %cst_42 {dimension_numbers = #tpu.dot_dimension_numbers<[1], [0], [0], [1], [0, 0, 1, 1], [], []>} : vector<256x128xf32>, vector<128x128xf32>, vector<256x128xf32> -> vector<256x128xf32>
    %113 = arith.addf %102, %112 : vector<256x128xf32>
    %c4 = arith.constant 4 : index
    %c0_43 = arith.constant 0 : index
    %c0_44 = arith.constant 0 : index
    %114 = vector.load %arg3[%c4, %c0_43, %c0_44] : memref<9x128x128xf32, #tpu.memory_space<vmem>>, vector<1x128x128xf32>
    %115 = vector.shape_cast %114 : vector<1x128x128xf32> to vector<128x128xf32>
    %cst_45 = arith.constant dense<0.000000e+00> : vector<256x128xf32>
    %116 = tpu.matmul %15, %115, %cst_45 {dimension_numbers = #tpu.dot_dimension_numbers<[1], [0], [0], [1], [0, 0, 1, 1], [], []>} : vector<256x128xf32>, vector<128x128xf32>, vector<256x128xf32> -> vector<256x128xf32>
    %117 = arith.addf %113, %116 : vector<256x128xf32>
    %118 = vector.extract_strided_slice %15 {offsets = [1, 0], sizes = [255, 128], strides = [1, 1]} : vector<256x128xf32> to vector<255x128xf32>
    %119 = tpu.concatenate %118, %75 in 0 : vector<255x128xf32>, vector<1x128xf32> -> vector<256x128xf32>
    %c0_i32_46 = arith.constant 0 : i32
    %120 = arith.sitofp %c0_i32_46 : i32 to f32
    %121 = vector.shape_cast %74 : vector<256x1xi1> to vector<256x1xi1>
    %122 = vector.broadcast %121 : vector<256x1xi1> to vector<256x128xi1>
    %123 = vector.broadcast %120 : f32 to vector<256x128xf32>
    %124 = arith.select %122, %119, %123 : vector<256x128xi1>, vector<256x128xf32>
    %c5 = arith.constant 5 : index
    %c0_47 = arith.constant 0 : index
    %c0_48 = arith.constant 0 : index
    %125 = vector.load %arg3[%c5, %c0_47, %c0_48] : memref<9x128x128xf32, #tpu.memory_space<vmem>>, vector<1x128x128xf32>
    %126 = vector.shape_cast %125 : vector<1x128x128xf32> to vector<128x128xf32>
    %cst_49 = arith.constant dense<0.000000e+00> : vector<256x128xf32>
    %127 = tpu.matmul %124, %126, %cst_49 {dimension_numbers = #tpu.dot_dimension_numbers<[1], [0], [0], [1], [0, 0, 1, 1], [], []>} : vector<256x128xf32>, vector<128x128xf32>, vector<256x128xf32> -> vector<256x128xf32>
    %128 = arith.addf %117, %127 : vector<256x128xf32>
    %129 = vector.extract_strided_slice %53 {offsets = [0, 0], sizes = [255, 128], strides = [1, 1]} : vector<256x128xf32> to vector<255x128xf32>
    %130 = tpu.concatenate %75, %129 in 0 : vector<1x128xf32>, vector<255x128xf32> -> vector<256x128xf32>
    %c0_i32_50 = arith.constant 0 : i32
    %131 = arith.sitofp %c0_i32_50 : i32 to f32
    %132 = vector.shape_cast %72 : vector<256x1xi1> to vector<256x1xi1>
    %133 = vector.broadcast %132 : vector<256x1xi1> to vector<256x128xi1>
    %134 = vector.broadcast %131 : f32 to vector<256x128xf32>
    %135 = arith.select %133, %130, %134 : vector<256x128xi1>, vector<256x128xf32>
    %c6 = arith.constant 6 : index
    %c0_51 = arith.constant 0 : index
    %c0_52 = arith.constant 0 : index
    %136 = vector.load %arg3[%c6, %c0_51, %c0_52] : memref<9x128x128xf32, #tpu.memory_space<vmem>>, vector<1x128x128xf32>
    %137 = vector.shape_cast %136 : vector<1x128x128xf32> to vector<128x128xf32>
    %cst_53 = arith.constant dense<0.000000e+00> : vector<256x128xf32>
    %138 = tpu.matmul %135, %137, %cst_53 {dimension_numbers = #tpu.dot_dimension_numbers<[1], [0], [0], [1], [0, 0, 1, 1], [], []>} : vector<256x128xf32>, vector<128x128xf32>, vector<256x128xf32> -> vector<256x128xf32>
    %139 = arith.addf %128, %138 : vector<256x128xf32>
    %c7 = arith.constant 7 : index
    %c0_54 = arith.constant 0 : index
    %c0_55 = arith.constant 0 : index
    %140 = vector.load %arg3[%c7, %c0_54, %c0_55] : memref<9x128x128xf32, #tpu.memory_space<vmem>>, vector<1x128x128xf32>
    %141 = vector.shape_cast %140 : vector<1x128x128xf32> to vector<128x128xf32>
    %cst_56 = arith.constant dense<0.000000e+00> : vector<256x128xf32>
    %142 = tpu.matmul %53, %141, %cst_56 {dimension_numbers = #tpu.dot_dimension_numbers<[1], [0], [0], [1], [0, 0, 1, 1], [], []>} : vector<256x128xf32>, vector<128x128xf32>, vector<256x128xf32> -> vector<256x128xf32>
    %143 = arith.addf %139, %142 : vector<256x128xf32>
    %144 = vector.extract_strided_slice %53 {offsets = [1, 0], sizes = [255, 128], strides = [1, 1]} : vector<256x128xf32> to vector<255x128xf32>
    %145 = tpu.concatenate %144, %75 in 0 : vector<255x128xf32>, vector<1x128xf32> -> vector<256x128xf32>
    %c0_i32_57 = arith.constant 0 : i32
    %146 = arith.sitofp %c0_i32_57 : i32 to f32
    %147 = vector.shape_cast %74 : vector<256x1xi1> to vector<256x1xi1>
    %148 = vector.broadcast %147 : vector<256x1xi1> to vector<256x128xi1>
    %149 = vector.broadcast %146 : f32 to vector<256x128xf32>
    %150 = arith.select %148, %145, %149 : vector<256x128xi1>, vector<256x128xf32>
    %c8 = arith.constant 8 : index
    %c0_58 = arith.constant 0 : index
    %c0_59 = arith.constant 0 : index
    %151 = vector.load %arg3[%c8, %c0_58, %c0_59] : memref<9x128x128xf32, #tpu.memory_space<vmem>>, vector<1x128x128xf32>
    %152 = vector.shape_cast %151 : vector<1x128x128xf32> to vector<128x128xf32>
    %cst_60 = arith.constant dense<0.000000e+00> : vector<256x128xf32>
    %153 = tpu.matmul %150, %152, %cst_60 {dimension_numbers = #tpu.dot_dimension_numbers<[1], [0], [0], [1], [0, 0, 1, 1], [], []>} : vector<256x128xf32>, vector<128x128xf32>, vector<256x128xf32> -> vector<256x128xf32>
    %154 = arith.addf %143, %153 : vector<256x128xf32>
    %c0_61 = arith.constant 0 : index
    %c0_62 = arith.constant 0 : index
    %c0_63 = arith.constant 0 : index
    %155 = vector.load %arg6[%c0_61, %c0_62, %c0_63] : memref<1x256x128xf32, #tpu.memory_space<vmem>>, vector<1x256x128xf32>
    %156 = vector.shape_cast %155 : vector<1x256x128xf32> to vector<256x128xf32>
    %157 = vector.shape_cast %154 : vector<256x128xf32> to vector<1x256x128xf32>
    tpu.vector_store %arg6[%c0_61, %c0_62, %c0_63], %157 {strides = array<i32>} : memref<1x256x128xf32, #tpu.memory_space<vmem>>, vector<1x256x128xf32>,
    %cst_64 = arith.constant dense<0.000000e+00> : vector<128xf32>
    %158 = vector.multi_reduction <add>, %154, %cst_64 [0] : vector<256x128xf32> to vector<128xf32>
    %159 = vector.shape_cast %158 : vector<128xf32> to vector<1x128xf32>
    %160 = arith.mulf %154, %154 : vector<256x128xf32>
    %cst_65 = arith.constant dense<0.000000e+00> : vector<128xf32>
    %161 = vector.multi_reduction <add>, %160, %cst_65 [0] : vector<256x128xf32> to vector<128xf32>
    %162 = vector.shape_cast %161 : vector<128xf32> to vector<1x128xf32>
    %163 = tpu.concatenate %159, %162 in 0 : vector<1x128xf32>, vector<1x128xf32> -> vector<2x128xf32>
    %c0_66 = arith.constant 0 : index
    %c0_67 = arith.constant 0 : index
    %c0_68 = arith.constant 0 : index
    %c0_69 = arith.constant 0 : index
    %164 = vector.load %arg7[%c0_66, %c0_67, %c0_68, %c0_69] : memref<1x1x2x128xf32, #tpu.memory_space<vmem>>, vector<1x1x2x128xf32>
    %165 = vector.shape_cast %164 : vector<1x1x2x128xf32> to vector<2x128xf32>
    %166 = vector.shape_cast %163 : vector<2x128xf32> to vector<1x1x2x128xf32>
    tpu.vector_store %arg7[%c0_66, %c0_67, %c0_68, %c0_69], %166 {strides = array<i32>} : memref<1x1x2x128xf32, #tpu.memory_space<vmem>>, vector<1x1x2x128xf32>,
    return
  }
  func.func @transform_0(%arg0: i32, %arg1: i32) -> (i32, i32, i32) {
    %c0_i32 = arith.constant 0 : i32
    %c0_i32_0 = arith.constant 0 : i32
    %c0_i32_1 = arith.constant 0 : i32
    return %arg0, %c0_i32, %c0_i32_0 : i32, i32, i32
  }
  func.func @transform_1(%arg0: i32, %arg1: i32) -> (i32, i32, i32) {
    %c0_i32 = arith.constant 0 : i32
    %c0_i32_0 = arith.constant 0 : i32
    %c0_i32_1 = arith.constant 0 : i32
    %c0_i32_2 = arith.constant 0 : i32
    return %c0_i32, %c0_i32_0, %c0_i32_1 : i32, i32, i32
  }
  func.func @transform_2(%arg0: i32, %arg1: i32) -> (i32, i32) {
    %c0_i32 = arith.constant 0 : i32
    %c0_i32_0 = arith.constant 0 : i32
    %c0_i32_1 = arith.constant 0 : i32
    return %c0_i32, %c0_i32_0 : i32, i32
  }
  func.func @transform_3(%arg0: i32, %arg1: i32) -> (i32, i32) {
    %c0_i32 = arith.constant 0 : i32
    %c0_i32_0 = arith.constant 0 : i32
    %c0_i32_1 = arith.constant 0 : i32
    return %c0_i32, %c0_i32_0 : i32, i32
  }
  func.func @transform_4(%arg0: i32, %arg1: i32) -> (i32, i32, i32) {
    %c0_i32 = arith.constant 0 : i32
    %c0_i32_0 = arith.constant 0 : i32
    return %arg0, %arg1, %c0_i32 : i32, i32, i32
  }
  func.func @transform_5(%arg0: i32, %arg1: i32) -> (i32, i32, i32, i32) {
    %c0_i32 = arith.constant 0 : i32
    %c0_i32_0 = arith.constant 0 : i32
    %c0_i32_1 = arith.constant 0 : i32
    return %arg0, %arg1, %c0_i32, %c0_i32_0 : i32, i32, i32, i32
  }
}

module attributes {stable_mosaic.version = 11 : i64} {
  func.func @_fused_conv1x1_kernel(%arg0: i32, %arg1: memref<512x128xf32, #tpu.memory_space<vmem>>, %arg2: memref<512x128xf32, #tpu.memory_space<vmem>>, %arg3: memref<128x128xf32, #tpu.memory_space<vmem>>, %arg4: memref<1x128xf32, #tpu.memory_space<vmem>>, %arg5: memref<1x128xf32, #tpu.memory_space<vmem>>, %arg6: memref<512x128xf32, #tpu.memory_space<vmem>>, %arg7: memref<512x128xf32, #tpu.memory_space<vmem>>, %arg8: memref<1x2x128xf32, #tpu.memory_space<vmem>>) attributes {dimension_semantics = [#tpu.dimension_semantics<parallel>], iteration_bounds = array<i64: 1>, scalar_prefetch = 0 : i64, scratch_operands = 0 : i64, tpu.core_type = #tpu.core_type<tc>, window_params = [{transform_indices = @transform_0, window_bounds = array<i64: 512, 128>}, {transform_indices = @transform_1, window_bounds = array<i64: 512, 128>}, {pipeline_mode = #tpu.pipeline_mode<synchronous>, transform_indices = @transform_2, window_bounds = array<i64: 128, 128>}, {pipeline_mode = #tpu.pipeline_mode<synchronous>, transform_indices = @transform_3, window_bounds = array<i64: 1, 128>}, {pipeline_mode = #tpu.pipeline_mode<synchronous>, transform_indices = @transform_4, window_bounds = array<i64: 1, 128>}, {transform_indices = @transform_5, window_bounds = array<i64: 512, 128>}, {transform_indices = @transform_6, window_bounds = array<i64: 512, 128>}, {transform_indices = @transform_7, window_bounds = array<i64: 1, 2, 128>}]} {
    %c0 = arith.constant 0 : index
    %c0_0 = arith.constant 0 : index
    %0 = vector.load %arg1[%c0, %c0_0] : memref<512x128xf32, #tpu.memory_space<vmem>>, vector<512x128xf32>
    %c0_1 = arith.constant 0 : index
    %c0_2 = arith.constant 0 : index
    %1 = vector.load %arg4[%c0_1, %c0_2] : memref<1x128xf32, #tpu.memory_space<vmem>>, vector<1x128xf32>
    %2 = vector.broadcast %1 : vector<1x128xf32> to vector<512x128xf32>
    %3 = arith.mulf %0, %2 : vector<512x128xf32>
    %c0_3 = arith.constant 0 : index
    %c0_4 = arith.constant 0 : index
    %4 = vector.load %arg5[%c0_3, %c0_4] : memref<1x128xf32, #tpu.memory_space<vmem>>, vector<1x128xf32>
    %5 = vector.broadcast %4 : vector<1x128xf32> to vector<512x128xf32>
    %6 = arith.addf %3, %5 : vector<512x128xf32>
    %cst = arith.constant 0.000000e+00 : f32
    %7 = vector.broadcast %cst : f32 to vector<512x128xf32>
    %8 = arith.cmpf ogt, %6, %7 : vector<512x128xf32>
    %cst_5 = arith.constant 1.000000e-01 : f32
    %9 = vector.broadcast %cst_5 : f32 to vector<512x128xf32>
    %10 = arith.mulf %9, %6 : vector<512x128xf32>
    %11 = arith.select %8, %6, %10 : vector<512x128xi1>, vector<512x128xf32>
    %c0_6 = arith.constant 0 : index
    %c0_7 = arith.constant 0 : index
    %12 = vector.load %arg2[%c0_6, %c0_7] : memref<512x128xf32, #tpu.memory_space<vmem>>, vector<512x128xf32>
    %13 = arith.addf %11, %12 : vector<512x128xf32>
    %c0_8 = arith.constant 0 : index
    %c0_9 = arith.constant 0 : index
    %14 = vector.load %arg6[%c0_8, %c0_9] : memref<512x128xf32, #tpu.memory_space<vmem>>, vector<512x128xf32>
    tpu.vector_store %arg6[%c0_8, %c0_9], %13 {strides = array<i32>} : memref<512x128xf32, #tpu.memory_space<vmem>>, vector<512x128xf32>,
    %c0_10 = arith.constant 0 : index
    %c0_11 = arith.constant 0 : index
    %15 = vector.load %arg3[%c0_10, %c0_11] : memref<128x128xf32, #tpu.memory_space<vmem>>, vector<128x128xf32>
    %cst_12 = arith.constant dense<0.000000e+00> : vector<512x128xf32>
    %16 = tpu.matmul %13, %15, %cst_12 {dimension_numbers = #tpu.dot_dimension_numbers<[1], [0], [0], [1], [0, 0, 1, 1], [], []>} : vector<512x128xf32>, vector<128x128xf32>, vector<512x128xf32> -> vector<512x128xf32>
    %c0_13 = arith.constant 0 : index
    %c0_14 = arith.constant 0 : index
    %17 = vector.load %arg7[%c0_13, %c0_14] : memref<512x128xf32, #tpu.memory_space<vmem>>, vector<512x128xf32>
    tpu.vector_store %arg7[%c0_13, %c0_14], %16 {strides = array<i32>} : memref<512x128xf32, #tpu.memory_space<vmem>>, vector<512x128xf32>,
    %18 = tpu.iota {dimensions = array<i32: 0>} : vector<512x1xi32>
    %c512_i32 = arith.constant 512 : i32
    %19 = arith.muli %arg0, %c512_i32 : i32
    %20 = vector.broadcast %19 : i32 to vector<512x1xi32>
    %21 = arith.addi %18, %20 : vector<512x1xi32>
    %c512_i32_15 = arith.constant 512 : i32
    %22 = vector.broadcast %c512_i32_15 : i32 to vector<512x1xi32>
    %23 = arith.cmpi slt, %21, %22 : vector<512x1xi32>
    %cst_16 = arith.constant 0.000000e+00 : f32
    %24 = vector.shape_cast %23 : vector<512x1xi1> to vector<512x1xi1>
    %25 = vector.broadcast %24 : vector<512x1xi1> to vector<512x128xi1>
    %26 = vector.broadcast %cst_16 : f32 to vector<512x128xf32>
    %27 = arith.select %25, %16, %26 : vector<512x128xi1>, vector<512x128xf32>
    %cst_17 = arith.constant dense<0.000000e+00> : vector<128xf32>
    %28 = vector.multi_reduction <add>, %27, %cst_17 [0] : vector<512x128xf32> to vector<128xf32>
    %29 = vector.shape_cast %28 : vector<128xf32> to vector<1x128xf32>
    %30 = arith.mulf %27, %27 : vector<512x128xf32>
    %cst_18 = arith.constant dense<0.000000e+00> : vector<128xf32>
    %31 = vector.multi_reduction <add>, %30, %cst_18 [0] : vector<512x128xf32> to vector<128xf32>
    %32 = vector.shape_cast %31 : vector<128xf32> to vector<1x128xf32>
    %33 = tpu.concatenate %29, %32 in 0 : vector<1x128xf32>, vector<1x128xf32> -> vector<2x128xf32>
    %c0_19 = arith.constant 0 : index
    %c0_20 = arith.constant 0 : index
    %c0_21 = arith.constant 0 : index
    %34 = vector.load %arg8[%c0_19, %c0_20, %c0_21] : memref<1x2x128xf32, #tpu.memory_space<vmem>>, vector<1x2x128xf32>
    %35 = vector.shape_cast %34 : vector<1x2x128xf32> to vector<2x128xf32>
    %36 = vector.shape_cast %33 : vector<2x128xf32> to vector<1x2x128xf32>
    tpu.vector_store %arg8[%c0_19, %c0_20, %c0_21], %36 {strides = array<i32>} : memref<1x2x128xf32, #tpu.memory_space<vmem>>, vector<1x2x128xf32>,
    return
  }
  func.func @transform_0(%arg0: i32) -> (i32, i32) {
    %c0_i32 = arith.constant 0 : i32
    %c0_i32_0 = arith.constant 0 : i32
    return %arg0, %c0_i32 : i32, i32
  }
  func.func @transform_1(%arg0: i32) -> (i32, i32) {
    %c0_i32 = arith.constant 0 : i32
    %c0_i32_0 = arith.constant 0 : i32
    return %arg0, %c0_i32 : i32, i32
  }
  func.func @transform_2(%arg0: i32) -> (i32, i32) {
    %c0_i32 = arith.constant 0 : i32
    %c0_i32_0 = arith.constant 0 : i32
    %c0_i32_1 = arith.constant 0 : i32
    return %c0_i32, %c0_i32_0 : i32, i32
  }
  func.func @transform_3(%arg0: i32) -> (i32, i32) {
    %c0_i32 = arith.constant 0 : i32
    %c0_i32_0 = arith.constant 0 : i32
    %c0_i32_1 = arith.constant 0 : i32
    return %c0_i32, %c0_i32_0 : i32, i32
  }
  func.func @transform_4(%arg0: i32) -> (i32, i32) {
    %c0_i32 = arith.constant 0 : i32
    %c0_i32_0 = arith.constant 0 : i32
    %c0_i32_1 = arith.constant 0 : i32
    return %c0_i32, %c0_i32_0 : i32, i32
  }
  func.func @transform_5(%arg0: i32) -> (i32, i32) {
    %c0_i32 = arith.constant 0 : i32
    %c0_i32_0 = arith.constant 0 : i32
    return %arg0, %c0_i32 : i32, i32
  }
  func.func @transform_6(%arg0: i32) -> (i32, i32) {
    %c0_i32 = arith.constant 0 : i32
    %c0_i32_0 = arith.constant 0 : i32
    return %arg0, %c0_i32 : i32, i32
  }
  func.func @transform_7(%arg0: i32) -> (i32, i32, i32) {
    %c0_i32 = arith.constant 0 : i32
    %c0_i32_0 = arith.constant 0 : i32
    %c0_i32_1 = arith.constant 0 : i32
    return %arg0, %c0_i32, %c0_i32_0 : i32, i32, i32
  }
}

module attributes {stable_mosaic.version = 11 : i64} {
  func.func @_bn_leaky_kernel(%arg0: i32, %arg1: memref<512x128xf32, #tpu.memory_space<vmem>>, %arg2: memref<512x128xf32, #tpu.memory_space<vmem>>, %arg3: memref<1x128xf32, #tpu.memory_space<vmem>>, %arg4: memref<1x128xf32, #tpu.memory_space<vmem>>, %arg5: memref<512x128xf32, #tpu.memory_space<vmem>>) attributes {dimension_semantics = [#tpu.dimension_semantics<parallel>], iteration_bounds = array<i64: 1>, scalar_prefetch = 0 : i64, scratch_operands = 0 : i64, tpu.core_type = #tpu.core_type<tc>, window_params = [{transform_indices = @transform_0, window_bounds = array<i64: 512, 128>}, {transform_indices = @transform_1, window_bounds = array<i64: 512, 128>}, {pipeline_mode = #tpu.pipeline_mode<synchronous>, transform_indices = @transform_2, window_bounds = array<i64: 1, 128>}, {pipeline_mode = #tpu.pipeline_mode<synchronous>, transform_indices = @transform_3, window_bounds = array<i64: 1, 128>}, {transform_indices = @transform_4, window_bounds = array<i64: 512, 128>}]} {
    %c0 = arith.constant 0 : index
    %c0_0 = arith.constant 0 : index
    %0 = vector.load %arg1[%c0, %c0_0] : memref<512x128xf32, #tpu.memory_space<vmem>>, vector<512x128xf32>
    %c0_1 = arith.constant 0 : index
    %c0_2 = arith.constant 0 : index
    %1 = vector.load %arg3[%c0_1, %c0_2] : memref<1x128xf32, #tpu.memory_space<vmem>>, vector<1x128xf32>
    %2 = vector.broadcast %1 : vector<1x128xf32> to vector<512x128xf32>
    %3 = arith.mulf %0, %2 : vector<512x128xf32>
    %c0_3 = arith.constant 0 : index
    %c0_4 = arith.constant 0 : index
    %4 = vector.load %arg4[%c0_3, %c0_4] : memref<1x128xf32, #tpu.memory_space<vmem>>, vector<1x128xf32>
    %5 = vector.broadcast %4 : vector<1x128xf32> to vector<512x128xf32>
    %6 = arith.addf %3, %5 : vector<512x128xf32>
    %cst = arith.constant 0.000000e+00 : f32
    %7 = vector.broadcast %cst : f32 to vector<512x128xf32>
    %8 = arith.cmpf ogt, %6, %7 : vector<512x128xf32>
    %cst_5 = arith.constant 1.000000e-01 : f32
    %9 = vector.broadcast %cst_5 : f32 to vector<512x128xf32>
    %10 = arith.mulf %9, %6 : vector<512x128xf32>
    %11 = arith.select %8, %6, %10 : vector<512x128xi1>, vector<512x128xf32>
    %c0_6 = arith.constant 0 : index
    %c0_7 = arith.constant 0 : index
    %12 = vector.load %arg2[%c0_6, %c0_7] : memref<512x128xf32, #tpu.memory_space<vmem>>, vector<512x128xf32>
    %13 = arith.addf %11, %12 : vector<512x128xf32>
    %c0_8 = arith.constant 0 : index
    %c0_9 = arith.constant 0 : index
    %14 = vector.load %arg5[%c0_8, %c0_9] : memref<512x128xf32, #tpu.memory_space<vmem>>, vector<512x128xf32>
    tpu.vector_store %arg5[%c0_8, %c0_9], %13 {strides = array<i32>} : memref<512x128xf32, #tpu.memory_space<vmem>>, vector<512x128xf32>,
    return
  }
  func.func @transform_0(%arg0: i32) -> (i32, i32) {
    %c0_i32 = arith.constant 0 : i32
    %c0_i32_0 = arith.constant 0 : i32
    return %arg0, %c0_i32 : i32, i32
  }
  func.func @transform_1(%arg0: i32) -> (i32, i32) {
    %c0_i32 = arith.constant 0 : i32
    %c0_i32_0 = arith.constant 0 : i32
    return %arg0, %c0_i32 : i32, i32
  }
  func.func @transform_2(%arg0: i32) -> (i32, i32) {
    %c0_i32 = arith.constant 0 : i32
    %c0_i32_0 = arith.constant 0 : i32
    %c0_i32_1 = arith.constant 0 : i32
    return %c0_i32, %c0_i32_0 : i32, i32
  }
  func.func @transform_3(%arg0: i32) -> (i32, i32) {
    %c0_i32 = arith.constant 0 : i32
    %c0_i32_0 = arith.constant 0 : i32
    %c0_i32_1 = arith.constant 0 : i32
    return %c0_i32, %c0_i32_0 : i32, i32
  }
  func.func @transform_4(%arg0: i32) -> (i32, i32) {
    %c0_i32 = arith.constant 0 : i32
    %c0_i32_0 = arith.constant 0 : i32
    return %arg0, %c0_i32 : i32, i32
  }
}

</mosaic_0001>

<bundles_post_ra>
// kernel: residual_block_forward.5
= control target key start
LH: loop header
LB: loop body
LE: loop exit
PB: predicated region body
PF: predicated region fallthrough
CT: control target
= control target key end

     0   :  { %9 = vsyncpa [#allocation3], 0  ;;  %s1829_s0 = inlined_call_operand.hbm [shape: f32[512,128], index: 0, kind: input, shape index: {}]   ;;  %s1830_s1 = inlined_call_operand.hbm [shape: f32[128,128], index: 1, kind: input, shape index: {}]   ;;  %s1831_s2 = inlined_call_operand.hbm [shape: f32[512,128], index: 2, kind: output, shape index: {0}]   ;;  %s1832_s3 = inlined_call_operand.hbm [shape: f32[1,2,128], index: 3, kind: output, shape index: {1}]  }
   0x1   :  { %10 = vsyncpa [#allocation6], 0 }
   0x2   :  { %11 = vsyncpa [#allocation4], 0 }
   0x3   :  { %12 = vsyncpa [#allocation9], 0  ;;  %s1554_s12 = smov [#allocation2]   ;;  %s1458_s16 = scalar_lea.hbm %s1829_s0, 8192 }
   0x4   :  { %s18_s13 = sshll.u32 %s1554_s12, 4  ;;  %p1459_p0 = scmp.ne.s32.totalorder %s1829_s0, %s1458_s16  ;;  %s19_s13 = int_to_ptr.vmem [resolvable:$true] %s18_s13 }
   0x5   :  { %p1462_p1 = scmp.lt.u32.totalorder %s1458_s16, %s1829_s0 }
   0x7   :  { %p1464_p2 = pnand %p1462_p1, %p1459_p0 }
   0x9   :  { %1467 = shalt.err (!%p1464_p2)
}
   0xa   :  { %s1468_s21 = scalar_lea.vmem %s19_s13, 8192  ;;  %p1473_p4 = scmp.lt.s32.totalorder %s19_s13, %s19_s13 }
   0xb   :  { %p1469_p3 = scmp.ne.s32.totalorder %s19_s13, %s1468_s21  ;;  %p1474_p5 = scmp.lt.s32.totalorder %s1468_s21, %s1468_s21 }
   0xd   :  { %p1475_p6 = por %p1474_p5, %p1473_p4 }
   0xf   :  { %p1476_p7 = pnand %p1475_p6, %p1469_p3 }
  0x11   :  { %1479 = shalt.err (!%p1476_p7)
}
  0x12   :  { %s1555_s22 = smov 128   ;;  %s1556_s23 = smov 8  }
  0x13   :  { %24 = dma.hbm_to_vmem [thread:$0]  %s1829_s0, 8192, %s19_s13, [#allocation3], %s1555_s22, %s1555_s22, %s1556_s23  }
  0x14   :  { %s1557_s26 = smov [#allocation5]   ;;  %s1480_s30 = scalar_lea.hbm %s1830_s1, 2048 }
  0x15   :  { %s30_s27 = sshll.u32 %s1557_s26, 4  ;;  %p1481_p8 = scmp.ne.s32.totalorder %s1830_s1, %s1480_s30  ;;  %s31_s27 = int_to_ptr.vmem [resolvable:$true] %s30_s27 }
  0x16   :  { %p1484_p9 = scmp.lt.u32.totalorder %s1480_s30, %s1830_s1 }
  0x18   :  { %p1486_p10 = pnand %p1484_p9, %p1481_p8 }
  0x1a   :  { %1489 = shalt.err (!%p1486_p10)
}
  0x1b   :  { %s1490_s8 = scalar_lea.vmem %s31_s27, 2048  ;;  %p1495_p12 = scmp.lt.s32.totalorder %s31_s27, %s31_s27 }
  0x1c   :  { %p1491_p11 = scmp.ne.s32.totalorder %s31_s27, %s1490_s8  ;;  %p1496_p13 = scmp.lt.s32.totalorder %s1490_s8, %s1490_s8 }
  0x1e   :  { %p1497_p0 = por %p1496_p13, %p1495_p12 }
  0x20   :  { %p1498_p1 = pnand %p1497_p0, %p1491_p11 }
  0x22   :  { %1501 = shalt.err (!%p1498_p1)
}
  0x23   :  { %36 = dma.hbm_to_vmem [thread:$0]  %s1830_s1, 2048, %s31_s27, [#allocation6], %s1555_s22, %s1555_s22, %s1556_s23  }
  0x24   :  { %1546 = dma.done.wait [#allocation3], 8192  }
  0x25   :  { %1547 = vsyncadd [#allocation3], 4294959104 }
  0x26   :  { %1548 = dma.done.wait [#allocation6], 2048  }
  0x27   :  { %1549 = vsyncadd [#allocation6], 4294965248  ;;  %v107_v0 = vld [vmem:[#allocation5] sm:$0xff]  ;;  %v108_v1 = vld [vmem:[#allocation5 + $0x8] sm:$0xff]  ;;  %s1558_s1 = smov [#allocation7]  }
  0x28   :  { %v109_v2 = vld [vmem:[#allocation5 + $0x10] sm:$0xff]  ;;  %v1404_v3 = vpack.c.bf16 %v108_v1, %v107_v0  ;;  %v110_v4 = vld [vmem:[#allocation5 + $0x18] sm:$0xff]  ;;  %v111_v6 = vld [vmem:[#allocation5 + $0x20] sm:$0xff]  ;;  %s1169_s10 = sshll.u32 %s1558_s1, 4  ;;  %s1170_s10 = int_to_ptr.vmem [resolvable:$true] %s1169_s10 }
  0x29   :  { %v1408_v5 = vpack.c.bf16 %v110_v4, %v109_v2  ;;  %v112_v7 = vld [vmem:[#allocation5 + $0x28] sm:$0xff]  ;;  %v43_v9 = vld [vmem:[#allocation2] sm:$0xff]  ;;  %v113_v10 = vld [vmem:[#allocation5 + $0x30] sm:$0xff]  ;;  %s1502_s11 = scalar_lea.vmem %s1170_s10, 8192  ;;  %p1507_p3 = scmp.lt.s32.totalorder %s1170_s10, %s1170_s10 }
  0x2a   :  { %1405 = vmatprep.subr.bf16.mxu0 %v1404_v3  ;;  %1436 = vmatprep.subr.bf16.mxu1 %v1404_v3  ;;  %v1412_v8 = vpack.c.bf16 %v112_v7, %v111_v6  ;;  %v114_v11 = vld [vmem:[#allocation5 + $0x38] sm:$0xff]  ;;  %v115_v13 = vld [vmem:[#allocation5 + $0x40] sm:$0xff]  ;;  %v116_v14 = vld [vmem:[#allocation5 + $0x48] sm:$0xff]  ;;  %p1503_p2 = scmp.ne.s32.totalorder %s1170_s10, %s1502_s11  ;;  %p1508_p4 = scmp.lt.s32.totalorder %s1502_s11, %s1502_s11 }
  0x2b   :  { %1407 = vmatpush3.bf16.msra.mxu0 %v1404_v3  ;;  %1444 = vmatpush3.bf16.msra.mxu1 %v1404_v3  ;;  %v1416_v12 = vpack.c.bf16 %v114_v11, %v113_v10  ;;  %v1420_v15 = vpack.c.bf16 %v116_v14, %v115_v13  ;;  %v117_v16 = vld [vmem:[#allocation5 + $0x50] sm:$0xff]  ;;  %v118_v17 = vld [vmem:[#allocation5 + $0x58] sm:$0xff]  ;;  %v75_v18 = vld [vmem:[#allocation2 + $0x100] sm:$0xff] }
  0x2c   :  { %1409 = vmatprep.subr.bf16.mxu0 %v1408_v5  ;;  %1437 = vmatprep.subr.bf16.mxu1 %v1408_v5  ;;  %v1424_v19 = vpack.c.bf16 %v118_v17, %v117_v16  ;;  %v119_v20 = vld [vmem:[#allocation5 + $0x60] sm:$0xff]  ;;  %v120_v21 = vld [vmem:[#allocation5 + $0x68] sm:$0xff]  ;;  %v121_v23 = vld [vmem:[#allocation5 + $0x70] sm:$0xff]  ;;  %p1509_p5 = por %p1508_p4, %p1507_p3 }
  0x2d   :  { %1308 = vmatprep.mubr.f32.mxu0 %v43_v9  ;;  %1356 = vmatprep.mubr.f32.mxu1 %v75_v18  ;;  %v1428_v22 = vpack.c.bf16 %v120_v21, %v119_v20  ;;  %v122_v24 = vld [vmem:[#allocation5 + $0x78] sm:$0xff]  ;;  %v44_v26 = vld [vmem:[#allocation2 + $0x8] sm:$0xff]  ;;  %v45_v28 = vld [vmem:[#allocation2 + $0x10] sm:$0xff] }
  0x2e   :  { %v1432_v25 = vpack.c.bf16 %v122_v24, %v121_v23  ;;  %v76_v27 = vld [vmem:[#allocation2 + $0x108] sm:$0xff]  ;;  %v77_v29 = vld [vmem:[#allocation2 + $0x110] sm:$0xff]  ;;  %v46_v30 = vld [vmem:[#allocation2 + $0x18] sm:$0xff]  ;;  %p1510_p6 = pnand %p1509_p5, %p1503_p2 }
  0x2f   :  { %1411 = vmatpush3.bf16.msra.mxu0 %v1408_v5  ;;  %1445 = vmatpush3.bf16.msra.mxu1 %v1408_v5  ;;  %v78_v31 = vld [vmem:[#allocation2 + $0x118] sm:$0xff]  ;;  %v47_v32 = vld [vmem:[#allocation2 + $0x20] sm:$0xff]  ;;  %v48_v34 = vld [vmem:[#allocation2 + $0x28] sm:$0xff] }
  0x30   :  { %1413 = vmatprep.subr.bf16.mxu0 %v1412_v8  ;;  %1438 = vmatprep.subr.bf16.mxu1 %v1412_v8  ;;  %v79_v33 = vld [vmem:[#allocation2 + $0x120] sm:$0xff]  ;;  %v80_v35 = vld [vmem:[#allocation2 + $0x128] sm:$0xff]  ;;  %v49_v36 = vld [vmem:[#allocation2 + $0x30] sm:$0xff] }
  0x31   :  { %v81_v37 = vld [vmem:[#allocation2 + $0x130] sm:$0xff]  ;;  %v50_v38 = vld [vmem:[#allocation2 + $0x38] sm:$0xff]  ;;  %v51_v40 = vld [vmem:[#allocation2 + $0x40] sm:$0xff] }
  0x32   :  { %v82_v39 = vld [vmem:[#allocation2 + $0x138] sm:$0xff]  ;;  %v83_v41 = vld [vmem:[#allocation2 + $0x140] sm:$0xff]  ;;  %v52_v42 = vld [vmem:[#allocation2 + $0x48] sm:$0xff] }
  0x33   :  { %1415 = vmatpush3.bf16.msra.mxu0 %v1412_v8  ;;  %1446 = vmatpush3.bf16.msra.mxu1 %v1412_v8  ;;  %v84_v43 = vld [vmem:[#allocation2 + $0x148] sm:$0xff]  ;;  %v53_v44 = vld [vmem:[#allocation2 + $0x50] sm:$0xff]  ;;  %v54_v46 = vld [vmem:[#allocation2 + $0x58] sm:$0xff] }
  0x34   :  { %1417 = vmatprep.subr.bf16.mxu0 %v1416_v12  ;;  %1439 = vmatprep.subr.bf16.mxu1 %v1416_v12  ;;  %v85_v45 = vld [vmem:[#allocation2 + $0x150] sm:$0xff]  ;;  %v86_v47 = vld [vmem:[#allocation2 + $0x158] sm:$0xff]  ;;  %v55_v48 = vld [vmem:[#allocation2 + $0x60] sm:$0xff] }
  0x35   :  { %v87_v49 = vld [vmem:[#allocation2 + $0x160] sm:$0xff]  ;;  %v56_v50 = vld [vmem:[#allocation2 + $0x68] sm:$0xff]  ;;  %v57_v52 = vld [vmem:[#allocation2 + $0x70] sm:$0xff] }
  0x36   :  { %v88_v51 = vld [vmem:[#allocation2 + $0x168] sm:$0xff]  ;;  %v89_v53 = vld [vmem:[#allocation2 + $0x170] sm:$0xff]  ;;  %v58_v54 = vld [vmem:[#allocation2 + $0x78] sm:$0xff] }
  0x37   :  { %1419 = vmatpush3.bf16.msra.mxu0 %v1416_v12  ;;  %1447 = vmatpush3.bf16.msra.mxu1 %v1416_v12  ;;  %v90_v55 = vld [vmem:[#allocation2 + $0x178] sm:$0xff]  ;;  %v59_v56 = vld [vmem:[#allocation2 + $0x80] sm:$0xff]  ;;  %v60_v58 = vld [vmem:[#allocation2 + $0x88] sm:$0xff] }
  0x38   :  { %1421 = vmatprep.subr.bf16.mxu0 %v1420_v15  ;;  %1440 = vmatprep.subr.bf16.mxu1 %v1420_v15  ;;  %v91_v57 = vld [vmem:[#allocation2 + $0x180] sm:$0xff]  ;;  %v92_v59 = vld [vmem:[#allocation2 + $0x188] sm:$0xff]  ;;  %v61_v60 = vld [vmem:[#allocation2 + $0x90] sm:$0xff] }
  0x39   :  { %v93_v61 = vld [vmem:[#allocation2 + $0x190] sm:$0xff]  ;;  %v62_v62 = vld [vmem:[#allocation2 + $0x98] sm:$0xff]  ;;  %v63_v0 = vld [vmem:[#allocation2 + $0xa0] sm:$0xff] }
  0x3a   :  { %v94_v63 = vld [vmem:[#allocation2 + $0x198] sm:$0xff]  ;;  %v95_v1 = vld [vmem:[#allocation2 + $0x1a0] sm:$0xff]  ;;  %v64_v2 = vld [vmem:[#allocation2 + $0xa8] sm:$0xff] }
  0x3b   :  { %1423 = vmatpush3.bf16.msra.mxu0 %v1420_v15  ;;  %1448 = vmatpush3.bf16.msra.mxu1 %v1420_v15  ;;  %v96_v3 = vld [vmem:[#allocation2 + $0x1a8] sm:$0xff]  ;;  %v65_v4 = vld [vmem:[#allocation2 + $0xb0] sm:$0xff]  ;;  %v66_v6 = vld [vmem:[#allocation2 + $0xb8] sm:$0xff] }
  0x3c   :  { %1425 = vmatprep.subr.bf16.mxu0 %v1424_v19  ;;  %1441 = vmatprep.subr.bf16.mxu1 %v1424_v19  ;;  %v97_v5 = vld [vmem:[#allocation2 + $0x1b0] sm:$0xff]  ;;  %v98_v7 = vld [vmem:[#allocation2 + $0x1b8] sm:$0xff]  ;;  %v67_v8 = vld [vmem:[#allocation2 + $0xc0] sm:$0xff] }
  0x3d   :  { %v99_v9 = vld [vmem:[#allocation2 + $0x1c0] sm:$0xff]  ;;  %v68_v10 = vld [vmem:[#allocation2 + $0xc8] sm:$0xff]  ;;  %v69_v12 = vld [vmem:[#allocation2 + $0xd0] sm:$0xff] }
  0x3e   :  { %v100_v11 = vld [vmem:[#allocation2 + $0x1c8] sm:$0xff]  ;;  %v101_v13 = vld [vmem:[#allocation2 + $0x1d0] sm:$0xff]  ;;  %v70_v14 = vld [vmem:[#allocation2 + $0xd8] sm:$0xff] }
  0x3f   :  { %1427 = vmatpush3.bf16.msra.mxu0 %v1424_v19  ;;  %1449 = vmatpush3.bf16.msra.mxu1 %v1424_v19  ;;  %v102_v15 = vld [vmem:[#allocation2 + $0x1d8] sm:$0xff]  ;;  %v71_v16 = vld [vmem:[#allocation2 + $0xe0] sm:$0xff]  ;;  %v72_v18 = vld [vmem:[#allocation2 + $0xe8] sm:$0xff] }
  0x40   :  { %1429 = vmatprep.subr.bf16.mxu0 %v1428_v22  ;;  %1442 = vmatprep.subr.bf16.mxu1 %v1428_v22  ;;  %v103_v17 = vld [vmem:[#allocation2 + $0x1e0] sm:$0xff]  ;;  %v104_v19 = vld [vmem:[#allocation2 + $0x1e8] sm:$0xff]  ;;  %v73_v20 = vld [vmem:[#allocation2 + $0xf0] sm:$0xff] }
  0x41   :  { %v105_v21 = vld [vmem:[#allocation2 + $0x1f0] sm:$0xff]  ;;  %v106_v23 = vld [vmem:[#allocation2 + $0x1f8] sm:$0xff] }
  0x43   :  { %1431 = vmatpush3.bf16.msra.mxu0 %v1428_v22  ;;  %1450 = vmatpush3.bf16.msra.mxu1 %v1428_v22  ;;  %v74_v22 = vld [vmem:[#allocation2 + $0xf8] sm:$0xff] }
  0x44   :  { %1433 = vmatprep.subr.bf16.mxu0 %v1432_v25  ;;  %1443 = vmatprep.subr.bf16.mxu1 %v1432_v25 }
  0x47   :  { %1435 = vmatpush3.bf16.msra.mxu0 %v1432_v25  ;;  %1451 = vmatpush3.bf16.msra.mxu1 %v1432_v25 }
  0x4a   :  { %1309 = vmatmul.mubr.f32.vlgmr.msra.gmra.mrb[0].mxu0 %v44_v26  ;;  %1357 = vmatmul.mubr.f32.vlgmr.msra.gmra.mrb[0].mxu1 %v76_v27 }
  0x4b   :  { %1311 = vmatprep.mubr.f32.mxu0 %v45_v28  ;;  %1359 = vmatprep.mubr.f32.mxu1 %v77_v29 }
  0x4e   :  { %1312 = vmatmul.mubr.f32.gmra.mrb[2].mxu0 %v46_v30  ;;  %1360 = vmatmul.mubr.f32.gmra.mrb[2].mxu1 %v78_v31 }
  0x4f   :  { %1314 = vmatprep.mubr.f32.mxu0 %v47_v32  ;;  %1362 = vmatprep.mubr.f32.mxu1 %v79_v33 }
  0x52   :  { %1315 = vmatmul.mubr.f32.gmra.mrb[4].mxu0 %v48_v34  ;;  %1363 = vmatmul.mubr.f32.gmra.mrb[4].mxu1 %v80_v35 }
  0x53   :  { %1317 = vmatprep.mubr.f32.mxu0 %v49_v36  ;;  %1365 = vmatprep.mubr.f32.mxu1 %v81_v37 }
  0x56   :  { %1318 = vmatmul.mubr.f32.gmra.mrb[6].mxu0 %v50_v38  ;;  %1366 = vmatmul.mubr.f32.gmra.mrb[6].mxu1 %v82_v39 }
  0x57   :  { %1320 = vmatprep.mubr.f32.mxu0 %v51_v40  ;;  %1368 = vmatprep.mubr.f32.mxu1 %v83_v41 }
  0x5a   :  { %1321 = vmatmul.mubr.f32.gmra.mrb[8].mxu0 %v52_v42  ;;  %1369 = vmatmul.mubr.f32.gmra.mrb[8].mxu1 %v84_v43 }
  0x5b   :  { %1323 = vmatprep.mubr.f32.mxu0 %v53_v44  ;;  %1371 = vmatprep.mubr.f32.mxu1 %v85_v45 }
  0x5e   :  { %1324 = vmatmul.mubr.f32.gmra.mrb[10].mxu0 %v54_v46  ;;  %1372 = vmatmul.mubr.f32.gmra.mrb[10].mxu1 %v86_v47 }
  0x5f   :  { %1326 = vmatprep.mubr.f32.mxu0 %v55_v48  ;;  %1374 = vmatprep.mubr.f32.mxu1 %v87_v49 }
  0x62   :  { %1327 = vmatmul.mubr.f32.gmra.mrb[12].mxu0 %v56_v50  ;;  %1375 = vmatmul.mubr.f32.gmra.mrb[12].mxu1 %v88_v51 }
  0x63   :  { %1329 = vmatprep.mubr.f32.mxu0 %v57_v52  ;;  %1377 = vmatprep.mubr.f32.mxu1 %v89_v53 }
  0x66   :  { %1330 = vmatmul.mubr.f32.gmra.mrb[14].mxu0 %v58_v54  ;;  %1378 = vmatmul.mubr.f32.gmra.mrb[14].mxu1 %v90_v55 }
  0x67   :  { %1332 = vmatprep.mubr.f32.mxu0 %v59_v56  ;;  %1380 = vmatprep.mubr.f32.mxu1 %v91_v57 }
  0x6a   :  { %1333 = vmatmul.mubr.f32.gmra.mrb[16].mxu0 %v60_v58  ;;  %1381 = vmatmul.mubr.f32.gmra.mrb[16].mxu1 %v92_v59 }
  0x6b   :  { %1335 = vmatprep.mubr.f32.mxu0 %v61_v60  ;;  %1383 = vmatprep.mubr.f32.mxu1 %v93_v61 }
  0x6e   :  { %1336 = vmatmul.mubr.f32.gmra.mrb[18].mxu0 %v62_v62  ;;  %1384 = vmatmul.mubr.f32.gmra.mrb[18].mxu1 %v94_v63 }
  0x6f   :  { %1338 = vmatprep.mubr.f32.mxu0 %v63_v0  ;;  %1386 = vmatprep.mubr.f32.mxu1 %v95_v1 }
  0x72   :  { %1339 = vmatmul.mubr.f32.gmra.mrb[20].mxu0 %v64_v2  ;;  %1387 = vmatmul.mubr.f32.gmra.mrb[20].mxu1 %v96_v3 }
  0x73   :  { %1341 = vmatprep.mubr.f32.mxu0 %v65_v4  ;;  %1389 = vmatprep.mubr.f32.mxu1 %v97_v5 }
  0x76   :  { %1342 = vmatmul.mubr.f32.gmra.mrb[22].mxu0 %v66_v6  ;;  %1390 = vmatmul.mubr.f32.gmra.mrb[22].mxu1 %v98_v7 }
  0x77   :  { %1344 = vmatprep.mubr.f32.mxu0 %v67_v8  ;;  %1392 = vmatprep.mubr.f32.mxu1 %v99_v9 }
  0x7a   :  { %1345 = vmatmul.mubr.f32.gmra.mrb[24].mxu0 %v68_v10  ;;  %1393 = vmatmul.mubr.f32.gmra.mrb[24].mxu1 %v100_v11 }
  0x7b   :  { %1347 = vmatprep.mubr.f32.mxu0 %v69_v12  ;;  %1395 = vmatprep.mubr.f32.mxu1 %v101_v13 }
  0x7e   :  { %1348 = vmatmul.mubr.f32.gmra.mrb[26].mxu0 %v70_v14  ;;  %1396 = vmatmul.mubr.f32.gmra.mrb[26].mxu1 %v102_v15 }
  0x7f   :  { %1350 = vmatprep.mubr.f32.mxu0 %v71_v16  ;;  %1398 = vmatprep.mubr.f32.mxu1 %v103_v17 }
  0x82   :  { %1351 = vmatmul.mubr.f32.gmra.mrb[28].mxu0 %v72_v18  ;;  %1399 = vmatmul.mubr.f32.gmra.mrb[28].mxu1 %v104_v19 }
  0x83   :  { %1353 = vmatprep.mubr.f32.mxu0 %v73_v20  ;;  %1401 = vmatprep.mubr.f32.mxu1 %v105_v21 }
  0x86   :  { %1354 = vmatmul.mubr.f32.gmra.mrb[30].mxu0 %v74_v22  ;;  %1402 = vmatmul.mubr.f32.gmra.mrb[30].mxu1 %v106_v23 }
 0x11d   :  { %v1310_v24 = vpop.f32.mrb[0].mxu0  ;;  %v1610_v25 = vpop.f32.mrb[0].mxu1 }
 0x11e   :  { %509 = vst [vmem:[#allocation7 + $0x8] sm:$0xff] %v1310_v24  ;;  %v1029_v26 = vmul.f32 %v1310_v24, %v1310_v24  ;;  %v189_v27 = vpop.f32.mrb[1].mxu0  ;;  %541 = vst [vmem:[#allocation7 + $0x108] sm:$0xff] %v1610_v25  ;;  %v1613_v28 = vpop.f32.mrb[1].mxu1 }
 0x11f   :  { %508 = vst [vmem:[#allocation7] sm:$0xff] %v189_v27  ;;  %v959_v29 = vadd.f32 %v1310_v24, %v189_v27  ;;  %v1028_v30 = vmul.f32 %v189_v27, %v189_v27  ;;  %540 = vst [vmem:[#allocation7 + $0x100] sm:$0xff] %v1613_v28 }
 0x121   :  { %v1092_v31 = vadd.f32 %v1029_v26, %v1028_v30  ;;  %v1313_v32 = vpop.f32.mrb[2].mxu0  ;;  %v1616_v33 = vpop.f32.mrb[2].mxu1 }
 0x122   :  { %511 = vst [vmem:[#allocation7 + $0x18] sm:$0xff] %v1313_v32  ;;  %v199_v34 = vpop.f32.mrb[3].mxu0  ;;  %543 = vst [vmem:[#allocation7 + $0x118] sm:$0xff] %v1616_v33  ;;  %v1619_v35 = vpop.f32.mrb[3].mxu1  ;;  %v1031_v38 = vmul.f32 %v1313_v32, %v1313_v32 }
 0x123   :  { %510 = vst [vmem:[#allocation7 + $0x10] sm:$0xff] %v199_v34  ;;  %v960_v36 = vadd.f32 %v959_v29, %v199_v34  ;;  %v1030_v37 = vmul.f32 %v199_v34, %v199_v34  ;;  %542 = vst [vmem:[#allocation7 + $0x110] sm:$0xff] %v1619_v35 }
 0x125   :  { %v1093_v39 = vadd.f32 %v1092_v31, %v1030_v37  ;;  %v1316_v40 = vpop.f32.mrb[4].mxu0  ;;  %v961_v41 = vadd.f32 %v1313_v32, %v960_v36  ;;  %v1622_v42 = vpop.f32.mrb[4].mxu1 }
 0x126   :  { %513 = vst [vmem:[#allocation7 + $0x28] sm:$0xff] %v1316_v40  ;;  %v209_v43 = vpop.f32.mrb[5].mxu0  ;;  %545 = vst [vmem:[#allocation7 + $0x128] sm:$0xff] %v1622_v42  ;;  %v1625_v44 = vpop.f32.mrb[5].mxu1  ;;  %v1033_v48 = vmul.f32 %v1316_v40, %v1316_v40 }
 0x127   :  { %512 = vst [vmem:[#allocation7 + $0x20] sm:$0xff] %v209_v43  ;;  %v962_v45 = vadd.f32 %v961_v41, %v209_v43  ;;  %v1032_v46 = vmul.f32 %v209_v43, %v209_v43  ;;  %v1094_v47 = vadd.f32 %v1093_v39, %v1031_v38  ;;  %544 = vst [vmem:[#allocation7 + $0x120] sm:$0xff] %v1625_v44 }
 0x129   :  { %v1095_v49 = vadd.f32 %v1094_v47, %v1032_v46  ;;  %v1319_v50 = vpop.f32.mrb[6].mxu0  ;;  %v963_v51 = vadd.f32 %v1316_v40, %v962_v45  ;;  %v1628_v52 = vpop.f32.mrb[6].mxu1 }
 0x12a   :  { %515 = vst [vmem:[#allocation7 + $0x38] sm:$0xff] %v1319_v50  ;;  %v219_v53 = vpop.f32.mrb[7].mxu0  ;;  %547 = vst [vmem:[#allocation7 + $0x138] sm:$0xff] %v1628_v52  ;;  %v1631_v54 = vpop.f32.mrb[7].mxu1  ;;  %v1035_v58 = vmul.f32 %v1319_v50, %v1319_v50 }
 0x12b   :  { %514 = vst [vmem:[#allocation7 + $0x30] sm:$0xff] %v219_v53  ;;  %v964_v55 = vadd.f32 %v963_v51, %v219_v53  ;;  %v1034_v56 = vmul.f32 %v219_v53, %v219_v53  ;;  %v1096_v57 = vadd.f32 %v1095_v49, %v1033_v48  ;;  %546 = vst [vmem:[#allocation7 + $0x130] sm:$0xff] %v1631_v54 }
 0x12d   :  { %v1097_v59 = vadd.f32 %v1096_v57, %v1034_v56  ;;  %v1322_v60 = vpop.f32.mrb[8].mxu0  ;;  %v965_v61 = vadd.f32 %v1319_v50, %v964_v55  ;;  %v1634_v62 = vpop.f32.mrb[8].mxu1 }
 0x12e   :  { %517 = vst [vmem:[#allocation7 + $0x48] sm:$0xff] %v1322_v60  ;;  %v229_v63 = vpop.f32.mrb[9].mxu0  ;;  %549 = vst [vmem:[#allocation7 + $0x148] sm:$0xff] %v1634_v62  ;;  %v1637_v0 = vpop.f32.mrb[9].mxu1  ;;  %v1037_v4 = vmul.f32 %v1322_v60, %v1322_v60 }
 0x12f   :  { %516 = vst [vmem:[#allocation7 + $0x40] sm:$0xff] %v229_v63  ;;  %v966_v1 = vadd.f32 %v965_v61, %v229_v63  ;;  %v1036_v2 = vmul.f32 %v229_v63, %v229_v63  ;;  %v1098_v3 = vadd.f32 %v1097_v59, %v1035_v58  ;;  %548 = vst [vmem:[#allocation7 + $0x140] sm:$0xff] %v1637_v0 }
 0x131   :  { %v1099_v5 = vadd.f32 %v1098_v3, %v1036_v2  ;;  %v1325_v6 = vpop.f32.mrb[10].mxu0  ;;  %v967_v7 = vadd.f32 %v1322_v60, %v966_v1  ;;  %v1640_v8 = vpop.f32.mrb[10].mxu1 }
 0x132   :  { %519 = vst [vmem:[#allocation7 + $0x58] sm:$0xff] %v1325_v6  ;;  %v239_v9 = vpop.f32.mrb[11].mxu0  ;;  %551 = vst [vmem:[#allocation7 + $0x158] sm:$0xff] %v1640_v8  ;;  %v1643_v10 = vpop.f32.mrb[11].mxu1  ;;  %v1039_v14 = vmul.f32 %v1325_v6, %v1325_v6 }
 0x133   :  { %518 = vst [vmem:[#allocation7 + $0x50] sm:$0xff] %v239_v9  ;;  %v968_v11 = vadd.f32 %v967_v7, %v239_v9  ;;  %v1038_v12 = vmul.f32 %v239_v9, %v239_v9  ;;  %v1100_v13 = vadd.f32 %v1099_v5, %v1037_v4  ;;  %550 = vst [vmem:[#allocation7 + $0x150] sm:$0xff] %v1643_v10 }
 0x135   :  { %v1101_v15 = vadd.f32 %v1100_v13, %v1038_v12  ;;  %v1328_v16 = vpop.f32.mrb[12].mxu0  ;;  %v969_v17 = vadd.f32 %v1325_v6, %v968_v11  ;;  %v1646_v18 = vpop.f32.mrb[12].mxu1 }
 0x136   :  { %521 = vst [vmem:[#allocation7 + $0x68] sm:$0xff] %v1328_v16  ;;  %v249_v19 = vpop.f32.mrb[13].mxu0  ;;  %553 = vst [vmem:[#allocation7 + $0x168] sm:$0xff] %v1646_v18  ;;  %v1649_v20 = vpop.f32.mrb[13].mxu1  ;;  %v1041_v24 = vmul.f32 %v1328_v16, %v1328_v16 }
 0x137   :  { %520 = vst [vmem:[#allocation7 + $0x60] sm:$0xff] %v249_v19  ;;  %v970_v21 = vadd.f32 %v969_v17, %v249_v19  ;;  %v1040_v22 = vmul.f32 %v249_v19, %v249_v19  ;;  %v1102_v23 = vadd.f32 %v1101_v15, %v1039_v14  ;;  %552 = vst [vmem:[#allocation7 + $0x160] sm:$0xff] %v1649_v20 }
 0x139   :  { %v1103_v26 = vadd.f32 %v1102_v23, %v1040_v22  ;;  %v1331_v27 = vpop.f32.mrb[14].mxu0  ;;  %v971_v29 = vadd.f32 %v1328_v16, %v970_v21  ;;  %v1652_v30 = vpop.f32.mrb[14].mxu1 }
 0x13a   :  { %523 = vst [vmem:[#allocation7 + $0x78] sm:$0xff] %v1331_v27  ;;  %v259_v31 = vpop.f32.mrb[15].mxu0  ;;  %555 = vst [vmem:[#allocation7 + $0x178] sm:$0xff] %v1652_v30  ;;  %v1655_v32 = vpop.f32.mrb[15].mxu1  ;;  %v1043_v38 = vmul.f32 %v1331_v27, %v1331_v27 }
 0x13b   :  { %522 = vst [vmem:[#allocation7 + $0x70] sm:$0xff] %v259_v31  ;;  %v972_v34 = vadd.f32 %v971_v29, %v259_v31  ;;  %v1042_v36 = vmul.f32 %v259_v31, %v259_v31  ;;  %v1104_v37 = vadd.f32 %v1103_v26, %v1041_v24  ;;  %554 = vst [vmem:[#allocation7 + $0x170] sm:$0xff] %v1655_v32 }
 0x13d   :  { %v1105_v39 = vadd.f32 %v1104_v37, %v1042_v36  ;;  %v1334_v40 = vpop.f32.mrb[16].mxu0  ;;  %v973_v41 = vadd.f32 %v1331_v27, %v972_v34  ;;  %v1658_v43 = vpop.f32.mrb[16].mxu1 }
 0x13e   :  { %525 = vst [vmem:[#allocation7 + $0x88] sm:$0xff] %v1334_v40  ;;  %v269_v45 = vpop.f32.mrb[17].mxu0  ;;  %557 = vst [vmem:[#allocation7 + $0x188] sm:$0xff] %v1658_v43  ;;  %v1661_v46 = vpop.f32.mrb[17].mxu1  ;;  %v1045_v50 = vmul.f32 %v1334_v40, %v1334_v40 }
 0x13f   :  { %524 = vst [vmem:[#allocation7 + $0x80] sm:$0xff] %v269_v45  ;;  %v974_v47 = vadd.f32 %v973_v41, %v269_v45  ;;  %v1044_v48 = vmul.f32 %v269_v45, %v269_v45  ;;  %v1106_v49 = vadd.f32 %v1105_v39, %v1043_v38  ;;  %556 = vst [vmem:[#allocation7 + $0x180] sm:$0xff] %v1661_v46 }
 0x141   :  { %v1107_v51 = vadd.f32 %v1106_v49, %v1044_v48  ;;  %v1337_v53 = vpop.f32.mrb[18].mxu0  ;;  %v975_v55 = vadd.f32 %v1334_v40, %v974_v47  ;;  %v1664_v56 = vpop.f32.mrb[18].mxu1 }
 0x142   :  { %527 = vst [vmem:[#allocation7 + $0x98] sm:$0xff] %v1337_v53  ;;  %v279_v57 = vpop.f32.mrb[19].mxu0  ;;  %559 = vst [vmem:[#allocation7 + $0x198] sm:$0xff] %v1664_v56  ;;  %v1667_v58 = vpop.f32.mrb[19].mxu1  ;;  %v1047_v63 = vmul.f32 %v1337_v53, %v1337_v53 }
 0x143   :  { %526 = vst [vmem:[#allocation7 + $0x90] sm:$0xff] %v279_v57  ;;  %v976_v59 = vadd.f32 %v975_v55, %v279_v57  ;;  %v1046_v60 = vmul.f32 %v279_v57, %v279_v57  ;;  %v1108_v61 = vadd.f32 %v1107_v51, %v1045_v50  ;;  %558 = vst [vmem:[#allocation7 + $0x190] sm:$0xff] %v1667_v58 }
 0x145   :  { %v1109_v1 = vadd.f32 %v1108_v61, %v1046_v60  ;;  %v1340_v2 = vpop.f32.mrb[20].mxu0  ;;  %v977_v3 = vadd.f32 %v1337_v53, %v976_v59  ;;  %v1670_v4 = vpop.f32.mrb[20].mxu1 }
 0x146   :  { %529 = vst [vmem:[#allocation7 + $0xa8] sm:$0xff] %v1340_v2  ;;  %v289_v5 = vpop.f32.mrb[21].mxu0  ;;  %561 = vst [vmem:[#allocation7 + $0x1a8] sm:$0xff] %v1670_v4  ;;  %v1673_v6 = vpop.f32.mrb[21].mxu1  ;;  %v1049_v12 = vmul.f32 %v1340_v2, %v1340_v2 }
 0x147   :  { %528 = vst [vmem:[#allocation7 + $0xa0] sm:$0xff] %v289_v5  ;;  %v978_v7 = vadd.f32 %v977_v3, %v289_v5  ;;  %v1048_v9 = vmul.f32 %v289_v5, %v289_v5  ;;  %v1110_v11 = vadd.f32 %v1109_v1, %v1047_v63  ;;  %560 = vst [vmem:[#allocation7 + $0x1a0] sm:$0xff] %v1673_v6 }
 0x149   :  { %v1111_v13 = vadd.f32 %v1110_v11, %v1048_v9  ;;  %v1343_v14 = vpop.f32.mrb[22].mxu0  ;;  %v979_v15 = vadd.f32 %v1340_v2, %v978_v7  ;;  %v1676_v16 = vpop.f32.mrb[22].mxu1 }
 0x14a   :  { %531 = vst [vmem:[#allocation7 + $0xb8] sm:$0xff] %v1343_v14  ;;  %v299_v17 = vpop.f32.mrb[23].mxu0  ;;  %563 = vst [vmem:[#allocation7 + $0x1b8] sm:$0xff] %v1676_v16  ;;  %v1679_v19 = vpop.f32.mrb[23].mxu1  ;;  %v1051_v24 = vmul.f32 %v1343_v14, %v1343_v14 }
 0x14b   :  { %530 = vst [vmem:[#allocation7 + $0xb0] sm:$0xff] %v299_v17  ;;  %v980_v21 = vadd.f32 %v979_v15, %v299_v17  ;;  %v1050_v22 = vmul.f32 %v299_v17, %v299_v17  ;;  %v1112_v23 = vadd.f32 %v1111_v13, %v1049_v12  ;;  %562 = vst [vmem:[#allocation7 + $0x1b0] sm:$0xff] %v1679_v19 }
 0x14d   :  { %v1113_v26 = vadd.f32 %v1112_v23, %v1050_v22  ;;  %v1346_v27 = vpop.f32.mrb[24].mxu0  ;;  %v981_v29 = vadd.f32 %v1343_v14, %v980_v21  ;;  %v1682_v31 = vpop.f32.mrb[24].mxu1 }
 0x14e   :  { %533 = vst [vmem:[#allocation7 + $0xc8] sm:$0xff] %v1346_v27  ;;  %v309_v34 = vpop.f32.mrb[25].mxu0  ;;  %565 = vst [vmem:[#allocation7 + $0x1c8] sm:$0xff] %v1682_v31  ;;  %v1685_v36 = vpop.f32.mrb[25].mxu1  ;;  %v1053_v40 = vmul.f32 %v1346_v27, %v1346_v27 }
 0x14f   :  { %532 = vst [vmem:[#allocation7 + $0xc0] sm:$0xff] %v309_v34  ;;  %v982_v37 = vadd.f32 %v981_v29, %v309_v34  ;;  %v1052_v38 = vmul.f32 %v309_v34, %v309_v34  ;;  %v1114_v39 = vadd.f32 %v1113_v26, %v1051_v24  ;;  %564 = vst [vmem:[#allocation7 + $0x1c0] sm:$0xff] %v1685_v36 }
 0x151   :  { %v1115_v41 = vadd.f32 %v1114_v39, %v1052_v38  ;;  %v1349_v45 = vpop.f32.mrb[26].mxu0  ;;  %v983_v47 = vadd.f32 %v1346_v27, %v982_v37  ;;  %v1688_v48 = vpop.f32.mrb[26].mxu1 }
 0x152   :  { %535 = vst [vmem:[#allocation7 + $0xd8] sm:$0xff] %v1349_v45  ;;  %v319_v49 = vpop.f32.mrb[27].mxu0  ;;  %567 = vst [vmem:[#allocation7 + $0x1d8] sm:$0xff] %v1688_v48  ;;  %v1691_v50 = vpop.f32.mrb[27].mxu1  ;;  %v1055_v57 = vmul.f32 %v1349_v45, %v1349_v45 }
 0x153   :  { %534 = vst [vmem:[#allocation7 + $0xd0] sm:$0xff] %v319_v49  ;;  %v984_v51 = vadd.f32 %v983_v47, %v319_v49  ;;  %v1054_v53 = vmul.f32 %v319_v49, %v319_v49  ;;  %v1116_v55 = vadd.f32 %v1115_v41, %v1053_v40  ;;  %566 = vst [vmem:[#allocation7 + $0x1d0] sm:$0xff] %v1691_v50 }
 0x155   :  { %v1117_v59 = vadd.f32 %v1116_v55, %v1054_v53  ;;  %v1352_v60 = vpop.f32.mrb[28].mxu0  ;;  %v985_v61 = vadd.f32 %v1349_v45, %v984_v51  ;;  %v1694_v63 = vpop.f32.mrb[28].mxu1 }
 0x156   :  { %537 = vst [vmem:[#allocation7 + $0xe8] sm:$0xff] %v1352_v60  ;;  %v329_v1 = vpop.f32.mrb[29].mxu0  ;;  %569 = vst [vmem:[#allocation7 + $0x1e8] sm:$0xff] %v1694_v63  ;;  %v1697_v2 = vpop.f32.mrb[29].mxu1  ;;  %v1057_v9 = vmul.f32 %v1352_v60, %v1352_v60 }
 0x157   :  { %536 = vst [vmem:[#allocation7 + $0xe0] sm:$0xff] %v329_v1  ;;  %v986_v3 = vadd.f32 %v985_v61, %v329_v1  ;;  %v1056_v5 = vmul.f32 %v329_v1, %v329_v1  ;;  %v1118_v7 = vadd.f32 %v1117_v59, %v1055_v57  ;;  %568 = vst [vmem:[#allocation7 + $0x1e0] sm:$0xff] %v1697_v2 }
 0x159   :  { %v1119_v11 = vadd.f32 %v1118_v7, %v1056_v5  ;;  %v1355_v12 = vpop.f32.mrb[30].mxu0  ;;  %v987_v13 = vadd.f32 %v1352_v60, %v986_v3  ;;  %v1700_v14 = vpop.f32.mrb[30].mxu1 }
 0x15a   :  { %539 = vst [vmem:[#allocation7 + $0xf8] sm:$0xff] %v1355_v12  ;;  %v339_v15 = vpop.f32.mrb[31].mxu0  ;;  %571 = vst [vmem:[#allocation7 + $0x1f8] sm:$0xff] %v1700_v14  ;;  %v1703_v17 = vpop.f32.mrb[31].mxu1 }
 0x15b   :  { %538 = vst [vmem:[#allocation7 + $0xf0] sm:$0xff] %v339_v15  ;;  %v988_v21 = vadd.f32 %v987_v13, %v339_v15  ;;  %v1058_v22 = vmul.f32 %v339_v15, %v339_v15  ;;  %v1120_v23 = vadd.f32 %v1119_v11, %v1057_v9  ;;  %570 = vst [vmem:[#allocation7 + $0x1f0] sm:$0xff] %v1703_v17 }
 0x15c   :  { %1513 = shalt.err (!%p1510_p6)
}
 0x15d   :  { %s1514_s14 = scalar_lea.hbm %s1831_s2, 8192 }
 0x15e   :  { %p1515_p7 = scmp.ne.s32.totalorder %s1831_s2, %s1514_s14  ;;  %p1518_p8 = scmp.lt.u32.totalorder %s1514_s14, %s1831_s2 }
 0x160   :  { %p1520_p9 = pnand %p1518_p8, %p1515_p7 }
 0x162   :  { %1523 = shalt.err (!%p1520_p9)
}
 0x163   :  { %1175 = dma.vmem_to_hbm [thread:$0]  %s1170_s10, 8192, %s1831_s2, [#allocation4], %s1555_s22, %s1555_s22, %s1556_s23   ;;  %v1059_v24 = vmul.f32 %v1355_v12, %v1355_v12  ;;  %v989_v26 = vadd.f32 %v1355_v12, %v988_v21  ;;  %v1121_v27 = vadd.f32 %v1120_v23, %v1058_v22  ;;  %v1060_v29 = vmul.f32 %v1613_v28, %v1613_v28 }
 0x164   :  { %v1061_v38 = vmul.f32 %v1610_v25, %v1610_v25  ;;  %v1062_v41 = vmul.f32 %v1619_v35, %v1619_v35  ;;  %v1063_v49 = vmul.f32 %v1616_v33, %v1616_v33  ;;  %s1559_s2 = smov [#allocation8]   ;;  %vm1161_vm0 = vcmask 1040384  }
 0x165   :  { %v1122_v34 = vadd.f32 %v1121_v27, %v1059_v24  ;;  %v990_v37 = vadd.f32 %v989_v26, %v1613_v28  ;;  %v1064_v28 = vmul.f32 %v1625_v44, %v1625_v44  ;;  %s1182_s21 = sshll.u32 %s1559_s2, 4  ;;  %s1183_s21 = int_to_ptr.vmem [resolvable:$true] %s1182_s21 }
 0x166   :  { %s1524_s22 = scalar_lea.vmem %s1183_s21, 32  ;;  %p1529_p11 = scmp.lt.s32.totalorder %s1183_s21, %s1183_s21 }
 0x167   :  { %v1123_v39 = vadd.f32 %v1122_v34, %v1060_v29  ;;  %v991_v40 = vadd.f32 %v1610_v25, %v990_v37  ;;  %v1065_v25 = vmul.f32 %v1622_v42, %v1622_v42  ;;  %p1525_p10 = scmp.ne.s32.totalorder %s1183_s21, %s1524_s22  ;;  %p1530_p12 = scmp.lt.s32.totalorder %s1524_s22, %s1524_s22 }
 0x169   :  { %v992_v45 = vadd.f32 %v991_v40, %v1619_v35  ;;  %v1124_v47 = vadd.f32 %v1123_v39, %v1061_v38  ;;  %v1066_v35 = vmul.f32 %v1631_v54, %v1631_v54  ;;  %p1531_p13 = por %p1530_p12, %p1529_p11 }
 0x16b   :  { %v1125_v51 = vadd.f32 %v1124_v47, %v1062_v41  ;;  %v993_v53 = vadd.f32 %v1616_v33, %v992_v45  ;;  %v1067_v33 = vmul.f32 %v1628_v52, %v1628_v52  ;;  %p1532_p0 = pnand %p1531_p13, %p1525_p10 }
 0x16d   :  { %v994_v55 = vadd.f32 %v993_v53, %v1625_v44  ;;  %v1126_v57 = vadd.f32 %v1125_v51, %v1063_v49  ;;  %v1068_v44 = vmul.f32 %v1637_v0, %v1637_v0 }
 0x16f   :  { %v1127_v59 = vadd.f32 %v1126_v57, %v1064_v28  ;;  %v995_v60 = vadd.f32 %v1622_v42, %v994_v55  ;;  %v1069_v42 = vmul.f32 %v1634_v62, %v1634_v62 }
 0x171   :  { %v996_v61 = vadd.f32 %v995_v60, %v1631_v54  ;;  %v1128_v1 = vadd.f32 %v1127_v59, %v1065_v25  ;;  %v1070_v54 = vmul.f32 %v1643_v10, %v1643_v10 }
 0x173   :  { %v1129_v3 = vadd.f32 %v1128_v1, %v1066_v35  ;;  %v997_v5 = vadd.f32 %v1628_v52, %v996_v61  ;;  %v1071_v52 = vmul.f32 %v1640_v8, %v1640_v8 }
 0x175   :  { %v998_v7 = vadd.f32 %v997_v5, %v1637_v0  ;;  %v1130_v9 = vadd.f32 %v1129_v3, %v1067_v33  ;;  %v1072_v0 = vmul.f32 %v1649_v20, %v1649_v20 }
 0x177   :  { %v1131_v11 = vadd.f32 %v1130_v9, %v1068_v44  ;;  %v999_v12 = vadd.f32 %v1634_v62, %v998_v7  ;;  %v1073_v62 = vmul.f32 %v1646_v18, %v1646_v18 }
 0x179   :  { %v1000_v13 = vadd.f32 %v999_v12, %v1643_v10  ;;  %v1132_v15 = vadd.f32 %v1131_v11, %v1069_v42  ;;  %v1074_v10 = vmul.f32 %v1655_v32, %v1655_v32 }
 0x17b   :  { %v1133_v21 = vadd.f32 %v1132_v15, %v1070_v54  ;;  %v1001_v22 = vadd.f32 %v1640_v8, %v1000_v13  ;;  %v1075_v8 = vmul.f32 %v1652_v30, %v1652_v30 }
 0x17d   :  { %v1002_v23 = vadd.f32 %v1001_v22, %v1649_v20  ;;  %v1134_v24 = vadd.f32 %v1133_v21, %v1071_v52  ;;  %v1076_v20 = vmul.f32 %v1661_v46, %v1661_v46 }
 0x17f   :  { %v1135_v26 = vadd.f32 %v1134_v24, %v1072_v0  ;;  %v1003_v27 = vadd.f32 %v1646_v18, %v1002_v23  ;;  %v1077_v18 = vmul.f32 %v1658_v43, %v1658_v43 }
 0x181   :  { %v1004_v29 = vadd.f32 %v1003_v27, %v1655_v32  ;;  %v1136_v34 = vadd.f32 %v1135_v26, %v1073_v62  ;;  %v1078_v32 = vmul.f32 %v1667_v58, %v1667_v58 }
 0x183   :  { %v1137_v37 = vadd.f32 %v1136_v34, %v1074_v10  ;;  %v1005_v38 = vadd.f32 %v1652_v30, %v1004_v29  ;;  %v1079_v30 = vmul.f32 %v1664_v56, %v1664_v56 }
 0x185   :  { %v1006_v39 = vadd.f32 %v1005_v38, %v1661_v46  ;;  %v1138_v40 = vadd.f32 %v1137_v37, %v1075_v8  ;;  %v1080_v46 = vmul.f32 %v1673_v6, %v1673_v6 }
 0x187   :  { %v1139_v41 = vadd.f32 %v1138_v40, %v1076_v20  ;;  %v1007_v45 = vadd.f32 %v1658_v43, %v1006_v39  ;;  %v1081_v43 = vmul.f32 %v1670_v4, %v1670_v4 }
 0x189   :  { %v1008_v47 = vadd.f32 %v1007_v45, %v1667_v58  ;;  %v1140_v49 = vadd.f32 %v1139_v41, %v1077_v18  ;;  %v1082_v58 = vmul.f32 %v1679_v19, %v1679_v19 }
 0x18b   :  { %v1141_v51 = vadd.f32 %v1140_v49, %v1078_v32  ;;  %v1009_v53 = vadd.f32 %v1664_v56, %v1008_v47  ;;  %v1083_v56 = vmul.f32 %v1676_v16, %v1676_v16 }
 0x18d   :  { %v1010_v28 = vadd.f32 %v1009_v53, %v1673_v6  ;;  %v1142_v55 = vadd.f32 %v1141_v51, %v1079_v30  ;;  %v1084_v6 = vmul.f32 %v1685_v36, %v1685_v36 }
 0x18f   :  { %v1143_v57 = vadd.f32 %v1142_v55, %v1080_v46  ;;  %v1011_v25 = vadd.f32 %v1670_v4, %v1010_v28  ;;  %v1085_v4 = vmul.f32 %v1682_v31, %v1682_v31 }
 0x191   :  { %v1012_v59 = vadd.f32 %v1011_v25, %v1679_v19  ;;  %v1144_v60 = vadd.f32 %v1143_v57, %v1081_v43  ;;  %v1086_v19 = vmul.f32 %v1691_v50, %v1691_v50 }
 0x193   :  { %v1145_v35 = vadd.f32 %v1144_v60, %v1082_v58  ;;  %v1013_v61 = vadd.f32 %v1676_v16, %v1012_v59  ;;  %v1087_v16 = vmul.f32 %v1688_v48, %v1688_v48 }
 0x195   :  { %v1014_v1 = vadd.f32 %v1013_v61, %v1685_v36  ;;  %v1146_v33 = vadd.f32 %v1145_v35, %v1083_v56  ;;  %v1088_v36 = vmul.f32 %v1697_v2, %v1697_v2 }
 0x197   :  { %v1147_v3 = vadd.f32 %v1146_v33, %v1084_v6  ;;  %v1015_v5 = vadd.f32 %v1682_v31, %v1014_v1  ;;  %v1089_v31 = vmul.f32 %v1694_v63, %v1694_v63 }
 0x199   :  { %v1016_v44 = vadd.f32 %v1015_v5, %v1691_v50  ;;  %v1148_v7 = vadd.f32 %v1147_v3, %v1085_v4  ;;  %v1090_v50 = vmul.f32 %v1703_v17, %v1703_v17 }
 0x19b   :  { %v1149_v9 = vadd.f32 %v1148_v7, %v1086_v19  ;;  %v1017_v42 = vadd.f32 %v1688_v48, %v1016_v44  ;;  %v1091_v48 = vmul.f32 %v1700_v14, %v1700_v14 }
 0x19d   :  { %v1018_v11 = vadd.f32 %v1017_v42, %v1697_v2  ;;  %v1150_v12 = vadd.f32 %v1149_v9, %v1087_v16 }
 0x19f   :  { %v1151_v54 = vadd.f32 %v1150_v12, %v1088_v36  ;;  %v1019_v13 = vadd.f32 %v1694_v63, %v1018_v11 }
 0x1a1   :  { %v1020_v15 = vadd.f32 %v1019_v13, %v1703_v17  ;;  %v1152_v52 = vadd.f32 %v1151_v54, %v1089_v31 }
 0x1a3   :  { %v1021_v21 = vadd.f32 %v1700_v14, %v1020_v15  ;;  %v1153_v22 = vadd.f32 %v1152_v52, %v1090_v50 }
 0x1a5   :  { %v1022_v2 = vrot.slane %v1021_v21, 4  ;;  %v1154_v0 = vadd.f32 %v1153_v22, %v1091_v48 }
 0x1a7   :  { %v1023_v23 = vadd.f32 %v1022_v2, %v1021_v21  ;;  %v1155_v24 = vrot.slane %v1154_v0, 4 }
 0x1a9   :  { %v1024_v62 = vrot.slane %v1023_v23, 2  ;;  %v1156_v26 = vadd.f32 %v1155_v24, %v1154_v0 }
 0x1ab   :  { %v1025_v27 = vadd.f32 %v1024_v62, %v1023_v23  ;;  %v1157_v63 = vrot.slane %v1156_v26, 2 }
 0x1ad   :  { %v1026_v10 = vrot.slane %v1025_v27, 1  ;;  %v1158_v29 = vadd.f32 %v1157_v63, %v1156_v26 }
 0x1af   :  { %v1159_v34 = vrot.slane %v1158_v29, 1  ;;  %v1027_v17 = vadd.f32 %v1026_v10, %v1025_v27 }
 0x1b1   :  { %v1160_v8 = vadd.f32 %v1159_v34, %v1158_v29 }
 0x1b3   :  { %v1162_v37 = vsel %vm1161_vm0, %v1027_v17, %v1160_v8 }
 0x1b4   :  { %1163 = vst [vmem:[#allocation8] sm:$0x3] %v1162_v37 }
 0x1b5   :  { %1535 = shalt.err (!%p1532_p0)
}
 0x1b6   :  { %s1536_s25 = scalar_lea.hbm %s1832_s3, 32 }
 0x1b7   :  { %p1537_p1 = scmp.ne.s32.totalorder %s1832_s3, %s1536_s25  ;;  %p1540_p2 = scmp.lt.u32.totalorder %s1536_s25, %s1832_s3 }
 0x1b9   :  { %p1542_p3 = pnand %p1540_p2, %p1537_p1 }
 0x1bb   :  { %1545 = shalt.err (!%p1542_p3)
}
 0x1bc   :  { %1185 = dma.vmem_to_hbm [thread:$0]  %s1183_s21, 32, %s1832_s3, [#allocation9]  }
 0x1bd   :  { %1550 = dma.done.wait [#allocation4], 8192  }
 0x1be   :  { %1551 = vsyncadd [#allocation4], 4294959104 }
 0x1bf   :  { %1552 = dma.done.wait [#allocation9], 32  }
 0x1c0   :  { %1553 = vsyncadd [#allocation9], 4294967264 }
 0x1c1   :  { %1192 = vsyncpa [#allocation3], 1 }
 0x1c2   :  { %1193 = vsyncpa [#allocation6], 1 }
 0x1c3   :  { %1194 = vsyncpa [#allocation4], 1 }
 0x1c4   :  { %1195 = vsyncpa [#allocation9], 1 }

// kernel: residual_block_forward.9
= control target key start
LH: loop header
LB: loop body
LE: loop exit
PB: predicated region body
PF: predicated region fallthrough
CT: control target
= control target key end

     0   :  { %9 = vsyncpa [#allocation3], 0  ;;  %s1050_s0 = inlined_call_operand.hbm [shape: f32[512,128], index: 0, kind: input, shape index: {}]   ;;  %s1051_s1 = inlined_call_operand.hbm [shape: f32[512,128], index: 1, kind: input, shape index: {}]   ;;  %s1052_s2 = inlined_call_operand.hbm [shape: f32[1,128], index: 2, kind: input, shape index: {}]   ;;  %s1053_s3 = inlined_call_operand.hbm [shape: f32[1,128], index: 3, kind: input, shape index: {}]   ;;  %s1054_s4 = inlined_call_operand.hbm [shape: f32[512,128], index: 4, kind: output, shape index: {}]  }
   0x1   :  { %10 = vsyncpa [#allocation6], 0 }
   0x2   :  { %11 = vsyncpa [#allocation9], 0 }
   0x3   :  { %12 = vsyncpa [#allocation4], 0  ;;  %s807_s15 = smov [#allocation5]   ;;  %s808_s17 = smov [#allocation2]  }
   0x4   :  { %s30_s16 = sshll.u32 %s807_s15, 4  ;;  %s18_s18 = sshll.u32 %s808_s17, 4  ;;  %s31_s16 = int_to_ptr.vmem [resolvable:$true] %s30_s16  ;;  %s839_s18 = int_to_ptr.vmem [resolvable:$true] %s18_s18 }
   0x5   :  { %s689_s21 = scalar_lea.hbm %s1051_s1, 8192 }
   0x6   :  { %p690_p0 = scmp.ne.s32.totalorder %s1051_s1, %s689_s21  ;;  %p693_p1 = scmp.lt.u32.totalorder %s689_s21, %s1051_s1 }
   0x8   :  { %p695_p2 = pnand %p693_p1, %p690_p0 }
   0xa   :  { %698 = shalt.err (!%p695_p2)
}
   0xb   :  { %s699_s26 = scalar_lea.vmem %s31_s16, 8192  ;;  %p704_p4 = scmp.lt.s32.totalorder %s31_s16, %s31_s16 }
   0xc   :  { %p700_p3 = scmp.ne.s32.totalorder %s31_s16, %s699_s26  ;;  %p705_p5 = scmp.lt.s32.totalorder %s699_s26, %s699_s26 }
   0xe   :  { %p706_p6 = por %p705_p5, %p704_p4 }
  0x10   :  { %p707_p7 = pnand %p706_p6, %p700_p3 }
  0x12   :  { %710 = shalt.err (!%p707_p7)
}
  0x13   :  { %s809_s27 = smov 128   ;;  %s810_s28 = smov 8  }
  0x14   :  { %36 = dma.hbm_to_vmem [thread:$0]  %s1051_s1, 8192, %s31_s16, [#allocation6], %s809_s27, %s809_s27, %s810_s28  }
  0x15   :  { %s711_s7 = scalar_lea.hbm %s1050_s0, 8192 }
  0x16   :  { %p712_p8 = scmp.ne.s32.totalorder %s1050_s0, %s711_s7  ;;  %p715_p9 = scmp.lt.u32.totalorder %s711_s7, %s1050_s0 }
  0x18   :  { %p717_p10 = pnand %p715_p9, %p712_p8 }
  0x1a   :  { %720 = shalt.err (!%p717_p10)
}
  0x1b   :  { %s721_s12 = scalar_lea.vmem %s839_s18, 8192  ;;  %p726_p12 = scmp.lt.s32.totalorder %s839_s18, %s839_s18 }
  0x1c   :  { %p722_p11 = scmp.ne.s32.totalorder %s839_s18, %s721_s12  ;;  %p727_p13 = scmp.lt.s32.totalorder %s721_s12, %s721_s12 }
  0x1e   :  { %p728_p0 = por %p727_p13, %p726_p12 }
  0x20   :  { %p729_p1 = pnand %p728_p0, %p722_p11 }
  0x22   :  { %732 = shalt.err (!%p729_p1)
}
  0x23   :  { %24 = dma.hbm_to_vmem [thread:$0]  %s1050_s0, 8192, %s839_s18, [#allocation3], %s809_s27, %s809_s27, %s810_s28  }
  0x24   :  { %s811_s14 = smov [#allocation7]   ;;  %s812_s16 = smov [#allocation8]  }
  0x25   :  { %s43_s15 = sshll.u32 %s811_s14, 4  ;;  %s53_s17 = sshll.u32 %s812_s16, 4  ;;  %s44_s15 = int_to_ptr.vmem [resolvable:$true] %s43_s15  ;;  %s54_s17 = int_to_ptr.vmem [resolvable:$true] %s53_s17 }
  0x26   :  { %s733_s21 = scalar_lea.hbm %s1052_s2, 16 }
  0x27   :  { %p734_p2 = scmp.ne.s32.totalorder %s1052_s2, %s733_s21  ;;  %p737_p3 = scmp.lt.u32.totalorder %s733_s21, %s1052_s2 }
  0x29   :  { %p739_p4 = pnand %p737_p3, %p734_p2 }
  0x2b   :  { %742 = shalt.err (!%p739_p4)
}
  0x2c   :  { %s743_s0 = scalar_lea.vmem %s44_s15, 16  ;;  %s747_s18 = scalar_lea.vmem %s44_s15, 32 }
  0x2d   :  { %p744_p5 = scmp.ne.s32.totalorder %s44_s15, %s743_s0  ;;  %p748_p6 = scmp.lt.s32.totalorder %s44_s15, %s44_s15 }
  0x2e   :  { %p749_p7 = scmp.lt.s32.totalorder %s747_s18, %s743_s0 }
  0x30   :  { %p750_p8 = por %p749_p7, %p748_p6 }
  0x32   :  { %p751_p9 = pnand %p750_p8, %p744_p5 }
  0x34   :  { %754 = shalt.err (!%p751_p9)
}
  0x35   :  { %46 = dma.hbm_to_vmem [thread:$0]  %s1052_s2, 16, %s44_s15, [#allocation6]  }
  0x36   :  { %s755_s6 = scalar_lea.hbm %s1053_s3, 16 }
  0x37   :  { %p756_p10 = scmp.ne.s32.totalorder %s1053_s3, %s755_s6  ;;  %p759_p11 = scmp.lt.u32.totalorder %s755_s6, %s1053_s3 }
  0x39   :  { %p761_p12 = pnand %p759_p11, %p756_p10 }
  0x3b   :  { %764 = shalt.err (!%p761_p12)
}
  0x3c   :  { %s765_s11 = scalar_lea.vmem %s54_s17, 16  ;;  %s769_s12 = scalar_lea.vmem %s54_s17, 32 }
  0x3d   :  { %p766_p13 = scmp.ne.s32.totalorder %s54_s17, %s765_s11  ;;  %p770_p0 = scmp.lt.s32.totalorder %s54_s17, %s54_s17 }
  0x3e   :  { %p771_p1 = scmp.lt.s32.totalorder %s769_s12, %s765_s11 }
  0x40   :  { %p772_p2 = por %p771_p1, %p770_p0 }
  0x42   :  { %p773_p3 = pnand %p772_p2, %p766_p13 }
  0x44   :  { %776 = shalt.err (!%p773_p3)
}
  0x45   :  { %56 = dma.hbm_to_vmem [thread:$0]  %s1053_s3, 16, %s54_s17, [#allocation9]  }
  0x46   :  { %799 = dma.done.wait [#allocation3], 8192  }
  0x47   :  { %800 = vsyncadd [#allocation3], 4294959104 }
  0x48   :  { %801 = dma.done.wait [#allocation6], 8208  }
  0x49   :  { %802 = vsyncadd [#allocation6], 4294959088 }
  0x4a   :  { %803 = dma.done.wait [#allocation9], 16  }
  0x4b   :  { %804 = vsyncadd [#allocation9], 4294967280  ;;  %v69_v0 = vld [vmem:[#allocation2] sm:$0xff]  ;;  %v70_v4 = vld [vmem:[#allocation2 + $0x8] sm:$0xff]  ;;  %s813_s3 = smov [#allocation10]  }
  0x4c   :  { %v900_v1 = vld [vmem:[#allocation7] ss:$0 sm:$0xff]  ;;  %v902_v2 = vld [vmem:[#allocation8] ss:$0 sm:$0xff]  ;;  %v71_v6 = vld [vmem:[#allocation2 + $0x10] sm:$0xff]  ;;  %s664_s13 = sshll.u32 %s813_s3, 4  ;;  %s665_s13 = int_to_ptr.vmem [resolvable:$true] %s664_s13 }
  0x4d   :  { %v140_v3 = vmul.f32 %v900_v1, %v69_v0  ;;  %v141_v5 = vmul.f32 %v900_v1, %v70_v4  ;;  %v72_v7 = vld [vmem:[#allocation2 + $0x18] sm:$0xff]  ;;  %v142_v9 = vmul.f32 %v900_v1, %v71_v6  ;;  %v73_v11 = vld [vmem:[#allocation2 + $0x20] sm:$0xff]  ;;  %v74_v14 = vld [vmem:[#allocation2 + $0x28] sm:$0xff]  ;;  %s777_s14 = scalar_lea.vmem %s665_s13, 8192  ;;  %p782_p5 = scmp.lt.s32.totalorder %s665_s13, %s665_s13 }
  0x4e   :  { %v143_v10 = vmul.f32 %v900_v1, %v72_v7  ;;  %v144_v13 = vmul.f32 %v900_v1, %v73_v11  ;;  %v467_v16 = vld [vmem:[#allocation5] sm:$0xff]  ;;  %v468_v20 = vld [vmem:[#allocation5 + $0x8] sm:$0xff]  ;;  %v469_v21 = vld [vmem:[#allocation5 + $0x10] sm:$0xff]  ;;  %v145_v23 = vmul.f32 %v900_v1, %v74_v14  ;;  %p778_p4 = scmp.ne.s32.totalorder %s665_s13, %s777_s14  ;;  %p783_p6 = scmp.lt.s32.totalorder %s777_s14, %s777_s14 }
  0x4f   :  { %v211_v8 = vadd.f32 %v902_v2, %v140_v3  ;;  %v212_v12 = vadd.f32 %v902_v2, %v141_v5  ;;  %v213_v17 = vadd.f32 %v902_v2, %v142_v9  ;;  %v75_v26 = vld [vmem:[#allocation2 + $0x30] sm:$0xff]  ;;  %v76_v27 = vld [vmem:[#allocation2 + $0x38] sm:$0xff]  ;;  %v471_v35 = vld [vmem:[#allocation5 + $0x20] sm:$0xff] }
  0x50   :  { %v214_v18 = vadd.f32 %v902_v2, %v143_v10  ;;  %v215_v22 = vadd.f32 %v902_v2, %v144_v13  ;;  %v470_v31 = vld [vmem:[#allocation5 + $0x18] sm:$0xff]  ;;  %v216_v36 = vadd.f32 %v902_v2, %v145_v23  ;;  %v77_v37 = vld [vmem:[#allocation2 + $0x40] sm:$0xff]  ;;  %v146_v40 = vmul.f32 %v900_v1, %v75_v26  ;;  %v78_v42 = vld [vmem:[#allocation2 + $0x48] sm:$0xff]  ;;  %p784_p7 = por %p783_p6, %p782_p5 }
  0x51   :  { %vm275_vm0 = vcmp.gt.f32.partialorder %v211_v8, 0.0  ;;  %v339_v15 = vmul.f32 0.1, %v211_v8  ;;  %vm276_vm1 = vcmp.gt.f32.partialorder %v212_v12, 0.0  ;;  %v340_v19 = vmul.f32 0.1, %v212_v12 }
  0x52   :  { %vm277_vm2 = vcmp.gt.f32.partialorder %v213_v17, 0.0  ;;  %v341_v25 = vmul.f32 0.1, %v213_v17  ;;  %vm278_vm3 = vcmp.gt.f32.partialorder %v214_v18, 0.0  ;;  %v342_v30 = vmul.f32 0.1, %v214_v18  ;;  %p785_p8 = pnand %p784_p7, %p778_p4 }
  0x53   :  { %v403_v24 = vsel %vm275_vm0, %v211_v8, %v339_v15  ;;  %v404_v29 = vsel %vm276_vm1, %v212_v12, %v340_v19  ;;  %vm279_vm4 = vcmp.gt.f32.partialorder %v215_v22, 0.0  ;;  %v343_v34 = vmul.f32 0.1, %v215_v22  ;;  %v79_v43 = vld [vmem:[#allocation2 + $0x50] sm:$0xff]  ;;  %v80_v44 = vld [vmem:[#allocation2 + $0x58] sm:$0xff]  ;;  %v472_v48 = vld [vmem:[#allocation5 + $0x28] sm:$0xff] }
  0x54   :  { %v531_v28 = vadd.f32 %v467_v16, %v403_v24  ;;  %v532_v32 = vadd.f32 %v468_v20, %v404_v29  ;;  %v405_v33 = vsel %vm277_vm2, %v213_v17, %v341_v25  ;;  %v406_v39 = vsel %vm278_vm3, %v214_v18, %v342_v30  ;;  %v81_v57 = vld [vmem:[#allocation2 + $0x60] sm:$0xff]  ;;  %v82_v58 = vld [vmem:[#allocation2 + $0x68] sm:$0xff]  ;;  %v473_v61 = vld [vmem:[#allocation5 + $0x30] sm:$0xff] }
  0x55   :  { %v533_v38 = vadd.f32 %v469_v21, %v405_v33  ;;  %v147_v41 = vmul.f32 %v900_v1, %v76_v27  ;;  %v534_v45 = vadd.f32 %v470_v31, %v406_v39  ;;  %v407_v46 = vsel %vm279_vm4, %v215_v22, %v343_v34  ;;  %v474_v63 = vld [vmem:[#allocation5 + $0x38] sm:$0xff]  ;;  %v475_v12 = vld [vmem:[#allocation5 + $0x40] sm:$0xff]  ;;  %v476_v13 = vld [vmem:[#allocation5 + $0x48] sm:$0xff] }
  0x56   :  { %595 = vst [vmem:[#allocation10] sm:$0xff] %v531_v28  ;;  %596 = vst [vmem:[#allocation10 + $0x8] sm:$0xff] %v532_v32  ;;  %vm280_vm5 = vcmp.gt.f32.partialorder %v216_v36, 0.0  ;;  %v344_v47 = vmul.f32 0.1, %v216_v36  ;;  %v535_v49 = vadd.f32 %v471_v35, %v407_v46  ;;  %v217_v50 = vadd.f32 %v902_v2, %v146_v40  ;;  %v477_v16 = vld [vmem:[#allocation5 + $0x50] sm:$0xff] }
  0x57   :  { %597 = vst [vmem:[#allocation10 + $0x10] sm:$0xff] %v533_v38  ;;  %v218_v51 = vadd.f32 %v902_v2, %v147_v41  ;;  %v148_v52 = vmul.f32 %v900_v1, %v77_v37  ;;  %598 = vst [vmem:[#allocation10 + $0x18] sm:$0xff] %v534_v45  ;;  %v149_v54 = vmul.f32 %v900_v1, %v78_v42  ;;  %v83_v17 = vld [vmem:[#allocation2 + $0x70] sm:$0xff]  ;;  %v478_v21 = vld [vmem:[#allocation5 + $0x58] sm:$0xff] }
  0x58   :  { %v408_v53 = vsel %vm280_vm5, %v216_v36, %v344_v47  ;;  %v150_v55 = vmul.f32 %v900_v1, %v79_v43  ;;  %v151_v56 = vmul.f32 %v900_v1, %v80_v44  ;;  %599 = vst [vmem:[#allocation10 + $0x20] sm:$0xff] %v535_v49  ;;  %vm281_vm6 = vcmp.gt.f32.partialorder %v217_v50, 0.0  ;;  %v84_v26 = vld [vmem:[#allocation2 + $0x78] sm:$0xff]  ;;  %v85_v31 = vld [vmem:[#allocation2 + $0x80] sm:$0xff]  ;;  %v86_v32 = vld [vmem:[#allocation2 + $0x88] sm:$0xff] }
  0x59   :  { %v536_v59 = vadd.f32 %v472_v48, %v408_v53  ;;  %v345_v60 = vmul.f32 0.1, %v217_v50  ;;  %vm282_vm7 = vcmp.gt.f32.partialorder %v218_v51, 0.0  ;;  %v346_v62 = vmul.f32 0.1, %v218_v51  ;;  %v87_v33 = vld [vmem:[#allocation2 + $0x90] sm:$0xff] }
  0x5a   :  { %v219_v0 = vadd.f32 %v902_v2, %v148_v52  ;;  %v220_v3 = vadd.f32 %v902_v2, %v149_v54  ;;  %v221_v4 = vadd.f32 %v902_v2, %v150_v55  ;;  %v222_v6 = vadd.f32 %v902_v2, %v151_v56  ;;  %v479_v37 = vld [vmem:[#allocation5 + $0x60] sm:$0xff]  ;;  %v480_v39 = vld [vmem:[#allocation5 + $0x68] sm:$0xff]  ;;  %v88_v46 = vld [vmem:[#allocation2 + $0x98] sm:$0xff] }
  0x5b   :  { %600 = vst [vmem:[#allocation10 + $0x28] sm:$0xff] %v536_v59  ;;  %v409_v5 = vsel %vm281_vm6, %v217_v50, %v345_v60  ;;  %v152_v7 = vmul.f32 %v900_v1, %v81_v57  ;;  %v153_v8 = vmul.f32 %v900_v1, %v82_v58  ;;  %v410_v10 = vsel %vm282_vm7, %v218_v51, %v346_v62  ;;  %v89_v47 = vld [vmem:[#allocation2 + $0xa0] sm:$0xff]  ;;  %v481_v51 = vld [vmem:[#allocation5 + $0x70] sm:$0xff]  ;;  %v482_v57 = vld [vmem:[#allocation5 + $0x78] sm:$0xff] }
  0x5c   :  { %v537_v9 = vadd.f32 %v473_v61, %v409_v5  ;;  %vm283_vm8 = vcmp.gt.f32.partialorder %v219_v0, 0.0  ;;  %v347_v11 = vmul.f32 0.1, %v219_v0  ;;  %v538_v14 = vadd.f32 %v474_v63, %v410_v10  ;;  %v483_v58 = vld [vmem:[#allocation5 + $0x80] sm:$0xff] }
  0x5d   :  { %vm284_vm9 = vcmp.gt.f32.partialorder %v220_v3, 0.0  ;;  %v348_v15 = vmul.f32 0.1, %v220_v3  ;;  %vm285_vm10 = vcmp.gt.f32.partialorder %v221_v4, 0.0  ;;  %v349_v19 = vmul.f32 0.1, %v221_v4 }
  0x5e   :  { %601 = vst [vmem:[#allocation10 + $0x30] sm:$0xff] %v537_v9  ;;  %v411_v18 = vsel %vm283_vm8, %v219_v0, %v347_v11  ;;  %vm286_vm11 = vcmp.gt.f32.partialorder %v222_v6, 0.0  ;;  %v350_v20 = vmul.f32 0.1, %v222_v6  ;;  %602 = vst [vmem:[#allocation10 + $0x38] sm:$0xff] %v538_v14  ;;  %v223_v24 = vadd.f32 %v902_v2, %v152_v7  ;;  %v484_v0 = vld [vmem:[#allocation5 + $0x88] sm:$0xff] }
  0x5f   :  { %v539_v22 = vadd.f32 %v475_v12, %v411_v18  ;;  %v412_v23 = vsel %vm284_vm9, %v220_v3, %v348_v15  ;;  %v224_v25 = vadd.f32 %v902_v2, %v153_v8  ;;  %v413_v28 = vsel %vm285_vm10, %v221_v4, %v349_v19  ;;  %v90_v3 = vld [vmem:[#allocation2 + $0xa8] sm:$0xff]  ;;  %v485_v8 = vld [vmem:[#allocation5 + $0x90] sm:$0xff] }
  0x60   :  { %v540_v27 = vadd.f32 %v476_v13, %v412_v23  ;;  %v414_v29 = vsel %vm286_vm11, %v222_v6, %v350_v20  ;;  %v154_v30 = vmul.f32 %v900_v1, %v83_v17  ;;  %v541_v34 = vadd.f32 %v477_v16, %v413_v28  ;;  %v91_v15 = vld [vmem:[#allocation2 + $0xb0] sm:$0xff]  ;;  %v92_v16 = vld [vmem:[#allocation2 + $0xb8] sm:$0xff]  ;;  %v93_v17 = vld [vmem:[#allocation2 + $0xc0] sm:$0xff] }
  0x61   :  { %603 = vst [vmem:[#allocation10 + $0x40] sm:$0xff] %v539_v22  ;;  %v542_v35 = vadd.f32 %v478_v21, %v414_v29  ;;  %vm287_vm12 = vcmp.gt.f32.partialorder %v223_v24, 0.0  ;;  %v351_v36 = vmul.f32 0.1, %v223_v24  ;;  %vm288_vm13 = vcmp.gt.f32.partialorder %v224_v25, 0.0  ;;  %v486_v21 = vld [vmem:[#allocation5 + $0x98] sm:$0xff] }
  0x62   :  { %604 = vst [vmem:[#allocation10 + $0x48] sm:$0xff] %v540_v27  ;;  %v352_v38 = vmul.f32 0.1, %v224_v25  ;;  %v225_v40 = vadd.f32 %v902_v2, %v154_v30  ;;  %v155_v41 = vmul.f32 %v900_v1, %v84_v26  ;;  %605 = vst [vmem:[#allocation10 + $0x50] sm:$0xff] %v541_v34  ;;  %v156_v43 = vmul.f32 %v900_v1, %v85_v31  ;;  %v94_v22 = vld [vmem:[#allocation2 + $0xc8] sm:$0xff]  ;;  %v95_v23 = vld [vmem:[#allocation2 + $0xd0] sm:$0xff] }
  0x63   :  { %606 = vst [vmem:[#allocation10 + $0x58] sm:$0xff] %v542_v35  ;;  %v415_v42 = vsel %vm287_vm12, %v223_v24, %v351_v36  ;;  %v157_v44 = vmul.f32 %v900_v1, %v86_v32  ;;  %v158_v45 = vmul.f32 %v900_v1, %v87_v33  ;;  %v159_v60 = vmul.f32 %v900_v1, %v88_v46  ;;  %v487_v27 = vld [vmem:[#allocation5 + $0xa0] sm:$0xff]  ;;  %v96_v36 = vld [vmem:[#allocation2 + $0xd8] sm:$0xff] }
  0x64   :  { %v543_v48 = vadd.f32 %v479_v37, %v415_v42  ;;  %v416_v49 = vsel %vm288_vm13, %v224_v25, %v352_v38  ;;  %vm289_vm14 = vcmp.gt.f32.partialorder %v225_v40, 0.0  ;;  %v353_v50 = vmul.f32 0.1, %v225_v40  ;;  %v97_v37 = vld [vmem:[#allocation2 + $0xe0] sm:$0xff] }
  0x65   :  { %v544_v52 = vadd.f32 %v480_v39, %v416_v49  ;;  %v226_v53 = vadd.f32 %v902_v2, %v155_v41  ;;  %v227_v54 = vadd.f32 %v902_v2, %v156_v43  ;;  %v228_v55 = vadd.f32 %v902_v2, %v157_v44  ;;  %v488_v41 = vld [vmem:[#allocation5 + $0xa8] sm:$0xff] }
  0x66   :  { %607 = vst [vmem:[#allocation10 + $0x60] sm:$0xff] %v543_v48  ;;  %v417_v56 = vsel %vm289_vm14, %v225_v40, %v353_v50  ;;  %v229_v59 = vadd.f32 %v902_v2, %v158_v45  ;;  %v160_v61 = vmul.f32 %v900_v1, %v89_v47  ;;  %v230_v9 = vadd.f32 %v902_v2, %v159_v60  ;;  %v489_v47 = vld [vmem:[#allocation5 + $0xb0] sm:$0xff]  ;;  %v490_v48 = vld [vmem:[#allocation5 + $0xb8] sm:$0xff] }
  0x67   :  { %608 = vst [vmem:[#allocation10 + $0x68] sm:$0xff] %v544_v52  ;;  %v545_v62 = vadd.f32 %v481_v51, %v417_v56  ;;  %vm290_vm15 = vcmp.gt.f32.partialorder %v226_v53, 0.0  ;;  %v354_v63 = vmul.f32 0.1, %v226_v53  ;;  %vm291_vm0 = vcmp.gt.f32.partialorder %v227_v54, 0.0 }
  0x68   :  { %v355_v4 = vmul.f32 0.1, %v227_v54  ;;  %vm292_vm1 = vcmp.gt.f32.partialorder %v228_v55, 0.0  ;;  %v356_v5 = vmul.f32 0.1, %v228_v55  ;;  %vm293_vm2 = vcmp.gt.f32.partialorder %v229_v59, 0.0 }
  0x69   :  { %609 = vst [vmem:[#allocation10 + $0x70] sm:$0xff] %v545_v62  ;;  %v418_v6 = vsel %vm290_vm15, %v226_v53, %v354_v63  ;;  %v357_v7 = vmul.f32 0.1, %v229_v59  ;;  %v231_v10 = vadd.f32 %v902_v2, %v160_v61  ;;  %v161_v14 = vmul.f32 %v900_v1, %v90_v3  ;;  %v493_v61 = vld [vmem:[#allocation5 + $0xd0] sm:$0xff] }
  0x6a   :  { %v546_v11 = vadd.f32 %v482_v57, %v418_v6  ;;  %v419_v12 = vsel %vm291_vm0, %v227_v54, %v355_v4  ;;  %v420_v13 = vsel %vm292_vm1, %v228_v55, %v356_v5  ;;  %vm294_vm3 = vcmp.gt.f32.partialorder %v230_v9, 0.0  ;;  %v491_v54 = vld [vmem:[#allocation5 + $0xc0] sm:$0xff]  ;;  %v492_v55 = vld [vmem:[#allocation5 + $0xc8] sm:$0xff]  ;;  %v99_v5 = vld [vmem:[#allocation2 + $0xf0] sm:$0xff] }
  0x6b   :  { %v547_v18 = vadd.f32 %v483_v58, %v419_v12  ;;  %v548_v19 = vadd.f32 %v484_v0, %v420_v13  ;;  %v421_v20 = vsel %vm293_vm2, %v229_v59, %v357_v7  ;;  %v358_v25 = vmul.f32 0.1, %v230_v9  ;;  %v98_v4 = vld [vmem:[#allocation2 + $0xe8] sm:$0xff]  ;;  %v100_v6 = vld [vmem:[#allocation2 + $0xf8] sm:$0xff]  ;;  %v103_v13 = vld [vmem:[#allocation2 + $0x110] sm:$0xff] }
  0x6c   :  { %610 = vst [vmem:[#allocation10 + $0x78] sm:$0xff] %v546_v11  ;;  %v549_v24 = vadd.f32 %v485_v8, %v421_v20  ;;  %vm295_vm4 = vcmp.gt.f32.partialorder %v231_v10, 0.0  ;;  %v359_v26 = vmul.f32 0.1, %v231_v10  ;;  %v232_v28 = vadd.f32 %v902_v2, %v161_v14  ;;  %v101_v11 = vld [vmem:[#allocation2 + $0x100] sm:$0xff]  ;;  %v102_v12 = vld [vmem:[#allocation2 + $0x108] sm:$0xff] }
  0x6d   :  { %611 = vst [vmem:[#allocation10 + $0x80] sm:$0xff] %v547_v18  ;;  %612 = vst [vmem:[#allocation10 + $0x88] sm:$0xff] %v548_v19  ;;  %v162_v29 = vmul.f32 %v900_v1, %v91_v15  ;;  %v163_v30 = vmul.f32 %v900_v1, %v92_v16  ;;  %v164_v31 = vmul.f32 %v900_v1, %v93_v17  ;;  %v494_v17 = vld [vmem:[#allocation5 + $0xd8] sm:$0xff] }
  0x6e   :  { %613 = vst [vmem:[#allocation10 + $0x90] sm:$0xff] %v549_v24  ;;  %v422_v32 = vsel %vm294_vm3, %v230_v9, %v358_v25  ;;  %v423_v33 = vsel %vm295_vm4, %v231_v10, %v359_v26  ;;  %v165_v34 = vmul.f32 %v900_v1, %v94_v22  ;;  %v166_v35 = vmul.f32 %v900_v1, %v95_v23 }
  0x6f   :  { %v550_v38 = vadd.f32 %v486_v21, %v422_v32  ;;  %v551_v39 = vadd.f32 %v487_v27, %v423_v33  ;;  %vm296_vm5 = vcmp.gt.f32.partialorder %v232_v28, 0.0  ;;  %v360_v40 = vmul.f32 0.1, %v232_v28 }
  0x70   :  { %v233_v42 = vadd.f32 %v902_v2, %v162_v29  ;;  %v234_v43 = vadd.f32 %v902_v2, %v163_v30  ;;  %v235_v44 = vadd.f32 %v902_v2, %v164_v31  ;;  %v236_v45 = vadd.f32 %v902_v2, %v165_v34 }
  0x71   :  { %614 = vst [vmem:[#allocation10 + $0x98] sm:$0xff] %v550_v38  ;;  %615 = vst [vmem:[#allocation10 + $0xa0] sm:$0xff] %v551_v39  ;;  %v424_v46 = vsel %vm296_vm5, %v232_v28, %v360_v40  ;;  %v237_v49 = vadd.f32 %v902_v2, %v166_v35  ;;  %v167_v50 = vmul.f32 %v900_v1, %v96_v36  ;;  %v495_v28 = vld [vmem:[#allocation5 + $0xe0] sm:$0xff]  ;;  %v496_v36 = vld [vmem:[#allocation5 + $0xe8] sm:$0xff] }
  0x72   :  { %v168_v51 = vmul.f32 %v900_v1, %v97_v37  ;;  %v552_v52 = vadd.f32 %v488_v41, %v424_v46  ;;  %vm297_vm6 = vcmp.gt.f32.partialorder %v233_v42, 0.0  ;;  %v361_v53 = vmul.f32 0.1, %v233_v42  ;;  %v497_v37 = vld [vmem:[#allocation5 + $0xf0] sm:$0xff]  ;;  %v498_v41 = vld [vmem:[#allocation5 + $0xf8] sm:$0xff]  ;;  %v500_v46 = vld [vmem:[#allocation5 + $0x108] sm:$0xff] }
  0x73   :  { %vm298_vm7 = vcmp.gt.f32.partialorder %v234_v43, 0.0  ;;  %v362_v56 = vmul.f32 0.1, %v234_v43  ;;  %vm299_vm8 = vcmp.gt.f32.partialorder %v235_v44, 0.0  ;;  %v363_v57 = vmul.f32 0.1, %v235_v44 }
  0x74   :  { %vm300_vm9 = vcmp.gt.f32.partialorder %v236_v45, 0.0  ;;  %616 = vst [vmem:[#allocation10 + $0xa8] sm:$0xff] %v552_v52  ;;  %v425_v58 = vsel %vm297_vm6, %v233_v42, %v361_v53  ;;  %v364_v59 = vmul.f32 0.1, %v236_v45  ;;  %vm301_vm10 = vcmp.gt.f32.partialorder %v237_v49, 0.0  ;;  %v499_v42 = vld [vmem:[#allocation5 + $0x100] sm:$0xff] }
  0x75   :  { %v365_v60 = vmul.f32 0.1, %v237_v49  ;;  %v553_v62 = vadd.f32 %v489_v47, %v425_v58  ;;  %v426_v63 = vsel %vm298_vm7, %v234_v43, %v362_v56  ;;  %v427_v0 = vsel %vm299_vm8, %v235_v44, %v363_v57  ;;  %v106_v52 = vld [vmem:[#allocation2 + $0x128] sm:$0xff]  ;;  %v107_v56 = vld [vmem:[#allocation2 + $0x130] sm:$0xff]  ;;  %v108_v57 = vld [vmem:[#allocation2 + $0x138] sm:$0xff] }
  0x76   :  { %v238_v3 = vadd.f32 %v902_v2, %v167_v50  ;;  %v554_v7 = vadd.f32 %v490_v48, %v426_v63  ;;  %v555_v8 = vadd.f32 %v491_v54, %v427_v0  ;;  %v428_v9 = vsel %vm300_vm9, %v236_v45, %v364_v59  ;;  %v104_v50 = vld [vmem:[#allocation2 + $0x118] sm:$0xff]  ;;  %v109_v58 = vld [vmem:[#allocation2 + $0x140] sm:$0xff]  ;;  %v501_v63 = vld [vmem:[#allocation5 + $0x110] sm:$0xff] }
  0x77   :  { %v429_v10 = vsel %vm301_vm10, %v237_v49, %v365_v60  ;;  %617 = vst [vmem:[#allocation10 + $0xb0] sm:$0xff] %v553_v62  ;;  %v556_v14 = vadd.f32 %v492_v55, %v428_v9  ;;  %v239_v18 = vadd.f32 %v902_v2, %v168_v51  ;;  %v169_v19 = vmul.f32 %v900_v1, %v98_v4  ;;  %v105_v51 = vld [vmem:[#allocation2 + $0x120] sm:$0xff] }
  0x78   :  { %v557_v15 = vadd.f32 %v493_v61, %v429_v10  ;;  %vm302_vm11 = vcmp.gt.f32.partialorder %v238_v3, 0.0  ;;  %v366_v16 = vmul.f32 0.1, %v238_v3  ;;  %618 = vst [vmem:[#allocation10 + $0xb8] sm:$0xff] %v554_v7  ;;  %619 = vst [vmem:[#allocation10 + $0xc0] sm:$0xff] %v555_v8  ;;  %v170_v20 = vmul.f32 %v900_v1, %v99_v5 }
  0x79   :  { %v171_v21 = vmul.f32 %v900_v1, %v100_v6  ;;  %620 = vst [vmem:[#allocation10 + $0xc8] sm:$0xff] %v556_v14  ;;  %v172_v23 = vmul.f32 %v900_v1, %v101_v11  ;;  %v173_v24 = vmul.f32 %v900_v1, %v102_v12  ;;  %v174_v25 = vmul.f32 %v900_v1, %v103_v13  ;;  %v110_v6 = vld [vmem:[#allocation2 + $0x148] sm:$0xff]  ;;  %v502_v13 = vld [vmem:[#allocation5 + $0x118] sm:$0xff] }
  0x7a   :  { %621 = vst [vmem:[#allocation10 + $0xd0] sm:$0xff] %v557_v15  ;;  %v430_v22 = vsel %vm302_vm11, %v238_v3, %v366_v16  ;;  %vm303_vm12 = vcmp.gt.f32.partialorder %v239_v18, 0.0  ;;  %v367_v27 = vmul.f32 0.1, %v239_v18  ;;  %v240_v29 = vadd.f32 %v902_v2, %v169_v19  ;;  %v503_v16 = vld [vmem:[#allocation5 + $0x120] sm:$0xff]  ;;  %v505_v19 = vld [vmem:[#allocation5 + $0x130] sm:$0xff] }
  0x7b   :  { %v558_v26 = vadd.f32 %v494_v17, %v430_v22  ;;  %v241_v30 = vadd.f32 %v902_v2, %v170_v20  ;;  %v242_v31 = vadd.f32 %v902_v2, %v171_v21  ;;  %v243_v32 = vadd.f32 %v902_v2, %v172_v23  ;;  %v504_v17 = vld [vmem:[#allocation5 + $0x128] sm:$0xff] }
  0x7c   :  { %v244_v33 = vadd.f32 %v902_v2, %v173_v24  ;;  %v431_v34 = vsel %vm303_vm12, %v239_v18, %v367_v27  ;;  %vm304_vm13 = vcmp.gt.f32.partialorder %v240_v29, 0.0  ;;  %v368_v35 = vmul.f32 0.1, %v240_v29 }
  0x7d   :  { %622 = vst [vmem:[#allocation10 + $0xd8] sm:$0xff] %v558_v26  ;;  %v245_v38 = vadd.f32 %v902_v2, %v174_v25  ;;  %v559_v39 = vadd.f32 %v495_v28, %v431_v34  ;;  %vm305_vm14 = vcmp.gt.f32.partialorder %v241_v30, 0.0  ;;  %v369_v40 = vmul.f32 0.1, %v241_v30 }
  0x7e   :  { %vm306_vm15 = vcmp.gt.f32.partialorder %v242_v31, 0.0  ;;  %v432_v43 = vsel %vm304_vm13, %v240_v29, %v368_v35  ;;  %v370_v44 = vmul.f32 0.1, %v242_v31  ;;  %vm307_vm0 = vcmp.gt.f32.partialorder %v243_v32, 0.0 }
  0x7f   :  { %v371_v45 = vmul.f32 0.1, %v243_v32  ;;  %623 = vst [vmem:[#allocation10 + $0xe0] sm:$0xff] %v559_v39  ;;  %v560_v47 = vadd.f32 %v496_v36, %v432_v43  ;;  %v433_v48 = vsel %vm305_vm14, %v241_v30, %v369_v40  ;;  %vm308_vm1 = vcmp.gt.f32.partialorder %v244_v33, 0.0  ;;  %v506_v30 = vld [vmem:[#allocation5 + $0x138] sm:$0xff]  ;;  %v115_v39 = vld [vmem:[#allocation2 + $0x170] sm:$0xff] }
  0x80   :  { %v372_v49 = vmul.f32 0.1, %v244_v33  ;;  %v561_v53 = vadd.f32 %v497_v37, %v433_v48  ;;  %v434_v54 = vsel %vm306_vm15, %v242_v31, %v370_v44  ;;  %vm309_vm2 = vcmp.gt.f32.partialorder %v245_v38, 0.0  ;;  %v111_v31 = vld [vmem:[#allocation2 + $0x150] sm:$0xff]  ;;  %v113_v37 = vld [vmem:[#allocation2 + $0x160] sm:$0xff] }
  0x81   :  { %v435_v55 = vsel %vm307_vm0, %v243_v32, %v371_v45  ;;  %624 = vst [vmem:[#allocation10 + $0xe8] sm:$0xff] %v560_v47  ;;  %v562_v59 = vadd.f32 %v498_v41, %v434_v54  ;;  %v373_v62 = vmul.f32 0.1, %v245_v38  ;;  %v175_v3 = vmul.f32 %v900_v1, %v104_v50  ;;  %v112_v32 = vld [vmem:[#allocation2 + $0x158] sm:$0xff]  ;;  %v507_v45 = vld [vmem:[#allocation5 + $0x140] sm:$0xff]  ;;  %v508_v54 = vld [vmem:[#allocation5 + $0x148] sm:$0xff] }
  0x82   :  { %v563_v60 = vadd.f32 %v499_v42, %v435_v55  ;;  %v436_v61 = vsel %vm308_vm1, %v244_v33, %v372_v49  ;;  %625 = vst [vmem:[#allocation10 + $0xf0] sm:$0xff] %v561_v53  ;;  %v176_v4 = vmul.f32 %v900_v1, %v105_v51  ;;  %v177_v5 = vmul.f32 %v900_v1, %v106_v52 }
  0x83   :  { %v564_v0 = vadd.f32 %v500_v46, %v436_v61  ;;  %626 = vst [vmem:[#allocation10 + $0xf8] sm:$0xff] %v562_v59  ;;  %v437_v7 = vsel %vm309_vm2, %v245_v38, %v373_v62  ;;  %v178_v8 = vmul.f32 %v900_v1, %v107_v56  ;;  %v179_v9 = vmul.f32 %v900_v1, %v108_v57  ;;  %v114_v38 = vld [vmem:[#allocation2 + $0x168] sm:$0xff]  ;;  %v509_v62 = vld [vmem:[#allocation5 + $0x150] sm:$0xff] }
  0x84   :  { %627 = vst [vmem:[#allocation10 + $0x100] sm:$0xff] %v563_v60  ;;  %v180_v10 = vmul.f32 %v900_v1, %v109_v58  ;;  %v565_v11 = vadd.f32 %v501_v63, %v437_v7  ;;  %v246_v12 = vadd.f32 %v902_v2, %v175_v3  ;;  %v247_v14 = vadd.f32 %v902_v2, %v176_v4  ;;  %v510_v63 = vld [vmem:[#allocation5 + $0x158] sm:$0xff] }
  0x85   :  { %628 = vst [vmem:[#allocation10 + $0x108] sm:$0xff] %v564_v0  ;;  %v248_v15 = vadd.f32 %v902_v2, %v177_v5  ;;  %v249_v18 = vadd.f32 %v902_v2, %v178_v8  ;;  %v250_v20 = vadd.f32 %v902_v2, %v179_v9  ;;  %v181_v22 = vmul.f32 %v900_v1, %v110_v6  ;;  %v511_v0 = vld [vmem:[#allocation5 + $0x160] sm:$0xff]  ;;  %v512_v6 = vld [vmem:[#allocation5 + $0x168] sm:$0xff]  ;;  %v116_v7 = vld [vmem:[#allocation2 + $0x178] sm:$0xff] }
  0x86   :  { %v251_v21 = vadd.f32 %v902_v2, %v180_v10  ;;  %629 = vst [vmem:[#allocation10 + $0x110] sm:$0xff] %v565_v11  ;;  %vm310_vm3 = vcmp.gt.f32.partialorder %v246_v12, 0.0  ;;  %v374_v23 = vmul.f32 0.1, %v246_v12  ;;  %vm311_vm4 = vcmp.gt.f32.partialorder %v247_v14, 0.0  ;;  %v117_v11 = vld [vmem:[#allocation2 + $0x180] sm:$0xff] }
  0x87   :  { %v375_v24 = vmul.f32 0.1, %v247_v14  ;;  %vm312_vm5 = vcmp.gt.f32.partialorder %v248_v15, 0.0  ;;  %v376_v25 = vmul.f32 0.1, %v248_v15  ;;  %vm313_vm6 = vcmp.gt.f32.partialorder %v249_v18, 0.0 }
  0x88   :  { %v377_v26 = vmul.f32 0.1, %v249_v18  ;;  %v438_v27 = vsel %vm310_vm3, %v246_v12, %v374_v23  ;;  %vm314_vm7 = vcmp.gt.f32.partialorder %v250_v20, 0.0  ;;  %v378_v29 = vmul.f32 0.1, %v250_v20  ;;  %v121_v23 = vld [vmem:[#allocation2 + $0x1a0] sm:$0xff] }
  0x89   :  { %v439_v28 = vsel %vm311_vm4, %v247_v14, %v375_v24  ;;  %v566_v33 = vadd.f32 %v502_v13, %v438_v27  ;;  %v440_v35 = vsel %vm312_vm5, %v248_v15, %v376_v25  ;;  %vm315_vm8 = vcmp.gt.f32.partialorder %v251_v21, 0.0  ;;  %v513_v15 = vld [vmem:[#allocation5 + $0x170] sm:$0xff]  ;;  %v122_v24 = vld [vmem:[#allocation2 + $0x1a8] sm:$0xff] }
  0x8a   :  { %v567_v34 = vadd.f32 %v503_v16, %v439_v28  ;;  %v441_v36 = vsel %vm313_vm6, %v249_v18, %v377_v26  ;;  %v568_v40 = vadd.f32 %v504_v17, %v440_v35  ;;  %v442_v42 = vsel %vm314_vm7, %v250_v20, %v378_v29  ;;  %v118_v16 = vld [vmem:[#allocation2 + $0x188] sm:$0xff]  ;;  %v119_v17 = vld [vmem:[#allocation2 + $0x190] sm:$0xff] }
  0x8b   :  { %v569_v41 = vadd.f32 %v505_v19, %v441_v36  ;;  %630 = vst [vmem:[#allocation10 + $0x118] sm:$0xff] %v566_v33  ;;  %v570_v43 = vadd.f32 %v506_v30, %v442_v42  ;;  %v379_v44 = vmul.f32 0.1, %v251_v21  ;;  %v252_v46 = vadd.f32 %v902_v2, %v181_v22  ;;  %v120_v22 = vld [vmem:[#allocation2 + $0x198] sm:$0xff]  ;;  %v515_v42 = vld [vmem:[#allocation5 + $0x180] sm:$0xff] }
  0x8c   :  { %631 = vst [vmem:[#allocation10 + $0x120] sm:$0xff] %v567_v34  ;;  %v182_v47 = vmul.f32 %v900_v1, %v111_v31  ;;  %632 = vst [vmem:[#allocation10 + $0x128] sm:$0xff] %v568_v40  ;;  %v183_v48 = vmul.f32 %v900_v1, %v112_v32  ;;  %v184_v49 = vmul.f32 %v900_v1, %v113_v37 }
  0x8d   :  { %633 = vst [vmem:[#allocation10 + $0x130] sm:$0xff] %v569_v41  ;;  %v185_v50 = vmul.f32 %v900_v1, %v114_v38  ;;  %v186_v51 = vmul.f32 %v900_v1, %v115_v39  ;;  %634 = vst [vmem:[#allocation10 + $0x138] sm:$0xff] %v570_v43  ;;  %v443_v52 = vsel %vm315_vm8, %v251_v21, %v379_v44  ;;  %vm316_vm9 = vcmp.gt.f32.partialorder %v252_v46, 0.0  ;;  %v514_v38 = vld [vmem:[#allocation5 + $0x178] sm:$0xff] }
  0x8e   :  { %v380_v53 = vmul.f32 0.1, %v252_v46  ;;  %v253_v55 = vadd.f32 %v902_v2, %v182_v47  ;;  %v571_v56 = vadd.f32 %v507_v45, %v443_v52  ;;  %v254_v57 = vadd.f32 %v902_v2, %v183_v48  ;;  %v516_v47 = vld [vmem:[#allocation5 + $0x188] sm:$0xff]  ;;  %v123_v52 = vld [vmem:[#allocation2 + $0x1b0] sm:$0xff] }
  0x8f   :  { %v255_v58 = vadd.f32 %v902_v2, %v184_v49  ;;  %v256_v59 = vadd.f32 %v902_v2, %v185_v50  ;;  %v257_v3 = vadd.f32 %v902_v2, %v186_v51  ;;  %v187_v21 = vmul.f32 %v900_v1, %v116_v7  ;;  %v517_v51 = vld [vmem:[#allocation5 + $0x190] sm:$0xff] }
  0x90   :  { %v444_v60 = vsel %vm316_vm9, %v252_v46, %v380_v53  ;;  %vm317_vm10 = vcmp.gt.f32.partialorder %v253_v55, 0.0  ;;  %v381_v61 = vmul.f32 0.1, %v253_v55  ;;  %635 = vst [vmem:[#allocation10 + $0x140] sm:$0xff] %v571_v56  ;;  %vm318_vm11 = vcmp.gt.f32.partialorder %v254_v57, 0.0  ;;  %v124_v53 = vld [vmem:[#allocation2 + $0x1b8] sm:$0xff] }
  0x91   :  { %v572_v4 = vadd.f32 %v508_v54, %v444_v60  ;;  %v382_v5 = vmul.f32 0.1, %v254_v57  ;;  %vm319_vm12 = vcmp.gt.f32.partialorder %v255_v58, 0.0  ;;  %v383_v9 = vmul.f32 0.1, %v255_v58  ;;  %v127_v7 = vld [vmem:[#allocation2 + $0x1d0] sm:$0xff] }
  0x92   :  { %v445_v8 = vsel %vm317_vm10, %v253_v55, %v381_v61  ;;  %vm320_vm13 = vcmp.gt.f32.partialorder %v256_v59, 0.0  ;;  %v384_v10 = vmul.f32 0.1, %v256_v59  ;;  %vm321_vm14 = vcmp.gt.f32.partialorder %v257_v3, 0.0  ;;  %v519_v61 = vld [vmem:[#allocation5 + $0x1a0] sm:$0xff] }
  0x93   :  { %636 = vst [vmem:[#allocation10 + $0x148] sm:$0xff] %v572_v4  ;;  %v573_v12 = vadd.f32 %v509_v62, %v445_v8  ;;  %v446_v13 = vsel %vm318_vm11, %v254_v57, %v382_v5  ;;  %v385_v14 = vmul.f32 0.1, %v257_v3  ;;  %v447_v19 = vsel %vm319_vm12, %v255_v58, %v383_v9  ;;  %v518_v57 = vld [vmem:[#allocation5 + $0x198] sm:$0xff] }
  0x94   :  { %v574_v18 = vadd.f32 %v510_v63, %v446_v13  ;;  %v448_v20 = vsel %vm320_vm13, %v256_v59, %v384_v10  ;;  %v575_v25 = vadd.f32 %v511_v0, %v447_v19  ;;  %v188_v28 = vmul.f32 %v900_v1, %v117_v11  ;;  %v125_v63 = vld [vmem:[#allocation2 + $0x1c0] sm:$0xff]  ;;  %v128_v8 = vld [vmem:[#allocation2 + $0x1d8] sm:$0xff] }
  0x95   :  { %637 = vst [vmem:[#allocation10 + $0x150] sm:$0xff] %v573_v12  ;;  %v576_v26 = vadd.f32 %v512_v6, %v448_v20  ;;  %v449_v27 = vsel %vm321_vm14, %v257_v3, %v385_v14  ;;  %v258_v30 = vadd.f32 %v902_v2, %v187_v21  ;;  %v189_v31 = vmul.f32 %v900_v1, %v118_v16  ;;  %v126_v6 = vld [vmem:[#allocation2 + $0x1c8] sm:$0xff]  ;;  %v129_v21 = vld [vmem:[#allocation2 + $0x1e0] sm:$0xff] }
  0x96   :  { %638 = vst [vmem:[#allocation10 + $0x158] sm:$0xff] %v574_v18  ;;  %v577_v29 = vadd.f32 %v513_v15, %v449_v27  ;;  %v190_v32 = vmul.f32 %v900_v1, %v119_v17  ;;  %639 = vst [vmem:[#allocation10 + $0x160] sm:$0xff] %v575_v25  ;;  %v259_v33 = vadd.f32 %v902_v2, %v188_v28  ;;  %v520_v12 = vld [vmem:[#allocation5 + $0x1a8] sm:$0xff]  ;;  %v521_v25 = vld [vmem:[#allocation5 + $0x1b0] sm:$0xff] }
  0x97   :  { %640 = vst [vmem:[#allocation10 + $0x168] sm:$0xff] %v576_v26  ;;  %v191_v34 = vmul.f32 %v900_v1, %v120_v22  ;;  %v192_v35 = vmul.f32 %v900_v1, %v121_v23  ;;  %v193_v36 = vmul.f32 %v900_v1, %v122_v24  ;;  %vm322_vm15 = vcmp.gt.f32.partialorder %v258_v30, 0.0  ;;  %v130_v22 = vld [vmem:[#allocation2 + $0x1e8] sm:$0xff]  ;;  %v522_v27 = vld [vmem:[#allocation5 + $0x1b8] sm:$0xff] }
  0x98   :  { %641 = vst [vmem:[#allocation10 + $0x170] sm:$0xff] %v577_v29  ;;  %v386_v37 = vmul.f32 0.1, %v258_v30  ;;  %v260_v39 = vadd.f32 %v902_v2, %v189_v31  ;;  %v261_v40 = vadd.f32 %v902_v2, %v190_v32  ;;  %vm323_vm0 = vcmp.gt.f32.partialorder %v259_v33, 0.0  ;;  %v687_v32 = vld [vmem:[#allocation8] ss:$0 sm:$0xff] }
  0x99   :  { %v387_v41 = vmul.f32 0.1, %v259_v33  ;;  %v262_v43 = vadd.f32 %v902_v2, %v191_v34  ;;  %v263_v44 = vadd.f32 %v902_v2, %v192_v35  ;;  %v264_v62 = vadd.f32 %v902_v2, %v193_v36 }
  0x9a   :  { %v450_v45 = vsel %vm322_vm15, %v258_v30, %v386_v37  ;;  %vm324_vm1 = vcmp.gt.f32.partialorder %v260_v39, 0.0  ;;  %v388_v46 = vmul.f32 0.1, %v260_v39  ;;  %vm325_vm2 = vcmp.gt.f32.partialorder %v261_v40, 0.0 }
  0x9b   :  { %v578_v48 = vadd.f32 %v514_v38, %v450_v45  ;;  %v451_v49 = vsel %vm323_vm0, %v259_v33, %v387_v41  ;;  %v389_v50 = vmul.f32 0.1, %v261_v40  ;;  %vm326_vm3 = vcmp.gt.f32.partialorder %v262_v43, 0.0  ;;  %v688_v33 = vld [vmem:[#allocation7] ss:$0 sm:$0xff] }
  0x9c   :  { %v579_v54 = vadd.f32 %v515_v42, %v451_v49  ;;  %v452_v55 = vsel %vm324_vm1, %v260_v39, %v388_v46  ;;  %v390_v56 = vmul.f32 0.1, %v262_v43  ;;  %vm327_vm4 = vcmp.gt.f32.partialorder %v263_v44, 0.0  ;;  %v523_v39 = vld [vmem:[#allocation5 + $0x1c0] sm:$0xff] }
  0x9d   :  { %642 = vst [vmem:[#allocation10 + $0x178] sm:$0xff] %v578_v48  ;;  %v580_v58 = vadd.f32 %v516_v47, %v452_v55  ;;  %v453_v59 = vsel %vm325_vm2, %v261_v40, %v389_v50  ;;  %v391_v60 = vmul.f32 0.1, %v263_v44  ;;  %v194_v4 = vmul.f32 %v900_v1, %v123_v52  ;;  %v524_v40 = vld [vmem:[#allocation5 + $0x1c8] sm:$0xff]  ;;  %v526_v47 = vld [vmem:[#allocation5 + $0x1d8] sm:$0xff] }
  0x9e   :  { %643 = vst [vmem:[#allocation10 + $0x180] sm:$0xff] %v579_v54  ;;  %v581_v0 = vadd.f32 %v517_v51, %v453_v59  ;;  %v454_v3 = vsel %vm326_vm3, %v262_v43, %v390_v56  ;;  %v195_v5 = vmul.f32 %v900_v1, %v124_v53  ;;  %vm328_vm5 = vcmp.gt.f32.partialorder %v264_v62, 0.0  ;;  %v525_v43 = vld [vmem:[#allocation5 + $0x1d0] sm:$0xff]  ;;  %v132_v52 = vld [vmem:[#allocation2 + $0x1f8] sm:$0xff] }
  0x9f   :  { %644 = vst [vmem:[#allocation10 + $0x188] sm:$0xff] %v580_v58  ;;  %v582_v9 = vadd.f32 %v518_v57, %v454_v3  ;;  %v455_v10 = vsel %vm327_vm4, %v263_v44, %v391_v60  ;;  %v392_v11 = vmul.f32 0.1, %v264_v62  ;;  %v265_v14 = vadd.f32 %v902_v2, %v194_v4  ;;  %v131_v44 = vld [vmem:[#allocation2 + $0x1f0] sm:$0xff]  ;;  %v527_v60 = vld [vmem:[#allocation5 + $0x1e0] sm:$0xff] }
  0xa0   :  { %645 = vst [vmem:[#allocation10 + $0x190] sm:$0xff] %v581_v0  ;;  %v583_v13 = vadd.f32 %v519_v61, %v455_v10  ;;  %v266_v15 = vadd.f32 %v902_v2, %v195_v5  ;;  %v196_v16 = vmul.f32 %v900_v1, %v125_v63  ;;  %v197_v18 = vmul.f32 %v900_v1, %v126_v6 }
  0xa1   :  { %646 = vst [vmem:[#allocation10 + $0x198] sm:$0xff] %v582_v9  ;;  %v456_v17 = vsel %vm328_vm5, %v264_v62, %v392_v11  ;;  %v198_v19 = vmul.f32 %v900_v1, %v127_v7  ;;  %v199_v20 = vmul.f32 %v900_v1, %v128_v8  ;;  %vm329_vm6 = vcmp.gt.f32.partialorder %v265_v14, 0.0  ;;  %v528_v62 = vld [vmem:[#allocation5 + $0x1e8] sm:$0xff]  ;;  %v529_v7 = vld [vmem:[#allocation5 + $0x1f0] sm:$0xff] }
  0xa2   :  { %647 = vst [vmem:[#allocation10 + $0x1a0] sm:$0xff] %v583_v13  ;;  %v584_v23 = vadd.f32 %v520_v12, %v456_v17  ;;  %v393_v24 = vmul.f32 0.1, %v265_v14  ;;  %vm330_vm7 = vcmp.gt.f32.partialorder %v266_v15, 0.0  ;;  %v394_v26 = vmul.f32 0.1, %v266_v15 }
  0xa3   :  { %v267_v28 = vadd.f32 %v902_v2, %v196_v16  ;;  %v268_v29 = vadd.f32 %v902_v2, %v197_v18  ;;  %v269_v30 = vadd.f32 %v902_v2, %v198_v19  ;;  %v270_v1 = vadd.f32 %v687_v32, %v199_v20  ;;  %v530_v13 = vld [vmem:[#allocation5 + $0x1f8] sm:$0xff] }
  0xa4   :  { %648 = vst [vmem:[#allocation10 + $0x1a8] sm:$0xff] %v584_v23  ;;  %v457_v31 = vsel %vm329_vm6, %v265_v14, %v393_v24  ;;  %v200_v34 = vmul.f32 %v688_v33, %v129_v21  ;;  %v201_v35 = vmul.f32 %v688_v33, %v130_v22  ;;  %v458_v37 = vsel %vm330_vm7, %v266_v15, %v394_v26 }
  0xa5   :  { %v585_v36 = vadd.f32 %v521_v25, %v457_v31  ;;  %vm331_vm8 = vcmp.gt.f32.partialorder %v267_v28, 0.0  ;;  %v395_v38 = vmul.f32 0.1, %v267_v28  ;;  %v586_v41 = vadd.f32 %v522_v27, %v458_v37 }
  0xa6   :  { %vm332_vm9 = vcmp.gt.f32.partialorder %v268_v29, 0.0  ;;  %v396_v42 = vmul.f32 0.1, %v268_v29  ;;  %vm333_vm10 = vcmp.gt.f32.partialorder %v269_v30, 0.0  ;;  %v397_v45 = vmul.f32 0.1, %v269_v30 }
  0xa7   :  { %649 = vst [vmem:[#allocation10 + $0x1b0] sm:$0xff] %v585_v36  ;;  %v459_v2 = vsel %vm331_vm8, %v267_v28, %v395_v38  ;;  %vm334_vm11 = vcmp.gt.f32.partialorder %v270_v1, 0.0  ;;  %v398_v46 = vmul.f32 0.1, %v270_v1  ;;  %650 = vst [vmem:[#allocation10 + $0x1b8] sm:$0xff] %v586_v41  ;;  %v271_v50 = vadd.f32 %v687_v32, %v200_v34 }
  0xa8   :  { %v587_v48 = vadd.f32 %v523_v39, %v459_v2  ;;  %v460_v49 = vsel %vm332_vm9, %v268_v29, %v396_v42  ;;  %v272_v51 = vadd.f32 %v687_v32, %v201_v35  ;;  %v461_v54 = vsel %vm333_vm10, %v269_v30, %v397_v45 }
  0xa9   :  { %v588_v53 = vadd.f32 %v524_v40, %v460_v49  ;;  %v462_v55 = vsel %vm334_vm11, %v270_v1, %v398_v46  ;;  %v202_v56 = vmul.f32 %v688_v33, %v131_v44  ;;  %v589_v57 = vadd.f32 %v525_v43, %v461_v54 }
  0xaa   :  { %651 = vst [vmem:[#allocation10 + $0x1c0] sm:$0xff] %v587_v48  ;;  %v590_v58 = vadd.f32 %v526_v47, %v462_v55  ;;  %vm335_vm12 = vcmp.gt.f32.partialorder %v271_v50, 0.0  ;;  %v399_v59 = vmul.f32 0.1, %v271_v50  ;;  %vm336_vm13 = vcmp.gt.f32.partialorder %v272_v51, 0.0 }
  0xab   :  { %652 = vst [vmem:[#allocation10 + $0x1c8] sm:$0xff] %v588_v53  ;;  %v400_v61 = vmul.f32 0.1, %v272_v51  ;;  %v273_v63 = vadd.f32 %v687_v32, %v202_v56  ;;  %v203_v0 = vmul.f32 %v688_v33, %v132_v52  ;;  %653 = vst [vmem:[#allocation10 + $0x1d0] sm:$0xff] %v589_v57 }
  0xac   :  { %654 = vst [vmem:[#allocation10 + $0x1d8] sm:$0xff] %v590_v58  ;;  %v463_v3 = vsel %vm335_vm12, %v271_v50, %v399_v59 }
  0xad   :  { %v591_v4 = vadd.f32 %v527_v60, %v463_v3  ;;  %v464_v5 = vsel %vm336_vm13, %v272_v51, %v400_v61  ;;  %vm337_vm14 = vcmp.gt.f32.partialorder %v273_v63, 0.0  ;;  %v401_v6 = vmul.f32 0.1, %v273_v63 }
  0xae   :  { %v592_v8 = vadd.f32 %v528_v62, %v464_v5  ;;  %v274_v9 = vadd.f32 %v687_v32, %v203_v0 }
  0xaf   :  { %655 = vst [vmem:[#allocation10 + $0x1e0] sm:$0xff] %v591_v4  ;;  %v465_v10 = vsel %vm337_vm14, %v273_v63, %v401_v6 }
  0xb0   :  { %656 = vst [vmem:[#allocation10 + $0x1e8] sm:$0xff] %v592_v8  ;;  %v593_v11 = vadd.f32 %v529_v7, %v465_v10  ;;  %vm338_vm15 = vcmp.gt.f32.partialorder %v274_v9, 0.0  ;;  %v402_v12 = vmul.f32 0.1, %v274_v9 }
  0xb2   :  { %657 = vst [vmem:[#allocation10 + $0x1f0] sm:$0xff] %v593_v11  ;;  %v466_v14 = vsel %vm338_vm15, %v274_v9, %v402_v12 }
  0xb3   :  { %v594_v15 = vadd.f32 %v530_v13, %v466_v14 }
  0xb5   :  { %658 = vst [vmem:[#allocation10 + $0x1f8] sm:$0xff] %v594_v15 }
  0xb6   :  { %788 = shalt.err (!%p785_p8)
}
  0xb7   :  { %s789_s17 = scalar_lea.hbm %s1054_s4, 8192 }
  0xb8   :  { %p790_p9 = scmp.ne.s32.totalorder %s1054_s4, %s789_s17  ;;  %p793_p10 = scmp.lt.u32.totalorder %s789_s17, %s1054_s4 }
  0xba   :  { %p795_p11 = pnand %p793_p10, %p790_p9 }
  0xbc   :  { %798 = shalt.err (!%p795_p11)
}
  0xbd   :  { %670 = dma.vmem_to_hbm [thread:$0]  %s665_s13, 8192, %s1054_s4, [#allocation4], %s809_s27, %s809_s27, %s810_s28  }
  0xbe   :  { %805 = dma.done.wait [#allocation4], 8192  }
  0xbf   :  { %806 = vsyncadd [#allocation4], 4294959104 }
  0xc0   :  { %674 = vsyncpa [#allocation3], 1 }
  0xc1   :  { %675 = vsyncpa [#allocation6], 1 }
  0xc2   :  { %676 = vsyncpa [#allocation9], 1 }
  0xc3   :  { %677 = vsyncpa [#allocation4], 1 }

// kernel: residual_block_forward.7
= control target key start
LH: loop header
LB: loop body
LE: loop exit
PB: predicated region body
PF: predicated region fallthrough
CT: control target
= control target key end

     0   :  { %13 = vsyncpa [#allocation3], 0  ;;  %s2963_s0 = inlined_call_operand.hbm [shape: f32[512,128], index: 0, kind: input, shape index: {}]   ;;  %s2964_s1 = inlined_call_operand.hbm [shape: f32[512,128], index: 1, kind: input, shape index: {}]   ;;  %s2965_s2 = inlined_call_operand.hbm [shape: f32[128,128], index: 2, kind: input, shape index: {}]   ;;  %s2966_s3 = inlined_call_operand.hbm [shape: f32[1,128], index: 3, kind: input, shape index: {}]   ;;  %s2967_s4 = inlined_call_operand.hbm [shape: f32[1,128], index: 4, kind: input, shape index: {}]   ;;  %s2968_s5 = inlined_call_operand.hbm [shape: f32[512,128], index: 5, kind: output, shape index: {0}]   ;;  %s2969_s6 = inlined_call_operand.hbm [shape: f32[512,128], index: 6, kind: output, shape index: {1}]   ;;  %s2970_s7 = inlined_call_operand.hbm [shape: f32[1,2,128], index: 7, kind: output, shape index: {2}]  }
   0x1   :  { %14 = vsyncpa [#allocation6], 0 }
   0x2   :  { %15 = vsyncpa [#allocation9], 0 }
   0x3   :  { %16 = vsyncpa [#allocation4], 0 }
   0x4   :  { %17 = vsyncpa [#allocation13], 0  ;;  %s2240_s24 = smov [#allocation5]   ;;  %s2241_s26 = smov [#allocation8]  }
   0x5   :  { %s35_s25 = sshll.u32 %s2240_s24, 4  ;;  %s60_s27 = sshll.u32 %s2241_s26, 4  ;;  %s36_s25 = int_to_ptr.vmem [resolvable:$true] %s35_s25  ;;  %s2290_s27 = int_to_ptr.vmem [resolvable:$true] %s60_s27 }
   0x6   :  { %s2054_s30 = scalar_lea.hbm %s2964_s1, 8192 }
   0x7   :  { %p2055_p0 = scmp.ne.s32.totalorder %s2964_s1, %s2054_s30  ;;  %p2058_p1 = scmp.lt.u32.totalorder %s2054_s30, %s2964_s1 }
   0x9   :  { %p2060_p2 = pnand %p2058_p1, %p2055_p0 }
   0xb   :  { %2063 = shalt.err (!%p2060_p2)
}
   0xc   :  { %s2064_s12 = scalar_lea.vmem %s36_s25, 8192  ;;  %p2069_p4 = scmp.lt.s32.totalorder %s36_s25, %s36_s25 }
   0xd   :  { %p2065_p3 = scmp.ne.s32.totalorder %s36_s25, %s2064_s12  ;;  %p2070_p5 = scmp.lt.s32.totalorder %s2064_s12, %s2064_s12 }
   0xf   :  { %p2071_p6 = por %p2070_p5, %p2069_p4 }
  0x11   :  { %p2072_p7 = pnand %p2071_p6, %p2065_p3 }
  0x13   :  { %2075 = shalt.err (!%p2072_p7)
}
  0x14   :  { %s2242_s13 = smov 128   ;;  %s2243_s14 = smov 8  }
  0x15   :  { %41 = dma.hbm_to_vmem [thread:$0]  %s2964_s1, 8192, %s36_s25, [#allocation6], %s2242_s13, %s2242_s13, %s2243_s14  }
  0x16   :  { %s2076_s19 = scalar_lea.hbm %s2966_s3, 16 }
  0x17   :  { %p2077_p8 = scmp.ne.s32.totalorder %s2966_s3, %s2076_s19  ;;  %p2080_p9 = scmp.lt.u32.totalorder %s2076_s19, %s2966_s3 }
  0x19   :  { %p2082_p10 = pnand %p2080_p9, %p2077_p8 }
  0x1b   :  { %2085 = shalt.err (!%p2082_p10)
}
  0x1c   :  { %s2086_s24 = scalar_lea.vmem %s2290_s27, 16  ;;  %s2090_s1 = scalar_lea.vmem %s2290_s27, 32 }
  0x1d   :  { %p2087_p11 = scmp.ne.s32.totalorder %s2290_s27, %s2086_s24  ;;  %p2091_p12 = scmp.lt.s32.totalorder %s2290_s27, %s2290_s27 }
  0x1e   :  { %p2092_p13 = scmp.lt.s32.totalorder %s2090_s1, %s2086_s24 }
  0x20   :  { %p2093_p0 = por %p2092_p13, %p2091_p12 }
  0x22   :  { %p2094_p1 = pnand %p2093_p0, %p2087_p11 }
  0x24   :  { %2097 = shalt.err (!%p2094_p1)
}
  0x25   :  { %63 = dma.hbm_to_vmem [thread:$0]  %s2966_s3, 16, %s2290_s27, [#allocation9]  }
  0x26   :  { %s2244_s28 = smov [#allocation2]   ;;  %s2245_s30 = smov [#allocation7]  }
  0x27   :  { %s23_s29 = sshll.u32 %s2244_s28, 4  ;;  %s47_s8 = sshll.u32 %s2245_s30, 4  ;;  %s24_s29 = int_to_ptr.vmem [resolvable:$true] %s23_s29  ;;  %s2325_s8 = int_to_ptr.vmem [resolvable:$true] %s47_s8 }
  0x28   :  { %s2098_s11 = scalar_lea.hbm %s2963_s0, 8192 }
  0x29   :  { %p2099_p2 = scmp.ne.s32.totalorder %s2963_s0, %s2098_s11  ;;  %p2102_p3 = scmp.lt.u32.totalorder %s2098_s11, %s2963_s0 }
  0x2b   :  { %p2104_p4 = pnand %p2102_p3, %p2099_p2 }
  0x2d   :  { %2107 = shalt.err (!%p2104_p4)
}
  0x2e   :  { %s2108_s3 = scalar_lea.vmem %s24_s29, 8192  ;;  %p2113_p6 = scmp.lt.s32.totalorder %s24_s29, %s24_s29 }
  0x2f   :  { %p2109_p5 = scmp.ne.s32.totalorder %s24_s29, %s2108_s3  ;;  %p2114_p7 = scmp.lt.s32.totalorder %s2108_s3, %s2108_s3 }
  0x31   :  { %p2115_p8 = por %p2114_p7, %p2113_p6 }
  0x33   :  { %p2116_p9 = pnand %p2115_p8, %p2109_p5 }
  0x35   :  { %2119 = shalt.err (!%p2116_p9)
}
  0x36   :  { %29 = dma.hbm_to_vmem [thread:$0]  %s2963_s0, 8192, %s24_s29, [#allocation3], %s2242_s13, %s2242_s13, %s2243_s14  }
  0x37   :  { %s2120_s21 = scalar_lea.hbm %s2965_s2, 2048 }
  0x38   :  { %p2121_p10 = scmp.ne.s32.totalorder %s2965_s2, %s2120_s21  ;;  %p2124_p11 = scmp.lt.u32.totalorder %s2120_s21, %s2965_s2 }
  0x3a   :  { %p2126_p12 = pnand %p2124_p11, %p2121_p10 }
  0x3c   :  { %2129 = shalt.err (!%p2126_p12)
}
  0x3d   :  { %s2130_s25 = scalar_lea.vmem %s2325_s8, 2048  ;;  %p2135_p0 = scmp.lt.s32.totalorder %s2325_s8, %s2325_s8 }
  0x3e   :  { %p2131_p13 = scmp.ne.s32.totalorder %s2325_s8, %s2130_s25  ;;  %p2136_p1 = scmp.lt.s32.totalorder %s2130_s25, %s2130_s25 }
  0x40   :  { %p2137_p2 = por %p2136_p1, %p2135_p0 }
  0x42   :  { %p2138_p3 = pnand %p2137_p2, %p2131_p13 }
  0x44   :  { %2141 = shalt.err (!%p2138_p3)
}
  0x45   :  { %53 = dma.hbm_to_vmem [thread:$0]  %s2965_s2, 2048, %s2325_s8, [#allocation6], %s2242_s13, %s2242_s13, %s2243_s14  }
  0x46   :  { %s2246_s28 = smov [#allocation10]   ;;  %s2142_s10 = scalar_lea.hbm %s2967_s4, 16 }
  0x47   :  { %s70_s29 = sshll.u32 %s2246_s28, 4  ;;  %p2143_p4 = scmp.ne.s32.totalorder %s2967_s4, %s2142_s10  ;;  %s71_s29 = int_to_ptr.vmem [resolvable:$true] %s70_s29 }
  0x48   :  { %p2146_p5 = scmp.lt.u32.totalorder %s2142_s10, %s2967_s4 }
  0x4a   :  { %p2148_p6 = pnand %p2146_p5, %p2143_p4 }
  0x4c   :  { %2151 = shalt.err (!%p2148_p6)
}
  0x4d   :  { %s2152_s17 = scalar_lea.vmem %s71_s29, 16  ;;  %s2156_s2 = scalar_lea.vmem %s71_s29, 32 }
  0x4e   :  { %p2153_p7 = scmp.ne.s32.totalorder %s71_s29, %s2152_s17  ;;  %p2157_p8 = scmp.lt.s32.totalorder %s71_s29, %s71_s29 }
  0x4f   :  { %p2158_p9 = scmp.lt.s32.totalorder %s2156_s2, %s2152_s17 }
  0x51   :  { %p2159_p10 = por %p2158_p9, %p2157_p8 }
  0x53   :  { %p2160_p11 = pnand %p2159_p10, %p2153_p7 }
  0x55   :  { %2163 = shalt.err (!%p2160_p11)
}
  0x56   :  { %73 = dma.hbm_to_vmem [thread:$0]  %s2967_s4, 16, %s71_s29, [#allocation9]  }
  0x57   :  { %2230 = dma.done.wait [#allocation3], 8192  }
  0x58   :  { %2231 = vsyncadd [#allocation3], 4294959104 }
  0x59   :  { %2232 = dma.done.wait [#allocation6], 10240  }
  0x5a   :  { %2233 = vsyncadd [#allocation6], 4294957056 }
  0x5b   :  { %2234 = dma.done.wait [#allocation9], 32  }
  0x5c   :  { %2235 = vsyncadd [#allocation9], 4294967264  ;;  %v679_v0 = vld [vmem:[#allocation7] sm:$0xff]  ;;  %v680_v1 = vld [vmem:[#allocation7 + $0x8] sm:$0xff]  ;;  %s2247_s4 = smov [#allocation11]  }
  0x5d   :  { %v681_v2 = vld [vmem:[#allocation7 + $0x10] sm:$0xff]  ;;  %v1994_v3 = vpack.c.bf16 %v680_v1, %v679_v0  ;;  %v682_v4 = vld [vmem:[#allocation7 + $0x18] sm:$0xff]  ;;  %v683_v5 = vld [vmem:[#allocation7 + $0x20] sm:$0xff]  ;;  %s1741_s27 = sshll.u32 %s2247_s4, 4  ;;  %s1742_s27 = int_to_ptr.vmem [resolvable:$true] %s1741_s27 }
  0x5e   :  { %v684_v6 = vld [vmem:[#allocation7 + $0x28] sm:$0xff]  ;;  %v1998_v7 = vpack.c.bf16 %v682_v4, %v681_v2  ;;  %v685_v8 = vld [vmem:[#allocation7 + $0x30] sm:$0xff]  ;;  %v686_v9 = vld [vmem:[#allocation7 + $0x38] sm:$0xff]  ;;  %s2164_s18 = scalar_lea.vmem %s1742_s27, 8192  ;;  %p2169_p13 = scmp.lt.s32.totalorder %s1742_s27, %s1742_s27 }
  0x5f   :  { %v687_v10 = vld [vmem:[#allocation7 + $0x40] sm:$0xff]  ;;  %1995 = vmatprep.subr.bf16.mxu0 %v1994_v3  ;;  %v688_v11 = vld [vmem:[#allocation7 + $0x48] sm:$0xff]  ;;  %v689_v12 = vld [vmem:[#allocation7 + $0x50] sm:$0xff]  ;;  %2026 = vmatprep.subr.bf16.mxu1 %v1994_v3  ;;  %v2002_v17 = vpack.c.bf16 %v684_v6, %v683_v5  ;;  %v2376_v21 = vpack.c.bf16 %v686_v9, %v685_v8  ;;  %p2165_p12 = scmp.ne.s32.totalorder %s1742_s27, %s2164_s18  ;;  %p2170_p0 = scmp.lt.s32.totalorder %s2164_s18, %s2164_s18 }
  0x60   :  { %v690_v13 = vld [vmem:[#allocation7 + $0x58] sm:$0xff]  ;;  %1997 = vmatpush3.bf16.msra.mxu0 %v1994_v3  ;;  %v691_v14 = vld [vmem:[#allocation7 + $0x60] sm:$0xff]  ;;  %v692_v15 = vld [vmem:[#allocation7 + $0x68] sm:$0xff]  ;;  %2034 = vmatpush3.bf16.msra.mxu1 %v1994_v3  ;;  %v2381_v25 = vpack.c.bf16 %v688_v11, %v687_v10 }
  0x61   :  { %v693_v16 = vld [vmem:[#allocation7 + $0x70] sm:$0xff]  ;;  %1999 = vmatprep.subr.bf16.mxu0 %v1998_v7  ;;  %v694_v18 = vld [vmem:[#allocation7 + $0x78] sm:$0xff]  ;;  %v89_v19 = vld [vmem:[#allocation2] sm:$0xff]  ;;  %2027 = vmatprep.subr.bf16.mxu1 %v1998_v7  ;;  %v2383_v26 = vpack.c.bf16 %v690_v13, %v689_v12  ;;  %v2385_v27 = vpack.c.bf16 %v692_v15, %v691_v14  ;;  %p2171_p1 = por %p2170_p0, %p2169_p13 }
  0x62   :  { %v2374_v20 = vld [vmem:[#allocation8] ss:$0 sm:$0xff]  ;;  %v2379_v23 = vld [vmem:[#allocation10] ss:$0 sm:$0xff]  ;;  %v90_v24 = vld [vmem:[#allocation2 + $0x8] sm:$0xff]  ;;  %v2388_v30 = vpack.c.bf16 %v694_v18, %v693_v16 }
  0x63   :  { %v160_v22 = vmul.f32 %v2374_v20, %v89_v19  ;;  %v161_v28 = vmul.f32 %v2374_v20, %v90_v24  ;;  %v91_v29 = vld [vmem:[#allocation2 + $0x10] sm:$0xff]  ;;  %v92_v33 = vld [vmem:[#allocation2 + $0x18] sm:$0xff]  ;;  %v93_v34 = vld [vmem:[#allocation2 + $0x20] sm:$0xff]  ;;  %p2172_p2 = pnand %p2171_p1, %p2165_p12 }
  0x64   :  { %2001 = vmatpush3.bf16.msra.mxu0 %v1998_v7  ;;  %v162_v32 = vmul.f32 %v2374_v20, %v91_v29  ;;  %2035 = vmatpush3.bf16.msra.mxu1 %v1998_v7  ;;  %v163_v36 = vmul.f32 %v2374_v20, %v92_v33  ;;  %v164_v37 = vmul.f32 %v2374_v20, %v93_v34  ;;  %v94_v38 = vld [vmem:[#allocation2 + $0x28] sm:$0xff]  ;;  %v487_v40 = vld [vmem:[#allocation5] sm:$0xff]  ;;  %v489_v49 = vld [vmem:[#allocation5 + $0x10] sm:$0xff] }
  0x65   :  { %v231_v31 = vadd.f32 %v2379_v23, %v160_v22  ;;  %2003 = vmatprep.subr.bf16.mxu0 %v2002_v17  ;;  %v232_v35 = vadd.f32 %v2379_v23, %v161_v28  ;;  %2028 = vmatprep.subr.bf16.mxu1 %v2002_v17  ;;  %v165_v42 = vmul.f32 %v2374_v20, %v94_v38  ;;  %v488_v44 = vld [vmem:[#allocation5 + $0x8] sm:$0xff]  ;;  %v490_v54 = vld [vmem:[#allocation5 + $0x18] sm:$0xff]  ;;  %v95_v55 = vld [vmem:[#allocation2 + $0x30] sm:$0xff] }
  0x66   :  { %v233_v41 = vadd.f32 %v2379_v23, %v162_v32  ;;  %v234_v45 = vadd.f32 %v2379_v23, %v163_v36  ;;  %v235_v46 = vadd.f32 %v2379_v23, %v164_v37  ;;  %v96_v56 = vld [vmem:[#allocation2 + $0x38] sm:$0xff]  ;;  %v491_v60 = vld [vmem:[#allocation5 + $0x20] sm:$0xff]  ;;  %v98_v62 = vld [vmem:[#allocation2 + $0x48] sm:$0xff]  ;;  %v166_v6 = vmul.f32 %v2374_v20, %v95_v55 }
  0x67   :  { %vm295_vm0 = vcmp.gt.f32.partialorder %v231_v31, 0.0  ;;  %v359_v39 = vmul.f32 0.1, %v231_v31  ;;  %vm296_vm1 = vcmp.gt.f32.partialorder %v232_v35, 0.0  ;;  %v360_v43 = vmul.f32 0.1, %v232_v35 }
  0x68   :  { %2005 = vmatpush3.bf16.msra.mxu0 %v2002_v17  ;;  %vm297_vm2 = vcmp.gt.f32.partialorder %v233_v41, 0.0  ;;  %v361_v48 = vmul.f32 0.1, %v233_v41  ;;  %v236_v50 = vadd.f32 %v2379_v23, %v165_v42  ;;  %2036 = vmatpush3.bf16.msra.mxu1 %v2002_v17  ;;  %vm298_vm3 = vcmp.gt.f32.partialorder %v234_v45, 0.0  ;;  %v97_v61 = vld [vmem:[#allocation2 + $0x40] sm:$0xff]  ;;  %v492_v2 = vld [vmem:[#allocation5 + $0x28] sm:$0xff] }
  0x69   :  { %v423_v47 = vsel %vm295_vm0, %v231_v31, %v359_v39  ;;  %2007 = vmatprep.subr.bf16.mxu0 %v2376_v21  ;;  %v424_v52 = vsel %vm296_vm1, %v232_v35, %v360_v43  ;;  %v362_v53 = vmul.f32 0.1, %v234_v45  ;;  %2029 = vmatprep.subr.bf16.mxu1 %v2376_v21  ;;  %vm299_vm4 = vcmp.gt.f32.partialorder %v235_v46, 0.0  ;;  %v99_v3 = vld [vmem:[#allocation2 + $0x50] sm:$0xff]  ;;  %v100_v8 = vld [vmem:[#allocation2 + $0x58] sm:$0xff]  ;;  %v101_v9 = vld [vmem:[#allocation2 + $0x60] sm:$0xff] }
  0x6a   :  { %v551_v51 = vadd.f32 %v487_v40, %v423_v47  ;;  %v2402_v57 = vadd.f32 %v488_v44, %v424_v52  ;;  %v425_v58 = vsel %vm297_vm2, %v233_v41, %v361_v48  ;;  %v363_v59 = vmul.f32 0.1, %v235_v46  ;;  %v493_v16 = vld [vmem:[#allocation5 + $0x30] sm:$0xff]  ;;  %v494_v19 = vld [vmem:[#allocation5 + $0x38] sm:$0xff]  ;;  %v495_v24 = vld [vmem:[#allocation5 + $0x40] sm:$0xff] }
  0x6b   :  { %v2404_v63 = vadd.f32 %v489_v49, %v425_v58  ;;  %v426_v0 = vsel %vm298_vm3, %v234_v45, %v362_v53  ;;  %vm300_vm5 = vcmp.gt.f32.partialorder %v236_v50, 0.0  ;;  %v364_v1 = vmul.f32 0.1, %v236_v50  ;;  %v496_v29 = vld [vmem:[#allocation5 + $0x48] sm:$0xff]  ;;  %v103_v45 = vld [vmem:[#allocation2 + $0x70] sm:$0xff]  ;;  %v105_v47 = vld [vmem:[#allocation2 + $0x80] sm:$0xff] }
  0x6c   :  { %615 = vst [vmem:[#allocation11] sm:$0xff] %v551_v51  ;;  %1898 = vmatprep.mubr.f32.mxu0 %v551_v51  ;;  %2009 = vmatpush3.bf16.msra.mxu0 %v2376_v21  ;;  %616 = vst [vmem:[#allocation11 + $0x8] sm:$0xff] %v2402_v57  ;;  %v2409_v4 = vadd.f32 %v490_v54, %v426_v0  ;;  %v427_v5 = vsel %vm299_vm4, %v235_v46, %v363_v59  ;;  %v102_v40 = vld [vmem:[#allocation2 + $0x68] sm:$0xff]  ;;  %v104_v46 = vld [vmem:[#allocation2 + $0x78] sm:$0xff] }
  0x6d   :  { %v167_v7 = vmul.f32 %v2374_v20, %v96_v56  ;;  %2011 = vmatprep.subr.bf16.mxu0 %v2381_v25  ;;  %617 = vst [vmem:[#allocation11 + $0x10] sm:$0xff] %v2404_v63  ;;  %v2416_v10 = vadd.f32 %v491_v60, %v427_v5  ;;  %v428_v11 = vsel %vm300_vm5, %v236_v50, %v364_v1  ;;  %v498_v52 = vld [vmem:[#allocation5 + $0x58] sm:$0xff]  ;;  %v106_v60 = vld [vmem:[#allocation2 + $0x88] sm:$0xff] }
  0x6e   :  { %v168_v12 = vmul.f32 %v2374_v20, %v97_v61  ;;  %v169_v13 = vmul.f32 %v2374_v20, %v98_v62  ;;  %618 = vst [vmem:[#allocation11 + $0x18] sm:$0xff] %v2409_v4  ;;  %v2421_v14 = vadd.f32 %v492_v2, %v428_v11  ;;  %v237_v15 = vadd.f32 %v2379_v23, %v166_v6  ;;  %v107_v61 = vld [vmem:[#allocation2 + $0x90] sm:$0xff]  ;;  %v499_v2 = vld [vmem:[#allocation5 + $0x60] sm:$0xff] }
  0x6f   :  { %v238_v17 = vadd.f32 %v2379_v23, %v167_v7  ;;  %v170_v18 = vmul.f32 %v2374_v20, %v99_v3  ;;  %2037 = vmatpush3.bf16.msra.mxu1 %v2376_v21  ;;  %619 = vst [vmem:[#allocation11 + $0x20] sm:$0xff] %v2416_v10  ;;  %v171_v31 = vmul.f32 %v2374_v20, %v100_v8  ;;  %v500_v8 = vld [vmem:[#allocation5 + $0x68] sm:$0xff] }
  0x70   :  { %v239_v22 = vadd.f32 %v2379_v23, %v168_v12  ;;  %v240_v28 = vadd.f32 %v2379_v23, %v169_v13  ;;  %v172_v32 = vmul.f32 %v2374_v20, %v101_v9  ;;  %2030 = vmatprep.subr.bf16.mxu1 %v2381_v25  ;;  %2013 = vmatpush3.bf16.msra.mxu0 %v2381_v25  ;;  %vm301_vm6 = vcmp.gt.f32.partialorder %v237_v15, 0.0  ;;  %v501_v9 = vld [vmem:[#allocation5 + $0x70] sm:$0xff] }
  0x71   :  { %620 = vst [vmem:[#allocation11 + $0x28] sm:$0xff] %v2421_v14  ;;  %v365_v21 = vmul.f32 0.1, %v237_v15  ;;  %vm302_vm7 = vcmp.gt.f32.partialorder %v238_v17, 0.0  ;;  %v366_v33 = vmul.f32 0.1, %v238_v17  ;;  %2015 = vmatprep.subr.bf16.mxu0 %v2383_v26  ;;  %v241_v38 = vadd.f32 %v2379_v23, %v170_v18 }
  0x72   :  { %vm303_vm8 = vcmp.gt.f32.partialorder %v239_v22, 0.0  ;;  %v367_v34 = vmul.f32 0.1, %v239_v22  ;;  %vm304_vm9 = vcmp.gt.f32.partialorder %v240_v28, 0.0  ;;  %v368_v35 = vmul.f32 0.1, %v240_v28 }
  0x73   :  { %v429_v36 = vsel %vm301_vm6, %v237_v15, %v365_v21  ;;  %v430_v37 = vsel %vm302_vm7, %v238_v17, %v366_v33  ;;  %v242_v39 = vadd.f32 %v2379_v23, %v171_v31  ;;  %2038 = vmatpush3.bf16.msra.mxu1 %v2381_v25  ;;  %vm305_vm10 = vcmp.gt.f32.partialorder %v241_v38, 0.0  ;;  %v497_v25 = vld [vmem:[#allocation5 + $0x50] sm:$0xff]  ;;  %v502_v17 = vld [vmem:[#allocation5 + $0x78] sm:$0xff] }
  0x74   :  { %v2439_v41 = vadd.f32 %v493_v16, %v429_v36  ;;  %v2441_v42 = vadd.f32 %v494_v19, %v430_v37  ;;  %v431_v43 = vsel %vm303_vm8, %v239_v22, %v367_v34  ;;  %v432_v44 = vsel %vm304_vm9, %v240_v28, %v368_v35  ;;  %2031 = vmatprep.subr.bf16.mxu1 %v2383_v26  ;;  %v108_v18 = vld [vmem:[#allocation2 + $0x98] sm:$0xff]  ;;  %v109_v35 = vld [vmem:[#allocation2 + $0xa0] sm:$0xff]  ;;  %v110_v36 = vld [vmem:[#allocation2 + $0xa8] sm:$0xff] }
  0x75   :  { %2017 = vmatpush3.bf16.msra.mxu0 %v2383_v26  ;;  %v2445_v48 = vadd.f32 %v495_v24, %v431_v43  ;;  %v2447_v49 = vadd.f32 %v496_v29, %v432_v44  ;;  %v369_v50 = vmul.f32 0.1, %v241_v38  ;;  %vm306_vm11 = vcmp.gt.f32.partialorder %v242_v39, 0.0  ;;  %v503_v29 = vld [vmem:[#allocation5 + $0x80] sm:$0xff]  ;;  %v111_v37 = vld [vmem:[#allocation2 + $0xb0] sm:$0xff]  ;;  %v504_v43 = vld [vmem:[#allocation5 + $0x88] sm:$0xff] }
  0x76   :  { %2019 = vmatprep.subr.bf16.mxu0 %v2385_v27  ;;  %621 = vst [vmem:[#allocation11 + $0x30] sm:$0xff] %v2439_v41  ;;  %622 = vst [vmem:[#allocation11 + $0x38] sm:$0xff] %v2441_v42  ;;  %v370_v51 = vmul.f32 0.1, %v242_v39  ;;  %v243_v53 = vadd.f32 %v2379_v23, %v172_v32  ;;  %v173_v54 = vmul.f32 %v2374_v20, %v102_v40  ;;  %v112_v44 = vld [vmem:[#allocation2 + $0xb8] sm:$0xff] }
  0x77   :  { %623 = vst [vmem:[#allocation11 + $0x40] sm:$0xff] %v2445_v48  ;;  %624 = vst [vmem:[#allocation11 + $0x48] sm:$0xff] %v2447_v49  ;;  %v433_v55 = vsel %vm305_vm10, %v241_v38, %v369_v50  ;;  %v174_v56 = vmul.f32 %v2374_v20, %v103_v45  ;;  %v175_v58 = vmul.f32 %v2374_v20, %v104_v46  ;;  %2039 = vmatpush3.bf16.msra.mxu1 %v2383_v26  ;;  %v113_v45 = vld [vmem:[#allocation2 + $0xc0] sm:$0xff] }
  0x78   :  { %v176_v59 = vmul.f32 %v2374_v20, %v105_v47  ;;  %v2460_v62 = vadd.f32 %v497_v25, %v433_v55  ;;  %v434_v0 = vsel %vm306_vm11, %v242_v39, %v370_v51  ;;  %vm307_vm12 = vcmp.gt.f32.partialorder %v243_v53, 0.0  ;;  %2032 = vmatprep.subr.bf16.mxu1 %v2385_v27  ;;  %v505_v25 = vld [vmem:[#allocation5 + $0x90] sm:$0xff] }
  0x79   :  { %v371_v1 = vmul.f32 0.1, %v243_v53  ;;  %2021 = vmatpush3.bf16.msra.mxu0 %v2385_v27  ;;  %v2464_v3 = vadd.f32 %v498_v52, %v434_v0  ;;  %v244_v5 = vadd.f32 %v2379_v23, %v173_v54  ;;  %v245_v6 = vadd.f32 %v2379_v23, %v174_v56  ;;  %v114_v56 = vld [vmem:[#allocation2 + $0xc8] sm:$0xff]  ;;  %v506_v0 = vld [vmem:[#allocation5 + $0x98] sm:$0xff] }
  0x7a   :  { %v246_v7 = vadd.f32 %v2379_v23, %v175_v58  ;;  %2023 = vmatprep.subr.bf16.mxu0 %v2388_v30  ;;  %625 = vst [vmem:[#allocation11 + $0x50] sm:$0xff] %v2460_v62  ;;  %v247_v11 = vadd.f32 %v2379_v23, %v176_v59  ;;  %v177_v12 = vmul.f32 %v2374_v20, %v106_v60  ;;  %v115_v58 = vld [vmem:[#allocation2 + $0xd0] sm:$0xff] }
  0x7b   :  { %v435_v26 = vsel %vm307_vm12, %v243_v53, %v371_v1  ;;  %v178_v13 = vmul.f32 %v2374_v20, %v107_v61  ;;  %626 = vst [vmem:[#allocation11 + $0x58] sm:$0xff] %v2464_v3  ;;  %vm308_vm13 = vcmp.gt.f32.partialorder %v244_v5, 0.0  ;;  %v372_v16 = vmul.f32 0.1, %v244_v5  ;;  %2040 = vmatpush3.bf16.msra.mxu1 %v2385_v27 }
  0x7c   :  { %v2475_v15 = vadd.f32 %v499_v2, %v435_v26  ;;  %vm309_vm14 = vcmp.gt.f32.partialorder %v245_v6, 0.0  ;;  %v373_v19 = vmul.f32 0.1, %v245_v6  ;;  %vm310_vm15 = vcmp.gt.f32.partialorder %v246_v7, 0.0  ;;  %2033 = vmatprep.subr.bf16.mxu1 %v2388_v30  ;;  %v507_v26 = vld [vmem:[#allocation5 + $0xa0] sm:$0xff] }
  0x7d   :  { %v374_v22 = vmul.f32 0.1, %v246_v7  ;;  %vm311_vm0 = vcmp.gt.f32.partialorder %v247_v11, 0.0  ;;  %2025 = vmatpush3.bf16.msra.mxu0 %v2388_v30  ;;  %v436_v24 = vsel %vm308_vm13, %v244_v5, %v372_v16  ;;  %v375_v28 = vmul.f32 0.1, %v247_v11  ;;  %v509_v16 = vld [vmem:[#allocation5 + $0xb0] sm:$0xff] }
  0x7e   :  { %627 = vst [vmem:[#allocation11 + $0x60] sm:$0xff] %v2475_v15  ;;  %v248_v31 = vadd.f32 %v2379_v23, %v177_v12  ;;  %v249_v32 = vadd.f32 %v2379_v23, %v178_v13  ;;  %v2483_v21 = vadd.f32 %v500_v8, %v436_v24  ;;  %v437_v27 = vsel %vm309_vm14, %v245_v6, %v373_v19  ;;  %v508_v8 = vld [vmem:[#allocation5 + $0xa8] sm:$0xff] }
  0x7f   :  { %v438_v33 = vsel %vm310_vm15, %v246_v7, %v374_v22  ;;  %v179_v34 = vmul.f32 %v2374_v20, %v108_v18  ;;  %v2487_v38 = vadd.f32 %v501_v9, %v437_v27  ;;  %v439_v40 = vsel %vm311_vm0, %v247_v11, %v375_v28  ;;  %2041 = vmatpush3.bf16.msra.mxu1 %v2388_v30  ;;  %v511_v28 = vld [vmem:[#allocation5 + $0xc0] sm:$0xff] }
  0x80   :  { %v2489_v39 = vadd.f32 %v502_v17, %v438_v33  ;;  %vm312_vm1 = vcmp.gt.f32.partialorder %v248_v31, 0.0  ;;  %1899 = vmatmul.mubr.f32.vlgmr.msra.gmra.mrb[0].mxu0 %v2402_v57  ;;  %628 = vst [vmem:[#allocation11 + $0x68] sm:$0xff] %v2483_v21  ;;  %v2495_v46 = vadd.f32 %v503_v29, %v439_v40  ;;  %v376_v47 = vmul.f32 0.1, %v248_v31  ;;  %v116_v33 = vld [vmem:[#allocation2 + $0xd8] sm:$0xff] }
  0x81   :  { %vm313_vm2 = vcmp.gt.f32.partialorder %v249_v32, 0.0  ;;  %v377_v50 = vmul.f32 0.1, %v249_v32  ;;  %1901 = vmatprep.mubr.f32.mxu0 %v2404_v63  ;;  %629 = vst [vmem:[#allocation11 + $0x70] sm:$0xff] %v2487_v38  ;;  %v250_v51 = vadd.f32 %v2379_v23, %v179_v34  ;;  %v180_v30 = vmul.f32 %v2374_v20, %v109_v35  ;;  %v117_v34 = vld [vmem:[#allocation2 + $0xe0] sm:$0xff]  ;;  %v118_v35 = vld [vmem:[#allocation2 + $0xe8] sm:$0xff] }
  0x82   :  { %630 = vst [vmem:[#allocation11 + $0x78] sm:$0xff] %v2489_v39  ;;  %v181_v57 = vmul.f32 %v2374_v20, %v110_v36  ;;  %v182_v52 = vmul.f32 %v2374_v20, %v111_v37  ;;  %631 = vst [vmem:[#allocation11 + $0x80] sm:$0xff] %v2495_v46  ;;  %v440_v53 = vsel %vm312_vm1, %v248_v31, %v376_v47 }
  0x83   :  { %v441_v54 = vsel %vm313_vm2, %v249_v32, %v377_v50  ;;  %v183_v55 = vmul.f32 %v2374_v20, %v112_v44  ;;  %v184_v63 = vmul.f32 %v2374_v20, %v113_v45  ;;  %v2508_v59 = vadd.f32 %v504_v43, %v440_v53  ;;  %v119_v43 = vld [vmem:[#allocation2 + $0xf0] sm:$0xff]  ;;  %v120_v44 = vld [vmem:[#allocation2 + $0xf8] sm:$0xff] }
  0x84   :  { %v2510_v60 = vadd.f32 %v505_v25, %v441_v54  ;;  %vm314_vm3 = vcmp.gt.f32.partialorder %v250_v51, 0.0  ;;  %v378_v61 = vmul.f32 0.1, %v250_v51  ;;  %1902 = vmatmul.mubr.f32.gmra.mrb[2].mxu0 %v2409_v4  ;;  %v251_v1 = vadd.f32 %v2379_v23, %v180_v30  ;;  %v512_v25 = vld [vmem:[#allocation5 + $0xc8] sm:$0xff] }
  0x85   :  { %v252_v2 = vadd.f32 %v2379_v23, %v181_v57  ;;  %v253_v5 = vadd.f32 %v2379_v23, %v182_v52  ;;  %v254_v6 = vadd.f32 %v2379_v23, %v183_v55  ;;  %1904 = vmatprep.mubr.f32.mxu0 %v2416_v10  ;;  %632 = vst [vmem:[#allocation11 + $0x88] sm:$0xff] %v2508_v59  ;;  %v510_v10 = vld [vmem:[#allocation5 + $0xb8] sm:$0xff] }
  0x86   :  { %633 = vst [vmem:[#allocation11 + $0x90] sm:$0xff] %v2510_v60  ;;  %v442_v7 = vsel %vm314_vm3, %v250_v51, %v378_v61  ;;  %v255_v9 = vadd.f32 %v2379_v23, %v184_v63  ;;  %v185_v4 = vmul.f32 %v2374_v20, %v114_v56  ;;  %v186_v11 = vmul.f32 %v2374_v20, %v115_v58  ;;  %v513_v58 = vld [vmem:[#allocation5 + $0xd0] sm:$0xff] }
  0x87   :  { %v2523_v12 = vadd.f32 %v506_v0, %v442_v7  ;;  %vm315_vm4 = vcmp.gt.f32.partialorder %v251_v1, 0.0  ;;  %v379_v13 = vmul.f32 0.1, %v251_v1  ;;  %vm316_vm5 = vcmp.gt.f32.partialorder %v252_v2, 0.0  ;;  %v514_v7 = vld [vmem:[#allocation5 + $0xd8] sm:$0xff] }
  0x88   :  { %v380_v17 = vmul.f32 0.1, %v252_v2  ;;  %vm317_vm6 = vcmp.gt.f32.partialorder %v253_v5, 0.0  ;;  %v381_v18 = vmul.f32 0.1, %v253_v5  ;;  %vm318_vm7 = vcmp.gt.f32.partialorder %v254_v6, 0.0  ;;  %1905 = vmatmul.mubr.f32.gmra.mrb[4].mxu0 %v2421_v14 }
  0x89   :  { %634 = vst [vmem:[#allocation11 + $0x98] sm:$0xff] %v2523_v12  ;;  %v443_v19 = vsel %vm315_vm4, %v251_v1, %v379_v13  ;;  %v382_v22 = vmul.f32 0.1, %v254_v6  ;;  %vm319_vm8 = vcmp.gt.f32.partialorder %v255_v9, 0.0  ;;  %v383_v24 = vmul.f32 0.1, %v255_v9  ;;  %1907 = vmatprep.mubr.f32.mxu0 %v2439_v41 }
  0x8a   :  { %v2528_v29 = vadd.f32 %v507_v26, %v443_v19  ;;  %v444_v31 = vsel %vm316_vm5, %v252_v2, %v380_v17  ;;  %v445_v32 = vsel %vm317_vm6, %v253_v5, %v381_v18  ;;  %v256_v27 = vadd.f32 %v2379_v23, %v185_v4  ;;  %v121_v41 = vld [vmem:[#allocation2 + $0x100] sm:$0xff]  ;;  %v517_v13 = vld [vmem:[#allocation5 + $0xf0] sm:$0xff]  ;;  %v518_v17 = vld [vmem:[#allocation5 + $0xf8] sm:$0xff] }
  0x8b   :  { %v2532_v14 = vadd.f32 %v508_v8, %v444_v31  ;;  %v2534_v36 = vadd.f32 %v509_v16, %v445_v32  ;;  %v446_v37 = vsel %vm318_vm7, %v254_v6, %v382_v22  ;;  %v447_v40 = vsel %vm319_vm8, %v255_v9, %v383_v24  ;;  %v515_v26 = vld [vmem:[#allocation5 + $0xe0] sm:$0xff]  ;;  %v123_v24 = vld [vmem:[#allocation2 + $0x110] sm:$0xff] }
  0x8c   :  { %635 = vst [vmem:[#allocation11 + $0xa0] sm:$0xff] %v2528_v29  ;;  %v2538_v45 = vadd.f32 %v510_v10, %v446_v37  ;;  %v2540_v47 = vadd.f32 %v511_v28, %v447_v40  ;;  %vm320_vm9 = vcmp.gt.f32.partialorder %v256_v27, 0.0  ;;  %v384_v50 = vmul.f32 0.1, %v256_v27  ;;  %1908 = vmatmul.mubr.f32.gmra.mrb[6].mxu0 %v2441_v42  ;;  %v124_v28 = vld [vmem:[#allocation2 + $0x118] sm:$0xff] }
  0x8d   :  { %636 = vst [vmem:[#allocation11 + $0xa8] sm:$0xff] %v2532_v14  ;;  %637 = vst [vmem:[#allocation11 + $0xb0] sm:$0xff] %v2534_v36  ;;  %v257_v51 = vadd.f32 %v2379_v23, %v186_v11  ;;  %v187_v30 = vmul.f32 %v2374_v20, %v116_v33  ;;  %v188_v57 = vmul.f32 %v2374_v20, %v117_v34  ;;  %1910 = vmatprep.mubr.f32.mxu0 %v2445_v48  ;;  %v516_v11 = vld [vmem:[#allocation5 + $0xe8] sm:$0xff]  ;;  %v125_v33 = vld [vmem:[#allocation2 + $0x120] sm:$0xff] }
  0x8e   :  { %v189_v52 = vmul.f32 %v2374_v20, %v118_v35  ;;  %638 = vst [vmem:[#allocation11 + $0xb8] sm:$0xff] %v2538_v45  ;;  %639 = vst [vmem:[#allocation11 + $0xc0] sm:$0xff] %v2540_v47  ;;  %v448_v53 = vsel %vm320_vm9, %v256_v27, %v384_v50  ;;  %v190_v42 = vmul.f32 %v2374_v20, %v119_v43  ;;  %v126_v34 = vld [vmem:[#allocation2 + $0x128] sm:$0xff]  ;;  %v127_v35 = vld [vmem:[#allocation2 + $0x130] sm:$0xff] }
  0x8f   :  { %v191_v54 = vmul.f32 %v2374_v20, %v120_v44  ;;  %v192_v55 = vmul.f32 %v2374_v20, %v121_v41  ;;  %v2555_v63 = vadd.f32 %v512_v25, %v448_v53  ;;  %vm321_vm10 = vcmp.gt.f32.partialorder %v257_v51, 0.0  ;;  %v519_v44 = vld [vmem:[#allocation5 + $0x100] sm:$0xff] }
  0x90   :  { %v385_v56 = vmul.f32 0.1, %v257_v51  ;;  %v258_v61 = vadd.f32 %v2379_v23, %v187_v30  ;;  %v259_v48 = vadd.f32 %v2379_v23, %v188_v57  ;;  %v260_v0 = vadd.f32 %v2379_v23, %v189_v52  ;;  %1911 = vmatmul.mubr.f32.gmra.mrb[8].mxu0 %v2447_v49 }
  0x91   :  { %v261_v1 = vadd.f32 %v2379_v23, %v190_v42  ;;  %v262_v2 = vadd.f32 %v2379_v23, %v191_v54  ;;  %640 = vst [vmem:[#allocation11 + $0xc8] sm:$0xff] %v2555_v63  ;;  %v263_v8 = vadd.f32 %v2379_v23, %v192_v55  ;;  %1913 = vmatprep.mubr.f32.mxu0 %v2460_v62  ;;  %v122_v62 = vld [vmem:[#allocation2 + $0x108] sm:$0xff] }
  0x92   :  { %v449_v5 = vsel %vm321_vm10, %v257_v51, %v385_v56  ;;  %vm322_vm11 = vcmp.gt.f32.partialorder %v258_v61, 0.0  ;;  %v386_v6 = vmul.f32 0.1, %v258_v61  ;;  %vm323_vm12 = vcmp.gt.f32.partialorder %v259_v48, 0.0  ;;  %v128_v51 = vld [vmem:[#allocation2 + $0x138] sm:$0xff]  ;;  %v520_v55 = vld [vmem:[#allocation5 + $0x108] sm:$0xff] }
  0x93   :  { %v2566_v9 = vadd.f32 %v513_v58, %v449_v5  ;;  %v387_v4 = vmul.f32 0.1, %v259_v48  ;;  %vm324_vm13 = vcmp.gt.f32.partialorder %v260_v0, 0.0  ;;  %v388_v49 = vmul.f32 0.1, %v260_v0 }
  0x94   :  { %v450_v16 = vsel %vm322_vm11, %v258_v61, %v386_v6  ;;  %vm325_vm14 = vcmp.gt.f32.partialorder %v261_v1, 0.0  ;;  %v389_v10 = vmul.f32 0.1, %v261_v1  ;;  %vm326_vm15 = vcmp.gt.f32.partialorder %v262_v2, 0.0  ;;  %1914 = vmatmul.mubr.f32.gmra.mrb[10].mxu0 %v2464_v3  ;;  %v521_v61 = vld [vmem:[#allocation5 + $0x110] sm:$0xff] }
  0x95   :  { %641 = vst [vmem:[#allocation11 + $0xd0] sm:$0xff] %v2566_v9  ;;  %v2569_v18 = vadd.f32 %v514_v7, %v450_v16  ;;  %v451_v19 = vsel %vm323_vm12, %v259_v48, %v387_v4  ;;  %v390_v22 = vmul.f32 0.1, %v262_v2  ;;  %v452_v32 = vsel %vm324_vm13, %v260_v0, %v388_v49  ;;  %1916 = vmatprep.mubr.f32.mxu0 %v2475_v15  ;;  %v522_v48 = vld [vmem:[#allocation5 + $0x118] sm:$0xff]  ;;  %v129_v16 = vld [vmem:[#allocation2 + $0x140] sm:$0xff] }
  0x96   :  { %v2572_v31 = vadd.f32 %v515_v26, %v451_v19  ;;  %v453_v27 = vsel %vm325_vm14, %v261_v1, %v389_v10  ;;  %vm327_vm0 = vcmp.gt.f32.partialorder %v263_v8, 0.0  ;;  %v2577_v37 = vadd.f32 %v516_v11, %v452_v32  ;;  %v523_v1 = vld [vmem:[#allocation5 + $0x120] sm:$0xff] }
  0x97   :  { %642 = vst [vmem:[#allocation11 + $0xd8] sm:$0xff] %v2569_v18  ;;  %v2579_v40 = vadd.f32 %v517_v13, %v453_v27  ;;  %v454_v43 = vsel %vm326_vm15, %v262_v2, %v390_v22  ;;  %v391_v3 = vmul.f32 0.1, %v263_v8  ;;  %v193_v50 = vmul.f32 %v2374_v20, %v122_v62  ;;  %v524_v13 = vld [vmem:[#allocation5 + $0x128] sm:$0xff]  ;;  %v131_v62 = vld [vmem:[#allocation2 + $0x150] sm:$0xff] }
  0x98   :  { %643 = vst [vmem:[#allocation11 + $0xe0] sm:$0xff] %v2572_v31  ;;  %v2583_v41 = vadd.f32 %v518_v17, %v454_v43  ;;  %v194_v25 = vmul.f32 %v2374_v20, %v123_v24  ;;  %v195_v15 = vmul.f32 %v2374_v20, %v124_v28  ;;  %644 = vst [vmem:[#allocation11 + $0xe8] sm:$0xff] %v2577_v37  ;;  %1917 = vmatmul.mubr.f32.gmra.mrb[12].mxu0 %v2483_v21  ;;  %v130_v22 = vld [vmem:[#allocation2 + $0x148] sm:$0xff]  ;;  %v132_v24 = vld [vmem:[#allocation2 + $0x158] sm:$0xff] }
  0x99   :  { %645 = vst [vmem:[#allocation11 + $0xf0] sm:$0xff] %v2579_v40  ;;  %v455_v30 = vsel %vm327_vm0, %v263_v8, %v391_v3  ;;  %v196_v57 = vmul.f32 %v2374_v20, %v125_v33  ;;  %v197_v52 = vmul.f32 %v2374_v20, %v126_v34  ;;  %v198_v53 = vmul.f32 %v2374_v20, %v127_v35  ;;  %v525_v34 = vld [vmem:[#allocation5 + $0x130] sm:$0xff] }
  0x9a   :  { %646 = vst [vmem:[#allocation11 + $0xf8] sm:$0xff] %v2583_v41  ;;  %v583_v42 = vadd.f32 %v519_v44, %v455_v30  ;;  %v264_v54 = vadd.f32 %v2379_v23, %v193_v50  ;;  %v265_v56 = vadd.f32 %v2379_v23, %v194_v25  ;;  %v266_v58 = vadd.f32 %v2379_v23, %v195_v15  ;;  %v133_v50 = vld [vmem:[#allocation2 + $0x160] sm:$0xff] }
  0x9b   :  { %1919 = vmatprep.mubr.f32.mxu0 %v2487_v38  ;;  %v267_v0 = vadd.f32 %v2379_v23, %v196_v57  ;;  %v268_v2 = vadd.f32 %v2379_v23, %v197_v52  ;;  %v269_v21 = vadd.f32 %v2379_v23, %v198_v53  ;;  %v199_v5 = vmul.f32 %v2374_v20, %v128_v51  ;;  %v526_v51 = vld [vmem:[#allocation5 + $0x138] sm:$0xff] }
  0x9c   :  { %647 = vst [vmem:[#allocation11 + $0x100] sm:$0xff] %v583_v42  ;;  %1946 = vmatprep.mubr.f32.mxu1 %v583_v42  ;;  %vm328_vm1 = vcmp.gt.f32.partialorder %v264_v54, 0.0  ;;  %v392_v6 = vmul.f32 0.1, %v264_v54  ;;  %vm329_vm2 = vcmp.gt.f32.partialorder %v265_v56, 0.0  ;;  %vm330_vm3 = vcmp.gt.f32.partialorder %v266_v58, 0.0  ;;  %1920 = vmatmul.mubr.f32.gmra.mrb[14].mxu0 %v2489_v39 }
  0x9d   :  { %v393_v7 = vmul.f32 0.1, %v265_v56  ;;  %v394_v26 = vmul.f32 0.1, %v266_v58  ;;  %vm331_vm4 = vcmp.gt.f32.partialorder %v267_v0, 0.0  ;;  %vm332_vm5 = vcmp.gt.f32.partialorder %v268_v2, 0.0  ;;  %1922 = vmatprep.mubr.f32.mxu0 %v2495_v46 }
  0x9e   :  { %v395_v38 = vmul.f32 0.1, %v267_v0  ;;  %v456_v8 = vsel %vm328_vm1, %v264_v54, %v392_v6  ;;  %v396_v11 = vmul.f32 0.1, %v268_v2  ;;  %vm333_vm6 = vcmp.gt.f32.partialorder %v269_v21, 0.0  ;;  %v530_v6 = vld [vmem:[#allocation5 + $0x158] sm:$0xff] }
  0x9f   :  { %v457_v4 = vsel %vm329_vm2, %v265_v56, %v393_v7  ;;  %v584_v49 = vadd.f32 %v520_v55, %v456_v8  ;;  %v458_v17 = vsel %vm330_vm3, %v266_v58, %v394_v26  ;;  %v397_v33 = vmul.f32 0.1, %v269_v21  ;;  %v528_v55 = vld [vmem:[#allocation5 + $0x148] sm:$0xff]  ;;  %v136_v8 = vld [vmem:[#allocation2 + $0x178] sm:$0xff] }
  0xa0   :  { %v585_v10 = vadd.f32 %v521_v61, %v457_v4  ;;  %v459_v19 = vsel %vm331_vm4, %v267_v0, %v395_v38  ;;  %v586_v28 = vadd.f32 %v522_v48, %v458_v17  ;;  %v460_v27 = vsel %vm332_vm5, %v268_v2, %v396_v11  ;;  %1923 = vmatmul.mubr.f32.gmra.mrb[16].mxu0 %v2508_v59  ;;  %v134_v58 = vld [vmem:[#allocation2 + $0x168] sm:$0xff]  ;;  %v529_v0 = vld [vmem:[#allocation5 + $0x150] sm:$0xff]  ;;  %v137_v4 = vld [vmem:[#allocation2 + $0x180] sm:$0xff] }
  0xa1   :  { %v587_v32 = vadd.f32 %v523_v1, %v459_v19  ;;  %648 = vst [vmem:[#allocation11 + $0x108] sm:$0xff] %v584_v49  ;;  %1947 = vmatmul.mubr.f32.vlgmr.msra.gmra.mrb[0].mxu1 %v584_v49  ;;  %v588_v39 = vadd.f32 %v524_v13, %v460_v27  ;;  %v270_v35 = vadd.f32 %v2379_v23, %v199_v5  ;;  %v135_v1 = vld [vmem:[#allocation2 + $0x170] sm:$0xff]  ;;  %v138_v49 = vld [vmem:[#allocation2 + $0x188] sm:$0xff]  ;;  %v140_v17 = vld [vmem:[#allocation2 + $0x198] sm:$0xff] }
  0xa2   :  { %649 = vst [vmem:[#allocation11 + $0x110] sm:$0xff] %v585_v10  ;;  %v200_v46 = vmul.f32 %v2374_v20, %v129_v16  ;;  %1949 = vmatprep.mubr.f32.mxu1 %v585_v10  ;;  %650 = vst [vmem:[#allocation11 + $0x118] sm:$0xff] %v586_v28  ;;  %v201_v43 = vmul.f32 %v2374_v20, %v130_v22  ;;  %v202_v3 = vmul.f32 %v2374_v20, %v131_v62  ;;  %v139_v10 = vld [vmem:[#allocation2 + $0x190] sm:$0xff] }
  0xa3   :  { %651 = vst [vmem:[#allocation11 + $0x120] sm:$0xff] %v587_v32  ;;  %v203_v44 = vmul.f32 %v2374_v20, %v132_v24  ;;  %1925 = vmatprep.mubr.f32.mxu0 %v2510_v60  ;;  %652 = vst [vmem:[#allocation11 + $0x128] sm:$0xff] %v588_v39  ;;  %v461_v25 = vsel %vm333_vm6, %v269_v21, %v397_v33  ;;  %vm334_vm7 = vcmp.gt.f32.partialorder %v270_v35, 0.0  ;;  %v398_v15 = vmul.f32 0.1, %v270_v35  ;;  %v527_v60 = vld [vmem:[#allocation5 + $0x140] sm:$0xff] }
  0xa4   :  { %v271_v59 = vadd.f32 %v2379_v23, %v200_v46  ;;  %v589_v30 = vadd.f32 %v525_v34, %v461_v25  ;;  %v272_v57 = vadd.f32 %v2379_v23, %v201_v43  ;;  %v273_v52 = vadd.f32 %v2379_v23, %v202_v3  ;;  %1926 = vmatmul.mubr.f32.gmra.mrb[18].mxu0 %v2523_v12  ;;  %v531_v24 = vld [vmem:[#allocation5 + $0x160] sm:$0xff]  ;;  %v532_v3 = vld [vmem:[#allocation5 + $0x168] sm:$0xff] }
  0xa5   :  { %v274_v53 = vadd.f32 %v2379_v23, %v203_v44  ;;  %1950 = vmatmul.mubr.f32.gmra.mrb[2].mxu1 %v586_v28  ;;  %v462_v42 = vsel %vm334_vm7, %v270_v35, %v398_v15  ;;  %v204_v56 = vmul.f32 %v2374_v20, %v133_v50  ;;  %1928 = vmatprep.mubr.f32.mxu0 %v2528_v29  ;;  %v533_v50 = vld [vmem:[#allocation5 + $0x170] sm:$0xff] }
  0xa6   :  { %vm335_vm8 = vcmp.gt.f32.partialorder %v271_v59, 0.0  ;;  %v399_v54 = vmul.f32 0.1, %v271_v59  ;;  %1952 = vmatprep.mubr.f32.mxu1 %v587_v32  ;;  %653 = vst [vmem:[#allocation11 + $0x130] sm:$0xff] %v589_v30  ;;  %v590_v61 = vadd.f32 %v526_v51, %v462_v42  ;;  %vm336_vm9 = vcmp.gt.f32.partialorder %v272_v57, 0.0 }
  0xa7   :  { %v400_v48 = vmul.f32 0.1, %v272_v57  ;;  %vm337_vm10 = vcmp.gt.f32.partialorder %v273_v52, 0.0  ;;  %v401_v21 = vmul.f32 0.1, %v273_v52  ;;  %vm338_vm11 = vcmp.gt.f32.partialorder %v274_v53, 0.0 }
  0xa8   :  { %v463_v2 = vsel %vm335_vm8, %v271_v59, %v399_v54  ;;  %v402_v5 = vmul.f32 0.1, %v274_v53  ;;  %654 = vst [vmem:[#allocation11 + $0x138] sm:$0xff] %v590_v61  ;;  %v275_v12 = vadd.f32 %v2379_v23, %v204_v56  ;;  %v205_v38 = vmul.f32 %v2374_v20, %v134_v58  ;;  %1929 = vmatmul.mubr.f32.gmra.mrb[20].mxu0 %v2532_v14  ;;  %v534_v54 = vld [vmem:[#allocation5 + $0x178] sm:$0xff]  ;;  %v536_v56 = vld [vmem:[#allocation5 + $0x188] sm:$0xff]  ;;  %v537_v58 = vld [vmem:[#allocation5 + $0x190] sm:$0xff] }
  0xa9   :  { %v591_v7 = vadd.f32 %v527_v60, %v463_v2  ;;  %v464_v26 = vsel %vm336_vm9, %v272_v57, %v400_v48  ;;  %1953 = vmatmul.mubr.f32.gmra.mrb[4].mxu1 %v588_v39  ;;  %v465_v13 = vsel %vm337_vm10, %v273_v52, %v401_v21  ;;  %v206_v16 = vmul.f32 %v2374_v20, %v135_v1  ;;  %v535_v60 = vld [vmem:[#allocation5 + $0x180] sm:$0xff]  ;;  %v142_v48 = vld [vmem:[#allocation2 + $0x1a8] sm:$0xff]  ;;  %v538_v21 = vld [vmem:[#allocation5 + $0x198] sm:$0xff] }
  0xaa   :  { %v592_v11 = vadd.f32 %v528_v55, %v464_v26  ;;  %v466_v29 = vsel %vm338_vm11, %v274_v53, %v402_v5  ;;  %1955 = vmatprep.mubr.f32.mxu1 %v589_v30  ;;  %v593_v19 = vadd.f32 %v529_v0, %v465_v13  ;;  %vm339_vm12 = vcmp.gt.f32.partialorder %v275_v12, 0.0  ;;  %1931 = vmatprep.mubr.f32.mxu0 %v2534_v36  ;;  %v141_v36 = vld [vmem:[#allocation2 + $0x1a0] sm:$0xff] }
  0xab   :  { %655 = vst [vmem:[#allocation11 + $0x140] sm:$0xff] %v591_v7  ;;  %v2627_v22 = vadd.f32 %v530_v6, %v466_v29  ;;  %v403_v62 = vmul.f32 0.1, %v275_v12  ;;  %v276_v28 = vadd.f32 %v2379_v23, %v205_v38  ;;  %v277_v32 = vadd.f32 %v2379_v23, %v206_v16  ;;  %v2663_v26 = vld [vmem:[#allocation10] ss:$0 sm:$0xff] }
  0xac   :  { %656 = vst [vmem:[#allocation11 + $0x148] sm:$0xff] %v592_v11  ;;  %v207_v27 = vmul.f32 %v2374_v20, %v136_v8  ;;  %v208_v39 = vmul.f32 %v2374_v20, %v137_v4  ;;  %657 = vst [vmem:[#allocation11 + $0x150] sm:$0xff] %v593_v19  ;;  %v209_v33 = vmul.f32 %v2374_v20, %v138_v49  ;;  %1932 = vmatmul.mubr.f32.gmra.mrb[22].mxu0 %v2538_v45  ;;  %v145_v38 = vld [vmem:[#allocation2 + $0x1c0] sm:$0xff]  ;;  %v146_v8 = vld [vmem:[#allocation2 + $0x1c8] sm:$0xff] }
  0xad   :  { %658 = vst [vmem:[#allocation11 + $0x158] sm:$0xff] %v2627_v22  ;;  %v467_v14 = vsel %vm339_vm12, %v275_v12, %v403_v62  ;;  %v210_v34 = vmul.f32 %v2374_v20, %v139_v10  ;;  %v211_v35 = vmul.f32 %v2374_v20, %v140_v17  ;;  %1956 = vmatmul.mubr.f32.gmra.mrb[6].mxu1 %v590_v61  ;;  %vm340_vm13 = vcmp.gt.f32.partialorder %v276_v28, 0.0  ;;  %v2673_v29 = vld [vmem:[#allocation8] ss:$0 sm:$0xff]  ;;  %v147_v49 = vld [vmem:[#allocation2 + $0x1d0] sm:$0xff]  ;;  %v148_v10 = vld [vmem:[#allocation2 + $0x1d8] sm:$0xff] }
  0xae   :  { %v2638_v46 = vadd.f32 %v531_v24, %v467_v14  ;;  %v404_v43 = vmul.f32 0.1, %v276_v28  ;;  %vm341_vm14 = vcmp.gt.f32.partialorder %v277_v32, 0.0  ;;  %1958 = vmatprep.mubr.f32.mxu1 %v591_v7  ;;  %v405_v44 = vmul.f32 0.1, %v277_v32  ;;  %1934 = vmatprep.mubr.f32.mxu0 %v2540_v47 }
  0xaf   :  { %v278_v25 = vadd.f32 %v2379_v23, %v207_v27  ;;  %v279_v15 = vadd.f32 %v2379_v23, %v208_v39  ;;  %v280_v51 = vadd.f32 %v2379_v23, %v209_v33  ;;  %v281_v30 = vadd.f32 %v2379_v23, %v210_v34 }
  0xb0   :  { %659 = vst [vmem:[#allocation11 + $0x160] sm:$0xff] %v2638_v46  ;;  %v468_v59 = vsel %vm340_vm13, %v276_v28, %v404_v43  ;;  %v282_v57 = vadd.f32 %v2379_v23, %v211_v35  ;;  %v212_v45 = vmul.f32 %v2374_v20, %v141_v36  ;;  %v469_v53 = vsel %vm341_vm14, %v277_v32, %v405_v44  ;;  %v540_v35 = vld [vmem:[#allocation5 + $0x1a8] sm:$0xff]  ;;  %v541_v43 = vld [vmem:[#allocation5 + $0x1b0] sm:$0xff] }
  0xb1   :  { %v2649_v52 = vadd.f32 %v532_v3, %v468_v59  ;;  %vm342_vm15 = vcmp.gt.f32.partialorder %v278_v25, 0.0  ;;  %v406_v42 = vmul.f32 0.1, %v278_v25  ;;  %1959 = vmatmul.mubr.f32.gmra.mrb[8].mxu1 %v592_v11  ;;  %v2651_v55 = vadd.f32 %v533_v50, %v469_v53  ;;  %1935 = vmatmul.mubr.f32.gmra.mrb[24].mxu0 %v2555_v63  ;;  %v143_v63 = vld [vmem:[#allocation2 + $0x1b0] sm:$0xff] }
  0xb2   :  { %vm343_vm0 = vcmp.gt.f32.partialorder %v279_v15, 0.0  ;;  %v407_v47 = vmul.f32 0.1, %v279_v15  ;;  %vm344_vm1 = vcmp.gt.f32.partialorder %v280_v51, 0.0  ;;  %1961 = vmatprep.mubr.f32.mxu1 %v593_v19  ;;  %v408_v23 = vmul.f32 0.1, %v280_v51  ;;  %1937 = vmatprep.mubr.f32.mxu0 %v2566_v9 }
  0xb3   :  { %660 = vst [vmem:[#allocation11 + $0x168] sm:$0xff] %v2649_v52  ;;  %v470_v20 = vsel %vm342_vm15, %v278_v25, %v406_v42  ;;  %vm345_vm2 = vcmp.gt.f32.partialorder %v281_v30, 0.0  ;;  %v409_v61 = vmul.f32 0.1, %v281_v30  ;;  %661 = vst [vmem:[#allocation11 + $0x170] sm:$0xff] %v2651_v55  ;;  %vm346_vm3 = vcmp.gt.f32.partialorder %v282_v57, 0.0 }
  0xb4   :  { %v2657_v0 = vadd.f32 %v534_v54, %v470_v20  ;;  %v471_v1 = vsel %vm343_vm0, %v279_v15, %v407_v47  ;;  %v410_v2 = vmul.f32 0.1, %v282_v57  ;;  %v472_v6 = vsel %vm344_vm1, %v280_v51, %v408_v23  ;;  %v144_v9 = vld [vmem:[#allocation2 + $0x1b8] sm:$0xff]  ;;  %v544_v42 = vld [vmem:[#allocation5 + $0x1c8] sm:$0xff] }
  0xb5   :  { %v2660_v5 = vadd.f32 %v535_v60, %v471_v1  ;;  %v473_v7 = vsel %vm345_vm2, %v281_v30, %v409_v61  ;;  %v283_v12 = vadd.f32 %v2663_v26, %v212_v45  ;;  %1962 = vmatmul.mubr.f32.gmra.mrb[10].mxu1 %v2627_v22  ;;  %v2668_v4 = vadd.f32 %v536_v56, %v472_v6  ;;  %v539_v22 = vld [vmem:[#allocation5 + $0x1a0] sm:$0xff]  ;;  %v542_v15 = vld [vmem:[#allocation5 + $0x1b8] sm:$0xff]  ;;  %v150_v54 = vld [vmem:[#allocation2 + $0x1e8] sm:$0xff] }
  0xb6   :  { %662 = vst [vmem:[#allocation11 + $0x178] sm:$0xff] %v2657_v0  ;;  %v2670_v11 = vadd.f32 %v537_v58, %v473_v7  ;;  %v474_v13 = vsel %vm346_vm3, %v282_v57, %v410_v2  ;;  %v213_v16 = vmul.f32 %v2673_v29, %v142_v48  ;;  %1938 = vmatmul.mubr.f32.gmra.mrb[26].mxu0 %v2569_v18  ;;  %v543_v57 = vld [vmem:[#allocation5 + $0x1c0] sm:$0xff]  ;;  %v151_v60 = vld [vmem:[#allocation2 + $0x1f0] sm:$0xff]  ;;  %v546_v6 = vld [vmem:[#allocation5 + $0x1d8] sm:$0xff] }
  0xb7   :  { %1964 = vmatprep.mubr.f32.mxu1 %v2638_v46  ;;  %663 = vst [vmem:[#allocation11 + $0x180] sm:$0xff] %v2660_v5  ;;  %v2679_v17 = vadd.f32 %v538_v21, %v474_v13  ;;  %vm347_vm4 = vcmp.gt.f32.partialorder %v283_v12, 0.0  ;;  %v411_v19 = vmul.f32 0.1, %v283_v12  ;;  %v214_v62 = vmul.f32 %v2673_v29, %v143_v63  ;;  %1940 = vmatprep.mubr.f32.mxu0 %v2572_v31  ;;  %v149_v45 = vld [vmem:[#allocation2 + $0x1e0] sm:$0xff]  ;;  %v545_v58 = vld [vmem:[#allocation5 + $0x1d0] sm:$0xff] }
  0xb8   :  { %664 = vst [vmem:[#allocation11 + $0x188] sm:$0xff] %v2668_v4  ;;  %665 = vst [vmem:[#allocation11 + $0x190] sm:$0xff] %v2670_v11  ;;  %v284_v24 = vadd.f32 %v2663_v26, %v213_v16  ;;  %v215_v18 = vmul.f32 %v2673_v29, %v144_v9  ;;  %v216_v28 = vmul.f32 %v2673_v29, %v145_v38  ;;  %v547_v13 = vld [vmem:[#allocation5 + $0x1e0] sm:$0xff] }
  0xb9   :  { %v217_v32 = vmul.f32 %v2673_v29, %v146_v8  ;;  %666 = vst [vmem:[#allocation11 + $0x198] sm:$0xff] %v2679_v17  ;;  %v475_v27 = vsel %vm347_vm4, %v283_v12, %v411_v19  ;;  %v285_v39 = vadd.f32 %v2663_v26, %v214_v62  ;;  %v218_v14 = vmul.f32 %v2673_v29, %v147_v49 }
  0xba   :  { %v219_v31 = vmul.f32 %v2673_v29, %v148_v10  ;;  %1965 = vmatmul.mubr.f32.gmra.mrb[12].mxu1 %v2649_v52  ;;  %v2694_v33 = vadd.f32 %v539_v22, %v475_v27  ;;  %vm348_vm5 = vcmp.gt.f32.partialorder %v284_v24, 0.0  ;;  %v412_v34 = vmul.f32 0.1, %v284_v24  ;;  %1941 = vmatmul.mubr.f32.gmra.mrb[28].mxu0 %v2577_v37  ;;  %v548_v10 = vld [vmem:[#allocation5 + $0x1e8] sm:$0xff]  ;;  %v549_v22 = vld [vmem:[#allocation5 + $0x1f0] sm:$0xff]  ;;  %v550_v27 = vld [vmem:[#allocation5 + $0x1f8] sm:$0xff] }
  0xbb   :  { %v286_v36 = vadd.f32 %v2663_v26, %v215_v18  ;;  %1967 = vmatprep.mubr.f32.mxu1 %v2651_v55  ;;  %vm349_vm6 = vcmp.gt.f32.partialorder %v285_v39, 0.0  ;;  %v413_v46 = vmul.f32 0.1, %v285_v39  ;;  %v287_v3 = vadd.f32 %v2663_v26, %v216_v28  ;;  %1943 = vmatprep.mubr.f32.mxu0 %v2579_v40 }
  0xbc   :  { %v288_v44 = vadd.f32 %v2663_v26, %v217_v32  ;;  %667 = vst [vmem:[#allocation11 + $0x1a0] sm:$0xff] %v2694_v33  ;;  %v476_v50 = vsel %vm348_vm5, %v284_v24, %v412_v34  ;;  %v289_v51 = vadd.f32 %v2663_v26, %v218_v14  ;;  %v290_v61 = vadd.f32 %v2663_v26, %v219_v31 }
  0xbd   :  { %vm350_vm7 = vcmp.gt.f32.partialorder %v286_v36, 0.0  ;;  %v414_v25 = vmul.f32 0.1, %v286_v36  ;;  %v2704_v37 = vadd.f32 %v540_v35, %v476_v50  ;;  %v477_v59 = vsel %vm349_vm6, %v285_v39, %v413_v46 }
  0xbe   :  { %vm351_vm8 = vcmp.gt.f32.partialorder %v287_v3, 0.0  ;;  %v415_v30 = vmul.f32 0.1, %v287_v3  ;;  %1968 = vmatmul.mubr.f32.gmra.mrb[14].mxu1 %v2657_v0  ;;  %v2707_v52 = vadd.f32 %v541_v43, %v477_v59  ;;  %vm352_vm9 = vcmp.gt.f32.partialorder %v288_v44, 0.0  ;;  %1944 = vmatmul.mubr.f32.gmra.mrb[30].mxu0 %v2583_v41  ;;  %v152_v0 = vld [vmem:[#allocation2 + $0x1f8] sm:$0xff] }
  0xbf   :  { %v478_v40 = vsel %vm350_vm7, %v286_v36, %v414_v25  ;;  %v416_v53 = vmul.f32 0.1, %v288_v44  ;;  %1970 = vmatprep.mubr.f32.mxu1 %v2660_v5  ;;  %668 = vst [vmem:[#allocation11 + $0x1a8] sm:$0xff] %v2704_v37  ;;  %vm353_vm10 = vcmp.gt.f32.partialorder %v289_v51, 0.0  ;;  %v417_v56 = vmul.f32 0.1, %v289_v51 }
  0xc0   :  { %v606_v55 = vadd.f32 %v542_v15, %v478_v40  ;;  %v479_v47 = vsel %vm351_vm8, %v287_v3, %v415_v30  ;;  %669 = vst [vmem:[#allocation11 + $0x1b0] sm:$0xff] %v2707_v52  ;;  %v220_v48 = vmul.f32 %v2673_v29, %v149_v45  ;;  %v221_v2 = vmul.f32 %v2673_v29, %v150_v54 }
  0xc1   :  { %v607_v20 = vadd.f32 %v543_v57, %v479_v47  ;;  %v480_v23 = vsel %vm352_vm9, %v288_v44, %v416_v53  ;;  %v481_v1 = vsel %vm353_vm10, %v289_v51, %v417_v56  ;;  %v222_v21 = vmul.f32 %v2673_v29, %v151_v60 }
  0xc2   :  { %670 = vst [vmem:[#allocation11 + $0x1b8] sm:$0xff] %v606_v55  ;;  %v608_v41 = vadd.f32 %v544_v42, %v480_v23  ;;  %1971 = vmatmul.mubr.f32.gmra.mrb[16].mxu1 %v2668_v4  ;;  %v609_v63 = vadd.f32 %v545_v58, %v481_v1  ;;  %vm354_vm11 = vcmp.gt.f32.partialorder %v290_v61, 0.0  ;;  %v418_v5 = vmul.f32 0.1, %v290_v61 }
  0xc3   :  { %671 = vst [vmem:[#allocation11 + $0x1c0] sm:$0xff] %v607_v20  ;;  %v291_v7 = vadd.f32 %v2663_v26, %v220_v48  ;;  %1973 = vmatprep.mubr.f32.mxu1 %v2670_v11  ;;  %v292_v12 = vadd.f32 %v2663_v26, %v221_v2  ;;  %v293_v9 = vadd.f32 %v2663_v26, %v222_v21 }
  0xc4   :  { %672 = vst [vmem:[#allocation11 + $0x1c8] sm:$0xff] %v608_v41  ;;  %v223_v38 = vmul.f32 %v2673_v29, %v152_v0  ;;  %673 = vst [vmem:[#allocation11 + $0x1d0] sm:$0xff] %v609_v63  ;;  %v482_v8 = vsel %vm354_vm11, %v290_v61, %v418_v5 }
  0xc5   :  { %vm355_vm12 = vcmp.gt.f32.partialorder %v291_v7, 0.0  ;;  %v419_v4 = vmul.f32 0.1, %v291_v7  ;;  %v610_v16 = vadd.f32 %v546_v6, %v482_v8  ;;  %vm356_vm13 = vcmp.gt.f32.partialorder %v292_v12, 0.0 }
  0xc6   :  { %v420_v49 = vmul.f32 0.1, %v292_v12  ;;  %vm357_vm14 = vcmp.gt.f32.partialorder %v293_v9, 0.0  ;;  %1974 = vmatmul.mubr.f32.gmra.mrb[18].mxu1 %v2679_v17  ;;  %v421_v19 = vmul.f32 0.1, %v293_v9  ;;  %v294_v62 = vadd.f32 %v2663_v26, %v223_v38 }
  0xc7   :  { %v483_v11 = vsel %vm355_vm12, %v291_v7, %v419_v4  ;;  %1976 = vmatprep.mubr.f32.mxu1 %v2694_v33  ;;  %674 = vst [vmem:[#allocation11 + $0x1d8] sm:$0xff] %v610_v16 }
  0xc8   :  { %v611_v29 = vadd.f32 %v547_v13, %v483_v11  ;;  %v484_v24 = vsel %vm356_vm13, %v292_v12, %v420_v49  ;;  %v485_v28 = vsel %vm357_vm14, %v293_v9, %v421_v19  ;;  %vm358_vm15 = vcmp.gt.f32.partialorder %v294_v62, 0.0 }
  0xc9   :  { %v612_v18 = vadd.f32 %v548_v10, %v484_v24  ;;  %v422_v32 = vmul.f32 0.1, %v294_v62  ;;  %v613_v39 = vadd.f32 %v549_v22, %v485_v28 }
  0xca   :  { %675 = vst [vmem:[#allocation11 + $0x1e0] sm:$0xff] %v611_v29  ;;  %1977 = vmatmul.mubr.f32.gmra.mrb[20].mxu1 %v2704_v37 }
  0xcb   :  { %676 = vst [vmem:[#allocation11 + $0x1e8] sm:$0xff] %v612_v18  ;;  %v486_v17 = vsel %vm358_vm15, %v294_v62, %v422_v32  ;;  %1979 = vmatprep.mubr.f32.mxu1 %v2707_v52  ;;  %677 = vst [vmem:[#allocation11 + $0x1f0] sm:$0xff] %v613_v39 }
  0xcc   :  { %v614_v26 = vadd.f32 %v550_v27, %v486_v17 }
  0xce   :  { %678 = vst [vmem:[#allocation11 + $0x1f8] sm:$0xff] %v614_v26  ;;  %1980 = vmatmul.mubr.f32.gmra.mrb[22].mxu1 %v606_v55 }
  0xcf   :  { %1982 = vmatprep.mubr.f32.mxu1 %v607_v20 }
  0xd2   :  { %1983 = vmatmul.mubr.f32.gmra.mrb[24].mxu1 %v608_v41 }
  0xd3   :  { %1985 = vmatprep.mubr.f32.mxu1 %v609_v63 }
  0xd6   :  { %1986 = vmatmul.mubr.f32.gmra.mrb[26].mxu1 %v610_v16 }
  0xd7   :  { %1988 = vmatprep.mubr.f32.mxu1 %v611_v29 }
  0xda   :  { %1989 = vmatmul.mubr.f32.gmra.mrb[28].mxu1 %v612_v18 }
  0xdb   :  { %1991 = vmatprep.mubr.f32.mxu1 %v613_v39 }
  0xde   :  { %1992 = vmatmul.mubr.f32.gmra.mrb[30].mxu1 %v614_v26 }
 0x153   :  { %v1900_v14 = vpop.f32.mrb[0].mxu0 }
 0x154   :  { %1081 = vst [vmem:[#allocation12 + $0x8] sm:$0xff] %v1900_v14  ;;  %v1601_v31 = vmul.f32 %v1900_v14, %v1900_v14  ;;  %v761_v33 = vpop.f32.mrb[1].mxu0 }
 0x155   :  { %1080 = vst [vmem:[#allocation12] sm:$0xff] %v761_v33  ;;  %v1531_v34 = vadd.f32 %v1900_v14, %v761_v33  ;;  %v1600_v35 = vmul.f32 %v761_v33, %v761_v33 }
 0x157   :  { %v1664_v36 = vadd.f32 %v1601_v31, %v1600_v35  ;;  %v1903_v46 = vpop.f32.mrb[2].mxu0 }
 0x158   :  { %1083 = vst [vmem:[#allocation12 + $0x18] sm:$0xff] %v1903_v46  ;;  %v771_v43 = vpop.f32.mrb[3].mxu0  ;;  %v1603_v50 = vmul.f32 %v1903_v46, %v1903_v46 }
 0x159   :  { %1082 = vst [vmem:[#allocation12 + $0x10] sm:$0xff] %v771_v43  ;;  %v1532_v3 = vadd.f32 %v1531_v34, %v771_v43  ;;  %v1602_v44 = vmul.f32 %v771_v43, %v771_v43 }
 0x15b   :  { %v1665_v25 = vadd.f32 %v1664_v36, %v1602_v44  ;;  %v1906_v15 = vpop.f32.mrb[4].mxu0  ;;  %v1533_v51 = vadd.f32 %v1903_v46, %v1532_v3 }
 0x15c   :  { %1085 = vst [vmem:[#allocation12 + $0x28] sm:$0xff] %v1906_v15  ;;  %v781_v37 = vpop.f32.mrb[5].mxu0  ;;  %v1605_v45 = vmul.f32 %v1906_v15, %v1906_v15 }
 0x15d   :  { %1084 = vst [vmem:[#allocation12 + $0x20] sm:$0xff] %v781_v37  ;;  %v1534_v59 = vadd.f32 %v1533_v51, %v781_v37  ;;  %v1604_v30 = vmul.f32 %v781_v37, %v781_v37  ;;  %v1666_v57 = vadd.f32 %v1665_v25, %v1603_v50 }
 0x15f   :  { %v1667_v52 = vadd.f32 %v1666_v57, %v1604_v30  ;;  %v1909_v40 = vpop.f32.mrb[6].mxu0  ;;  %v1535_v53 = vadd.f32 %v1906_v15, %v1534_v59 }
 0x160   :  { %1087 = vst [vmem:[#allocation12 + $0x38] sm:$0xff] %v1909_v40  ;;  %v791_v42 = vpop.f32.mrb[7].mxu0 }
 0x161   :  { %2175 = shalt.err (!%p2172_p2)
}
 0x162   :  { %s2176_s21 = scalar_lea.hbm %s2968_s5, 8192 }
 0x163   :  { %p2177_p3 = scmp.ne.s32.totalorder %s2968_s5, %s2176_s21  ;;  %p2180_p4 = scmp.lt.u32.totalorder %s2176_s21, %s2968_s5 }
 0x165   :  { %p2182_p5 = pnand %p2180_p4, %p2177_p3 }
 0x167   :  { %2185 = shalt.err (!%p2182_p5)
}
 0x168   :  { %1747 = dma.vmem_to_hbm [thread:$0]  %s1742_s27, 8192, %s2968_s5, [#allocation4], %s2242_s13, %s2242_s13, %s2243_s14   ;;  %1086 = vst [vmem:[#allocation12 + $0x30] sm:$0xff] %v791_v42  ;;  %v1536_v54 = vadd.f32 %v1535_v53, %v791_v42  ;;  %v1606_v60 = vmul.f32 %v791_v42, %v791_v42  ;;  %v1668_v55 = vadd.f32 %v1667_v52, %v1605_v45  ;;  %v1607_v47 = vmul.f32 %v1909_v40, %v1909_v40  ;;  %v1912_v58 = vpop.f32.mrb[8].mxu0 }
 0x169   :  { %1089 = vst [vmem:[#allocation12 + $0x48] sm:$0xff] %v1912_v58  ;;  %v801_v23 = vpop.f32.mrb[9].mxu0  ;;  %v1609_v41 = vmul.f32 %v1912_v58, %v1912_v58  ;;  %s2248_s5 = smov [#allocation12]  }
 0x16a   :  { %v1669_v56 = vadd.f32 %v1668_v55, %v1606_v60  ;;  %v1537_v20 = vadd.f32 %v1909_v40, %v1536_v54  ;;  %1088 = vst [vmem:[#allocation12 + $0x40] sm:$0xff] %v801_v23  ;;  %v1608_v48 = vmul.f32 %v801_v23, %v801_v23  ;;  %v1915_v2 = vpop.f32.mrb[10].mxu0  ;;  %s1753_s26 = sshll.u32 %s2248_s5, 4  ;;  %s1754_s26 = int_to_ptr.vmem [resolvable:$true] %s1753_s26 }
 0x16b   :  { %1091 = vst [vmem:[#allocation12 + $0x58] sm:$0xff] %v1915_v2  ;;  %v811_v63 = vpop.f32.mrb[11].mxu0  ;;  %v1611_v12 = vmul.f32 %v1915_v2, %v1915_v2  ;;  %s2186_s28 = scalar_lea.vmem %s1754_s26, 8192  ;;  %p2191_p7 = scmp.lt.s32.totalorder %s1754_s26, %s1754_s26 }
 0x16c   :  { %v1538_v61 = vadd.f32 %v1537_v20, %v801_v23  ;;  %v1670_v0 = vadd.f32 %v1669_v56, %v1607_v47  ;;  %1090 = vst [vmem:[#allocation12 + $0x50] sm:$0xff] %v811_v63  ;;  %v1610_v6 = vmul.f32 %v811_v63, %v811_v63  ;;  %v1918_v38 = vpop.f32.mrb[12].mxu0  ;;  %p2187_p6 = scmp.ne.s32.totalorder %s1754_s26, %s2186_s28  ;;  %p2192_p8 = scmp.lt.s32.totalorder %s2186_s28, %s2186_s28 }
 0x16d   :  { %1093 = vst [vmem:[#allocation12 + $0x68] sm:$0xff] %v1918_v38  ;;  %v821_v4 = vpop.f32.mrb[13].mxu0  ;;  %v1613_v10 = vmul.f32 %v1918_v38, %v1918_v38 }
 0x16e   :  { %v1671_v1 = vadd.f32 %v1670_v0, %v1608_v48  ;;  %v1539_v21 = vadd.f32 %v1912_v58, %v1538_v61  ;;  %1092 = vst [vmem:[#allocation12 + $0x60] sm:$0xff] %v821_v4  ;;  %v1612_v16 = vmul.f32 %v821_v4, %v821_v4  ;;  %p2193_p9 = por %p2192_p8, %p2191_p7 }
 0x16f   :  { %v1921_v19 = vpop.f32.mrb[14].mxu0 }
 0x170   :  { %v1540_v5 = vadd.f32 %v1539_v21, %v811_v63  ;;  %v1672_v7 = vadd.f32 %v1671_v1, %v1609_v41  ;;  %1095 = vst [vmem:[#allocation12 + $0x78] sm:$0xff] %v1921_v19  ;;  %v831_v62 = vpop.f32.mrb[15].mxu0  ;;  %v1615_v32 = vmul.f32 %v1921_v19, %v1921_v19  ;;  %p2194_p10 = pnand %p2193_p9, %p2187_p6 }
 0x171   :  { %1094 = vst [vmem:[#allocation12 + $0x70] sm:$0xff] %v831_v62  ;;  %v1614_v24 = vmul.f32 %v831_v62, %v831_v62 }
 0x172   :  { %v1673_v9 = vadd.f32 %v1672_v7, %v1610_v6  ;;  %v1541_v8 = vadd.f32 %v1915_v2, %v1540_v5 }
 0x173   :  { %v1924_v39 = vpop.f32.mrb[16].mxu0 }
 0x174   :  { %v1542_v13 = vadd.f32 %v1541_v8, %v821_v4  ;;  %v1674_v49 = vadd.f32 %v1673_v9, %v1611_v12  ;;  %v2744_v28 = vpop.f32.mrb[0].mxu1  ;;  %1097 = vst [vmem:[#allocation12 + $0x88] sm:$0xff] %v1924_v39  ;;  %v841_v14 = vpop.f32.mrb[17].mxu0  ;;  %v1617_v36 = vmul.f32 %v1924_v39, %v1924_v39 }
 0x175   :  { %1113 = vst [vmem:[#allocation12 + $0x108] sm:$0xff] %v2744_v28  ;;  %v2747_v26 = vpop.f32.mrb[1].mxu1  ;;  %1096 = vst [vmem:[#allocation12 + $0x80] sm:$0xff] %v841_v14  ;;  %v1616_v33 = vmul.f32 %v841_v14, %v841_v14 }
 0x176   :  { %v1675_v11 = vadd.f32 %v1674_v49, %v1612_v16  ;;  %v1543_v22 = vadd.f32 %v1918_v38, %v1542_v13  ;;  %1112 = vst [vmem:[#allocation12 + $0x100] sm:$0xff] %v2747_v26 }
 0x177   :  { %v1927_v43 = vpop.f32.mrb[18].mxu0 }
 0x178   :  { %v1544_v29 = vadd.f32 %v1543_v22, %v831_v62  ;;  %v1676_v18 = vadd.f32 %v1675_v11, %v1613_v10  ;;  %v2750_v35 = vpop.f32.mrb[2].mxu1  ;;  %1099 = vst [vmem:[#allocation12 + $0x98] sm:$0xff] %v1927_v43  ;;  %v851_v50 = vpop.f32.mrb[19].mxu0  ;;  %v1619_v59 = vmul.f32 %v1927_v43, %v1927_v43 }
 0x179   :  { %1115 = vst [vmem:[#allocation12 + $0x118] sm:$0xff] %v2750_v35  ;;  %v2753_v44 = vpop.f32.mrb[3].mxu1  ;;  %1098 = vst [vmem:[#allocation12 + $0x90] sm:$0xff] %v851_v50  ;;  %v1618_v15 = vmul.f32 %v851_v50, %v851_v50 }
 0x17a   :  { %v1677_v27 = vadd.f32 %v1676_v18, %v1614_v24  ;;  %v1545_v17 = vadd.f32 %v1921_v19, %v1544_v29  ;;  %1114 = vst [vmem:[#allocation12 + $0x110] sm:$0xff] %v2753_v44 }
 0x17b   :  { %v1930_v57 = vpop.f32.mrb[20].mxu0 }
 0x17c   :  { %v1546_v31 = vadd.f32 %v1545_v17, %v841_v14  ;;  %v1678_v34 = vadd.f32 %v1677_v27, %v1615_v32  ;;  %v2756_v37 = vpop.f32.mrb[4].mxu1  ;;  %1101 = vst [vmem:[#allocation12 + $0xa8] sm:$0xff] %v1930_v57  ;;  %v861_v40 = vpop.f32.mrb[21].mxu0  ;;  %v1621_v55 = vmul.f32 %v1930_v57, %v1930_v57 }
 0x17d   :  { %1117 = vst [vmem:[#allocation12 + $0x128] sm:$0xff] %v2756_v37  ;;  %v2759_v52 = vpop.f32.mrb[5].mxu1  ;;  %1100 = vst [vmem:[#allocation12 + $0xa0] sm:$0xff] %v861_v40  ;;  %v1620_v42 = vmul.f32 %v861_v40, %v861_v40 }
 0x17e   :  { %v1679_v46 = vadd.f32 %v1678_v34, %v1616_v33  ;;  %v1547_v3 = vadd.f32 %v1924_v39, %v1546_v31  ;;  %1116 = vst [vmem:[#allocation12 + $0x120] sm:$0xff] %v2759_v52 }
 0x17f   :  { %v1933_v56 = vpop.f32.mrb[22].mxu0 }
 0x180   :  { %v1548_v25 = vadd.f32 %v1547_v3, %v851_v50  ;;  %v1680_v51 = vadd.f32 %v1679_v46, %v1617_v36  ;;  %v2762_v60 = vpop.f32.mrb[6].mxu1  ;;  %1103 = vst [vmem:[#allocation12 + $0xb8] sm:$0xff] %v1933_v56  ;;  %v871_v23 = vpop.f32.mrb[23].mxu0  ;;  %v1623_v1 = vmul.f32 %v1933_v56, %v1933_v56 }
 0x181   :  { %1119 = vst [vmem:[#allocation12 + $0x138] sm:$0xff] %v2762_v60  ;;  %v2765_v20 = vpop.f32.mrb[7].mxu1  ;;  %1102 = vst [vmem:[#allocation12 + $0xb0] sm:$0xff] %v871_v23  ;;  %v1622_v48 = vmul.f32 %v871_v23, %v871_v23 }
 0x182   :  { %v1681_v30 = vadd.f32 %v1680_v51, %v1618_v15  ;;  %v1549_v45 = vadd.f32 %v1927_v43, %v1548_v25  ;;  %1118 = vst [vmem:[#allocation12 + $0x130] sm:$0xff] %v2765_v20 }
 0x184   :  { %v1550_v53 = vadd.f32 %v1549_v45, %v861_v40  ;;  %v1682_v54 = vadd.f32 %v1681_v30, %v1619_v59  ;;  %v2768_v41 = vpop.f32.mrb[8].mxu1  ;;  %v1936_v21 = vpop.f32.mrb[24].mxu0  ;;  %v1632_v40 = vmul.f32 %v2747_v26, %v2747_v26 }
 0x185   :  { %1121 = vst [vmem:[#allocation12 + $0x148] sm:$0xff] %v2768_v41  ;;  %v2771_v5 = vpop.f32.mrb[9].mxu1  ;;  %1105 = vst [vmem:[#allocation12 + $0xc8] sm:$0xff] %v1936_v21  ;;  %v881_v6 = vpop.f32.mrb[25].mxu0  ;;  %v1625_v8 = vmul.f32 %v1936_v21, %v1936_v21 }
 0x186   :  { %v1683_v47 = vadd.f32 %v1682_v54, %v1620_v42  ;;  %v1551_v58 = vadd.f32 %v1930_v57, %v1550_v53  ;;  %1120 = vst [vmem:[#allocation12 + $0x140] sm:$0xff] %v2771_v5  ;;  %1104 = vst [vmem:[#allocation12 + $0xc0] sm:$0xff] %v881_v6  ;;  %v1624_v12 = vmul.f32 %v881_v6, %v881_v6 }
 0x188   :  { %v1552_v61 = vadd.f32 %v1551_v58, %v871_v23  ;;  %v1684_v0 = vadd.f32 %v1683_v47, %v1621_v55  ;;  %v2774_v38 = vpop.f32.mrb[10].mxu1  ;;  %v1633_v47 = vmul.f32 %v2744_v28, %v2744_v28  ;;  %v1634_v23 = vmul.f32 %v2753_v44, %v2753_v44 }
 0x189   :  { %v1939_v13 = vpop.f32.mrb[26].mxu0  ;;  %1123 = vst [vmem:[#allocation12 + $0x158] sm:$0xff] %v2774_v38  ;;  %v2777_v49 = vpop.f32.mrb[11].mxu1 }
 0x18a   :  { %v1685_v2 = vadd.f32 %v1684_v0, %v1622_v48  ;;  %v1553_v63 = vadd.f32 %v1933_v56, %v1552_v61  ;;  %1107 = vst [vmem:[#allocation12 + $0xd8] sm:$0xff] %v1939_v13  ;;  %v891_v10 = vpop.f32.mrb[27].mxu0  ;;  %1122 = vst [vmem:[#allocation12 + $0x150] sm:$0xff] %v2777_v49  ;;  %v1627_v29 = vmul.f32 %v1939_v13, %v1939_v13 }
 0x18b   :  { %1106 = vst [vmem:[#allocation12 + $0xd0] sm:$0xff] %v891_v10  ;;  %v1626_v19 = vmul.f32 %v891_v10, %v891_v10 }
 0x18c   :  { %v1554_v7 = vadd.f32 %v1553_v63, %v881_v6  ;;  %v1686_v9 = vadd.f32 %v1685_v2, %v1623_v1  ;;  %v1635_v1 = vmul.f32 %v2750_v35, %v2750_v35 }
 0x18d   :  { %v2780_v62 = vpop.f32.mrb[12].mxu1  ;;  %v1942_v18 = vpop.f32.mrb[28].mxu0 }
 0x18e   :  { %v1687_v4 = vadd.f32 %v1686_v9, %v1624_v12  ;;  %v1555_v16 = vadd.f32 %v1936_v21, %v1554_v7  ;;  %1125 = vst [vmem:[#allocation12 + $0x168] sm:$0xff] %v2780_v62  ;;  %v2783_v27 = vpop.f32.mrb[13].mxu1  ;;  %1109 = vst [vmem:[#allocation12 + $0xe8] sm:$0xff] %v1942_v18  ;;  %v901_v39 = vpop.f32.mrb[29].mxu0  ;;  %v1629_v34 = vmul.f32 %v1942_v18, %v1942_v18 }
 0x18f   :  { %1124 = vst [vmem:[#allocation12 + $0x160] sm:$0xff] %v2783_v27  ;;  %1108 = vst [vmem:[#allocation12 + $0xe0] sm:$0xff] %v901_v39  ;;  %v1628_v14 = vmul.f32 %v901_v39, %v901_v39  ;;  %v1636_v21 = vmul.f32 %v2759_v52, %v2759_v52  ;;  %v1637_v12 = vmul.f32 %v2756_v37, %v2756_v37 }
 0x190   :  { %v1556_v11 = vadd.f32 %v1555_v16, %v891_v10  ;;  %v1688_v22 = vadd.f32 %v1687_v4, %v1625_v8  ;;  %v1638_v8 = vmul.f32 %v2765_v20, %v2765_v20  ;;  %v1639_v10 = vmul.f32 %v2762_v60, %v2762_v60 }
 0x191   :  { %v2786_v33 = vpop.f32.mrb[14].mxu1  ;;  %v1945_v46 = vpop.f32.mrb[30].mxu0 }
 0x192   :  { %v1689_v24 = vadd.f32 %v1688_v22, %v1626_v19  ;;  %v1557_v32 = vadd.f32 %v1939_v13, %v1556_v11  ;;  %1127 = vst [vmem:[#allocation12 + $0x178] sm:$0xff] %v2786_v33  ;;  %v2789_v3 = vpop.f32.mrb[15].mxu1  ;;  %1111 = vst [vmem:[#allocation12 + $0xf8] sm:$0xff] %v1945_v46  ;;  %v911_v50 = vpop.f32.mrb[31].mxu0  ;;  %v1631_v30 = vmul.f32 %v1945_v46, %v1945_v46 }
 0x193   :  { %1126 = vst [vmem:[#allocation12 + $0x170] sm:$0xff] %v2789_v3  ;;  %1110 = vst [vmem:[#allocation12 + $0xf0] sm:$0xff] %v911_v50  ;;  %v1630_v15 = vmul.f32 %v911_v50, %v911_v50  ;;  %v1640_v19 = vmul.f32 %v2771_v5, %v2771_v5 }
 0x194   :  { %v1558_v17 = vadd.f32 %v1557_v32, %v901_v39  ;;  %v1690_v31 = vadd.f32 %v1689_v24, %v1627_v29  ;;  %v1642_v39 = vmul.f32 %v2777_v49, %v2777_v49 }
 0x195   :  { %v2792_v59 = vpop.f32.mrb[16].mxu1 }
 0x196   :  { %v1691_v36 = vadd.f32 %v1690_v31, %v1628_v14  ;;  %v1559_v43 = vadd.f32 %v1942_v18, %v1558_v17  ;;  %1129 = vst [vmem:[#allocation12 + $0x188] sm:$0xff] %v2792_v59  ;;  %v2797_v53 = vpop.f32.mrb[17].mxu1  ;;  %v1641_v18 = vmul.f32 %v2768_v41, %v2768_v41 }
 0x197   :  { %1128 = vst [vmem:[#allocation12 + $0x180] sm:$0xff] %v2797_v53 }
 0x198   :  { %v1560_v25 = vadd.f32 %v1559_v43, %v911_v50  ;;  %v1692_v51 = vadd.f32 %v1691_v36, %v1629_v34  ;;  %v1643_v34 = vmul.f32 %v2774_v38, %v2774_v38 }
 0x199   :  { %v2801_v55 = vpop.f32.mrb[18].mxu1 }
 0x19a   :  { %v1561_v57 = vadd.f32 %v1945_v46, %v1560_v25  ;;  %v1693_v45 = vadd.f32 %v1692_v51, %v1630_v15  ;;  %1131 = vst [vmem:[#allocation12 + $0x198] sm:$0xff] %v2801_v55  ;;  %v2809_v61 = vpop.f32.mrb[19].mxu1  ;;  %v1644_v46 = vmul.f32 %v2783_v27, %v2783_v27 }
 0x19b   :  { %1130 = vst [vmem:[#allocation12 + $0x190] sm:$0xff] %v2809_v61 }
 0x19c   :  { %v1694_v42 = vadd.f32 %v1693_v45, %v1631_v30  ;;  %v1562_v54 = vadd.f32 %v1561_v57, %v2747_v26  ;;  %v1646_v30 = vmul.f32 %v2789_v3, %v2789_v3 }
 0x19d   :  { %v2813_v0 = vpop.f32.mrb[20].mxu1 }
 0x19e   :  { %v1695_v56 = vadd.f32 %v1694_v42, %v1632_v40  ;;  %v1563_v58 = vadd.f32 %v2744_v28, %v1562_v54  ;;  %1133 = vst [vmem:[#allocation12 + $0x1a8] sm:$0xff] %v2813_v0  ;;  %v2821_v63 = vpop.f32.mrb[21].mxu1 }
 0x19f   :  { %1132 = vst [vmem:[#allocation12 + $0x1a0] sm:$0xff] %v2821_v63 }
 0x1a0   :  { %v1564_v48 = vadd.f32 %v1563_v58, %v2753_v44  ;;  %v1696_v26 = vadd.f32 %v1695_v56, %v1633_v47 }
 0x1a1   :  { %v2825_v7 = vpop.f32.mrb[22].mxu1 }
 0x1a2   :  { %v1697_v2 = vadd.f32 %v1696_v26, %v1634_v23  ;;  %v1565_v28 = vadd.f32 %v2750_v35, %v1564_v48  ;;  %1135 = vst [vmem:[#allocation12 + $0x1b8] sm:$0xff] %v2825_v7  ;;  %v2833_v4 = vpop.f32.mrb[23].mxu1 }
 0x1a3   :  { %1134 = vst [vmem:[#allocation12 + $0x1b0] sm:$0xff] %v2833_v4 }
 0x1a4   :  { %v1566_v44 = vadd.f32 %v1565_v28, %v2759_v52  ;;  %v1698_v6 = vadd.f32 %v1697_v2, %v1635_v1 }
 0x1a5   :  { %v2837_v16 = vpop.f32.mrb[24].mxu1 }
 0x1a6   :  { %v1699_v9 = vadd.f32 %v1698_v6, %v1636_v21  ;;  %v1567_v35 = vadd.f32 %v2756_v37, %v1566_v44  ;;  %1137 = vst [vmem:[#allocation12 + $0x1c8] sm:$0xff] %v2837_v16  ;;  %v2845_v22 = vpop.f32.mrb[25].mxu1 }
 0x1a7   :  { %1136 = vst [vmem:[#allocation12 + $0x1c0] sm:$0xff] %v2845_v22 }
 0x1a8   :  { %v1568_v52 = vadd.f32 %v1567_v35, %v2765_v20  ;;  %v1700_v13 = vadd.f32 %v1699_v9, %v1637_v12 }
 0x1a9   :  { %v2849_v24 = vpop.f32.mrb[26].mxu1 }
 0x1aa   :  { %v1701_v11 = vadd.f32 %v1700_v13, %v1638_v8  ;;  %v1569_v37 = vadd.f32 %v2762_v60, %v1568_v52  ;;  %1139 = vst [vmem:[#allocation12 + $0x1d8] sm:$0xff] %v2849_v24  ;;  %v2857_v17 = vpop.f32.mrb[27].mxu1 }
 0x1ab   :  { %1138 = vst [vmem:[#allocation12 + $0x1d0] sm:$0xff] %v2857_v17 }
 0x1ac   :  { %v1570_v20 = vadd.f32 %v1569_v37, %v2771_v5  ;;  %v1702_v29 = vadd.f32 %v1701_v11, %v1639_v10 }
 0x1ad   :  { %v2861_v31 = vpop.f32.mrb[28].mxu1 }
 0x1ae   :  { %v1703_v32 = vadd.f32 %v1702_v29, %v1640_v19  ;;  %v1571_v60 = vadd.f32 %v2768_v41, %v1570_v20  ;;  %1141 = vst [vmem:[#allocation12 + $0x1e8] sm:$0xff] %v2861_v31  ;;  %v2869_v43 = vpop.f32.mrb[29].mxu1 }
 0x1af   :  { %1140 = vst [vmem:[#allocation12 + $0x1e0] sm:$0xff] %v2869_v43 }
 0x1b0   :  { %v1572_v5 = vadd.f32 %v1571_v60, %v2777_v49  ;;  %v1704_v14 = vadd.f32 %v1703_v32, %v1641_v18 }
 0x1b1   :  { %v2873_v25 = vpop.f32.mrb[30].mxu1 }
 0x1b2   :  { %v1705_v36 = vadd.f32 %v1704_v14, %v1642_v39  ;;  %v1573_v41 = vadd.f32 %v2774_v38, %v1572_v5  ;;  %v1645_v38 = vmul.f32 %v2780_v62, %v2780_v62  ;;  %1143 = vst [vmem:[#allocation12 + $0x1f8] sm:$0xff] %v2873_v25  ;;  %v2881_v57 = vpop.f32.mrb[31].mxu1 }
 0x1b3   :  { %1142 = vst [vmem:[#allocation12 + $0x1f0] sm:$0xff] %v2881_v57 }
 0x1b4   :  { %v1574_v49 = vadd.f32 %v1573_v41, %v2783_v27  ;;  %v1706_v50 = vadd.f32 %v1705_v36, %v1643_v34 }
 0x1b6   :  { %v1707_v15 = vadd.f32 %v1706_v50, %v1644_v46  ;;  %v1575_v51 = vadd.f32 %v2780_v62, %v1574_v49 }
 0x1b8   :  { %v1576_v27 = vadd.f32 %v1575_v51, %v2789_v3  ;;  %v1708_v45 = vadd.f32 %v1707_v15, %v1645_v38 }
 0x1b9   :  { %2197 = shalt.err (!%p2194_p10)
}
 0x1ba   :  { %s2198_s9 = scalar_lea.hbm %s2969_s6, 8192 }
 0x1bb   :  { %p2199_p11 = scmp.ne.s32.totalorder %s2969_s6, %s2198_s9  ;;  %p2202_p12 = scmp.lt.u32.totalorder %s2198_s9, %s2969_s6 }
 0x1bd   :  { %p2204_p13 = pnand %p2202_p12, %p2199_p11 }
 0x1bf   :  { %2207 = shalt.err (!%p2204_p13)
}
 0x1c0   :  { %1759 = dma.vmem_to_hbm [thread:$0]  %s1754_s26, 8192, %s2969_s6, [#allocation13], %s2242_s13, %s2242_s13, %s2243_s14   ;;  %v1647_v62 = vmul.f32 %v2786_v33, %v2786_v33  ;;  %v1709_v3 = vadd.f32 %v1708_v45, %v1646_v30  ;;  %v1577_v40 = vadd.f32 %v2786_v33, %v1576_v27  ;;  %v1648_v42 = vmul.f32 %v2797_v53, %v2797_v53 }
 0x1c1   :  { %v1649_v56 = vmul.f32 %v2792_v59, %v2792_v59  ;;  %v1650_v48 = vmul.f32 %v2809_v61, %v2809_v61  ;;  %v1651_v33 = vmul.f32 %v2801_v55, %v2801_v55  ;;  %s2249_s6 = smov [#allocation14]   ;;  %vm1733_vm0 = vcmask 1040384  }
 0x1c2   :  { %v1578_v54 = vadd.f32 %v1577_v40, %v2797_v53  ;;  %v1710_v47 = vadd.f32 %v1709_v3, %v1647_v62  ;;  %v1652_v53 = vmul.f32 %v2821_v63, %v2821_v63  ;;  %s1766_s13 = sshll.u32 %s2249_s6, 4  ;;  %s1767_s13 = int_to_ptr.vmem [resolvable:$true] %s1766_s13 }
 0x1c3   :  { %s2208_s14 = scalar_lea.vmem %s1767_s13, 32  ;;  %p2213_p1 = scmp.lt.s32.totalorder %s1767_s13, %s1767_s13 }
 0x1c4   :  { %v1711_v58 = vadd.f32 %v1710_v47, %v1648_v42  ;;  %v1579_v23 = vadd.f32 %v2792_v59, %v1578_v54  ;;  %v1653_v59 = vmul.f32 %v2813_v0, %v2813_v0  ;;  %p2209_p0 = scmp.ne.s32.totalorder %s1767_s13, %s2208_s14  ;;  %p2214_p2 = scmp.lt.s32.totalorder %s2208_s14, %s2208_s14 }
 0x1c6   :  { %v1580_v26 = vadd.f32 %v1579_v23, %v2809_v61  ;;  %v1712_v1 = vadd.f32 %v1711_v58, %v1649_v56  ;;  %v1654_v61 = vmul.f32 %v2833_v4, %v2833_v4  ;;  %p2215_p3 = por %p2214_p2, %p2213_p1 }
 0x1c8   :  { %v1713_v2 = vadd.f32 %v1712_v1, %v1650_v48  ;;  %v1581_v28 = vadd.f32 %v2801_v55, %v1580_v26  ;;  %v1655_v55 = vmul.f32 %v2825_v7, %v2825_v7  ;;  %p2216_p4 = pnand %p2215_p3, %p2209_p0 }
 0x1ca   :  { %v1582_v21 = vadd.f32 %v1581_v28, %v2821_v63  ;;  %v1714_v44 = vadd.f32 %v1713_v2, %v1651_v33  ;;  %v1656_v63 = vmul.f32 %v2845_v22, %v2845_v22 }
 0x1cc   :  { %v1715_v6 = vadd.f32 %v1714_v44, %v1652_v53  ;;  %v1583_v12 = vadd.f32 %v2813_v0, %v1582_v21  ;;  %v1657_v0 = vmul.f32 %v2837_v16, %v2837_v16 }
 0x1ce   :  { %v1584_v9 = vadd.f32 %v1583_v12, %v2833_v4  ;;  %v1716_v35 = vadd.f32 %v1715_v6, %v1653_v59  ;;  %v1658_v4 = vmul.f32 %v2857_v17, %v2857_v17 }
 0x1d0   :  { %v1717_v8 = vadd.f32 %v1716_v35, %v1654_v61  ;;  %v1585_v52 = vadd.f32 %v2825_v7, %v1584_v9  ;;  %v1659_v7 = vmul.f32 %v2849_v24, %v2849_v24 }
 0x1d2   :  { %v1586_v13 = vadd.f32 %v1585_v52, %v2845_v22  ;;  %v1718_v10 = vadd.f32 %v1717_v8, %v1655_v55  ;;  %v1660_v22 = vmul.f32 %v2869_v43, %v2869_v43 }
 0x1d4   :  { %v1719_v11 = vadd.f32 %v1718_v10, %v1656_v63  ;;  %v1587_v37 = vadd.f32 %v2837_v16, %v1586_v13  ;;  %v1661_v16 = vmul.f32 %v2861_v31, %v2861_v31 }
 0x1d6   :  { %v1588_v19 = vadd.f32 %v1587_v37, %v2857_v17  ;;  %v1720_v20 = vadd.f32 %v1719_v11, %v1657_v0  ;;  %v1662_v17 = vmul.f32 %v2881_v57, %v2881_v57 }
 0x1d8   :  { %v1721_v29 = vadd.f32 %v1720_v20, %v1658_v4  ;;  %v1589_v18 = vadd.f32 %v2849_v24, %v1588_v19  ;;  %v1663_v24 = vmul.f32 %v2873_v25, %v2873_v25 }
 0x1da   :  { %v1590_v32 = vadd.f32 %v1589_v18, %v2869_v43  ;;  %v1722_v60 = vadd.f32 %v1721_v29, %v1659_v7 }
 0x1dc   :  { %v1723_v39 = vadd.f32 %v1722_v60, %v1660_v22  ;;  %v1591_v5 = vadd.f32 %v2861_v31, %v1590_v32 }
 0x1de   :  { %v1592_v14 = vadd.f32 %v1591_v5, %v2881_v57  ;;  %v1724_v34 = vadd.f32 %v1723_v39, %v1661_v16 }
 0x1e0   :  { %v1593_v36 = vadd.f32 %v2873_v25, %v1592_v14  ;;  %v1725_v41 = vadd.f32 %v1724_v34, %v1662_v17 }
 0x1e2   :  { %v1594_v46 = vrot.slane %v1593_v36, 4  ;;  %v1726_v43 = vadd.f32 %v1725_v41, %v1663_v24 }
 0x1e4   :  { %v1595_v49 = vadd.f32 %v1594_v46, %v1593_v36  ;;  %v1727_v50 = vrot.slane %v1726_v43, 4 }
 0x1e6   :  { %v1596_v38 = vrot.slane %v1595_v49, 2  ;;  %v1728_v15 = vadd.f32 %v1727_v50, %v1726_v43 }
 0x1e8   :  { %v1597_v51 = vadd.f32 %v1596_v38, %v1595_v49  ;;  %v1729_v31 = vrot.slane %v1728_v15, 2 }
 0x1ea   :  { %v1598_v30 = vrot.slane %v1597_v51, 1  ;;  %v1730_v27 = vadd.f32 %v1729_v31, %v1728_v15 }
 0x1ec   :  { %v1731_v45 = vrot.slane %v1730_v27, 1  ;;  %v1599_v57 = vadd.f32 %v1598_v30, %v1597_v51 }
 0x1ee   :  { %v1732_v62 = vadd.f32 %v1731_v45, %v1730_v27 }
 0x1f0   :  { %v1734_v3 = vsel %vm1733_vm0, %v1599_v57, %v1732_v62 }
 0x1f1   :  { %1735 = vst [vmem:[#allocation14] sm:$0x3] %v1734_v3 }
 0x1f2   :  { %2219 = shalt.err (!%p2216_p4)
}
 0x1f3   :  { %s2220_s3 = scalar_lea.hbm %s2970_s7, 32 }
 0x1f4   :  { %p2221_p5 = scmp.ne.s32.totalorder %s2970_s7, %s2220_s3  ;;  %p2224_p6 = scmp.lt.u32.totalorder %s2220_s3, %s2970_s7 }
 0x1f6   :  { %p2226_p7 = pnand %p2224_p6, %p2221_p5 }
 0x1f8   :  { %2229 = shalt.err (!%p2226_p7)
}
 0x1f9   :  { %1769 = dma.vmem_to_hbm [thread:$0]  %s1767_s13, 32, %s2970_s7, [#allocation13]  }
 0x1fa   :  { %2236 = dma.done.wait [#allocation4], 8192  }
 0x1fb   :  { %2237 = vsyncadd [#allocation4], 4294959104 }
 0x1fc   :  { %2238 = dma.done.wait [#allocation13], 8224  }
 0x1fd   :  { %2239 = vsyncadd [#allocation13], 4294959072 }
 0x1fe   :  { %1779 = vsyncpa [#allocation3], 1 }
 0x1ff   :  { %1780 = vsyncpa [#allocation6], 1 }
 0x200   :  { %1781 = vsyncpa [#allocation9], 1 }
 0x201   :  { %1782 = vsyncpa [#allocation4], 1 }
 0x202   :  { %1783 = vsyncpa [#allocation13], 1 }

// kernel: residual_block_forward.6
= control target key start
LH: loop header
LB: loop body
LE: loop exit
PB: predicated region body
PF: predicated region fallthrough
CT: control target
= control target key end

     0   :  { %11 = vsyncpa [#allocation3], 0  ;;  %s8180_s0 = inlined_call_operand.hbm [shape: f32[2,256,128], index: 0, kind: input, shape index: {}]   ;;  %s8181_s1 = inlined_call_operand.hbm [shape: f32[9,128,128], index: 1, kind: input, shape index: {}]   ;;  %s8182_s2 = inlined_call_operand.hbm [shape: f32[1,128], index: 2, kind: input, shape index: {}]   ;;  %s8183_s3 = inlined_call_operand.hbm [shape: f32[1,128], index: 3, kind: input, shape index: {}]   ;;  %s8184_s4 = inlined_call_operand.hbm [shape: f32[2,256,128], index: 4, kind: output, shape index: {0}]   ;;  %s8185_s5 = inlined_call_operand.hbm [shape: f32[2,1,2,128], index: 5, kind: output, shape index: {1}]  }
   0x1   :  { %13 = vsyncpa [#allocation3 + $0x1], 0 }
   0x2   :  { %14 = vsyncpa [#allocation6], 0 }
   0x3   :  { %15 = vsyncpa [#allocation9], 0 }
   0x4   :  { %16 = vsyncpa [#allocation4], 0 }
   0x5   :  { %18 = vsyncpa [#allocation4 + $0x1], 0 }
   0x6   :  { %19 = vsyncpa [#allocation12], 0 }
   0x7   :  { %21 = vsyncpa [#allocation12 + $0x1], 0  ;;  %s6574_s18 = smov 0   ;;  %s6576_s19 = smov 0  }
   0x8   :  { %s6578_s20 = smov 0   ;;  %s6580_s21 = smov 0  }
   0x9   :  { %s6582_s22 = smov 0   ;;  %s6584_s23 = smov 0  }
   0xa LB: > { %8390 = sst [smem:[#allocation18_spill]] %s6511_s18  ;;  %s4352_s24 = sadd.s32 4294967295, %s6531_s23   ;;  %s6531_s23 = sphi %s6584_s23, %s27_s23   ;;  %s6527_s22 = sphi %s6582_s22, %s8784_s22   ;;  %s6523_s21 = sphi %s6580_s21, %s8783_s21   ;;  %s6519_s20 = sphi %s6578_s20, %s8782_s20   ;;  %s6515_s19 = sphi %s6576_s19, %s8781_s19   ;;  %s6511_s18 = sphi %s6574_s18, %s8780_s18  }
   0xb   : > { %s4353_s25 = sadd.s32 4294967294, %s6531_s23   ;;  %p59_p0 = scmp.ne.s32.totalorder %s6515_s19, %s6511_s18 }
   0xc   : > { %p6608_p1 = scmp.eq.s32.totalorder %s4352_s24, 0  ;;  %p6612_p2 = scmp.eq.s32.totalorder %s4352_s24, 1 }
   0xd   : > { %p154_p3 = scmp.eq.s32.totalorder %s4353_s25, 1  ;;  %p4354_p5 = scmp.ge.s32.totalorder %s6531_s23, 1 }
   0xe   : > { %s8391_s26 = scalar_select %p6608_p1, 1, 0 }
   0xf   : > { %s8392_s27 = scalar_select %p6612_p2, 1, 0 }
  0x10   : > { %p6618_p4 = por %p6608_p1, %p59_p0  ;;  %p6623_p6 = por %p154_p3, %p59_p0 }
  0x11   : > { %p189_p7 = scmp.lt.s32.totalorder %s6531_s23, 3  ;;  %s6533_s6 = smov [#allocation5]  }
  0x12   : > { %s8393_s28 = scalar_select %p6618_p4, 1, 0 }
  0x13   : > { %s8394_s29 = scalar_select %p6623_p6, 1, 0 }
  0x14   : > { %p6628_p8 = pnand %p4354_p5, %p189_p7  ;;  %s201_s7 = sshll.u32 %s6533_s6, 4  ;;  %s6632_s7 = int_to_ptr.vmem [resolvable:$true] %s201_s7 }
  0x15   : > { %8395 = sst [smem:[#allocation19_spill]] %s8394_s29  ;;  %s6534_s9 = smov [#allocation7]  }
  0x16   : > { %s8396_s30 = scalar_select %p6628_p8, 1, 0 }
  0x17   : > { %p6208_p9 = pneg %p6628_p8  ;;  %s215_s10 = sshll.u32 %s6534_s9, 4  ;;  %s6643_s10 = int_to_ptr.vmem [resolvable:$true] %s215_s10 }
  0x18   : > { %s6535_s11 = smov [#allocation8]   ;;  %s6295_s15 = scalar_lea.hbm %s8181_s1, 18432 }
  0x19   : > { %p6639_p11 = pnand %p6208_p9, %p6608_p1  ;;  %s6645_s12 = sshll.u32 %s6535_s11, 4  ;;  %s227_s12 = int_to_ptr.vmem [resolvable:$true] %s6645_s12 }
  0x1a   : > { %p6296_p12 = scmp.ne.s32.totalorder %s8181_s1, %s6295_s15  ;;  %p6302_p5 = scmp.lt.u32.totalorder %s6295_s15, %s8181_s1 }
  0x1b   : > { %p6655_p13 = pneg %p6639_p11 }
  0x1d   : > { %p6298_p0 = pnand %p6655_p13, %p6296_p12 }
  0x1f   : > { %p6299_p3 = pneg %p6298_p0 }
  0x21   : > { %p6304_p7 = pnand %p6302_p5, %p6299_p3 }
  0x23   : > { %6307 = shalt.err (!%p6304_p7)
}
  0x24   : > { %s6308_s9 = scalar_lea.vmem %s6632_s7, 18432  ;;  %p6316_p1 = scmp.lt.s32.totalorder %s6632_s7, %s6632_s7 }
  0x25   : > { %p6309_p9 = scmp.ne.s32.totalorder %s6632_s7, %s6308_s9  ;;  %p6317_p4 = scmp.lt.s32.totalorder %s6308_s9, %s6308_s9 }
  0x27   : > { %p6311_p10 = pnand %p6309_p9, %p6655_p13  ;;  %p6318_p12 = por %p6317_p4, %p6316_p1 }
  0x29   : > { %p6312_p6 = pneg %p6311_p10 }
  0x2b   : > { %p6319_p0 = pnand %p6318_p12, %p6312_p6 }
  0x2d   : > { %6322 = shalt.err (!%p6319_p0)
}
  0x2e   : > { %s6536_s11 = smov 128   ;;  %s6537_s13 = smov 8  }
  0x2f   : > { %6211 = dma.hbm_to_vmem [thread:$0]  (!%p6639_p11), %s8181_s1, 18432, %s6632_s7, [#allocation6], %s6536_s11, %s6536_s11, %s6537_s13  }
  0x30   : > { %s6323_s25 = scalar_lea.hbm %s8182_s2, 16 }
  0x31   : > { %p6324_p1 = scmp.ne.s32.totalorder %s8182_s2, %s6323_s25  ;;  %p6330_p10 = scmp.lt.u32.totalorder %s6323_s25, %s8182_s2 }
  0x33   : > { %p6326_p4 = pnand %p6324_p1, %p6655_p13 }
  0x35   : > { %p6327_p6 = pneg %p6326_p4 }
  0x37   : > { %p6332_p3 = pnand %p6330_p10, %p6327_p6 }
  0x39   : > { %6335 = shalt.err (!%p6332_p3)
}
  0x3a   : > { %s6336_s7 = scalar_lea.vmem %s6643_s10, 16  ;;  %s6343_s14 = scalar_lea.vmem %s6643_s10, 32 }
  0x3b   : > { %p6337_p5 = scmp.ne.s32.totalorder %s6643_s10, %s6336_s7  ;;  %p6344_p12 = scmp.lt.s32.totalorder %s6643_s10, %s6643_s10 }
  0x3c   : > { %p6345_p0 = scmp.lt.s32.totalorder %s6343_s14, %s6336_s7 }
  0x3d   : > { %p6339_p7 = pnand %p6337_p5, %p6655_p13 }
  0x3e   : > { %p6346_p1 = por %p6345_p0, %p6344_p12 }
  0x3f   : > { %p6340_p9 = pneg %p6339_p7 }
  0x41   : > { %p6347_p4 = pnand %p6346_p1, %p6340_p9 }
  0x43   : > { %6350 = shalt.err (!%p6347_p4)
}
  0x44   : > { %6214 = dma.hbm_to_vmem [thread:$0]  (!%p6639_p11), %s8182_s2, 16, %s6643_s10, [#allocation6]  }
  0x45   : > { %s6351_s17 = scalar_lea.hbm %s8183_s3, 16 }
  0x46   : > { %p6352_p6 = scmp.ne.s32.totalorder %s8183_s3, %s6351_s17  ;;  %p6358_p5 = scmp.lt.u32.totalorder %s6351_s17, %s8183_s3 }
  0x48   : > { %p6354_p10 = pnand %p6352_p6, %p6655_p13 }
  0x4a   : > { %p6355_p3 = pneg %p6354_p10 }
  0x4c   : > { %p6360_p7 = pnand %p6358_p5, %p6355_p3 }
  0x4e   : > { %6363 = shalt.err (!%p6360_p7)
}
  0x4f   : > { %s6364_s14 = scalar_lea.vmem %s227_s12, 16  ;;  %s6371_s10 = scalar_lea.vmem %s227_s12, 32 }
  0x50   : > { %p6365_p9 = scmp.ne.s32.totalorder %s227_s12, %s6364_s14  ;;  %p6372_p1 = scmp.lt.s32.totalorder %s227_s12, %s227_s12 }
  0x51   : > { %p6373_p4 = scmp.lt.s32.totalorder %s6371_s10, %s6364_s14 }
  0x52   : > { %p6367_p12 = pnand %p6365_p9, %p6655_p13 }
  0x53   : > { %p6374_p8 = por %p6373_p4, %p6372_p1 }
  0x54   : > { %p6368_p0 = pneg %p6367_p12 }
  0x56   : > { %p6375_p2 = pnand %p6374_p8, %p6368_p0 }
  0x58   : > { %6378 = shalt.err (!%p6375_p2)
}
  0x59   : > { %6217 = dma.hbm_to_vmem [thread:$0]  (!%p6639_p11), %s8183_s3, 16, %s227_s12, [#allocation9]  }
  0x5a   : > { %s46_s24 = sadd.s32 1, %s6519_s20  ;;  %s39_s15 = sadd.s32 1, %s6527_s22 }
  0x5b   : > { %p53_p2 = scmp.ne.s32.totalorder %s6519_s20, %s6515_s19  ;;  %p41_p8 = scmp.ge.s32.totalorder %s39_s15, 2 }
  0x5c   : > { %p54_p13 = scmp.eq.s32.totalorder %s6531_s23, 0  ;;  %p8399_p6 = scmp.ne.s32.totalorder %s8392_s27, 0 }
  0x5d   : > { %p6232_p3 = scmp.lt.s32.totalorder %s6531_s23, 2  ;;  %s8786_s15 = smov (%p41_p8, %s39_s15), 0 }
  0x5e   : > { %p6729_p10 = por %p8399_p6, %p53_p2  ;;  %p55_p5 = por %p54_p13, %p53_p2 }
  0x5f   : > { %s237_s16 = sand.u32 1, %s6519_s20   ;;  %s43_s17 = ssub.s32 %s6527_s22, %s8786_s15 }
  0x60   : > { %p44_p7 = scmp.eq.s32.totalorder %s43_s17, 0  ;;  %s4359_s12 = sshll.u32 %s237_s16, 8 }
  0x61   : > { %s4476_s25 = sshll.u32 %s6527_s22, 12  ;;  %s241_s14 = scalar_lea.vmem [#allocation2], %s4359_s12 }
  0x62   : > { %s6741_s6 = scalar_select %p44_p7, %s6519_s20, %s46_s24  }
  0x63   : > { %s6746_s27 = scalar_lea.hbm %s8180_s0, %s4476_s25  ;;  %s248_s10 = sshll.u32 %s241_s14, 4  ;;  %s6748_s10 = int_to_ptr.vmem [resolvable:$true] %s248_s10 }
  0x64   : > { %p6752_p11 = pnand %p6232_p3, %p55_p5  ;;  %s6756_s29 = scalar_lea.sflag [#allocation3], %s237_s16 }
  0x65   : > { %s6379_s24 = scalar_lea.hbm %s6746_s27, 4096  ;;  %s6384_s25 = scalar_lea.hbm %s8180_s0, 8192 }
  0x66   : > { %p6380_p9 = scmp.ne.s32.totalorder %s6746_s27, %s6379_s24  ;;  %p6381_p12 = pneg %p6752_p11 }
  0x67   : > { %p6385_p4 = scmp.lt.u32.totalorder %s6746_s27, %s8180_s0  ;;  %p6386_p2 = scmp.lt.u32.totalorder %s6384_s25, %s6379_s24 }
  0x68   : > { %p6382_p0 = pnand %p6381_p12, %p6380_p9  ;;  %p6388_p13 = scmp.lt.u32.totalorder %s6379_s24, %s6746_s27 }
  0x69   : > { %p6387_p8 = por %p6386_p2, %p6385_p4 }
  0x6a   : > { %p6383_p1 = pneg %p6382_p0 }
  0x6b   : > { %p6389_p6 = por %p6388_p13, %p6387_p8 }
  0x6d   : > { %p6390_p3 = pnand %p6389_p6, %p6383_p1 }
  0x6f   : > { %6393 = shalt.err (!%p6390_p3)
}
  0x70   : > { %s6394_s16 = scalar_lea.vmem %s6748_s10, 4096  ;;  %s6538_s14 = smov [#allocation2]  }
  0x71   : > { %p6395_p5 = scmp.ne.s32.totalorder %s6748_s10, %s6394_s16  ;;  %s6399_s17 = sshll.u32 %s6538_s14, 4  ;;  %s6400_s17 = int_to_ptr.vmem [resolvable:$false] %s6399_s17 }
  0x72   : > { %s6401_s12 = scalar_lea.vmem %s6400_s17, 8192  ;;  %p6402_p0 = scmp.lt.s32.totalorder %s6748_s10, %s6400_s17 }
  0x73   : > { %p6397_p7 = pnand %p6395_p5, %p6381_p12  ;;  %p6403_p4 = scmp.lt.s32.totalorder %s6401_s12, %s6394_s16 }
  0x75   : > { %p6398_p9 = pneg %p6397_p7  ;;  %p6404_p2 = por %p6403_p4, %p6402_p0 }
  0x77   : > { %p6405_p8 = pnand %p6404_p2, %p6398_p9 }
  0x79   : > { %6408 = shalt.err (!%p6405_p8)
}
  0x7a   : > { %6221 = dma.hbm_to_vmem [thread:$0]  (!%p6752_p11), %s6746_s27, 4096, %s6748_s10, %s6756_s29, %s6536_s11, %s6536_s11, %s6537_s13  }
  0x7b   : > { %p8402_p12 = scmp.ne.s32.totalorder %s8396_s30, 0 }
  0x7d   : > { %260 = sbr.rel (%p8402_p12) target bundleno = 724 (0x2d4), region = 36 }
  0x84   : > { %s6790_s24 = sand.u32 1, %s6515_s19   ;;  %p8403_p1 = scmp.ne.s32.totalorder %s8393_s28, 0 }
  0x85   : > { %s4363_s25 = sshll.u32 %s6790_s24, 8  ;;  %s263_s9 = scalar_lea.sflag [#allocation3], %s6790_s24 }
  0x86   : > { %s6796_s18 = scalar_lea.vmem [#allocation2], %s4363_s25 }
  0x87   : > { %6490 = dma.done.wait (%p8403_p1), %s263_s9, 4096  }
  0x88   : > { %6492 = vsyncadd (%p8403_p1), %s263_s9, 4294963200  ;;  %p8404_p11 = scmp.ne.s32.totalorder %s8391_s26, 0 }
  0x8a   : > { %6494 = dma.done.wait (%p8404_p11), [#allocation6], 18448  }
  0x8b   : > { %6496 = vsyncadd (%p8404_p11), [#allocation6], 4294948848 }
  0x8c   : > { %6498 = dma.done.wait (%p8404_p11), [#allocation9], 16  }
  0x8d   : > { %6500 = vsyncadd (%p8404_p11), [#allocation9], 4294967280  ;;  %v8192_v0 = vmov 0.0   ;;  %v1286_v1 = vld [vmem:[#allocation5 + $0x80] sm:$0xff]  ;;  %v1287_v2 = vld [vmem:[#allocation5 + $0x88] sm:$0xff]  ;;  %vm8296_vm13 = vcmask 1046528  }
  0x8e   : > { %4942 = vmatprep.mubr.f32.mxu1 %v8192_v0  ;;  %v2536_v3 = vld [vmem:[#allocation5 + $0x200] sm:$0xff]  ;;  %v5630_v4 = vpack.c.bf16 %v1287_v2, %v1286_v1  ;;  %v2537_v5 = vld [vmem:[#allocation5 + $0x208] sm:$0xff]  ;;  %v1288_v6 = vld [vmem:[#allocation5 + $0x90] sm:$0xff]  ;;  %s8053_s26 = scalar_lea.vmem [#allocation10], %s4363_s25  ;;  %s4477_s28 = sshll.u32 %s6523_s21, 12 }
  0x8f   : > { %v1289_v7 = vld [vmem:[#allocation5 + $0x98] sm:$0xff]  ;;  %v6811_v8 = vpack.c.bf16 %v2537_v5, %v2536_v3  ;;  %v2538_v10 = vld [vmem:[#allocation5 + $0x210] sm:$0xff]  ;;  %v1290_v12 = vld [vmem:[#allocation5 + $0xa0] sm:$0xff]  ;;  %s4188_s30 = sshll.u32 %s8053_s26, 4  ;;  %s8095_s27 = scalar_lea.hbm %s8184_s4, %s4477_s28  ;;  %s8097_s30 = int_to_ptr.vmem [resolvable:$true] %s4188_s30 }
  0x90   : > { %v5634_v9 = vpack.c.bf16 %v1289_v7, %v1288_v6  ;;  %v2539_v11 = vld [vmem:[#allocation5 + $0x218] sm:$0xff]  ;;  %5631 = vmatprep.subr.bf16.mxu1 %v5630_v4  ;;  %v1291_v14 = vld [vmem:[#allocation5 + $0xa8] sm:$0xff]  ;;  %v2540_v15 = vld [vmem:[#allocation5 + $0x220] sm:$0xff]  ;;  %s4168_s10 = scalar_lea.sflag [#allocation4], %s6790_s24  ;;  %s6409_s29 = scalar_lea.vmem %s8097_s30, 4096 }
  0x91   : > { %8405 = vst [vmem:[#allocation20_spill] sm:$0xff] %v6811_v8  ;;  %v6813_v13 = vpack.c.bf16 %v2539_v11, %v2538_v10  ;;  %v2541_v16 = vld [vmem:[#allocation5 + $0x228] sm:$0xff]  ;;  %5759 = vmatprep.subr.bf16.mxu0 %v6811_v8  ;;  %5633 = vmatpush3.bf16.msra.mxu1 %v5630_v4  ;;  %v5638_v17 = vpack.c.bf16 %v1291_v14, %v1290_v12  ;;  %v1292_v19 = vld [vmem:[#allocation5 + $0xb0] sm:$0xff]  ;;  %v1293_v20 = vld [vmem:[#allocation5 + $0xb8] sm:$0xff]  ;;  %p6410_p13 = scmp.ne.s32.totalorder %s8097_s30, %s6409_s29  ;;  %s6540_s7 = smov [#allocation10]  }
  0x92   : > { %5761 = vmatpush3.bf16.msra.mxu0 %v6811_v8  ;;  %5635 = vmatprep.subr.bf16.mxu1 %v5634_v9  ;;  %v6818_v18 = vpack.c.bf16 %v2541_v16, %v2540_v15  ;;  %v2542_v21 = vld [vmem:[#allocation5 + $0x230] sm:$0xff]  ;;  %v2543_v22 = vld [vmem:[#allocation5 + $0x238] sm:$0xff]  ;;  %v5642_v23 = vpack.c.bf16 %v1293_v20, %v1292_v19  ;;  %v1294_v24 = vld [vmem:[#allocation5 + $0xc0] sm:$0xff]  ;;  %s6413_s16 = sshll.u32 %s6540_s7, 4  ;;  %s6414_s16 = int_to_ptr.vmem [resolvable:$false] %s6413_s16 }
  0x93   : > { %8406 = vst [vmem:[#allocation21_spill] sm:$0xff] %v6813_v13  ;;  %5763 = vmatprep.subr.bf16.mxu0 %v6813_v13  ;;  %v6822_v25 = vpack.c.bf16 %v2543_v22, %v2542_v21  ;;  %v1295_v26 = vld [vmem:[#allocation5 + $0xc8] sm:$0xff]  ;;  %v2544_v27 = vld [vmem:[#allocation5 + $0x240] sm:$0xff]  ;;  %v1296_v35 = vld [vmem:[#allocation5 + $0xd0] sm:$0xff]  ;;  %p6411_p6 = pnand %p6410_p13, %p6729_p10  ;;  %s6415_s14 = scalar_lea.vmem %s6414_s16, 8192 }
  0x94   : > { %8407 = vst [vmem:[#allocation22_spill] sm:$0xff] %v6818_v18  ;;  %v6824_v28 = vld [vmem:[#allocation7] ss:$0 sm:$0xff]  ;;  %v2545_v29 = vld [vmem:[#allocation5 + $0x248] sm:$0xff]  ;;  %v6826_v30 = vld [vmem:[#allocation8] ss:$0 sm:$0xff]  ;;  %v5646_v33 = vpack.c.bf16 %v1295_v26, %v1294_v24  ;;  %p6416_p5 = scmp.lt.s32.totalorder %s8097_s30, %s6414_s16  ;;  %p6417_p7 = scmp.lt.s32.totalorder %s6415_s14, %s6409_s29 }
  0x95   : > { %5637 = vmatpush3.bf16.msra.mxu1 %v5634_v9  ;;  %8408 = vst [vmem:[#allocation23_spill] sm:$0xff] %v6822_v25  ;;  %v315_v31 = vld [vmem:[%s6796_s18] sm:$0xff]  ;;  %v6832_v34 = vpack.c.bf16 %v2545_v29, %v2544_v27  ;;  %v1297_v36 = vld [vmem:[#allocation5 + $0xd8] sm:$0xff]  ;;  %v2546_v38 = vld [vmem:[#allocation5 + $0x250] sm:$0xff]  ;;  %p6412_p3 = pneg %p6411_p6 }
  0x96   : > { %5765 = vmatpush3.bf16.msra.mxu0 %v6813_v13  ;;  %5639 = vmatprep.subr.bf16.mxu1 %v5638_v17  ;;  %v353_v32 = vmul.f32 %v6824_v28, %v315_v31  ;;  %v2547_v39 = vld [vmem:[#allocation5 + $0x258] sm:$0xff]  ;;  %v5650_v41 = vpack.c.bf16 %v1297_v36, %v1296_v35  ;;  %v1298_v43 = vld [vmem:[#allocation5 + $0xe0] sm:$0xff]  ;;  %v1299_v44 = vld [vmem:[#allocation5 + $0xe8] sm:$0xff]  ;;  %p6418_p9 = por %p6417_p7, %p6416_p5 }
  0x97   : > { %5767 = vmatprep.subr.bf16.mxu0 %v6818_v18  ;;  %8409 = vst [vmem:[#allocation24_spill] sm:$0xff] %v6832_v34  ;;  %v6837_v42 = vpack.c.bf16 %v2547_v39, %v2546_v38  ;;  %v316_v46 = vld [vmem:[%s6796_s18 + $0x8] sm:$0xff]  ;;  %v2548_v47 = vld [vmem:[#allocation5 + $0x260] sm:$0xff]  ;;  %v317_v49 = vld [vmem:[%s6796_s18 + $0x10] sm:$0xff]  ;;  %v5654_v50 = vpack.c.bf16 %v1299_v44, %v1298_v43 }
  0x98   : > { %v391_v37 = vadd.f32 %v6826_v30, %v353_v32  ;;  %v2549_v48 = vld [vmem:[#allocation5 + $0x268] sm:$0xff]  ;;  %v354_v51 = vmul.f32 %v6824_v28, %v316_v46  ;;  %v1300_v53 = vld [vmem:[#allocation5 + $0xf0] sm:$0xff]  ;;  %v1301_v54 = vld [vmem:[#allocation5 + $0xf8] sm:$0xff]  ;;  %v355_v58 = vmul.f32 %v6824_v28, %v317_v49  ;;  %p6419_p0 = pnand %p6418_p9, %p6412_p3 }
  0x99   : > { %5641 = vmatpush3.bf16.msra.mxu1 %v5638_v17  ;;  %8410 = vst [vmem:[#allocation25_spill] sm:$0xff] %v6837_v42  ;;  %v6847_v52 = vpack.c.bf16 %v2549_v48, %v2548_v47  ;;  %v318_v55 = vld [vmem:[%s6796_s18 + $0x18] sm:$0xff]  ;;  %v2550_v56 = vld [vmem:[#allocation5 + $0x270] sm:$0xff]  ;;  %v319_v59 = vld [vmem:[%s6796_s18 + $0x20] sm:$0xff]  ;;  %v5658_v60 = vpack.c.bf16 %v1301_v54, %v1300_v53 }
  0x9a   : > { %5769 = vmatpush3.bf16.msra.mxu0 %v6818_v18  ;;  %5643 = vmatprep.subr.bf16.mxu1 %v5642_v23  ;;  %vm423_vm0 = vcmp.gt.f32.partialorder %v391_v37, 0.0  ;;  %v455_v40 = vmul.f32 0.1, %v391_v37  ;;  %v2551_v57 = vld [vmem:[#allocation5 + $0x278] sm:$0xff]  ;;  %v392_v61 = vadd.f32 %v6826_v30, %v354_v51  ;;  %v356_v62 = vmul.f32 %v6824_v28, %v318_v55  ;;  %v1269_v1 = vld [vmem:[#allocation5] sm:$0xff]  ;;  %v1270_v2 = vld [vmem:[#allocation5 + $0x8] sm:$0xff] }
  0x9b   : > { %5771 = vmatprep.subr.bf16.mxu0 %v6822_v25  ;;  %8411 = vst [vmem:[#allocation26_spill] sm:$0xff] %v6847_v52  ;;  %v6856_v63 = vpack.c.bf16 %v2551_v57, %v2550_v56  ;;  %v357_v3 = vmul.f32 %v6824_v28, %v319_v59  ;;  %v320_v4 = vld [vmem:[%s6796_s18 + $0x28] sm:$0xff]  ;;  %v2850_v5 = vld [vmem:[#allocation5 + $0x280] sm:$0xff]  ;;  %v393_v7 = vadd.f32 %v6826_v30, %v355_v58  ;;  %v321_v9 = vld [vmem:[%s6796_s18 + $0x30] sm:$0xff] }
  0x9c   : > { %v6839_v45 = vsel %vm423_vm0, %v391_v37, %v455_v40  ;;  %v2851_v6 = vld [vmem:[#allocation5 + $0x288] sm:$0xff]  ;;  %v5662_v10 = vpack.c.bf16 %v1270_v2, %v1269_v1  ;;  %v456_v11 = vmul.f32 0.1, %v392_v61  ;;  %v394_v12 = vadd.f32 %v6826_v30, %v356_v62  ;;  %v322_v15 = vld [vmem:[%s6796_s18 + $0x38] sm:$0xff]  ;;  %v323_v20 = vld [vmem:[%s6796_s18 + $0x40] sm:$0xff] }
  0x9d   : > { %5645 = vmatpush3.bf16.msra.mxu1 %v5642_v23  ;;  %5262 = vmatprep.mubr.f32.mxu0 %v6839_v45  ;;  %8412 = vst [vmem:[#allocation27_spill] sm:$0xff] %v6856_v63  ;;  %v358_v14 = vmul.f32 %v6824_v28, %v320_v4  ;;  %vm424_vm1 = vcmp.gt.f32.partialorder %v392_v61, 0.0  ;;  %v5790_v16 = vpack.c.bf16 %v2851_v6, %v2850_v5  ;;  %v457_v21 = vmul.f32 0.1, %v393_v7  ;;  %v2852_v22 = vld [vmem:[#allocation5 + $0x290] sm:$0xff]  ;;  %v2853_v23 = vld [vmem:[#allocation5 + $0x298] sm:$0xff] }
  0x9e   : > { %5773 = vmatpush3.bf16.msra.mxu0 %v6822_v25  ;;  %5647 = vmatprep.subr.bf16.mxu1 %v5646_v33  ;;  %v395_v17 = vadd.f32 %v6826_v30, %v357_v3  ;;  %v359_v19 = vmul.f32 %v6824_v28, %v321_v9  ;;  %vm425_vm2 = vcmp.gt.f32.partialorder %v393_v7, 0.0  ;;  %v1271_v24 = vld [vmem:[#allocation5 + $0x10] sm:$0xff]  ;;  %v1272_v26 = vld [vmem:[#allocation5 + $0x18] sm:$0xff]  ;;  %v360_v27 = vmul.f32 %v6824_v28, %v322_v15  ;;  %v2855_v35 = vld [vmem:[#allocation5 + $0x2a8] sm:$0xff] }
  0x9f   : > { %5775 = vmatprep.subr.bf16.mxu0 %v6832_v34  ;;  %v6872_v29 = vsel %vm424_vm1, %v392_v61, %v456_v11  ;;  %v458_v31 = vmul.f32 0.1, %v394_v12  ;;  %v396_v32 = vadd.f32 %v6826_v30, %v358_v14  ;;  %v361_v36 = vmul.f32 %v6824_v28, %v323_v20  ;;  %v324_v40 = vld [vmem:[%s6796_s18 + $0x48] sm:$0xff]  ;;  %v325_v44 = vld [vmem:[%s6796_s18 + $0x50] sm:$0xff]  ;;  %v1273_v48 = vld [vmem:[#allocation5 + $0x20] sm:$0xff] }
  0xa0   : > { %vm426_vm3 = vcmp.gt.f32.partialorder %v394_v12, 0.0  ;;  %v5794_v37 = vpack.c.bf16 %v2853_v23, %v2852_v22  ;;  %v459_v38 = vmul.f32 0.1, %v395_v17  ;;  %v397_v39 = vadd.f32 %v6826_v30, %v359_v19  ;;  %v1274_v49 = vld [vmem:[#allocation5 + $0x28] sm:$0xff]  ;;  %v2856_v53 = vld [vmem:[#allocation5 + $0x2b0] sm:$0xff]  ;;  %v2857_v54 = vld [vmem:[#allocation5 + $0x2b8] sm:$0xff] }
  0xa1   : > { %5649 = vmatpush3.bf16.msra.mxu1 %v5646_v33  ;;  %v2854_v33 = vld [vmem:[#allocation5 + $0x2a0] sm:$0xff]  ;;  %vm427_vm4 = vcmp.gt.f32.partialorder %v395_v17, 0.0  ;;  %v5666_v43 = vpack.c.bf16 %v1272_v26, %v1271_v24  ;;  %v398_v47 = vadd.f32 %v6826_v30, %v360_v27  ;;  %v460_v51 = vmul.f32 0.1, %v396_v32  ;;  %v1275_v3 = vld [vmem:[#allocation5 + $0x30] sm:$0xff]  ;;  %v1276_v4 = vld [vmem:[#allocation5 + $0x38] sm:$0xff] }
  0xa2   : > { %5777 = vmatpush3.bf16.msra.mxu0 %v6832_v34  ;;  %5651 = vmatprep.subr.bf16.mxu1 %v5650_v41  ;;  %v5798_v46 = vpack.c.bf16 %v2855_v35, %v2854_v33  ;;  %v399_v55 = vadd.f32 %v6826_v30, %v361_v36  ;;  %v362_v56 = vmul.f32 %v6824_v28, %v324_v40  ;;  %vm428_vm5 = vcmp.gt.f32.partialorder %v396_v32, 0.0  ;;  %v327_v62 = vld [vmem:[%s6796_s18 + $0x60] sm:$0xff]  ;;  %v2859_v11 = vld [vmem:[#allocation5 + $0x2c8] sm:$0xff]  ;;  %v329_v20 = vld [vmem:[%s6796_s18 + $0x70] sm:$0xff] }
  0xa3   : > { %5779 = vmatprep.subr.bf16.mxu0 %v6837_v42  ;;  %v6893_v57 = vsel %vm427_vm4, %v395_v17, %v459_v38  ;;  %v461_v58 = vmul.f32 0.1, %v397_v39  ;;  %v363_v59 = vmul.f32 %v6824_v28, %v325_v44  ;;  %vm429_vm6 = vcmp.gt.f32.partialorder %v397_v39, 0.0  ;;  %v328_v17 = vld [vmem:[%s6796_s18 + $0x68] sm:$0xff]  ;;  %v1277_v23 = vld [vmem:[#allocation5 + $0x40] sm:$0xff]  ;;  %v2860_v33 = vld [vmem:[#allocation5 + $0x2d0] sm:$0xff] }
  0xa4   : > { %8415 = vst [vmem:[#allocation30_spill] sm:$0xff] %v6893_v57  ;;  %v5670_v61 = vpack.c.bf16 %v1274_v49, %v1273_v48  ;;  %vm430_vm7 = vcmp.gt.f32.partialorder %v398_v47, 0.0  ;;  %v462_v1 = vmul.f32 0.1, %v398_v47  ;;  %v5802_v2 = vpack.c.bf16 %v2857_v54, %v2856_v53  ;;  %v1278_v24 = vld [vmem:[#allocation5 + $0x48] sm:$0xff]  ;;  %v2861_v35 = vld [vmem:[#allocation5 + $0x2d8] sm:$0xff] }
  0xa5   : > { %5653 = vmatpush3.bf16.msra.mxu1 %v5650_v41  ;;  %v6880_v41 = vsel %vm425_vm2, %v393_v7, %v457_v21  ;;  %v563_v5 = vlaneseq  ;;  %v6903_v6 = vsel %vm428_vm5, %v396_v32, %v460_v51  ;;  %v463_v7 = vmul.f32 0.1, %v399_v55  ;;  %v330_v40 = vld [vmem:[%s6796_s18 + $0x78] sm:$0xff]  ;;  %v1279_v48 = vld [vmem:[#allocation5 + $0x50] sm:$0xff]  ;;  %v343_v8 = vld [vmem:[%s6796_s18 + $0xe0] sm:$0xff] }
  0xa6   : > { %5781 = vmatpush3.bf16.msra.mxu0 %v6837_v42  ;;  %5655 = vmatprep.subr.bf16.mxu1 %v5654_v50  ;;  %8413 = vst [vmem:[#allocation28_spill] sm:$0xff] %v6880_v41  ;;  %8416 = vst [vmem:[#allocation31_spill] sm:$0xff] %v6903_v6  ;;  %v400_v9 = vadd.f32 %v6826_v30, %v362_v56  ;;  %v6908_v14 = vsel %vm429_vm6, %v397_v39, %v461_v58  ;;  %vm431_vm8 = vcmp.gt.f32.partialorder %v399_v55, 0.0  ;;  %v1280_v49 = vld [vmem:[#allocation5 + $0x58] sm:$0xff]  ;;  %vm8258_vm0 = vcmask 1040384   ;;  %v340_v42 = vld [vmem:[%s6796_s18 + $0xc8] sm:$0xff] }
  0xa7   : > { %5783 = vmatprep.subr.bf16.mxu0 %v6847_v52  ;;  %8417 = vst [vmem:[#allocation32_spill] sm:$0xff] %v6908_v14  ;;  %v401_v15 = vadd.f32 %v6826_v30, %v363_v59  ;;  %v5674_v19 = vpack.c.bf16 %v1276_v4, %v1275_v3  ;;  %v6918_v21 = vsel %vm430_vm7, %v398_v47, %v462_v1  ;;  %v6920_v26 = vshrl.u32 %v563_v5, 7  ;;  %v2863_v1 = vld [vmem:[#allocation5 + $0x2e8] sm:$0xff]  ;;  %v3172_v34 = vld [vmem:[#allocation5 + $0x330] sm:$0xff]  ;;  %v3173_v25 = vld [vmem:[#allocation5 + $0x338] sm:$0xff] }
  0xa8   : > { %8418 = vst [vmem:[#allocation33_spill] sm:$0xff] %v6918_v21  ;;  %v6924_v27 = vsel %vm431_vm8, %v399_v55, %v463_v7  ;;  %v366_v36 = vmul.f32 %v6824_v28, %v328_v17  ;;  %vm432_vm9 = vcmp.gt.f32.partialorder %v400_v9, 0.0  ;;  %v367_v39 = vmul.f32 %v6824_v28, %v329_v20  ;;  %v332_v7 = vld [vmem:[%s6796_s18 + $0x88] sm:$0xff]  ;;  %v342_v13 = vld [vmem:[%s6796_s18 + $0xd8] sm:$0xff] }
  0xa9   : > { %5657 = vmatpush3.bf16.msra.mxu1 %v5654_v50  ;;  %v6887_v50 = vsel %vm426_vm3, %v394_v12, %v458_v31  ;;  %8419 = vst [vmem:[#allocation34_spill] sm:$0xff] %v6924_v27  ;;  %v464_v31 = vmul.f32 0.1, %v400_v9  ;;  %vm433_vm10 = vcmp.gt.f32.partialorder %v401_v15, 0.0  ;;  %v6934_v44 = vpack.c.bf16 %v2861_v35, %v2860_v33 }
  0xaa   : > { %5785 = vmatpush3.bf16.msra.mxu0 %v6847_v52  ;;  %5659 = vmatprep.subr.bf16.mxu1 %v5658_v60  ;;  %8414 = vst [vmem:[#allocation29_spill] sm:$0xff] %v6887_v50  ;;  %v6940_v47 = vadd.s32 24, %v6920_v26  ;;  %v6943_v51 = vadd.s32 40, %v6920_v26  ;;  %v404_v55 = vadd.f32 %v6826_v30, %v366_v36  ;;  %v368_v56 = vmul.f32 %v6824_v28, %v330_v40 }
  0xab   : > { %5787 = vmatprep.subr.bf16.mxu0 %v6856_v63  ;;  %v6947_v53 = vsel %vm432_vm9, %v400_v9, %v464_v31  ;;  %v6958_v3 = vadd.s32 56, %v6920_v26  ;;  %v6961_v4 = vadd.s32 72, %v6920_v26  ;;  %v1281_v9 = vld [vmem:[#allocation5 + $0x60] sm:$0xff]  ;;  %v2864_v31 = vld [vmem:[#allocation5 + $0x2f0] sm:$0xff]  ;;  %v370_v33 = vmul.f32 %v6824_v28, %v332_v7  ;;  %v3167_v7 = vld [vmem:[#allocation5 + $0x308] sm:$0xff] }
  0xac   : > { %8420 = vst [vmem:[#allocation35_spill] sm:$0xff] %v6947_v53  ;;  %v406_v17 = vadd.f32 %v6826_v30, %v368_v56  ;;  %vm436_vm14 = vcmp.gt.f32.partialorder %v404_v55, 0.0 }
  0xad   : > { %5661 = vmatpush3.bf16.msra.mxu1 %v5658_v60  ;;  %v326_v60 = vld [vmem:[%s6796_s18 + $0x58] sm:$0xff] }
  0xae   : > { %5789 = vmatpush3.bf16.msra.mxu0 %v6856_v63  ;;  %5663 = vmatprep.subr.bf16.mxu1 %v5662_v10  ;;  %v364_v12 = vmul.f32 %v6824_v28, %v326_v60  ;;  %v405_v60 = vadd.f32 %v6826_v30, %v367_v39  ;;  %vm438_vm1 = vcmp.gt.f32.partialorder %v406_v17, 0.0 }
  0xaf   : > { %5791 = vmatprep.subr.bf16.mxu0 %v5790_v16 }
  0xb0   : > { %4943 = vmatmul.mubr.f32.vlgmr.msra.gmra.mrb[0].mxu1 %v8192_v0  ;;  %v402_v32 = vadd.f32 %v6826_v30, %v364_v12  ;;  %v6971_v12 = vadd.s32 104, %v6920_v26  ;;  %vm437_vm15 = vcmp.gt.f32.partialorder %v405_v60, 0.0  ;;  %v336_v0 = vld [vmem:[%s6796_s18 + $0xa8] sm:$0xff] }
  0xb1   : > { %5263 = vmatmul.mubr.f32.vlgmr.msra.gmra.mrb[0].mxu0 %v6872_v29  ;;  %5665 = vmatpush3.bf16.msra.mxu1 %v5662_v10  ;;  %v2858_v10 = vld [vmem:[#allocation5 + $0x2c0] sm:$0xff] }
  0xb2   : > { %5793 = vmatpush3.bf16.msra.mxu0 %v5790_v16  ;;  %4945 = vmatprep.mubr.f32.mxu1 %v6839_v45  ;;  %v365_v16 = vmul.f32 %v6824_v28, %v327_v62  ;;  %v5806_v22 = vpack.c.bf16 %v2859_v11, %v2858_v10  ;;  %v466_v54 = vmul.f32 0.1, %v402_v32  ;;  %vm434_vm11 = vcmp.gt.f32.partialorder %v402_v32, 0.0  ;;  %v2862_v62 = vld [vmem:[#allocation5 + $0x2e0] sm:$0xff]  ;;  %v1282_v10 = vld [vmem:[#allocation5 + $0x68] sm:$0xff] }
  0xb3   : > { %5265 = vmatprep.mubr.f32.mxu0 %v6880_v41  ;;  %5795 = vmatprep.subr.bf16.mxu0 %v5794_v37  ;;  %v6968_v11 = vadd.s32 88, %v6920_v26  ;;  %v5686_v36 = vpack.c.bf16 %v1282_v10, %v1281_v9  ;;  %v1762_v9 = vrot.slane %v6887_v50, 1  ;;  %v7009_v10 = vadd.f32 %v6826_v30, %v370_v33 }
  0xb4   : > { %4946 = vmatmul.mubr.f32.gmra.mrb[2].mxu1 %v6872_v29  ;;  %5667 = vmatprep.subr.bf16.mxu1 %v5666_v43  ;;  %v403_v38 = vadd.f32 %v6826_v30, %v365_v16  ;;  %v468_v16 = vmul.f32 0.1, %v404_v55 }
  0xb5   : > { %5266 = vmatmul.mubr.f32.gmra.mrb[2].mxu0 %v6887_v50  ;;  %4948 = vmatprep.mubr.f32.mxu1 %v6880_v41  ;;  %vm440_vm4 = vcmp.gt.f32.partialorder %v7009_v10, 0.0 }
  0xb6   : > { %5797 = vmatpush3.bf16.msra.mxu0 %v5794_v37  ;;  %5268 = vmatprep.mubr.f32.mxu0 %v6893_v57  ;;  %v465_v37 = vmul.f32 0.1, %v401_v15  ;;  %v467_v59 = vmul.f32 0.1, %v403_v38  ;;  %vm435_vm12 = vcmp.gt.f32.partialorder %v403_v38, 0.0 }
  0xb7   : > { %5799 = vmatprep.subr.bf16.mxu0 %v5798_v46  ;;  %5669 = vmatpush3.bf16.msra.mxu1 %v5666_v43  ;;  %v5678_v43 = vpack.c.bf16 %v1278_v24, %v1277_v23  ;;  %v5814_v23 = vpack.c.bf16 %v2863_v1, %v2862_v62  ;;  %v469_v24 = vmul.f32 0.1, %v405_v60  ;;  %v335_v1 = vld [vmem:[%s6796_s18 + $0xa0] sm:$0xff] }
  0xb8   : > { %4949 = vmatmul.mubr.f32.gmra.mrb[4].mxu1 %v6887_v50  ;;  %5671 = vmatprep.subr.bf16.mxu1 %v5670_v61  ;;  %v6952_v58 = vsel %vm433_vm10, %v401_v15, %v465_v37  ;;  %v6975_v15 = vsel %vm434_vm11, %v402_v32, %v466_v54  ;;  %v6981_v20 = vsel %vm435_vm12, %v403_v38, %v467_v59  ;;  %v2865_v32 = vld [vmem:[#allocation5 + $0x2f8] sm:$0xff]  ;;  %v1760_v37 = vrot.slane %v6880_v41, 1 }
  0xb9   : > { %5269 = vmatmul.mubr.f32.gmra.mrb[4].mxu0 %v6903_v6  ;;  %4951 = vmatprep.mubr.f32.mxu1 %v6893_v57  ;;  %8421 = vst [vmem:[#allocation36_spill] sm:$0xff] %v6952_v58  ;;  %8422 = vst [vmem:[#allocation37_spill] sm:$0xff] %v6975_v15  ;;  %v8194_v38 = vrot.slane %v6839_v45, 1  ;;  %v334_v59 = vld [vmem:[%s6796_s18 + $0x98] sm:$0xff]  ;;  %v5818_v62 = vpack.c.bf16 %v2865_v32, %v2864_v31  ;;  %v1946_v31 = vld [vmem:[#allocation5 + $0x100] sm:$0xff] }
  0xba   : > { %5801 = vmatpush3.bf16.msra.mxu0 %v5798_v46  ;;  %5271 = vmatprep.mubr.f32.mxu0 %v6908_v14  ;;  %v6937_v46 = vadd.s32 8, %v6920_v26  ;;  %v1947_v32 = vld [vmem:[#allocation5 + $0x108] sm:$0xff] }
  0xbb   : > { %5803 = vmatprep.subr.bf16.mxu0 %v5802_v2  ;;  %5673 = vmatpush3.bf16.msra.mxu1 %v5670_v61  ;;  %v331_v61 = vld [vmem:[%s6796_s18 + $0x80] sm:$0xff] }
  0xbc   : > { %4952 = vmatmul.mubr.f32.gmra.mrb[6].mxu1 %v6903_v6  ;;  %5675 = vmatprep.subr.bf16.mxu1 %v5674_v19  ;;  %v607_v5 = vand.u32 15, %v6937_v46  ;;  %v1284_v46 = vld [vmem:[#allocation5 + $0x78] sm:$0xff] }
  0xbd   : > { %5272 = vmatmul.mubr.f32.gmra.mrb[6].mxu0 %v6918_v21  ;;  %4954 = vmatprep.mubr.f32.mxu1 %v6908_v14 }
  0xbe   : > { %5805 = vmatpush3.bf16.msra.mxu0 %v5802_v2  ;;  %5274 = vmatprep.mubr.f32.mxu0 %v6924_v27  ;;  %v5682_v2 = vpack.c.bf16 %v1280_v49, %v1279_v48  ;;  %v6996_v48 = vsel %vm436_vm14, %v404_v55, %v468_v16  ;;  %v470_v49 = vmul.f32 0.1, %v406_v17  ;;  %v3166_v55 = vld [vmem:[#allocation5 + $0x300] sm:$0xff]  ;;  %vm7017_vm2 = vcmp.ne.s32.totalorder %v607_v5, 15 }
  0xbf   : > { %5807 = vmatprep.subr.bf16.mxu0 %v5806_v22  ;;  %5677 = vmatpush3.bf16.msra.mxu1 %v5674_v19  ;;  %v369_v19 = vmul.f32 %v6824_v28, %v331_v61  ;;  %8423 = vst [vmem:[#allocation38_spill] sm:$0xff] %v6996_v48  ;;  %v7002_v61 = vsel %vm437_vm15, %v405_v60, %v469_v24 }
  0xc0   : > { %4955 = vmatmul.mubr.f32.gmra.mrb[8].mxu1 %v6918_v21  ;;  %5679 = vmatprep.subr.bf16.mxu1 %v5678_v43  ;;  %v372_v24 = vmul.f32 %v6824_v28, %v334_v59  ;;  %v7025_v33 = vsel %vm438_vm1, %v406_v17, %v470_v49  ;;  %v373_v5 = vmul.f32 %v6824_v28, %v335_v1  ;;  %v337_v17 = vld [vmem:[%s6796_s18 + $0xb0] sm:$0xff] }
  0xc1   : > { %5275 = vmatmul.mubr.f32.gmra.mrb[8].mxu0 %v6947_v53  ;;  %4957 = vmatprep.mubr.f32.mxu1 %v6924_v27  ;;  %v407_v54 = vadd.f32 %v6826_v30, %v369_v19  ;;  %v7013_v19 = vrot.slane %v6839_v45, 7  ;;  %8428 = vst [vmem:[#allocation41_spill] sm:$0xff] %v7025_v33  ;;  %v7041_v49 = vsel %vm8296_vm13, %v1760_v37, %v1762_v9  ;;  %v3168_v1 = vld [vmem:[#allocation5 + $0x310] sm:$0xff] }
  0xc2   : > { %5809 = vmatpush3.bf16.msra.mxu0 %v5806_v22  ;;  %5277 = vmatprep.mubr.f32.mxu0 %v6952_v58  ;;  %v333_v22 = vld [vmem:[%s6796_s18 + $0x90] sm:$0xff]  ;;  %8431 = vst [vmem:[#allocation44_spill] sm:$0xff] %v7041_v49  ;;  %v7045_v16 = vpack.c.bf16 %v1947_v32, %v1946_v31  ;;  %v411_v40 = vadd.f32 %v6826_v30, %v373_v5 }
  0xc3   : > { %5811 = vmatprep.subr.bf16.mxu0 %v6934_v44  ;;  %5681 = vmatpush3.bf16.msra.mxu1 %v5678_v43  ;;  %v1283_v43 = vld [vmem:[#allocation5 + $0x70] sm:$0xff]  ;;  %v371_v56 = vmul.f32 %v6824_v28, %v333_v22  ;;  %8424 = vst [vmem:[#allocation39_spill] sm:$0xff] %v7013_v19  ;;  %vm439_vm3 = vcmp.gt.f32.partialorder %v407_v54, 0.0  ;;  %v375_v39 = vmul.f32 %v6824_v28, %v337_v17  ;;  %v3170_v17 = vld [vmem:[#allocation5 + $0x320] sm:$0xff] }
  0xc4   : > { %4958 = vmatmul.mubr.f32.gmra.mrb[10].mxu1 %v6947_v53  ;;  %5683 = vmatprep.subr.bf16.mxu1 %v5682_v2  ;;  %v5690_v60 = vpack.c.bf16 %v1284_v46, %v1283_v43  ;;  %v471_v43 = vmul.f32 0.1, %v407_v54  ;;  %vm443_vm8 = vcmp.gt.f32.partialorder %v411_v40, 0.0 }
  0xc5   : > { %5278 = vmatmul.mubr.f32.gmra.mrb[10].mxu0 %v6975_v15  ;;  %4960 = vmatprep.mubr.f32.mxu1 %v6952_v58  ;;  %v409_v46 = vadd.f32 %v6826_v30, %v371_v56  ;;  %v1764_v56 = vrot.slane %v6893_v57, 1  ;;  %v413_v63 = vadd.f32 %v6826_v30, %v375_v39 }
  0xc6   : > { %5813 = vmatpush3.bf16.msra.mxu0 %v6934_v44  ;;  %5280 = vmatprep.mubr.f32.mxu0 %v6981_v20  ;;  %v1758_v44 = vrot.slane %v6872_v29, 1  ;;  %v7056_v31 = vsel %vm439_vm3, %v407_v54, %v471_v43  ;;  %v8433_v54 = vand.u32 15, %v6940_v47  ;;  %v8434_v43 = vmov 0 }
  0xc7   : > { %5815 = vmatprep.subr.bf16.mxu0 %v5814_v23  ;;  %5685 = vmatpush3.bf16.msra.mxu1 %v5682_v2  ;;  %v8425_v2 = vmov 0  ;;  %v473_v32 = vmul.f32 0.1, %v409_v46  ;;  %vm441_vm5 = vcmp.gt.f32.partialorder %v409_v46, 0.0  ;;  %v7076_v5 = vsel %vm8296_vm13, %v1762_v9, %v1764_v56 }
  0xc8   : > { %4961 = vmatmul.mubr.f32.gmra.mrb[12].mxu1 %v6975_v15  ;;  %5687 = vmatprep.subr.bf16.mxu1 %v5686_v36  ;;  %v8426_v2 = vsel %vm7017_vm2, 4294967295, %v8425_v2  ;;  %v7033_v59 = vsel %vm8296_vm13, %v8194_v38, %v1758_v44  ;;  %v7036_v22 = vsel %vm8296_vm13, %v1758_v44, %v1760_v37  ;;  %v3169_v38 = vld [vmem:[#allocation5 + $0x318] sm:$0xff]  ;;  %v410_v44 = vadd.f32 %v6826_v30, %v372_v24 }
  0xc9   : > { %5281 = vmatmul.mubr.f32.gmra.mrb[12].mxu0 %v6996_v48  ;;  %4963 = vmatprep.mubr.f32.mxu1 %v6981_v20  ;;  %8427 = vst [vmem:[#allocation40_spill] sm:$0xff] %v8426_v2  ;;  %8429 = vst [vmem:[#allocation42_spill] sm:$0xff] %v7033_v59  ;;  %v374_v37 = vmul.f32 %v6824_v28, %v336_v0  ;;  %v1766_v24 = vrot.slane %v6903_v6, 1  ;;  %v5826_v35 = vpack.c.bf16 %v3169_v38, %v3168_v1  ;;  %v339_v0 = vld [vmem:[%s6796_s18 + $0xc0] sm:$0xff]  ;;  %v3171_v1 = vld [vmem:[#allocation5 + $0x328] sm:$0xff] }
  0xca   : > { %5817 = vmatpush3.bf16.msra.mxu0 %v5814_v23  ;;  %5283 = vmatprep.mubr.f32.mxu0 %v7002_v61  ;;  %8430 = vst [vmem:[#allocation43_spill] sm:$0xff] %v7036_v22  ;;  %v5822_v23 = vpack.c.bf16 %v3167_v7, %v3166_v55  ;;  %v338_v55 = vld [vmem:[%s6796_s18 + $0xb8] sm:$0xff]  ;;  %v8195_v7 = vrot.slane %v6872_v29, 7  ;;  %vm7071_vm6 = vcmp.ne.s32.totalorder %v8433_v54, 15  ;;  %8437 = vst [vmem:[#allocation47_spill] sm:$0xff] %v7076_v5  ;;  %v1768_v38 = vrot.slane %v6908_v14, 1 }
  0xcb   : > { %5819 = vmatprep.subr.bf16.mxu0 %v5818_v62  ;;  %5689 = vmatpush3.bf16.msra.mxu1 %v5686_v36  ;;  %v472_v36 = vmul.f32 0.1, %v7009_v10  ;;  %v8435_v43 = vsel %vm7071_vm6, 4294967295, %v8434_v43  ;;  %vm442_vm7 = vcmp.gt.f32.partialorder %v410_v44, 0.0  ;;  %v474_v9 = vmul.f32 0.1, %v410_v44 }
  0xcc   : > { %4964 = vmatmul.mubr.f32.gmra.mrb[14].mxu1 %v6996_v48  ;;  %5691 = vmatprep.subr.bf16.mxu1 %v5690_v60  ;;  %8436 = vst [vmem:[#allocation46_spill] sm:$0xff] %v8435_v43  ;;  %v7093_v54 = vsel %vm441_vm5, %v409_v46, %v473_v32  ;;  %v377_v52 = vmul.f32 %v6824_v28, %v339_v0  ;;  %v8440_v46 = vand.u32 15, %v6943_v51  ;;  %v8441_v32 = vmov 0  ;;  %v3441_v43 = vld [vmem:[#allocation5 + $0x388] sm:$0xff] }
  0xcd   : > { %5284 = vmatmul.mubr.f32.gmra.mrb[14].mxu0 %v7025_v33  ;;  %4966 = vmatprep.mubr.f32.mxu1 %v7002_v61  ;;  %v7088_v47 = vsel %vm440_vm4, %v7009_v10, %v472_v36  ;;  %8438 = vst [vmem:[#allocation48_spill] sm:$0xff] %v7093_v54  ;;  %v7099_v10 = vsel %vm8296_vm13, %v1764_v56, %v1766_v24  ;;  %v1770_v36 = vrot.slane %v6918_v21, 1  ;;  %v1772_v56 = vrot.slane %v6924_v27, 1 }
  0xce   : > { %5821 = vmatpush3.bf16.msra.mxu0 %v5818_v62  ;;  %5342 = vmatprep.mubr.f32.mxu0 %v7033_v59  ;;  %v7066_v62 = vsel %vm8258_vm0, %v7013_v19, %v8195_v7  ;;  %v475_v7 = vmul.f32 0.1, %v411_v40  ;;  %8439 = vst [vmem:[#allocation49_spill] sm:$0xff] %v7099_v10  ;;  %vm7106_vm9 = vcmp.ne.s32.totalorder %v8440_v46, 15  ;;  %v7111_v39 = vsel %vm8296_vm13, %v1766_v24, %v1768_v38  ;;  %v1953_v59 = vld [vmem:[#allocation5 + $0x138] sm:$0xff] }
  0xcf   : > { %5823 = vmatprep.subr.bf16.mxu0 %v5822_v23  ;;  %5693 = vmatpush3.bf16.msra.mxu1 %v5690_v60  ;;  %8432 = vst [vmem:[#allocation45_spill] sm:$0xff] %v7066_v62  ;;  %v376_v60 = vmul.f32 %v6824_v28, %v338_v55  ;;  %v412_v55 = vadd.f32 %v6826_v30, %v374_v37  ;;  %v8442_v32 = vsel %vm7106_vm9, 4294967295, %v8441_v32  ;;  %8444 = vst [vmem:[#allocation51_spill] sm:$0xff] %v7111_v39 }
  0xd0   : > { %4967 = vmatmul.mubr.f32.gmra.mrb[16].mxu1 %v7025_v33  ;;  %5695 = vmatprep.subr.bf16.mxu1 %v7045_v16  ;;  %v5830_v37 = vpack.c.bf16 %v3171_v1, %v3170_v17  ;;  %8443 = vst [vmem:[#allocation50_spill] sm:$0xff] %v8442_v32  ;;  %v7120_v51 = vsel %vm442_vm7, %v410_v44, %v474_v9  ;;  %v477_v1 = vmul.f32 0.1, %v413_v63  ;;  %vm445_vm11 = vcmp.gt.f32.partialorder %v413_v63, 0.0 }
  0xd1   : > { %5343 = vmatmul.mubr.msk.f32.vlgmr.msra.gmra.mrb[0].mxu0 %vm7017_vm2, %v7036_v22  ;;  %4969 = vmatprep.mubr.f32.mxu1 %v7056_v31  ;;  %v414_v0 = vadd.f32 %v6826_v30, %v376_v60  ;;  %vm444_vm10 = vcmp.gt.f32.partialorder %v412_v55, 0.0  ;;  %v476_v24 = vmul.f32 0.1, %v412_v55  ;;  %v378_v17 = vmul.f32 %v6824_v28, %v340_v42  ;;  %v1952_v22 = vld [vmem:[#allocation5 + $0x130] sm:$0xff] }
  0xd2   : > { %5825 = vmatpush3.bf16.msra.mxu0 %v5822_v23  ;;  %5345 = vmatprep.mubr.f32.mxu0 %v7041_v49  ;;  %v341_v23 = vld [vmem:[%s6796_s18 + $0xd0] sm:$0xff]  ;;  %v7125_v60 = vsel %vm443_vm8, %v411_v40, %v475_v7  ;;  %v415_v46 = vadd.f32 %v6826_v30, %v377_v52  ;;  %v7131_v44 = vsel %vm8296_vm13, %v1768_v38, %v1770_v36  ;;  %v1774_v9 = vrot.slane %v6947_v53, 1 }
  0xd3   : > { %5827 = vmatprep.subr.bf16.mxu0 %v5826_v35  ;;  %v379_v18 = vmul.f32 %v6824_v28, %v341_v23  ;;  %8445 = vst [vmem:[#allocation52_spill] sm:$0xff] %v7131_v44  ;;  %v5834_v42 = vpack.c.bf16 %v3173_v25, %v3172_v34  ;;  %v8447_v40 = vmov 0  ;;  %v7143_v52 = vsel %vm8296_vm13, %v1770_v36, %v1772_v56  ;;  %v3174_v23 = vld [vmem:[#allocation5 + $0x340] sm:$0xff] }
  0xd4   : > { %4970 = vmatmul.mubr.f32.gmra.mrb[18].mxu1 %v7088_v47  ;;  %8450 = vst [vmem:[#allocation54_spill] sm:$0xff] %v7143_v52  ;;  %v478_v7 = vmul.f32 0.1, %v414_v0  ;;  %v1776_v38 = vrot.slane %v6952_v58, 1  ;;  %v7151_v25 = vsel %vm444_vm10, %v412_v55, %v476_v24  ;;  %vm446_vm14 = vcmp.gt.f32.partialorder %v414_v0, 0.0 }
  0xd5   : > { %5346 = vmatmul.mubr.msk.f32.gmra.mrb[2].mxu0 %vm7071_vm6, %v7076_v5  ;;  %4972 = vmatprep.mubr.f32.mxu1 %v7093_v54  ;;  %8451 = vst [vmem:[#allocation55_spill] sm:$0xff] %v7151_v25  ;;  %v416_v34 = vadd.f32 %v6826_v30, %v378_v17  ;;  %v7157_v36 = vsel %vm445_vm11, %v413_v63, %v477_v1  ;;  %v344_v5 = vld [vmem:[%s6796_s18 + $0xe8] sm:$0xff]  ;;  %vm447_vm15 = vcmp.gt.f32.partialorder %v415_v46, 0.0  ;;  %v1778_v24 = vrot.slane %v6975_v15, 1  ;;  %v3176_v17 = vld [vmem:[#allocation5 + $0x350] sm:$0xff]  ;;  %v3177_v1 = vld [vmem:[#allocation5 + $0x358] sm:$0xff] }
  0xd6   : > { %5348 = vmatprep.mubr.f32.mxu0 %v7099_v10  ;;  %5829 = vmatpush3.bf16.msra.mxu0 %v5826_v35  ;;  %v8446_v35 = vand.u32 15, %v6958_v3  ;;  %v3175_v10 = vld [vmem:[#allocation5 + $0x348] sm:$0xff]  ;;  %v380_v3 = vmul.f32 %v6824_v28, %v342_v13  ;;  %8452 = vst [vmem:[#allocation56_spill] sm:$0xff] %v7157_v36  ;;  %v417_v32 = vadd.f32 %v6826_v30, %v379_v18  ;;  %v8455_v18 = vmov 0 }
  0xd7   : > { %5831 = vmatprep.subr.bf16.mxu0 %v5830_v37  ;;  %v7163_v55 = vsel %vm8296_vm13, %v1772_v56, %v1774_v9  ;;  %v5838_v13 = vpack.c.bf16 %v3175_v10, %v3174_v23  ;;  %v7168_v63 = vsel %vm446_vm14, %v414_v0, %v478_v7  ;;  %v691_v56 = vand.u32 15, %v6971_v12 }
  0xd8   : > { %4973 = vmatmul.mubr.f32.gmra.mrb[20].mxu1 %v7120_v51  ;;  %vm7138_vm12 = vcmp.ne.s32.totalorder %v8446_v35, 15  ;;  %v479_v35 = vmul.f32 0.1, %v415_v46  ;;  %8453 = vst [vmem:[#allocation57_spill] sm:$0xff] %v7163_v55  ;;  %v480_v10 = vmul.f32 0.1, %v416_v34  ;;  %v418_v0 = vadd.f32 %v6826_v30, %v380_v3 }
  0xd9   : > { %v8448_v40 = vsel %vm7138_vm12, 4294967295, %v8447_v40  ;;  %5349 = vmatmul.mubr.msk.f32.gmra.mrb[4].mxu0 %vm7106_vm9, %v7111_v39  ;;  %4975 = vmatprep.mubr.f32.mxu1 %v7125_v60  ;;  %v381_v39 = vmul.f32 %v6824_v28, %v343_v8  ;;  %v7177_v8 = vsel %vm8296_vm13, %v1774_v9, %v1776_v38  ;;  %v382_v7 = vmul.f32 %v6824_v28, %v344_v5 }
  0xda   : > { %8449 = vst [vmem:[#allocation53_spill] sm:$0xff] %v8448_v40  ;;  %5351 = vmatprep.mubr.f32.mxu0 %v7131_v44  ;;  %5833 = vmatpush3.bf16.msra.mxu0 %v5830_v37  ;;  %v8454_v37 = vand.u32 15, %v6961_v4  ;;  %8458 = vst [vmem:[#allocation59_spill] sm:$0xff] %v7177_v8  ;;  %v1780_v4 = vrot.slane %v6981_v20, 1  ;;  %v7189_v9 = vsel %vm447_vm15, %v415_v46, %v479_v35  ;;  %vm448_vm3 = vcmp.gt.f32.partialorder %v416_v34, 0.0  ;;  %v3178_v35 = vld [vmem:[#allocation5 + $0x360] sm:$0xff] }
  0xdb   : > { %5835 = vmatprep.subr.bf16.mxu0 %v5834_v42  ;;  %v481_v12 = vmul.f32 0.1, %v417_v32  ;;  %v419_v23 = vadd.f32 %v6826_v30, %v381_v39  ;;  %vm449_vm4 = vcmp.gt.f32.partialorder %v417_v32, 0.0  ;;  %v5842_v3 = vpack.c.bf16 %v3177_v1, %v3176_v17 }
  0xdc   : > { %4976 = vmatmul.mubr.f32.gmra.mrb[22].mxu1 %v7151_v25  ;;  %vm7172_vm1 = vcmp.ne.s32.totalorder %v8454_v37, 15  ;;  %v7193_v37 = vsel %vm8296_vm13, %v1776_v38, %v1778_v24  ;;  %v8460_v28 = vand.u32 15, %v6968_v11  ;;  %v8461_v5 = vmov 0 }
  0xdd   : > { %v8456_v18 = vsel %vm7172_vm1, 4294967295, %v8455_v18  ;;  %5352 = vmatmul.mubr.msk.f32.gmra.mrb[6].mxu0 %vm7138_vm12, %v7143_v52  ;;  %4978 = vmatprep.mubr.f32.mxu1 %v7157_v36  ;;  %8459 = vst [vmem:[#allocation60_spill] sm:$0xff] %v7193_v37  ;;  %v1782_v52 = vrot.slane %v6996_v48, 1  ;;  %vm7203_vm7 = vcmp.ne.s32.totalorder %v691_v56, 15  ;;  %v8464_v46 = vmov 0 }
  0xde   : > { %8457 = vst [vmem:[#allocation58_spill] sm:$0xff] %v8456_v18  ;;  %5354 = vmatprep.mubr.f32.mxu0 %v7163_v55  ;;  %5837 = vmatpush3.bf16.msra.mxu0 %v5834_v42  ;;  %vm7199_vm5 = vcmp.ne.s32.totalorder %v8460_v28, 15  ;;  %v8465_v46 = vsel %vm7203_vm7, 4294967295, %v8464_v46  ;;  %v579_v39 = vadd.s32 120, %v6920_v26  ;;  %v8467_v42 = vmov 0.0   ;;  %v3179_v55 = vld [vmem:[#allocation5 + $0x368] sm:$0xff] }
  0xdf   : > { %5839 = vmatprep.subr.bf16.mxu0 %v5838_v13  ;;  %v8462_v5 = vsel %vm7199_vm5, 4294967295, %v8461_v5  ;;  %8466 = vst [vmem:[#allocation62_spill] sm:$0xff] %v8465_v46  ;;  %v7209_v38 = vrot.slane %v8467_v42, 7  ;;  %v7216_v11 = vsel %vm448_vm3, %v416_v34, %v480_v10  ;;  %v482_v56 = vmul.f32 0.1, %v418_v0 }
  0xe0   : > { %4979 = vmatmul.mubr.f32.gmra.mrb[24].mxu1 %v7168_v63  ;;  %8463 = vst [vmem:[#allocation61_spill] sm:$0xff] %v8462_v5  ;;  %8469 = vst [vmem:[#allocation64_spill] sm:$0xff] %v7216_v11  ;;  %v1784_v17 = vrot.slane %v7002_v61, 1  ;;  %v420_v1 = vadd.f32 %v6826_v30, %v382_v7  ;;  %v7222_v28 = vsel %vm8296_vm13, %v1778_v24, %v1780_v4  ;;  %vm450_vm8 = vcmp.gt.f32.partialorder %v418_v0, 0.0 }
  0xe1   : > { %8468 = vst [vmem:[#allocation63_spill] sm:$0xff] %v7209_v38  ;;  %5355 = vmatmul.mubr.msk.f32.gmra.mrb[8].mxu0 %vm7172_vm1, %v7177_v8  ;;  %4981 = vmatprep.mubr.f32.mxu1 %v7189_v9  ;;  %8470 = vst [vmem:[#allocation65_spill] sm:$0xff] %v7222_v28  ;;  %v7225_v44 = vsel %vm449_vm4, %v417_v32, %v481_v12  ;;  %v483_v8 = vmul.f32 0.1, %v419_v23  ;;  %v7228_v18 = vsel %vm8296_vm13, %v1780_v4, %v1782_v52  ;;  %v3180_v12 = vld [vmem:[#allocation5 + $0x370] sm:$0xff] }
  0xe2   : > { %5357 = vmatprep.mubr.f32.mxu0 %v7193_v37  ;;  %8471 = vst [vmem:[#allocation66_spill] sm:$0xff] %v7225_v44  ;;  %5841 = vmatpush3.bf16.msra.mxu0 %v5838_v13  ;;  %8472 = vst [vmem:[#allocation67_spill] sm:$0xff] %v7228_v18  ;;  %vm451_vm10 = vcmp.gt.f32.partialorder %v419_v23, 0.0  ;;  %v1786_v34 = vrot.slane %v7025_v33, 1  ;;  %v5846_v10 = vpack.c.bf16 %v3179_v55, %v3178_v35  ;;  %v705_v30 = vand.u32 15, %v579_v39  ;;  %v3181_v37 = vld [vmem:[#allocation5 + $0x378] sm:$0xff] }
  0xe3   : > { %5843 = vmatprep.subr.bf16.mxu0 %v5842_v3  ;;  %v600_v24 = vand.u32 15, %v6920_v26  ;;  %v581_v7 = vadd.s32 136, %v6920_v26  ;;  %v566_v32 = vadd.s32 16, %v6920_v26  ;;  %v7240_v13 = vsel %vm450_vm8, %v418_v0, %v482_v56 }
  0xe4   : > { %4982 = vmatmul.mubr.f32.gmra.mrb[26].mxu1 %v7216_v11  ;;  %v484_v55 = vmul.f32 0.1, %v420_v1  ;;  %v583_v4 = vadd.s32 152, %v6920_v26  ;;  %v568_v39 = vadd.s32 32, %v6920_v26  ;;  %v7246_v35 = vsel %vm8296_vm13, %v1782_v52, %v1784_v17 }
  0xe5   : > { %5358 = vmatmul.mubr.msk.f32.gmra.mrb[10].mxu0 %vm7199_vm5, %v7222_v28  ;;  %4984 = vmatprep.mubr.f32.mxu1 %v7225_v44  ;;  %8473 = vst [vmem:[#allocation68_spill] sm:$0xff] %v7246_v35  ;;  %v7249_v40 = vsel %vm451_vm10, %v419_v23, %v483_v8  ;;  %vm452_vm11 = vcmp.gt.f32.partialorder %v420_v1, 0.0  ;;  %v1788_v28 = vrot.slane %v7056_v31, 1  ;;  %v7253_v0 = vsel %vm8296_vm13, %v1784_v17, %v1786_v34  ;;  %v3440_v23 = vld [vmem:[#allocation5 + $0x380] sm:$0xff] }
  0xe6   : > { %5360 = vmatprep.mubr.f32.mxu0 %v7228_v18  ;;  %5845 = vmatpush3.bf16.msra.mxu0 %v5842_v3  ;;  %8474 = vst [vmem:[#allocation69_spill] sm:$0xff] %v7253_v0  ;;  %v1790_v56 = vrot.slane %v7088_v47, 1  ;;  %v5850_v5 = vpack.c.bf16 %v3181_v37, %v3180_v12  ;;  %v1172_v52 = vsel %vm8258_vm0, 0.0, %v7209_v38  ;;  %v719_v18 = vand.u32 15, %v581_v7 }
  0xe7   : > { %5847 = vmatprep.subr.bf16.mxu0 %v5846_v10  ;;  %v614_v49 = vand.u32 15, %v566_v32  ;;  %v585_v8 = vadd.s32 168, %v6920_v26  ;;  %v7265_v3 = vsel %vm452_vm11, %v420_v1, %v484_v55  ;;  %v733_v37 = vand.u32 15, %v583_v4 }
  0xe8   : > { %4985 = vmatmul.mubr.f32.gmra.mrb[28].mxu1 %v7240_v13  ;;  %v628_v17 = vand.u32 15, %v568_v39  ;;  %v570_v12 = vadd.s32 48, %v6920_v26  ;;  %vm7269_vm14 = vcmp.ne.s32.totalorder %v705_v30, 15  ;;  %v8475_v7 = vmov 0  ;;  %v1949_v39 = vld [vmem:[#allocation5 + $0x118] sm:$0xff] }
  0xe9   : > { %5361 = vmatmul.mubr.msk.f32.gmra.mrb[12].mxu0 %vm7203_vm7, %v7246_v35  ;;  %4987 = vmatprep.mubr.f32.mxu1 %v7249_v40  ;;  %v8476_v7 = vsel %vm7269_vm14, 4294967295, %v8475_v7  ;;  %v7274_v32 = vsel %vm8296_vm13, %v1786_v34, %v1788_v28  ;;  %vm7276_vm15 = vcmp.ne.s32.totalorder %v600_v24, 0  ;;  %v8479_v35 = vmov 0  ;;  %v1948_v24 = vld [vmem:[#allocation5 + $0x110] sm:$0xff] }
  0xea   : > { %5363 = vmatprep.mubr.f32.mxu0 %v7253_v0  ;;  %8477 = vst [vmem:[#allocation70_spill] sm:$0xff] %v8476_v7  ;;  %8478 = vst [vmem:[#allocation71_spill] sm:$0xff] %v7274_v32  ;;  %v8480_v35 = vsel %vm7276_vm15, 4294967295, %v8479_v35  ;;  %v1792_v1 = vrot.slane %v7093_v54, 1  ;;  %5849 = vmatpush3.bf16.msra.mxu0 %v5846_v10  ;;  %v7282_v55 = vsel %vm8296_vm13, %v1788_v28, %v1790_v56  ;;  %v1794_v4 = vrot.slane %v7120_v51, 1  ;;  %v345_v7 = vld [vmem:[%s6796_s18 + $0xf0] sm:$0xff] }
  0xeb   : > { %8481 = vst [vmem:[#allocation72_spill] sm:$0xff] %v7282_v55  ;;  %5851 = vmatprep.subr.bf16.mxu0 %v5850_v5  ;;  %v7285_v30 = vpack.c.bf16 %v3441_v43, %v3440_v23  ;;  %vm7288_vm3 = vcmp.ne.s32.totalorder %v719_v18, 15  ;;  %v8482_v34 = vmov 0  ;;  %v747_v0 = vand.u32 15, %v585_v8 }
  0xec   : > { %4988 = vmatmul.mubr.f32.gmra.mrb[30].mxu1 %v7265_v3  ;;  %v8483_v34 = vsel %vm7288_vm3, 4294967295, %v8482_v34  ;;  %v587_v46 = vadd.s32 184, %v6920_v26  ;;  %vm7298_vm4 = vcmp.ne.s32.totalorder %v614_v49, 0  ;;  %v8485_v43 = vmov 0 }
  0xed   : > { %8484 = vst [vmem:[#allocation73_spill] sm:$0xff] %v8483_v34  ;;  %5364 = vmatmul.mubr.msk.f32.gmra.mrb[14].mxu0 %vm7269_vm14, %v7274_v32  ;;  %5022 = vmatprep.mubr.msk.f32.mxu1 %vm7276_vm15, %v1172_v52  ;;  %v8486_v43 = vsel %vm7298_vm4, 4294967295, %v8485_v43  ;;  %vm7302_vm8 = vcmp.ne.s32.totalorder %v733_v37, 15  ;;  %v8487_v18 = vmov 0  ;;  %vm7306_vm10 = vcmp.ne.s32.totalorder %v628_v17, 0 }
  0xee   : > { %v8488_v18 = vsel %vm7302_vm8, 4294967295, %v8487_v18  ;;  %v8490_v28 = vmov 0  ;;  %v642_v10 = vand.u32 15, %v570_v12  ;;  %5366 = vmatprep.mubr.f32.mxu0 %v7282_v55  ;;  %v7312_v8 = vsel %vm8296_vm13, %v1790_v56, %v1792_v1  ;;  %5853 = vmatpush3.bf16.msra.mxu0 %v5850_v5 }
  0xef   : > { %8489 = vst [vmem:[#allocation74_spill] sm:$0xff] %v8488_v18  ;;  %v8491_v28 = vsel %vm7306_vm10, 4294967295, %v8490_v28  ;;  %8492 = vst [vmem:[#allocation75_spill] sm:$0xff] %v7312_v8  ;;  %v1796_v49 = vrot.slane %v7125_v60, 1  ;;  %v7316_v52 = vrot.slane %v6880_v41, 7  ;;  %v1798_v23 = vrot.slane %v7151_v25, 1  ;;  %5855 = vmatprep.subr.bf16.mxu0 %v7285_v30 }
  0xf0   : > { %v1081_v37 = vsel %vm8258_vm0, %v7209_v38, %v7013_v19  ;;  %v7323_v17 = vsel %vm8296_vm13, %v1792_v1, %v1794_v4  ;;  %v1086_v12 = vrot.slane %v6887_v50, 7  ;;  %v5698_v56 = vpack.c.bf16 %v1949_v39, %v1948_v24  ;;  %5023 = vmatmul.mubr.f32.vlgmr.msra.gmra.mrb[0].mxu1 %v7209_v38  ;;  %v1950_v41 = vld [vmem:[#allocation5 + $0x120] sm:$0xff]  ;;  %v1951_v19 = vld [vmem:[#allocation5 + $0x128] sm:$0xff]  ;;  %v346_v39 = vld [vmem:[%s6796_s18 + $0xf8] sm:$0xff] }
  0xf1   : > { %8493 = vst [vmem:[#allocation76_spill] sm:$0xff] %v7323_v17  ;;  %vm7328_vm11 = vcmp.ne.s32.totalorder %v747_v0, 15  ;;  %v8494_v55 = vmov 0  ;;  %v761_v5 = vand.u32 15, %v587_v46  ;;  %v572_v32 = vadd.s32 64, %v6920_v26  ;;  %5367 = vmatmul.mubr.msk.f32.gmra.mrb[16].mxu0 %vm7288_vm3, %v7312_v8  ;;  %5697 = vmatpush3.bf16.msra.mxu1 %v7045_v16  ;;  %v1959_v18 = vld [vmem:[#allocation5 + $0x168] sm:$0xff] }
  0xf2   : > { %v8495_v55 = vsel %vm7328_vm11, 4294967295, %v8494_v55  ;;  %v1800_v1 = vrot.slane %v7157_v36, 1  ;;  %vm7339_vm0 = vcmp.ne.s32.totalorder %v642_v10, 0  ;;  %v8497_v24 = vmov 0  ;;  %5025 = vmatprep.mubr.msk.f32.mxu1 %vm7298_vm4, %v1081_v37  ;;  %5369 = vmatprep.mubr.f32.mxu0 %v7323_v17  ;;  %v6293_v17 = vld [vmem:[#allocation7] ss:$0 sm:$0xff] }
  0xf3   : > { %8496 = vst [vmem:[#allocation77_spill] sm:$0xff] %v8495_v55  ;;  %v8498_v24 = vsel %vm7339_vm0, 4294967295, %v8497_v24  ;;  %v1088_v0 = vrot.slane %v6893_v57, 7  ;;  %v589_v46 = vadd.s32 200, %v6920_v26  ;;  %v7350_v8 = vsel %vm8296_vm13, %v1794_v4, %v1796_v49  ;;  %5699 = vmatprep.subr.bf16.mxu1 %v5698_v56  ;;  %v1956_v55 = vld [vmem:[#allocation5 + $0x150] sm:$0xff] }
  0xf4   : > { %8499 = vst [vmem:[#allocation78_spill] sm:$0xff] %v7350_v8  ;;  %v8500_v16 = vrot.slane %v6872_v29, 7  ;;  %vm8501_vm3 = vcmask 1040384   ;;  %v7359_v50 = vsel %vm8296_vm13, %v1796_v49, %v1798_v23  ;;  %v1802_v57 = vrot.slane %v7168_v63, 1  ;;  %5026 = vmatmul.mubr.f32.gmra.mrb[2].mxu1 %v7066_v62 }
  0xf5   : > { %8503 = vst [vmem:[#allocation80_spill] sm:$0xff] %v7359_v50  ;;  %vm8504_vm14 = vmmov %vm8501_vm3  ;;  %v1090_v37 = vrot.slane %v6903_v6, 7  ;;  %v5702_v4 = vpack.c.bf16 %v1951_v19, %v1950_v41  ;;  %v383_v38 = vmul.f32 %v6293_v17, %v345_v7  ;;  %v1804_v29 = vrot.slane %v7189_v9, 1  ;;  %5370 = vmatmul.mubr.msk.f32.gmra.mrb[18].mxu0 %vm7302_vm8, %v7350_v8  ;;  %5701 = vmatpush3.bf16.msra.mxu1 %v5698_v56  ;;  %v6294_v8 = vld [vmem:[#allocation8] ss:$0 sm:$0xff] }
  0xf6   : > { %v7356_v10 = vsel %vm8501_vm3, %v8500_v16, %v7316_v52  ;;  %v7364_v34 = vsel %vm8504_vm14, %v7316_v52, %v1086_v12  ;;  %v656_v16 = vand.u32 15, %v572_v32  ;;  %v1092_v49 = vrot.slane %v6908_v14, 7  ;;  %vm8507_vm14 = vmmov %vm8501_vm3  ;;  %5372 = vmatprep.mubr.f32.mxu0 %v7359_v50  ;;  %v1955_v14 = vld [vmem:[#allocation5 + $0x148] sm:$0xff] }
  0xf7   : > { %8502 = vst [vmem:[#allocation79_spill] sm:$0xff] %v7356_v10  ;;  %8505 = vst [vmem:[#allocation81_spill] sm:$0xff] %v7364_v34  ;;  %v384_v2 = vmul.f32 %v6293_v17, %v346_v39  ;;  %5028 = vmatprep.mubr.msk.f32.mxu1 %vm7306_vm10, %v7356_v10  ;;  %v7377_v41 = vsel %vm8296_vm13, %v1798_v23, %v1800_v1  ;;  %v7380_v19 = vsel %vm8507_vm14, %v1086_v12, %v1088_v0  ;;  %v8510_v39 = vmov 0 }
  0xf8   : > { %8506 = vst [vmem:[#allocation82_spill] sm:$0xff] %v7377_v41  ;;  %8508 = vst [vmem:[#allocation83_spill] sm:$0xff] %v7380_v19  ;;  %v1806_v7 = vrot.slane %v7216_v11, 1  ;;  %v1094_v32 = vrot.slane %v6918_v21, 7  ;;  %v7386_v17 = vsel %vm8296_vm13, %v1800_v1, %v1802_v57  ;;  %vm7388_vm3 = vcmp.ne.s32.totalorder %v761_v5, 15  ;;  %5703 = vmatprep.subr.bf16.mxu1 %v5702_v4  ;;  %5029 = vmatmul.mubr.f32.gmra.mrb[4].mxu1 %v7364_v34 }
  0xf9   : > { %8509 = vst [vmem:[#allocation84_spill] sm:$0xff] %v7386_v17  ;;  %v8511_v39 = vsel %vm7388_vm3, 4294967295, %v8510_v39  ;;  %v775_v10 = vand.u32 15, %v589_v46  ;;  %v574_v23 = vadd.s32 80, %v6920_v26  ;;  %vm8513_vm8 = vmmov %vm8507_vm14  ;;  %v1808_v62 = vrot.slane %v7225_v44, 1  ;;  %v1954_v46 = vld [vmem:[#allocation5 + $0x140] sm:$0xff]  ;;  %5373 = vmatmul.mubr.msk.f32.gmra.mrb[20].mxu0 %vm7328_vm11, %v7377_v41  ;;  %5031 = vmatprep.mubr.msk.f32.mxu1 %vm7339_vm0, %v7380_v19 }
  0xfa   : > { %8512 = vst [vmem:[#allocation85_spill] sm:$0xff] %v8511_v39  ;;  %v7394_v12 = vsel %vm8513_vm8, %v1088_v0, %v1090_v37  ;;  %v5706_v21 = vpack.c.bf16 %v1953_v59, %v1952_v22  ;;  %v421_v50 = vadd.f32 %v6294_v8, %v383_v38  ;;  %v7399_v56 = vsel %vm8296_vm13, %v1802_v57, %v1804_v29  ;;  %vm8518_vm7 = vmmov %vm8513_vm8 }
  0xfb   : > { %8514 = vst [vmem:[#allocation86_spill] sm:$0xff] %v7394_v12  ;;  %8515 = vst [vmem:[#allocation87_spill] sm:$0xff] %v7399_v56  ;;  %vm7401_vm14 = vcmp.ne.s32.totalorder %v656_v16, 0  ;;  %v8516_v5 = vmov 0  ;;  %v7406_v1 = vsel %vm8518_vm7, %v1090_v37, %v1092_v49  ;;  %v422_v0 = vadd.f32 %v6294_v8, %v384_v2  ;;  %5375 = vmatprep.mubr.f32.mxu0 %v7386_v17  ;;  %5705 = vmatpush3.bf16.msra.mxu1 %v5702_v4  ;;  %v1957_v17 = vld [vmem:[#allocation5 + $0x158] sm:$0xff] }
  0xfc   : > { %v8517_v5 = vsel %vm7401_vm14, 4294967295, %v8516_v5  ;;  %8519 = vst [vmem:[#allocation88_spill] sm:$0xff] %v7406_v1  ;;  %v7415_v57 = vsel %vm8296_vm13, %v1804_v29, %v1806_v7  ;;  %vm8521_vm8 = vmmov %vm8518_vm7  ;;  %v1096_v59 = vrot.slane %v6924_v27, 7  ;;  %v591_v2 = vadd.s32 216, %v6920_v26  ;;  %5707 = vmatprep.subr.bf16.mxu1 %v5706_v21  ;;  %5032 = vmatmul.mubr.f32.gmra.mrb[6].mxu1 %v7394_v12 }
  0xfd   : > { %8520 = vst [vmem:[#allocation89_spill] sm:$0xff] %v7415_v57  ;;  %v7418_v22 = vsel %vm8521_vm8, %v1092_v49, %v1094_v32  ;;  %vm7423_vm7 = vcmp.ne.s32.totalorder %v775_v10, 15  ;;  %v8523_v38 = vmov 0  ;;  %v670_v8 = vand.u32 15, %v574_v23  ;;  %5376 = vmatmul.mubr.msk.f32.gmra.mrb[22].mxu0 %vm7388_vm3, %v7399_v56  ;;  %5034 = vmatprep.mubr.msk.f32.mxu1 %vm7401_vm14, %v7406_v1 }
  0xfe   : > { %8522 = vst [vmem:[#allocation90_spill] sm:$0xff] %v7418_v22  ;;  %v8524_v38 = vsel %vm7423_vm7, 4294967295, %v8523_v38  ;;  %v1810_v37 = vrot.slane %v7240_v13, 1  ;;  %v576_v29 = vadd.s32 96, %v6920_v26  ;;  %v7430_v16 = vsel %vm8296_vm13, %v1806_v7, %v1808_v62  ;;  %vm8527_vm13 = vmmov %vm8521_vm8  ;;  %5378 = vmatprep.mubr.f32.mxu0 %v7415_v57  ;;  %v1958_v57 = vld [vmem:[#allocation5 + $0x160] sm:$0xff] }
  0xff   : > { %8525 = vst [vmem:[#allocation91_spill] sm:$0xff] %v8524_v38  ;;  %8526 = vst [vmem:[#allocation92_spill] sm:$0xff] %v7430_v16  ;;  %v1098_v49 = vrot.slane %v6947_v53, 7  ;;  %v485_v41 = vmul.f32 0.1, %v421_v50  ;;  %v5710_v27 = vpack.c.bf16 %v1955_v14, %v1954_v46  ;;  %v1812_v10 = vrot.slane %v7249_v40, 1  ;;  %5709 = vmatpush3.bf16.msra.mxu1 %v5706_v21 }
 0x100   : > { %v1100_v4 = vrot.slane %v6952_v58, 7  ;;  %v486_v23 = vmul.f32 0.1, %v422_v0  ;;  %v7443_v14 = vsel %vm8527_vm13, %v1094_v32, %v1096_v59  ;;  %v789_v7 = vand.u32 15, %v591_v2  ;;  %vm8533_vm3 = vmmov %vm8527_vm13  ;;  %5035 = vmatmul.mubr.f32.gmra.mrb[8].mxu1 %v7418_v22 }
 0x101   : > { %8528 = vst [vmem:[#allocation93_spill] sm:$0xff] %v7443_v14  ;;  %v593_v46 = vadd.s32 232, %v6920_v26  ;;  %vm7447_vm8 = vcmp.ne.s32.totalorder %v670_v8, 0  ;;  %v8529_v58 = vmov 0  ;;  %vm8531_vm5 = vcmask 1046528   ;;  %5711 = vmatprep.subr.bf16.mxu1 %v5710_v27  ;;  %5379 = vmatmul.mubr.msk.f32.gmra.mrb[24].mxu0 %vm7423_vm7, %v7430_v16 }
 0x102   : > { %v8530_v58 = vsel %vm7447_vm8, 4294967295, %v8529_v58  ;;  %v7452_v53 = vsel %vm8531_vm5, %v1808_v62, %v1810_v37  ;;  %v684_v56 = vand.u32 15, %v576_v29  ;;  %v578_v39 = vadd.s32 112, %v6920_v26  ;;  %vm8537_vm11 = vmmov %vm8531_vm5  ;;  %5037 = vmatprep.mubr.msk.f32.mxu1 %vm7447_vm8, %v7443_v14 }
 0x103   : > { %8532 = vst [vmem:[#allocation94_spill] sm:$0xff] %v7452_v53  ;;  %v7456_v32 = vsel %vm8533_vm3, %v1096_v59, %v1098_v49  ;;  %v7459_v2 = vrot.slane %v7265_v3, 1  ;;  %vm8536_vm13 = vcmp.gt.f32.partialorder %v421_v50, 0.0  ;;  %v5714_v8 = vpack.c.bf16 %v1957_v17, %v1956_v55  ;;  %vm8539_vm5 = vmmov %vm8533_vm3  ;;  %5381 = vmatprep.mubr.f32.mxu0 %v7452_v53  ;;  %5713 = vmatpush3.bf16.msra.mxu1 %v5710_v27 }
 0x104   : > { %8534 = vst [vmem:[#allocation95_spill] sm:$0xff] %v7456_v32  ;;  %v7462_v6 = vsel %vm8536_vm13, %v421_v50, %v485_v41  ;;  %v7466_v62 = vsel %vm8537_vm11, %v1810_v37, %v1812_v10  ;;  %v7469_v21 = vsel %vm8539_vm5, %v1098_v49, %v1100_v4  ;;  %v1102_v29 = vrot.slane %v6975_v15, 7  ;;  %5038 = vmatmul.mubr.f32.gmra.mrb[10].mxu1 %v7456_v32  ;;  %v1961_v15 = vld [vmem:[#allocation5 + $0x178] sm:$0xff] }
 0x105   : > { %8535 = vst [vmem:[#allocation96_spill] sm:$0xff] %v7459_v2  ;;  %8538 = vst [vmem:[#allocation97_spill] sm:$0xff] %v7466_v62  ;;  %vm8540_vm3 = vcmp.gt.f32.partialorder %v422_v0, 0.0  ;;  %vm7481_vm11 = vcmp.ne.s32.totalorder %v789_v7, 15  ;;  %v8541_v50 = vmov 0  ;;  %v803_v55 = vand.u32 15, %v593_v46  ;;  %5715 = vmatprep.subr.bf16.mxu1 %v5714_v8 }
 0x106   : > { %v7473_v59 = vsel %vm8540_vm3, %v422_v0, %v486_v23  ;;  %v8542_v50 = vsel %vm7481_vm11, 4294967295, %v8541_v50  ;;  %v595_v41 = vadd.s32 248, %v6920_v26  ;;  %v580_v17 = vadd.s32 128, %v6920_v26  ;;  %5382 = vmatmul.mubr.msk.f32.gmra.mrb[26].mxu0 %vm7481_vm11, %v7466_v62 }
 0x107   : > { %8543 = vst [vmem:[#allocation98_spill] sm:$0xff] %v8542_v50  ;;  %vm7488_vm13 = vcmp.ne.s32.totalorder %v684_v56, 0  ;;  %v2809_v37 = vrot.slane %v7462_v6, 1  ;;  %v698_v49 = vand.u32 15, %v578_v39  ;;  %v1104_v23 = vrot.slane %v6981_v20, 7  ;;  %v1960_v39 = vld [vmem:[#allocation5 + $0x170] sm:$0xff]  ;;  %5717 = vmatpush3.bf16.msra.mxu1 %v5714_v8 }
 0x108   : > { %vm8546_vm5 = vcmask 1046528   ;;  %v7499_v46 = vrot.slane %v7473_v59, 1  ;;  %v5718_v16 = vpack.c.bf16 %v1959_v18, %v1958_v57  ;;  %vm8549_vm3 = vcmask 1040384   ;;  %5040 = vmatprep.mubr.msk.f32.mxu1 %vm7488_vm13, %v7469_v21 }
 0x109   : > { %v7496_v7 = vsel %vm8546_vm5, %v1812_v10, %v7459_v2  ;;  %v7503_v56 = vsel %vm8549_vm3, %v1100_v4, %v1102_v29  ;;  %v1106_v53 = vrot.slane %v6996_v48, 7  ;;  %vm7512_vm5 = vcmp.ne.s32.totalorder %v803_v55, 15 }
 0x10a   : > { %8547 = vst [vmem:[#allocation99_spill] sm:$0xff] %v7496_v7  ;;  %8548 = vst [vmem:[#allocation100_spill] sm:$0xff] %v7499_v46  ;;  %v8551_v27 = vmov 0  ;;  %v817_v18 = vand.u32 15, %v595_v41  ;;  %v712_v57 = vand.u32 15, %v580_v17  ;;  %v1108_v10 = vrot.slane %v7002_v61, 7  ;;  %5384 = vmatprep.mubr.f32.mxu0 %v7496_v7  ;;  %5719 = vmatprep.subr.bf16.mxu1 %v5718_v16 }
 0x10b   : > { %8550 = vst [vmem:[#allocation101_spill] sm:$0xff] %v7503_v56  ;;  %v8552_v27 = vsel %vm7512_vm5, 4294967295, %v8551_v27  ;;  %vm8554_vm3 = vcmask 1046528   ;;  %vm7522_vm7 = vcmp.ne.s32.totalorder %v698_v49, 0  ;;  %vm8558_vm11 = vcmask 1040384   ;;  %5041 = vmatmul.mubr.f32.gmra.mrb[12].mxu1 %v7503_v56  ;;  %v2262_v49 = vld [vmem:[#allocation5 + $0x180] sm:$0xff] }
 0x10c   : > { %8553 = vst [vmem:[#allocation102_spill] sm:$0xff] %v8552_v27  ;;  %v7520_v4 = vsel %vm8554_vm3, %v7459_v2, %v2809_v37  ;;  %v7527_v48 = vsel %vm8558_vm11, %v1102_v29, %v1104_v23  ;;  %v582_v55 = vadd.s32 144, %v6920_v26  ;;  %vm8559_vm1 = vmmov %vm8554_vm3  ;;  %v5722_v17 = vpack.c.bf16 %v1961_v15, %v1960_v39  ;;  %v2263_v7 = vld [vmem:[#allocation5 + $0x188] sm:$0xff]  ;;  %5721 = vmatpush3.bf16.msra.mxu1 %v5718_v16  ;;  %v8721_v15 = vld [vmem:[#allocation57_spill] sm:$0xff] }
 0x10d   : > { %8555 = vst [vmem:[#allocation103_spill] sm:$0xff] %v7520_v4  ;;  %v7532_v41 = vsel %vm8559_vm1, %v2809_v37, %v7499_v46  ;;  %vm8561_vm3 = vmmov %vm8558_vm11  ;;  %5385 = vmatmul.mubr.msk.f32.gmra.mrb[28].mxu0 %vm7512_vm5, %v7520_v4  ;;  %5043 = vmatprep.mubr.msk.f32.mxu1 %vm7522_vm7, %v7527_v48  ;;  %vm7544_vm11 = vcmp.ne.s32.totalorder %v817_v18, 15  ;;  %vm7548_vm1 = vcmp.ne.s32.totalorder %v712_v57, 0  ;;  %v1110_v37 = vrot.slane %v7025_v33, 7  ;;  %v3443_v33 = vld [vmem:[#allocation5 + $0x398] sm:$0xff] }
 0x10e   : > { %8560 = vst [vmem:[#allocation104_spill] sm:$0xff] %v7532_v41  ;;  %v7536_v2 = vsel %vm8561_vm3, %v1104_v23, %v1106_v53  ;;  %v7553_v29 = vsel %vm8561_vm3, %v1106_v53, %v1108_v10  ;;  %5387 = vmatprep.mubr.f32.mxu0 %v7532_v41  ;;  %vm8566_vm5 = vcmask 1046528   ;;  %v726_v39 = vand.u32 15, %v582_v55  ;;  %vm8567_vm12 = vmmov %vm8561_vm3  ;;  %5723 = vmatprep.subr.bf16.mxu1 %v5722_v17  ;;  %v3442_v53 = vld [vmem:[#allocation5 + $0x390] sm:$0xff]  ;;  %v3444_v41 = vld [vmem:[#allocation5 + $0x3a0] sm:$0xff] }
 0x10f   : > { %v2816_v23 = vsel %vm8566_vm5, %v7499_v46, 0.0  ;;  %v1112_v18 = vrot.slane %v7056_v31, 7  ;;  %v584_v4 = vadd.s32 160, %v6920_v26  ;;  %v3132_v57 = vsel %vm8567_vm12, 0.0, %v7316_v52  ;;  %5044 = vmatmul.mubr.f32.gmra.mrb[14].mxu1 %v7536_v2  ;;  %vm8568_vm5 = vmmov %vm8561_vm3 }
 0x110   : > { %v7563_v27 = vpack.c.bf16 %v2263_v7, %v2262_v49  ;;  %5046 = vmatprep.mubr.msk.f32.mxu1 %vm7548_vm1, %v7553_v29  ;;  %v7572_v55 = vsel %vm8568_vm5, %v1108_v10, %v1110_v37  ;;  %v1114_v16 = vrot.slane %v7088_v47, 7  ;;  %v1116_v52 = vrot.slane %v7093_v54, 7  ;;  %5725 = vmatpush3.bf16.msra.mxu1 %v5722_v17  ;;  %v3445_v54 = vld [vmem:[#allocation5 + $0x3a8] sm:$0xff]  ;;  %vm8571_vm5 = vmmov %vm8561_vm3  ;;  %v8728_v17 = vld [vmem:[#allocation58_spill] sm:$0xff] }
 0x111   : > { %5388 = vmatmul.mubr.msk.f32.gmra.mrb[30].mxu0 %vm7544_vm11, %v2816_v23  ;;  %vm7578_vm12 = vcmp.ne.s32.totalorder %v726_v39, 0  ;;  %v7583_v49 = vsel %vm8561_vm3, %v1110_v37, %v1112_v18  ;;  %v740_v23 = vand.u32 15, %v584_v4  ;;  %v586_v46 = vadd.s32 176, %v6920_v26 }
 0x112   : > { %5422 = vmatprep.mubr.msk.f32.mxu0 %vm7276_vm15, %v3132_v57  ;;  %v5858_v10 = vpack.c.bf16 %v3443_v33, %v3442_v53  ;;  %5727 = vmatprep.subr.bf16.mxu1 %v7563_v27  ;;  %v7593_v37 = vsel %vm8571_vm5, %v1112_v18, %v1114_v16  ;;  %v7596_v4 = vsel %vm8561_vm3, %v1114_v16, %v1116_v52  ;;  %v1118_v33 = vrot.slane %v7120_v51, 7  ;;  %v3446_v16 = vld [vmem:[#allocation5 + $0x3b0] sm:$0xff]  ;;  %vm8575_vm5 = vmmov %vm8561_vm3 }
 0x113   : > { %5047 = vmatmul.mubr.f32.gmra.mrb[16].mxu1 %v7572_v55  ;;  %8572 = vst [vmem:[#allocation105_spill] sm:$0xff] %v7593_v37  ;;  %vm7603_vm15 = vcmp.ne.s32.totalorder %v740_v23, 0  ;;  %v754_v39 = vand.u32 15, %v586_v46  ;;  %v1120_v57 = vrot.slane %v7125_v60, 7  ;;  %v588_v18 = vadd.s32 192, %v6920_v26 }
 0x114   : > { %5049 = vmatprep.mubr.msk.f32.mxu1 %vm7578_vm12, %v7583_v49  ;;  %v5862_v53 = vpack.c.bf16 %v3445_v54, %v3444_v41  ;;  %v1122_v46 = vrot.slane %v7151_v25, 7  ;;  %v1124_v23 = vrot.slane %v7157_v36, 7  ;;  %v3448_v36 = vld [vmem:[#allocation5 + $0x3c0] sm:$0xff]  ;;  %v3449_v25 = vld [vmem:[#allocation5 + $0x3c8] sm:$0xff] }
 0x115   : > { %5423 = vmatmul.mubr.f32.vlgmr.msra.gmra.mrb[0].mxu0 %v7364_v34  ;;  %v3447_v34 = vld [vmem:[#allocation5 + $0x3b8] sm:$0xff]  ;;  %vm7622_vm3 = vcmp.ne.s32.totalorder %v754_v39, 0  ;;  %v1126_v39 = vrot.slane %v7168_v63, 7 }
 0x116   : > { %5857 = vmatpush3.bf16.msra.mxu0 %v7285_v30  ;;  %5425 = vmatprep.mubr.msk.f32.mxu0 %vm7298_vm4, %v7380_v19  ;;  %v7615_v30 = vsel %vm8575_vm5, %v1116_v52, %v1118_v33  ;;  %vm8578_vm4 = vmmov %vm8575_vm5  ;;  %v590_v52 = vadd.s32 208, %v6920_v26  ;;  %v5866_v19 = vpack.c.bf16 %v3447_v34, %v3446_v16  ;;  %v8583_v34 = vmov 0 }
 0x117   : > { %5859 = vmatprep.subr.bf16.mxu0 %v5858_v10  ;;  %5050 = vmatmul.mubr.f32.gmra.mrb[18].mxu1 %v7593_v37  ;;  %v7627_v41 = vsel %vm8578_vm4, %v1118_v33, %v1120_v57  ;;  %vm8580_vm5 = vmmov %vm8578_vm4  ;;  %v7639_v33 = vsel %vm8578_vm4, %v1122_v46, %v1124_v23  ;;  %v1128_v16 = vrot.slane %v7189_v9, 7 }
 0x118   : > { %5052 = vmatprep.mubr.msk.f32.mxu1 %vm7603_vm15, %v7596_v4  ;;  %8579 = vst [vmem:[#allocation106_spill] sm:$0xff] %v7627_v41  ;;  %8582 = vst [vmem:[#allocation108_spill] sm:$0xff] %v7639_v33 }
 0x119   : > { %5426 = vmatmul.mubr.f32.gmra.mrb[2].mxu0 %v7394_v12  ;;  %v768_v12 = vand.u32 15, %v588_v18  ;;  %v782_v18 = vand.u32 15, %v590_v52  ;;  %v1132_v52 = vrot.slane %v7225_v44, 7  ;;  %v3452_v44 = vld [vmem:[#allocation5 + $0x3e0] sm:$0xff] }
 0x11a   : > { %5428 = vmatprep.mubr.msk.f32.mxu0 %vm7306_vm10, %v7406_v1  ;;  %5861 = vmatpush3.bf16.msra.mxu0 %v5858_v10  ;;  %v7636_v10 = vsel %vm8580_vm5, %v1120_v57, %v1122_v46  ;;  %v592_v57 = vadd.s32 224, %v6920_v26  ;;  %v3450_v46 = vld [vmem:[#allocation5 + $0x3d0] sm:$0xff]  ;;  %v3451_v1 = vld [vmem:[#allocation5 + $0x3d8] sm:$0xff]  ;;  %vm8586_vm5 = vmmov %vm8578_vm4 }
 0x11b   : > { %5863 = vmatprep.subr.bf16.mxu0 %v5862_v53  ;;  %5053 = vmatmul.mubr.f32.gmra.mrb[20].mxu1 %v7615_v30  ;;  %8581 = vst [vmem:[#allocation107_spill] sm:$0xff] %v7636_v10  ;;  %vm7645_vm10 = vcmp.ne.s32.totalorder %v768_v12, 0  ;;  %v7657_v12 = vsel %vm8586_vm5, %v1124_v23, %v1126_v39  ;;  %vm7664_vm4 = vcmp.ne.s32.totalorder %v782_v18, 0  ;;  %v594_v23 = vadd.s32 240, %v6920_v26 }
 0x11c   : > { %5055 = vmatprep.mubr.msk.f32.mxu1 %vm7622_vm3, %v7627_v41  ;;  %v8584_v34 = vsel %vm7645_vm10, 4294967295, %v8583_v34  ;;  %8587 = vst [vmem:[#allocation110_spill] sm:$0xff] %v7657_v12  ;;  %v8595_v26 = vmov 0 }
 0x11d   : > { %5429 = vmatmul.mubr.f32.gmra.mrb[4].mxu0 %v7418_v22  ;;  %8585 = vst [vmem:[#allocation109_spill] sm:$0xff] %v8584_v34  ;;  %v5870_v22 = vpack.c.bf16 %v3449_v25, %v3448_v36  ;;  %v8588_v25 = vmov 0  ;;  %v8630_v34 = vld [vmem:[#allocation61_spill] sm:$0xff] }
 0x11e   : > { %5431 = vmatprep.mubr.msk.f32.mxu0 %vm7339_vm0, %v7443_v14  ;;  %5865 = vmatpush3.bf16.msra.mxu0 %v5862_v53  ;;  %v1130_v53 = vrot.slane %v7216_v11, 7  ;;  %v8589_v25 = vsel %vm7664_vm4, 4294967295, %v8588_v25  ;;  %vm8591_vm0 = vmmov %vm8586_vm5  ;;  %v5874_v14 = vpack.c.bf16 %v3451_v1, %v3450_v46  ;;  %v3453_v11 = vld [vmem:[#allocation5 + $0x3e8] sm:$0xff]  ;;  %v810_v1 = vand.u32 15, %v594_v23  ;;  %v3454_v46 = vld [vmem:[#allocation5 + $0x3f0] sm:$0xff] }
 0x11f   : > { %5867 = vmatprep.subr.bf16.mxu0 %v5866_v19  ;;  %5056 = vmatmul.mubr.f32.gmra.mrb[22].mxu1 %v7636_v10  ;;  %8590 = vst [vmem:[#allocation111_spill] sm:$0xff] %v8589_v25  ;;  %v7669_v36 = vsel %vm8591_vm0, %v1126_v39, %v1128_v16  ;;  %vm8593_vm5 = vmmov %vm8591_vm0  ;;  %v1134_v39 = vrot.slane %v7240_v13, 7  ;;  %v3755_v23 = vld [vmem:[#allocation5 + $0x408] sm:$0xff] }
 0x120   : > { %5058 = vmatprep.mubr.msk.f32.mxu1 %vm7645_vm10, %v7639_v33  ;;  %8592 = vst [vmem:[#allocation112_spill] sm:$0xff] %v7669_v36  ;;  %v7678_v18 = vsel %vm8593_vm5, %v1128_v16, %v1130_v53  ;;  %v5878_v16 = vpack.c.bf16 %v3453_v11, %v3452_v44  ;;  %v8601_v44 = vmov 0  ;;  %v8632_v25 = vld [vmem:[#allocation60_spill] sm:$0xff] }
 0x121   : > { %5432 = vmatmul.mubr.f32.gmra.mrb[6].mxu0 %v7456_v32  ;;  %v796_v32 = vand.u32 15, %v592_v57  ;;  %8594 = vst [vmem:[#allocation113_spill] sm:$0xff] %v7678_v18  ;;  %v1136_v57 = vrot.slane %v7249_v40, 7  ;;  %v8720_v0 = vld [vmem:[#allocation108_spill] sm:$0xff] }
 0x122   : > { %5434 = vmatprep.mubr.msk.f32.mxu0 %vm7401_vm14, %v7469_v21  ;;  %5869 = vmatpush3.bf16.msra.mxu0 %v5866_v19  ;;  %vm8598_vm14 = vmmov %vm8593_vm5 }
 0x123   : > { %5871 = vmatprep.subr.bf16.mxu0 %v5870_v22  ;;  %5059 = vmatmul.mubr.f32.gmra.mrb[24].mxu1 %v7657_v12  ;;  %vm7684_vm0 = vcmp.ne.s32.totalorder %v796_v32, 0  ;;  %v7689_v19 = vsel %vm8598_vm14, %v1130_v53, %v1132_v52  ;;  %v7698_v32 = vsel %vm8593_vm5, %v1132_v52, %v1134_v39  ;;  %v8365_v53 = vrot.slane %v7265_v3, 7  ;;  %v3754_v52 = vld [vmem:[#allocation5 + $0x400] sm:$0xff] }
 0x124   : > { %5061 = vmatprep.mubr.msk.f32.mxu1 %vm7664_vm4, %v7669_v36  ;;  %v8596_v26 = vsel %vm7684_vm0, 4294967295, %v8595_v26  ;;  %8599 = vst [vmem:[#allocation115_spill] sm:$0xff] %v7689_v19  ;;  %8600 = vst [vmem:[#allocation116_spill] sm:$0xff] %v7698_v32  ;;  %vm7704_vm14 = vcmp.ne.s32.totalorder %v810_v1, 0 }
 0x125   : > { %5435 = vmatmul.mubr.f32.gmra.mrb[8].mxu0 %v7503_v56  ;;  %8597 = vst [vmem:[#allocation114_spill] sm:$0xff] %v8596_v26  ;;  %v3455_v56 = vld [vmem:[#allocation5 + $0x3f8] sm:$0xff]  ;;  %v8602_v44 = vsel %vm7704_vm14, 4294967295, %v8601_v44  ;;  %v7719_v1 = vsel %vm8593_vm5, %v1136_v57, %v8365_v53  ;;  %v3759_v26 = vld [vmem:[#allocation5 + $0x428] sm:$0xff] }
 0x126   : > { %5437 = vmatprep.mubr.msk.f32.mxu0 %vm7447_vm8, %v7527_v48  ;;  %5873 = vmatpush3.bf16.msra.mxu0 %v5870_v22  ;;  %8603 = vst [vmem:[#allocation117_spill] sm:$0xff] %v8602_v44  ;;  %vm8604_vm8 = vmmov %vm8593_vm5  ;;  %v5882_v22 = vpack.c.bf16 %v3455_v56, %v3454_v46  ;;  %v2264_v56 = vld [vmem:[#allocation5 + $0x190] sm:$0xff]  ;;  %v2265_v46 = vld [vmem:[#allocation5 + $0x198] sm:$0xff] }
 0x127   : > { %5875 = vmatprep.subr.bf16.mxu0 %v5874_v14  ;;  %5062 = vmatmul.mubr.f32.gmra.mrb[26].mxu1 %v7678_v18  ;;  %v7709_v11 = vsel %vm8604_vm8, %v1134_v39, %v1136_v57  ;;  %8606 = vst [vmem:[#allocation119_spill] sm:$0xff] %v7719_v1  ;;  %v7722_v39 = vrot.slane %v8467_v42, 1  ;;  %v8608_v57 = vrot.slane %v6839_v45, 1  ;;  %vm8609_vm8 = vcmask 1046528   ;;  %v8611_v45 = vld [vmem:[#allocation42_spill] sm:$0xff]  ;;  %v8647_v44 = vld [vmem:[#allocation71_spill] sm:$0xff] }
 0x128   : > { %5064 = vmatprep.mubr.msk.f32.mxu1 %vm7684_vm0, %v7689_v19  ;;  %8605 = vst [vmem:[#allocation118_spill] sm:$0xff] %v7709_v11  ;;  %v8724_v7 = vld [vmem:[#allocation112_spill] sm:$0xff]  ;;  %v8731_v54 = vld [vmem:[#allocation111_spill] sm:$0xff] }
 0x129   : > { %5438 = vmatmul.mubr.f32.gmra.mrb[10].mxu0 %v7536_v2  ;;  %8607 = vst [vmem:[#allocation120_spill] sm:$0xff] %v7722_v39  ;;  %v1757_v53 = vsel %vm8609_vm8, %v7722_v39, %v8608_v57  ;;  %v2268_v57 = vld [vmem:[#allocation5 + $0x1b0] sm:$0xff] }
 0x12a   : > { %5440 = vmatprep.mubr.msk.f32.mxu0 %vm7488_vm13, %v7553_v29  ;;  %5877 = vmatpush3.bf16.msra.mxu0 %v5874_v14  ;;  %v7727_v14 = vpack.c.bf16 %v3755_v23, %v3754_v52  ;;  %v2266_v23 = vld [vmem:[#allocation5 + $0x1a0] sm:$0xff]  ;;  %v8735_v52 = vld [vmem:[#allocation68_spill] sm:$0xff] }
 0x12b   : > { %5879 = vmatprep.subr.bf16.mxu0 %v5878_v16  ;;  %5065 = vmatmul.mubr.f32.gmra.mrb[28].mxu1 %v7698_v32 }
 0x12c   : > { %5067 = vmatprep.mubr.msk.f32.mxu1 %vm7704_vm14, %v7709_v11 }
 0x12d   : > { %5441 = vmatmul.mubr.f32.gmra.mrb[12].mxu0 %v7572_v55 }
 0x12e   : > { %5443 = vmatprep.mubr.msk.f32.mxu0 %vm7522_vm7, %v7583_v49  ;;  %5881 = vmatpush3.bf16.msra.mxu0 %v5878_v16  ;;  %v5730_v16 = vpack.c.bf16 %v2265_v46, %v2264_v56  ;;  %v8612_v56 = vld [vmem:[#allocation43_spill] sm:$0xff]  ;;  %v8736_v46 = vld [vmem:[#allocation61_spill] sm:$0xff] }
 0x12f   : > { %5883 = vmatprep.subr.bf16.mxu0 %v5882_v22  ;;  %5068 = vmatmul.mubr.f32.gmra.mrb[30].mxu1 %v7719_v1 }
 0x130   : > { %5102 = vmatprep.mubr.f32.mxu1 %v7722_v39  ;;  %v8614_v39 = vld [vmem:[#allocation44_spill] sm:$0xff] }
 0x131   : > { %5444 = vmatmul.mubr.f32.gmra.mrb[14].mxu0 %v7593_v37  ;;  %v2267_v37 = vld [vmem:[#allocation5 + $0x1a8] sm:$0xff] }
 0x132   : > { %5446 = vmatprep.mubr.msk.f32.mxu0 %vm7548_vm1, %v7596_v4  ;;  %5885 = vmatpush3.bf16.msra.mxu0 %v5882_v22  ;;  %v5734_v22 = vpack.c.bf16 %v2267_v37, %v2266_v23  ;;  %v2270_v37 = vld [vmem:[#allocation5 + $0x1c0] sm:$0xff]  ;;  %v2271_v23 = vld [vmem:[#allocation5 + $0x1c8] sm:$0xff] }
 0x133   : > { %5887 = vmatprep.subr.bf16.mxu0 %v7727_v14  ;;  %5103 = vmatmul.mubr.msk.f32.vlgmr.msra.gmra.mrb[0].mxu1 %vm7017_vm2, %v1757_v53  ;;  %v2269_v53 = vld [vmem:[#allocation5 + $0x1b8] sm:$0xff] }
 0x134   : > { %5729 = vmatpush3.bf16.msra.mxu1 %v7563_v27  ;;  %5105 = vmatprep.mubr.f32.mxu1 %v8611_v45  ;;  %v5738_v27 = vpack.c.bf16 %v2269_v53, %v2268_v57  ;;  %v8615_v45 = vld [vmem:[#allocation47_spill] sm:$0xff]  ;;  %v2272_v57 = vld [vmem:[#allocation5 + $0x1d0] sm:$0xff]  ;;  %v2273_v53 = vld [vmem:[#allocation5 + $0x1d8] sm:$0xff] }
 0x135   : > { %5447 = vmatmul.mubr.f32.gmra.mrb[16].mxu0 %v7615_v30  ;;  %5731 = vmatprep.subr.bf16.mxu1 %v5730_v16 }
 0x136   : > { %5449 = vmatprep.mubr.msk.f32.mxu0 %vm7578_vm12, %v7627_v41  ;;  %v8621_v41 = vld [vmem:[#allocation52_spill] sm:$0xff] }
 0x137   : > { %5106 = vmatmul.mubr.msk.f32.gmra.mrb[2].mxu1 %vm7071_vm6, %v8612_v56  ;;  %v8617_v56 = vld [vmem:[#allocation49_spill] sm:$0xff] }
 0x138   : > { %5108 = vmatprep.mubr.f32.mxu1 %v8614_v39  ;;  %5733 = vmatpush3.bf16.msra.mxu1 %v5730_v16  ;;  %v8618_v16 = vld [vmem:[#allocation51_spill] sm:$0xff] }
 0x139   : > { %5450 = vmatmul.mubr.f32.gmra.mrb[18].mxu0 %v7636_v10  ;;  %5735 = vmatprep.subr.bf16.mxu1 %v5734_v22  ;;  %v8619_v10 = vld [vmem:[#allocation53_spill] sm:$0xff] }
 0x13a   : > { %5452 = vmatprep.mubr.msk.f32.mxu0 %vm7603_vm15, %v7639_v33  ;;  %v5742_v33 = vpack.c.bf16 %v2271_v23, %v2270_v37  ;;  %vm8620_vm5 = vnez %v8619_v10  ;;  %v8622_v37 = vld [vmem:[#allocation54_spill] sm:$0xff]  ;;  %v2274_v10 = vld [vmem:[#allocation5 + $0x1e0] sm:$0xff] }
 0x13b   : > { %5109 = vmatmul.mubr.msk.f32.gmra.mrb[4].mxu1 %vm7106_vm9, %v8615_v45  ;;  %v8623_v23 = vld [vmem:[#allocation58_spill] sm:$0xff] }
 0x13c   : > { %5111 = vmatprep.mubr.f32.mxu1 %v8617_v56  ;;  %5737 = vmatpush3.bf16.msra.mxu1 %v5734_v22  ;;  %v5746_v22 = vpack.c.bf16 %v2273_v53, %v2272_v57  ;;  %vm8624_vm8 = vnez %v8623_v23  ;;  %v8629_v23 = vld [vmem:[#allocation59_spill] sm:$0xff] }
 0x13d   : > { %5453 = vmatmul.mubr.f32.gmra.mrb[20].mxu0 %v7657_v12  ;;  %5739 = vmatprep.subr.bf16.mxu1 %v5738_v27  ;;  %v2275_v12 = vld [vmem:[#allocation5 + $0x1e8] sm:$0xff] }
 0x13e   : > { %5455 = vmatprep.mubr.msk.f32.mxu0 %vm7622_vm3, %v7669_v36  ;;  %v2221_v36 = vrot.slane %v7462_v6, 7  ;;  %v5750_v53 = vpack.c.bf16 %v2275_v12, %v2274_v10 }
 0x13f   : > { %5112 = vmatmul.mubr.msk.f32.gmra.mrb[6].mxu1 %vm8620_vm5, %v8618_v16 }
 0x140   : > { %5114 = vmatprep.mubr.f32.mxu1 %v8621_v41  ;;  %5741 = vmatpush3.bf16.msra.mxu1 %v5738_v27  ;;  %v2223_v27 = vrot.slane %v7473_v59, 7 }
 0x141   : > { %5456 = vmatmul.mubr.f32.gmra.mrb[22].mxu0 %v7678_v18  ;;  %5743 = vmatprep.subr.bf16.mxu1 %v5742_v33  ;;  %v8625_v18 = vld [vmem:[#allocation57_spill] sm:$0xff] }
 0x142   : > { %5458 = vmatprep.mubr.msk.f32.mxu0 %vm7645_vm10, %v7689_v19  ;;  %v8626_v19 = vrot.slane %v7265_v3, 7  ;;  %vm8627_vm10 = vcmask 1040384  }
 0x143   : > { %5115 = vmatmul.mubr.msk.f32.gmra.mrb[8].mxu1 %vm8624_vm8, %v8622_v37  ;;  %vm8631_vm8 = vnez %v8630_v34  ;;  %v8638_v34 = vld [vmem:[#allocation62_spill] sm:$0xff] }
 0x144   : > { %5117 = vmatprep.mubr.f32.mxu1 %v8625_v18  ;;  %5745 = vmatpush3.bf16.msra.mxu1 %v5742_v33  ;;  %v7785_v57 = vsel %vm8627_vm10, %v8626_v19, %v2221_v36  ;;  %v2277_v18 = vld [vmem:[#allocation5 + $0x1f8] sm:$0xff]  ;;  %v8635_v19 = vld [vmem:[#allocation63_spill] sm:$0xff] }
 0x145   : > { %5459 = vmatmul.mubr.f32.gmra.mrb[24].mxu0 %v7698_v32  ;;  %8628 = vst [vmem:[#allocation40_spill] sm:$0xff] %v7785_v57  ;;  %5747 = vmatprep.subr.bf16.mxu1 %v5746_v22  ;;  %v2276_v32 = vld [vmem:[#allocation5 + $0x1f0] sm:$0xff] }
 0x146   : > { %5461 = vmatprep.mubr.msk.f32.mxu0 %vm7664_vm4, %v7709_v11  ;;  %vm8633_vm4 = vmmov %vm8627_vm10  ;;  %v5754_v12 = vpack.c.bf16 %v2277_v18, %v2276_v32  ;;  %v8637_v11 = vld [vmem:[#allocation65_spill] sm:$0xff]  ;;  %v8645_v32 = vld [vmem:[#allocation28_spill] sm:$0xff] }
 0x147   : > { %5118 = vmatmul.mubr.msk.f32.gmra.mrb[10].mxu1 %vm8631_vm8, %v8629_v23  ;;  %v7796_v33 = vsel %vm8633_vm4, %v2221_v36, %v2223_v27  ;;  %vm8636_vm10 = vmmov %vm8633_vm4  ;;  %vm8639_vm8 = vnez %v8638_v34  ;;  %v8641_v36 = vld [vmem:[#allocation68_spill] sm:$0xff]  ;;  %v8644_v18 = vld [vmem:[#allocation69_spill] sm:$0xff] }
 0x148   : > { %5120 = vmatprep.mubr.f32.mxu1 %v8632_v25  ;;  %8634 = vst [vmem:[#allocation42_spill] sm:$0xff] %v7796_v33  ;;  %5749 = vmatpush3.bf16.msra.mxu1 %v5746_v22  ;;  %v3126_v10 = vsel %vm8636_vm10, %v2223_v27, %v8635_v19  ;;  %v8642_v22 = vld [vmem:[#allocation70_spill] sm:$0xff]  ;;  %v3756_v27 = vld [vmem:[#allocation5 + $0x410] sm:$0xff]  ;;  %v8646_v34 = vld [vmem:[#allocation20_spill] sm:$0xff] }
 0x149   : > { %5462 = vmatmul.mubr.f32.gmra.mrb[26].mxu0 %v7719_v1  ;;  %5751 = vmatprep.subr.bf16.mxu1 %v5750_v53  ;;  %v8640_v1 = vld [vmem:[#allocation67_spill] sm:$0xff]  ;;  %vm8643_vm4 = vnez %v8642_v22  ;;  %v8650_v22 = vld [vmem:[#allocation29_spill] sm:$0xff] }
 0x14a   : > { %5464 = vmatprep.mubr.msk.f32.mxu0 %vm7684_vm0, %v7785_v57  ;;  %v3757_v57 = vld [vmem:[#allocation5 + $0x418] sm:$0xff] }
 0x14b   : > { %5121 = vmatmul.mubr.msk.f32.gmra.mrb[12].mxu1 %vm8639_vm8, %v8637_v11 }
 0x14c   : > { %5123 = vmatprep.mubr.f32.mxu1 %v8640_v1  ;;  %5753 = vmatpush3.bf16.msra.mxu1 %v5750_v53  ;;  %v3758_v53 = vld [vmem:[#allocation5 + $0x420] sm:$0xff]  ;;  %v8658_v1 = vld [vmem:[#allocation32_spill] sm:$0xff] }
 0x14d   : > { %5465 = vmatmul.mubr.f32.gmra.mrb[28].mxu0 %v7796_v33  ;;  %5755 = vmatprep.subr.bf16.mxu1 %v5754_v12  ;;  %v5890_v33 = vpack.c.bf16 %v3757_v57, %v3756_v27  ;;  %v8654_v57 = vld [vmem:[#allocation74_spill] sm:$0xff]  ;;  %v3760_v27 = vld [vmem:[#allocation5 + $0x430] sm:$0xff] }
 0x14e   : > { %5467 = vmatprep.mubr.msk.f32.mxu0 %vm7704_vm14, %v3126_v10  ;;  %v8648_v10 = vld [vmem:[#allocation73_spill] sm:$0xff]  ;;  %vm8687_vm14 = vcmask 1040384  }
 0x14f   : > { %5124 = vmatmul.mubr.msk.f32.gmra.mrb[14].mxu1 %vm8643_vm4, %v8641_v36  ;;  %vm8649_vm10 = vnez %v8648_v10  ;;  %v8651_v36 = vld [vmem:[#allocation72_spill] sm:$0xff]  ;;  %vm8655_vm4 = vnez %v8654_v57  ;;  %v8656_v10 = vld [vmem:[#allocation31_spill] sm:$0xff] }
 0x150   : > { %5126 = vmatprep.mubr.f32.mxu1 %v8644_v18  ;;  %5757 = vmatpush3.bf16.msra.mxu1 %v5754_v12  ;;  %v8653_v12 = vld [vmem:[#allocation75_spill] sm:$0xff]  ;;  %v3761_v18 = vld [vmem:[#allocation5 + $0x438] sm:$0xff]  ;;  %v8663_v57 = vld [vmem:[#allocation80_spill] sm:$0xff] }
 0x151   : > { %5468 = vmatmul.mubr.f32.gmra.mrb[30].mxu0 %v8635_v19  ;;  %5918 = vmatprep.subr.bf16.mxu1 %v8646_v34  ;;  %v8652_v19 = vld [vmem:[#allocation30_spill] sm:$0xff] }
 0x152   : > { %5502 = vmatprep.mubr.f32.mxu0 %v8645_v32  ;;  %v5894_v32 = vpack.c.bf16 %v3759_v26, %v3758_v53  ;;  %v3762_v26 = vld [vmem:[#allocation5 + $0x440] sm:$0xff]  ;;  %v3763_v53 = vld [vmem:[#allocation5 + $0x448] sm:$0xff] }
 0x153   : > { %5127 = vmatmul.mubr.msk.f32.gmra.mrb[16].mxu1 %vm8649_vm10, %v8647_v44  ;;  %v8657_v44 = vld [vmem:[#allocation76_spill] sm:$0xff] }
 0x154   : > { %5129 = vmatprep.mubr.f32.mxu1 %v8651_v36  ;;  %v8660_v36 = vld [vmem:[#allocation77_spill] sm:$0xff] }
 0x155   : > { %5503 = vmatmul.mubr.f32.vlgmr.msra.gmra.mrb[0].mxu0 %v8650_v22  ;;  %v5898_v22 = vpack.c.bf16 %v3761_v18, %v3760_v27  ;;  %vm8661_vm10 = vnez %v8660_v36  ;;  %v3765_v18 = vld [vmem:[#allocation5 + $0x458] sm:$0xff]  ;;  %v8668_v27 = vld [vmem:[#allocation35_spill] sm:$0xff]  ;;  %v8669_v36 = vld [vmem:[#allocation84_spill] sm:$0xff] }
 0x156   : > { %5889 = vmatpush3.bf16.msra.mxu0 %v7727_v14  ;;  %5505 = vmatprep.mubr.f32.mxu0 %v8652_v19  ;;  %v8659_v14 = vld [vmem:[#allocation78_spill] sm:$0xff]  ;;  %v8662_v19 = vld [vmem:[#allocation33_spill] sm:$0xff] }
 0x157   : > { %5891 = vmatprep.subr.bf16.mxu0 %v5890_v33  ;;  %5130 = vmatmul.mubr.msk.f32.gmra.mrb[18].mxu1 %vm8655_vm4, %v8653_v12  ;;  %v8664_v12 = vld [vmem:[#allocation34_spill] sm:$0xff] }
 0x158   : > { %5132 = vmatprep.mubr.f32.mxu1 %v8657_v44  ;;  %v8665_v44 = vld [vmem:[#allocation82_spill] sm:$0xff] }
 0x159   : > { %5506 = vmatmul.mubr.f32.gmra.mrb[2].mxu0 %v8656_v10  ;;  %v5902_v10 = vpack.c.bf16 %v3763_v53, %v3762_v26  ;;  %v8673_v26 = vld [vmem:[#allocation37_spill] sm:$0xff] }
 0x15a   : > { %5508 = vmatprep.mubr.f32.mxu0 %v8658_v1  ;;  %5893 = vmatpush3.bf16.msra.mxu0 %v5890_v33  ;;  %v8666_v1 = vld [vmem:[#allocation85_spill] sm:$0xff] }
 0x15b   : > { %5895 = vmatprep.subr.bf16.mxu0 %v5894_v32  ;;  %5133 = vmatmul.mubr.msk.f32.gmra.mrb[20].mxu1 %vm8661_vm10, %v8659_v14  ;;  %vm8667_vm4 = vnez %v8666_v1  ;;  %v3764_v33 = vld [vmem:[#allocation5 + $0x450] sm:$0xff]  ;;  %v8670_v14 = vld [vmem:[#allocation36_spill] sm:$0xff]  ;;  %vm8672_vm10 = vnez %v8524_v38 }
 0x15c   : > { %5135 = vmatprep.mubr.f32.mxu1 %v8663_v57  ;;  %v8671_v57 = vld [vmem:[#allocation87_spill] sm:$0xff]  ;;  %v8674_v53 = vld [vmem:[#allocation89_spill] sm:$0xff]  ;;  %v8675_v1 = vld [vmem:[#allocation92_spill] sm:$0xff] }
 0x15d   : > { %5509 = vmatmul.mubr.f32.gmra.mrb[4].mxu0 %v8662_v19  ;;  %v5906_v19 = vpack.c.bf16 %v3765_v18, %v3764_v33  ;;  %v8677_v33 = vld [vmem:[#allocation38_spill] sm:$0xff]  ;;  %v8679_v38 = vld [vmem:[#allocation97_spill] sm:$0xff] }
 0x15e   : > { %5511 = vmatprep.mubr.f32.mxu0 %v8664_v12  ;;  %5897 = vmatpush3.bf16.msra.mxu0 %v5894_v32  ;;  %v3766_v32 = vld [vmem:[#allocation5 + $0x460] sm:$0xff]  ;;  %v3767_v12 = vld [vmem:[#allocation5 + $0x468] sm:$0xff]  ;;  %v8678_v18 = vld [vmem:[#allocation94_spill] sm:$0xff] }
 0x15f   : > { %5899 = vmatprep.subr.bf16.mxu0 %v5898_v22  ;;  %5136 = vmatmul.mubr.msk.f32.gmra.mrb[22].mxu1 %vm8667_vm4, %v8665_v44  ;;  %vm8676_vm4 = vnez %v8542_v50 }
 0x160   : > { %5138 = vmatprep.mubr.f32.mxu1 %v8669_v36 }
 0x161   : > { %5512 = vmatmul.mubr.f32.gmra.mrb[6].mxu0 %v8668_v27  ;;  %v5910_v27 = vpack.c.bf16 %v3767_v12, %v3766_v32  ;;  %v8683_v32 = vld [vmem:[#allocation99_spill] sm:$0xff]  ;;  %v8684_v12 = vld [vmem:[#allocation96_spill] sm:$0xff] }
 0x162   : > { %5514 = vmatprep.mubr.f32.mxu0 %v8670_v14  ;;  %5901 = vmatpush3.bf16.msra.mxu0 %v5898_v22  ;;  %v3768_v22 = vld [vmem:[#allocation5 + $0x470] sm:$0xff]  ;;  %v3769_v14 = vld [vmem:[#allocation5 + $0x478] sm:$0xff] }
 0x163   : > { %5903 = vmatprep.subr.bf16.mxu0 %v5902_v10  ;;  %5139 = vmatmul.mubr.msk.f32.gmra.mrb[24].mxu1 %vm8672_vm10, %v8671_v57 }
 0x164   : > { %5141 = vmatprep.mubr.f32.mxu1 %v8674_v53 }
 0x165   : > { %5515 = vmatmul.mubr.f32.gmra.mrb[8].mxu0 %v8673_v26  ;;  %v5914_v26 = vpack.c.bf16 %v3769_v14, %v3768_v22  ;;  %v8691_v22 = vld [vmem:[#allocation79_spill] sm:$0xff] }
 0x166   : > { %5517 = vmatprep.mubr.f32.mxu0 %v6981_v20  ;;  %5905 = vmatpush3.bf16.msra.mxu0 %v5902_v10  ;;  %v8680_v20 = vld [vmem:[#allocation102_spill] sm:$0xff]  ;;  %v8682_v10 = vld [vmem:[#allocation41_spill] sm:$0xff]  ;;  %v8696_v14 = vld [vmem:[#allocation83_spill] sm:$0xff] }
 0x167   : > { %5907 = vmatprep.subr.bf16.mxu0 %v5906_v19  ;;  %5142 = vmatmul.mubr.msk.f32.gmra.mrb[26].mxu1 %vm8676_vm4, %v8675_v1  ;;  %vm8681_vm10 = vnez %v8680_v20  ;;  %vm8685_vm4 = vcmask 1046528  }
 0x168   : > { %5144 = vmatprep.mubr.f32.mxu1 %v8678_v18  ;;  %v1848_v50 = vsel %vm8685_vm4, %v8684_v12, 0.0  ;;  %vm8697_vm4 = vnez %v8491_v28  ;;  %v8703_v28 = vld [vmem:[#allocation23_spill] sm:$0xff]  ;;  %v8705_v12 = vld [vmem:[#allocation64_spill] sm:$0xff] }
 0x169   : > { %5518 = vmatmul.mubr.f32.gmra.mrb[10].mxu0 %v8677_v33  ;;  %v8686_v33 = vld [vmem:[#allocation39_spill] sm:$0xff] }
 0x16a   : > { %5520 = vmatprep.mubr.f32.mxu0 %v7002_v61  ;;  %5909 = vmatpush3.bf16.msra.mxu0 %v5906_v19  ;;  %v2228_v18 = vsel %vm8687_vm14, 0.0, %v8686_v33  ;;  %v8689_v61 = vld [vmem:[#allocation48_spill] sm:$0xff]  ;;  %v8690_v19 = vld [vmem:[#allocation45_spill] sm:$0xff]  ;;  %vm8692_vm14 = vnez %v8486_v43  ;;  %v8700_v43 = vld [vmem:[#allocation86_spill] sm:$0xff] }
 0x16b   : > { %5911 = vmatprep.subr.bf16.mxu0 %v5910_v27  ;;  %5145 = vmatmul.mubr.msk.f32.gmra.mrb[28].mxu1 %vm8681_vm10, %v8679_v38  ;;  %vm8688_vm10 = vnez %v8480_v35  ;;  %v8695_v35 = vld [vmem:[#allocation55_spill] sm:$0xff]  ;;  %v8706_v33 = vld [vmem:[#allocation93_spill] sm:$0xff] }
 0x16c   : > { %5147 = vmatprep.mubr.f32.mxu1 %v8683_v32 }
 0x16d   : > { %5521 = vmatmul.mubr.f32.gmra.mrb[12].mxu0 %v8682_v10  ;;  %v8704_v10 = vld [vmem:[#allocation90_spill] sm:$0xff] }
 0x16e   : > { %5523 = vmatprep.mubr.f32.mxu0 %v7056_v31  ;;  %5913 = vmatpush3.bf16.msra.mxu0 %v5910_v27  ;;  %v8694_v27 = vld [vmem:[#allocation81_spill] sm:$0xff] }
 0x16f   : > { %5915 = vmatprep.subr.bf16.mxu0 %v5914_v26  ;;  %5148 = vmatmul.mubr.msk.f32.gmra.mrb[30].mxu1 %vm7544_vm11, %v1848_v50  ;;  %v8693_v50 = vld [vmem:[#allocation21_spill] sm:$0xff] }
 0x170   : > { %5182 = vmatprep.mubr.msk.f32.mxu1 %vm8688_vm10, %v2228_v18  ;;  %v8698_v18 = vld [vmem:[#allocation56_spill] sm:$0xff]  ;;  %vm8702_vm10 = vnez %v8498_v24 }
 0x171   : > { %5524 = vmatmul.mubr.f32.gmra.mrb[14].mxu0 %v7088_v47  ;;  %v8709_v24 = vld [vmem:[#allocation24_spill] sm:$0xff] }
 0x172   : > { %5526 = vmatprep.mubr.f32.mxu0 %v8689_v61  ;;  %5917 = vmatpush3.bf16.msra.mxu0 %v5914_v26  ;;  %v8701_v26 = vld [vmem:[#allocation88_spill] sm:$0xff] }
 0x173   : > { %5183 = vmatmul.mubr.f32.vlgmr.msra.gmra.mrb[0].mxu1 %v8690_v19  ;;  %v8708_v19 = vld [vmem:[#allocation66_spill] sm:$0xff] }
 0x174   : > { %5926 = vmatpush3.bf16.msra.mxu1 %v8646_v34  ;;  %5185 = vmatprep.mubr.msk.f32.mxu1 %vm8692_vm14, %v8691_v22  ;;  %v8699_v34 = vld [vmem:[#allocation22_spill] sm:$0xff]  ;;  %vm8707_vm14 = vnez %v8517_v5  ;;  %v8710_v22 = vld [vmem:[#allocation95_spill] sm:$0xff]  ;;  %v8712_v5 = vld [vmem:[#allocation25_spill] sm:$0xff] }
 0x175   : > { %5527 = vmatmul.mubr.f32.gmra.mrb[16].mxu0 %v7120_v51  ;;  %5919 = vmatprep.subr.bf16.mxu1 %v8693_v50 }
 0x176   : > { %5529 = vmatprep.mubr.f32.mxu0 %v7125_v60 }
 0x177   : > { %5186 = vmatmul.mubr.f32.gmra.mrb[2].mxu1 %v8694_v27  ;;  %v8745_v27 = vld [vmem:[#allocation117_spill] sm:$0xff] }
 0x178   : > { %5188 = vmatprep.mubr.msk.f32.mxu1 %vm8697_vm4, %v8696_v14  ;;  %5927 = vmatpush3.bf16.msra.mxu1 %v8693_v50  ;;  %vm8711_vm4 = vnez %v8530_v58  ;;  %v8713_v50 = vld [vmem:[#allocation101_spill] sm:$0xff]  ;;  %v8714_v58 = vld [vmem:[#allocation26_spill] sm:$0xff]  ;;  %v8747_v14 = vld [vmem:[#allocation72_spill] sm:$0xff] }
 0x179   : > { %5530 = vmatmul.mubr.f32.gmra.mrb[18].mxu0 %v8695_v35  ;;  %5920 = vmatprep.subr.bf16.mxu1 %v8699_v34 }
 0x17a   : > { %5532 = vmatprep.mubr.f32.mxu0 %v8698_v18 }
 0x17b   : > { %5189 = vmatmul.mubr.f32.gmra.mrb[4].mxu1 %v8700_v43  ;;  %v8749_v43 = vld [vmem:[#allocation75_spill] sm:$0xff] }
 0x17c   : > { %5191 = vmatprep.mubr.msk.f32.mxu1 %vm8702_vm10, %v8701_v26  ;;  %5928 = vmatpush3.bf16.msra.mxu1 %v8699_v34  ;;  %v8748_v34 = vld [vmem:[#allocation42_spill] sm:$0xff]  ;;  %vm8772_vm10 = vcmask 1046528  }
 0x17d   : > { %5533 = vmatmul.mubr.f32.gmra.mrb[20].mxu0 %v7168_v63  ;;  %5921 = vmatprep.subr.bf16.mxu1 %v8703_v28  ;;  %v8750_v26 = vld [vmem:[#allocation70_spill] sm:$0xff] }
 0x17e   : > { %5535 = vmatprep.mubr.f32.mxu0 %v7189_v9 }
 0x17f   : > { %5192 = vmatmul.mubr.f32.gmra.mrb[6].mxu1 %v8704_v10  ;;  %v8753_v10 = vld [vmem:[#allocation78_spill] sm:$0xff] }
 0x180   : > { %5194 = vmatprep.mubr.msk.f32.mxu1 %vm8707_vm14, %v8706_v33  ;;  %5929 = vmatpush3.bf16.msra.mxu1 %v8703_v28  ;;  %v8752_v28 = vld [vmem:[#allocation76_spill] sm:$0xff]  ;;  %v8754_v33 = vld [vmem:[#allocation73_spill] sm:$0xff]  ;;  %vm8773_vm14 = vnez %v8680_v20 }
 0x181   : > { %5536 = vmatmul.mubr.f32.gmra.mrb[22].mxu0 %v8705_v12  ;;  %5922 = vmatprep.subr.bf16.mxu1 %v8709_v24 }
 0x182   : > { %5538 = vmatprep.mubr.f32.mxu0 %v8708_v19 }
 0x183   : > { %5195 = vmatmul.mubr.f32.gmra.mrb[8].mxu1 %v8710_v22  ;;  %v8757_v22 = vld [vmem:[#allocation74_spill] sm:$0xff] }
 0x184   : > { %5197 = vmatprep.mubr.msk.f32.mxu1 %vm8711_vm4, %v7469_v21  ;;  %5930 = vmatpush3.bf16.msra.mxu1 %v8709_v24  ;;  %v8715_v21 = vld [vmem:[#allocation27_spill] sm:$0xff]  ;;  %v8756_v24 = vld [vmem:[#allocation80_spill] sm:$0xff]  ;;  %vm8774_vm4 = vmmov %vm8772_vm10 }
 0x185   : > { %5539 = vmatmul.mubr.f32.gmra.mrb[24].mxu0 %v7240_v13  ;;  %5923 = vmatprep.subr.bf16.mxu1 %v8712_v5 }
 0x186   : > { %5541 = vmatprep.mubr.f32.mxu0 %v7249_v40 }
 0x187   : > { %5198 = vmatmul.mubr.f32.gmra.mrb[10].mxu1 %v8713_v50 }
 0x188   : > { %5200 = vmatprep.mubr.msk.f32.mxu1 %vm7488_vm13, %v7527_v48  ;;  %5931 = vmatpush3.bf16.msra.mxu1 %v8712_v5  ;;  %v8716_v48 = vld [vmem:[#allocation105_spill] sm:$0xff]  ;;  %vm8751_vm13 = vnez %v8750_v26 }
 0x189   : > { %5542 = vmatmul.mubr.f32.gmra.mrb[26].mxu0 %v7265_v3  ;;  %5924 = vmatprep.subr.bf16.mxu1 %v8714_v58 }
 0x18a   : > { %5544 = vmatprep.mubr.f32.mxu0 %v7462_v6 }
 0x18b   : > { %5201 = vmatmul.mubr.f32.gmra.mrb[12].mxu1 %v7536_v2  ;;  %v8718_v2 = vld [vmem:[#allocation107_spill] sm:$0xff] }
 0x18c   : > { %5203 = vmatprep.mubr.msk.f32.mxu1 %vm7522_vm7, %v7553_v29  ;;  %5932 = vmatpush3.bf16.msra.mxu1 %v8714_v58  ;;  %v8722_v29 = vld [vmem:[#allocation110_spill] sm:$0xff]  ;;  %vm8746_vm7 = vnez %v8745_v27 }
 0x18d   : > { %5545 = vmatmul.mubr.f32.gmra.mrb[28].mxu0 %v7473_v59  ;;  %5925 = vmatprep.subr.bf16.mxu1 %v8715_v21 }
 0x18e   : > { %5547 = vmatprep.mubr.f32.mxu0 %v8467_v42 }
 0x18f   : > { %5204 = vmatmul.mubr.f32.gmra.mrb[14].mxu1 %v7572_v55 }
 0x190   : > { %5206 = vmatprep.mubr.msk.f32.mxu1 %vm7548_vm1, %v7583_v49  ;;  %5933 = vmatpush3.bf16.msra.mxu1 %v8715_v21  ;;  %v8725_v49 = vld [vmem:[#allocation109_spill] sm:$0xff]  ;;  %vm8755_vm1 = vnez %v8754_v33 }
 0x191   : > { %5548 = vmatmul.mubr.f32.gmra.mrb[30].mxu0 %v8467_v42  ;;  %v8717_v42 = vld [vmem:[#allocation106_spill] sm:$0xff] }
 0x192   : > { %5582 = vmatprep.mubr.f32.mxu0 %v8614_v39  ;;  %v8734_v39 = vld [vmem:[#allocation116_spill] sm:$0xff] }
 0x193   : > { %5207 = vmatmul.mubr.f32.gmra.mrb[16].mxu1 %v8716_v48 }
 0x194   : > { %5209 = vmatprep.mubr.msk.f32.mxu1 %vm7578_vm12, %v7596_v4  ;;  %v8727_v4 = vld [vmem:[#allocation113_spill] sm:$0xff]  ;;  %vm8758_vm12 = vnez %v8757_v22 }
 0x195   : > { %5583 = vmatmul.mubr.msk.f32.vlgmr.msra.gmra.mrb[0].mxu0 %vm7017_vm2, %v8615_v45  ;;  %vm8726_vm2 = vnez %v8725_v49  ;;  %v8738_v45 = vld [vmem:[#allocation118_spill] sm:$0xff] }
 0x196   : > { %5585 = vmatprep.mubr.f32.mxu0 %v8617_v56  ;;  %v8740_v56 = vld [vmem:[#allocation69_spill] sm:$0xff] }
 0x197   : > { %5210 = vmatmul.mubr.f32.gmra.mrb[18].mxu1 %v7615_v30  ;;  %v8730_v30 = vld [vmem:[#allocation115_spill] sm:$0xff] }
 0x198   : > { %5212 = vmatprep.mubr.msk.f32.mxu1 %vm7603_vm15, %v8717_v42  ;;  %vm8737_vm15 = vnez %v8736_v46 }
 0x199   : > { %5586 = vmatmul.mubr.msk.f32.gmra.mrb[2].mxu0 %vm7071_vm6, %v8618_v16  ;;  %vm8729_vm6 = vnez %v8728_v17  ;;  %v8741_v16 = vld [vmem:[#allocation119_spill] sm:$0xff] }
 0x19a   : > { %5588 = vmatprep.mubr.f32.mxu0 %v8621_v41  ;;  %v8733_v41 = vld [vmem:[#allocation67_spill] sm:$0xff] }
 0x19b   : > { %5213 = vmatmul.mubr.f32.gmra.mrb[20].mxu1 %v8718_v2 }
 0x19c   : > { %5215 = vmatprep.mubr.msk.f32.mxu1 %vm7622_vm3, %v8720_v0 }
 0x19d   : > { %5589 = vmatmul.mubr.msk.f32.gmra.mrb[4].mxu0 %vm7106_vm9, %v8622_v37  ;;  %vm8732_vm9 = vnez %v8731_v54 }
 0x19e   : > { %5591 = vmatprep.mubr.f32.mxu0 %v8721_v15 }
 0x19f   : > { %5216 = vmatmul.mubr.f32.gmra.mrb[22].mxu1 %v8722_v29 }
 0x1a0   : > { %5218 = vmatprep.mubr.msk.f32.mxu1 %vm8726_vm2, %v8724_v7 }
 0x1a1   : > { %5592 = vmatmul.mubr.msk.f32.gmra.mrb[6].mxu0 %vm8620_vm5, %v8629_v23  ;;  %v8744_v23 = vld [vmem:[#allocation40_spill] sm:$0xff] }
 0x1a2   : > { %5594 = vmatprep.mubr.f32.mxu0 %v8632_v25 }
 0x1a3   : > { %5219 = vmatmul.mubr.f32.gmra.mrb[24].mxu1 %v8727_v4 }
 0x1a4   : > { %5221 = vmatprep.mubr.msk.f32.mxu1 %vm8732_vm9, %v8730_v30 }
 0x1a5   : > { %5595 = vmatmul.mubr.msk.f32.gmra.mrb[8].mxu0 %vm8729_vm6, %v8637_v11  ;;  %v8742_v11 = vld [vmem:[#allocation71_spill] sm:$0xff] }
 0x1a6   : > { %5597 = vmatprep.mubr.f32.mxu0 %v8733_v41 }
 0x1a7   : > { %5222 = vmatmul.mubr.f32.gmra.mrb[26].mxu1 %v8734_v39 }
 0x1a8   : > { %5224 = vmatprep.mubr.msk.f32.mxu1 %vm7684_vm0, %v8738_v45 }
 0x1a9   : > { %5598 = vmatmul.mubr.msk.f32.gmra.mrb[10].mxu0 %vm8737_vm15, %v8735_v52 }
 0x1aa   : > { %5600 = vmatprep.mubr.f32.mxu0 %v8740_v56 }
 0x1ab   : > { %5225 = vmatmul.mubr.f32.gmra.mrb[28].mxu1 %v8741_v16 }
 0x1ac   : > { %5227 = vmatprep.mubr.msk.f32.mxu1 %vm8746_vm7, %v8744_v23 }
 0x1ad   : > { %5601 = vmatmul.mubr.msk.f32.gmra.mrb[12].mxu0 %vm8639_vm8, %v8742_v11 }
 0x1ae   : > { %5603 = vmatprep.mubr.f32.mxu0 %v8747_v14 }
 0x1af   : > { %5228 = vmatmul.mubr.f32.gmra.mrb[30].mxu1 %v8748_v34 }
 0x1b0   : > { %5286 = vmatprep.mubr.f32.mxu1 %v7056_v31  ;;  %v8759_v31 = vld [vmem:[#allocation77_spill] sm:$0xff] }
 0x1b1   : > { %5604 = vmatmul.mubr.msk.f32.gmra.mrb[14].mxu0 %vm8751_vm13, %v8749_v43  ;;  %vm8760_vm3 = vnez %v8759_v31 }
 0x1b2   : > { %5606 = vmatprep.mubr.f32.mxu0 %v8752_v28 }
 0x1b3   : > { %5287 = vmatmul.mubr.f32.vlgmr.msra.gmra.mrb[16].mxu1 %v7088_v47  ;;  %v8761_v47 = vld [vmem:[#allocation85_spill] sm:$0xff] }
 0x1b4   : > { %5289 = vmatprep.mubr.f32.mxu1 %v8689_v61  ;;  %vm8762_vm0 = vnez %v8761_v47 }
 0x1b5   : > { %5607 = vmatmul.mubr.msk.f32.gmra.mrb[16].mxu0 %vm8755_vm1, %v8753_v10 }
 0x1b6   : > { %5609 = vmatprep.mubr.f32.mxu0 %v8756_v24 }
 0x1b7   : > { %5290 = vmatmul.mubr.f32.gmra.mrb[18].mxu1 %v7120_v51  ;;  %v8763_v51 = vld [vmem:[#allocation94_spill] sm:$0xff] }
 0x1b8   : > { %5292 = vmatprep.mubr.f32.mxu1 %v7125_v60  ;;  %v8764_v60 = vld [vmem:[#allocation91_spill] sm:$0xff] }
 0x1b9   : > { %5610 = vmatmul.mubr.msk.f32.gmra.mrb[18].mxu0 %vm8758_vm12, %v8665_v44  ;;  %vm8765_vm5 = vnez %v8764_v60  ;;  %v8767_v44 = vld [vmem:[#allocation98_spill] sm:$0xff] }
 0x1ba   : > { %5612 = vmatprep.mubr.f32.mxu0 %v8669_v36  ;;  %vm8768_vm8 = vnez %v8767_v44  ;;  %v8770_v36 = vld [vmem:[#allocation120_spill] sm:$0xff] }
 0x1bb   : > { %5293 = vmatmul.mubr.f32.gmra.mrb[20].mxu1 %v8695_v35 }
 0x1bc   : > { %5295 = vmatprep.mubr.f32.mxu1 %v8698_v18 }
 0x1bd   : > { %5613 = vmatmul.mubr.msk.f32.gmra.mrb[20].mxu0 %vm8760_vm3, %v8671_v57  ;;  %v8771_v57 = vld [vmem:[#allocation100_spill] sm:$0xff] }
 0x1be   : > { %5615 = vmatprep.mubr.f32.mxu0 %v8674_v53 }
 0x1bf   : > { %5296 = vmatmul.mubr.f32.gmra.mrb[22].mxu1 %v7168_v63  ;;  %v8766_v63 = vld [vmem:[#allocation103_spill] sm:$0xff] }
 0x1c0   : > { %5298 = vmatprep.mubr.f32.mxu1 %v7189_v9  ;;  %v8769_v9 = vld [vmem:[#allocation104_spill] sm:$0xff] }
 0x1c1   : > { %5616 = vmatmul.mubr.msk.f32.gmra.mrb[22].mxu0 %vm8762_vm0, %v8675_v1  ;;  %v3714_v1 = vsel %vm8772_vm10, %v8771_v57, %v8770_v36 }
 0x1c2   : > { %5618 = vmatprep.mubr.f32.mxu0 %v8763_v51 }
 0x1c3   : > { %5299 = vmatmul.mubr.f32.gmra.mrb[24].mxu1 %v8705_v12 }
 0x1c4   : > { %5301 = vmatprep.mubr.f32.mxu1 %v8708_v19 }
 0x1c5   : > { %5619 = vmatmul.mubr.msk.f32.gmra.mrb[24].mxu0 %vm8765_vm5, %v8679_v38 }
 0x1c6   : > { %5621 = vmatprep.mubr.f32.mxu0 %v8683_v32 }
 0x1c7   : > { %5302 = vmatmul.mubr.f32.gmra.mrb[26].mxu1 %v7240_v13  ;;  %v3720_v13 = vsel %vm8774_vm4, %v8770_v36, 0.0 }
 0x1c8   : > { %5304 = vmatprep.mubr.f32.mxu1 %v7249_v40 }
 0x1c9   : > { %5622 = vmatmul.mubr.msk.f32.gmra.mrb[26].mxu0 %vm8768_vm8, %v8766_v63 }
 0x1ca   : > { %5624 = vmatprep.mubr.f32.mxu0 %v8769_v9 }
 0x1cb   : > { %5305 = vmatmul.mubr.f32.gmra.mrb[28].mxu1 %v7265_v3 }
 0x1cc   : > { %5307 = vmatprep.mubr.f32.mxu1 %v7462_v6 }
 0x1cd   : > { %5625 = vmatmul.mubr.msk.f32.gmra.mrb[28].mxu0 %vm8773_vm14, %v3714_v1 }
 0x1ce   : > { %5627 = vmatprep.mubr.f32.mxu0 %v8770_v36 }
 0x1cf   : > { %5308 = vmatmul.mubr.f32.gmra.mrb[30].mxu1 %v7473_v59 }
 0x1d1   : > { %5628 = vmatmul.mubr.msk.f32.gmra.mrb[30].mxu0 %vm7544_vm11, %v3720_v13 }
 0x246   : > { %v5184_v40 = vpop.f32.mrb[0].mxu1 }
 0x247   : > { %v2344_v38 = vpop.f32.mrb[1].mxu1 }
 0x24a   : > { %v5187_v53 = vpop.f32.mrb[2].mxu1 }
 0x24b   : > { %v2354_v32 = vpop.f32.mrb[3].mxu1 }
 0x24e   : > { %v5190_v3 = vpop.f32.mrb[4].mxu1 }
 0x24f   : > { %v2364_v20 = vpop.f32.mrb[5].mxu1 }
 0x252   : > { %v5193_v61 = vpop.f32.mrb[6].mxu1 }
 0x253   : > { %v2374_v35 = vpop.f32.mrb[7].mxu1 }
 0x256   : > { %v5196_v6 = vpop.f32.mrb[8].mxu1 }
 0x257   : > { %v2384_v18 = vpop.f32.mrb[9].mxu1 }
 0x25a   : > { %v5199_v12 = vpop.f32.mrb[10].mxu1 }
 0x25b   : > { %v8041_v19 = vpop.f32.mrb[11].mxu1 }
 0x25e   : > { %v8043_v5 = vpop.f32.mrb[12].mxu1 }
 0x25f   : > { %v8045_v59 = vpop.f32.mrb[13].mxu1 }
 0x262   : > { %v8047_v8 = vpop.f32.mrb[14].mxu1 }
 0x263   : > { %v8049_v50 = vpop.f32.mrb[15].mxu1 }
 0x268   : > { %v5584_v58 = vpop.f32.mrb[0].mxu0 }
 0x269   : > { %v5934_v21 = vadd.f32 %v5584_v58, %v5184_v40  ;;  %v3836_v48 = vpop.f32.mrb[1].mxu0 }
 0x26a   : > { %v5935_v42 = vadd.f32 %v3836_v48, %v2344_v38 }
 0x26b   : > { %4028 = vst [vmem:[%s8053_s26 + $0x8] sm:$0xff] %v5934_v21  ;;  %v4097_v2 = vmul.f32 %v5934_v21, %v5934_v21 }
 0x26c   : > { %4027 = vst [vmem:[%s8053_s26] sm:$0xff] %v5935_v42  ;;  %v4059_v62 = vadd.f32 %v5935_v42, %v5934_v21  ;;  %v4096_v0 = vmul.f32 %v5935_v42, %v5935_v42  ;;  %v5587_v15 = vpop.f32.mrb[2].mxu0 }
 0x26d   : > { %v5936_v29 = vadd.f32 %v5587_v15, %v5187_v53  ;;  %v3846_v55 = vpop.f32.mrb[3].mxu0 }
 0x26e   : > { %v4128_v7 = vadd.f32 %v4097_v2, %v4096_v0  ;;  %v5937_v49 = vadd.f32 %v3846_v55, %v2354_v32 }
 0x26f   : > { %4030 = vst [vmem:[%s8053_s26 + $0x18] sm:$0xff] %v5936_v29  ;;  %v4099_v39 = vmul.f32 %v5936_v29, %v5936_v29 }
 0x270   : > { %4029 = vst [vmem:[%s8053_s26 + $0x10] sm:$0xff] %v5937_v49  ;;  %v4060_v4 = vadd.f32 %v5937_v49, %v4059_v62  ;;  %v4098_v17 = vmul.f32 %v5937_v49, %v5937_v49  ;;  %v5590_v30 = vpop.f32.mrb[4].mxu0 }
 0x271   : > { %v5938_v54 = vadd.f32 %v5590_v30, %v5190_v3  ;;  %v3856_v41 = vpop.f32.mrb[5].mxu0 }
 0x272   : > { %v4129_v52 = vadd.f32 %v4128_v7, %v4098_v17  ;;  %v5939_v46 = vadd.f32 %v3856_v41, %v2364_v20  ;;  %v4061_v45 = vadd.f32 %v5936_v29, %v4060_v4 }
 0x273   : > { %4032 = vst [vmem:[%s8053_s26 + $0x28] sm:$0xff] %v5938_v54  ;;  %v4101_v27 = vmul.f32 %v5938_v54, %v5938_v54 }
 0x274   : > { %4031 = vst [vmem:[%s8053_s26 + $0x20] sm:$0xff] %v5939_v46  ;;  %v4062_v25 = vadd.f32 %v5939_v46, %v4061_v45  ;;  %v4100_v56 = vmul.f32 %v5939_v46, %v5939_v46  ;;  %v4130_v16 = vadd.f32 %v4129_v52, %v4099_v39  ;;  %v5593_v11 = vpop.f32.mrb[6].mxu0 }
 0x275   : > { %v5940_v37 = vadd.f32 %v5593_v11, %v5193_v61  ;;  %v3866_v23 = vpop.f32.mrb[7].mxu0 }
 0x276   : > { %v4131_v14 = vadd.f32 %v4130_v16, %v4100_v56  ;;  %v5941_v34 = vadd.f32 %v3866_v23, %v2374_v35  ;;  %v4063_v43 = vadd.f32 %v5938_v54, %v4062_v25 }
 0x277   : > { %4034 = vst [vmem:[%s8053_s26 + $0x38] sm:$0xff] %v5940_v37  ;;  %v4103_v31 = vmul.f32 %v5940_v37, %v5940_v37 }
 0x278   : > { %4033 = vst [vmem:[%s8053_s26 + $0x30] sm:$0xff] %v5941_v34  ;;  %v4064_v26 = vadd.f32 %v5941_v34, %v4063_v43  ;;  %v4102_v28 = vmul.f32 %v5941_v34, %v5941_v34  ;;  %v4132_v10 = vadd.f32 %v4131_v14, %v4101_v27  ;;  %v5596_v33 = vpop.f32.mrb[8].mxu0 }
 0x279   : > { %v5942_v24 = vadd.f32 %v5596_v33, %v5196_v6  ;;  %v3876_v22 = vpop.f32.mrb[9].mxu0 }
 0x27a   : > { %v4133_v47 = vadd.f32 %v4132_v10, %v4102_v28  ;;  %v5943_v51 = vadd.f32 %v3876_v22, %v2384_v18  ;;  %v4065_v60 = vadd.f32 %v5940_v37, %v4064_v26 }
 0x27b   : > { %4036 = vst [vmem:[%s8053_s26 + $0x48] sm:$0xff] %v5942_v24  ;;  %v4105_v13 = vmul.f32 %v5942_v24, %v5942_v24 }
 0x27c   : > { %4035 = vst [vmem:[%s8053_s26 + $0x40] sm:$0xff] %v5943_v51  ;;  %v4066_v63 = vadd.f32 %v5943_v51, %v4065_v60  ;;  %v4104_v44 = vmul.f32 %v5943_v51, %v5943_v51  ;;  %v4134_v9 = vadd.f32 %v4133_v47, %v4103_v31  ;;  %v5599_v36 = vpop.f32.mrb[10].mxu0 }
 0x27d   : > { %v5944_v57 = vadd.f32 %v5599_v36, %v5199_v12  ;;  %v3886_v1 = vpop.f32.mrb[11].mxu0 }
 0x27e   : > { %v4135_v40 = vadd.f32 %v4134_v9, %v4104_v44  ;;  %v5945_v38 = vadd.f32 %v3886_v1, %v8041_v19  ;;  %v4067_v53 = vadd.f32 %v5942_v24, %v4066_v63 }
 0x27f   : > { %4038 = vst [vmem:[%s8053_s26 + $0x58] sm:$0xff] %v5944_v57  ;;  %v4107_v18 = vmul.f32 %v5944_v57, %v5944_v57 }
 0x280   : > { %4037 = vst [vmem:[%s8053_s26 + $0x50] sm:$0xff] %v5945_v38  ;;  %v4068_v32 = vadd.f32 %v5945_v38, %v4067_v53  ;;  %v4106_v3 = vmul.f32 %v5945_v38, %v5945_v38  ;;  %v4136_v20 = vadd.f32 %v4135_v40, %v4105_v13  ;;  %v5602_v61 = vpop.f32.mrb[12].mxu0 }
 0x281   : > { %v5946_v35 = vadd.f32 %v5602_v61, %v8043_v5  ;;  %v3896_v6 = vpop.f32.mrb[13].mxu0 }
 0x282   : > { %v4137_v12 = vadd.f32 %v4136_v20, %v4106_v3  ;;  %v5947_v58 = vadd.f32 %v3896_v6, %v8045_v59  ;;  %v4069_v21 = vadd.f32 %v5944_v57, %v4068_v32 }
 0x283   : > { %4040 = vst [vmem:[%s8053_s26 + $0x68] sm:$0xff] %v5946_v35  ;;  %v4109_v15 = vmul.f32 %v5946_v35, %v5946_v35 }
 0x284   : > { %4039 = vst [vmem:[%s8053_s26 + $0x60] sm:$0xff] %v5947_v58  ;;  %v4070_v19 = vadd.f32 %v5947_v58, %v4069_v21  ;;  %v4108_v48 = vmul.f32 %v5947_v58, %v5947_v58  ;;  %v4138_v42 = vadd.f32 %v4137_v12, %v4107_v18  ;;  %v5605_v2 = vpop.f32.mrb[14].mxu0 }
 0x285   : > { %v5948_v62 = vadd.f32 %v5605_v2, %v8047_v8  ;;  %v3906_v0 = vpop.f32.mrb[15].mxu0 }
 0x286   : > { %v4139_v29 = vadd.f32 %v4138_v42, %v4108_v48  ;;  %v5949_v5 = vadd.f32 %v3906_v0, %v8049_v50  ;;  %v4071_v55 = vadd.f32 %v5946_v35, %v4070_v19  ;;  %v5288_v59 = vpop.f32.mrb[16].mxu1 }
 0x287   : > { %4042 = vst [vmem:[%s8053_s26 + $0x78] sm:$0xff] %v5948_v62  ;;  %v2698_v30 = vpop.f32.mrb[17].mxu1  ;;  %v4111_v39 = vmul.f32 %v5948_v62, %v5948_v62 }
 0x288   : > { %4041 = vst [vmem:[%s8053_s26 + $0x70] sm:$0xff] %v5949_v5  ;;  %v4072_v7 = vadd.f32 %v5949_v5, %v4071_v55  ;;  %v4110_v49 = vmul.f32 %v5949_v5, %v5949_v5  ;;  %v4140_v4 = vadd.f32 %v4139_v29, %v4109_v15  ;;  %v5608_v17 = vpop.f32.mrb[16].mxu0 }
 0x289   : > { %v5950_v54 = vadd.f32 %v5608_v17, %v5288_v59  ;;  %v3916_v41 = vpop.f32.mrb[17].mxu0 }
 0x28a   : > { %v4141_v8 = vadd.f32 %v4140_v4, %v4110_v49  ;;  %v5951_v52 = vadd.f32 %v3916_v41, %v2698_v30  ;;  %v4073_v46 = vadd.f32 %v5948_v62, %v4072_v7  ;;  %v5291_v50 = vpop.f32.mrb[18].mxu1 }
 0x28b   : > { %4044 = vst [vmem:[%s8053_s26 + $0x88] sm:$0xff] %v5950_v54  ;;  %v2708_v11 = vpop.f32.mrb[19].mxu1  ;;  %v4113_v27 = vmul.f32 %v5950_v54, %v5950_v54 }
 0x28c   : > { %4043 = vst [vmem:[%s8053_s26 + $0x80] sm:$0xff] %v5951_v52  ;;  %v4074_v45 = vadd.f32 %v5951_v52, %v4073_v46  ;;  %v4112_v25 = vmul.f32 %v5951_v52, %v5951_v52  ;;  %v4142_v56 = vadd.f32 %v4141_v8, %v4111_v39  ;;  %v5611_v16 = vpop.f32.mrb[18].mxu0 }
 0x28d   : > { %v5952_v37 = vadd.f32 %v5611_v16, %v5291_v50  ;;  %v3926_v23 = vpop.f32.mrb[19].mxu0 }
 0x28e   : > { %v4143_v14 = vadd.f32 %v4142_v56, %v4112_v25  ;;  %v5953_v34 = vadd.f32 %v3926_v23, %v2708_v11  ;;  %v4075_v43 = vadd.f32 %v5950_v54, %v4074_v45  ;;  %v5294_v26 = vpop.f32.mrb[20].mxu1 }
 0x28f   : > { %4046 = vst [vmem:[%s8053_s26 + $0x98] sm:$0xff] %v5952_v37  ;;  %v2718_v22 = vpop.f32.mrb[21].mxu1  ;;  %v4115_v51 = vmul.f32 %v5952_v37, %v5952_v37 }
 0x290   : > { %4045 = vst [vmem:[%s8053_s26 + $0x90] sm:$0xff] %v5953_v34  ;;  %v4076_v28 = vadd.f32 %v5953_v34, %v4075_v43  ;;  %v4114_v10 = vmul.f32 %v5953_v34, %v5953_v34  ;;  %v4144_v33 = vadd.f32 %v4143_v14, %v4113_v27  ;;  %v5614_v24 = vpop.f32.mrb[20].mxu0 }
 0x291   : > { %v5954_v31 = vadd.f32 %v5614_v24, %v5294_v26  ;;  %v3936_v47 = vpop.f32.mrb[21].mxu0 }
 0x292   : > { %v4145_v60 = vadd.f32 %v4144_v33, %v4114_v10  ;;  %v5955_v63 = vadd.f32 %v3936_v47, %v2718_v22  ;;  %v4077_v44 = vadd.f32 %v5952_v37, %v4076_v28  ;;  %v5297_v9 = vpop.f32.mrb[22].mxu1 }
 0x293   : > { %4048 = vst [vmem:[%s8053_s26 + $0xa8] sm:$0xff] %v5954_v31  ;;  %v2728_v40 = vpop.f32.mrb[23].mxu1  ;;  %v4117_v32 = vmul.f32 %v5954_v31, %v5954_v31 }
 0x294   : > { %4047 = vst [vmem:[%s8053_s26 + $0xa0] sm:$0xff] %v5955_v63  ;;  %v4078_v36 = vadd.f32 %v5955_v63, %v4077_v44  ;;  %v4116_v57 = vmul.f32 %v5955_v63, %v5955_v63  ;;  %v4146_v1 = vadd.f32 %v4145_v60, %v4115_v51  ;;  %v5617_v13 = vpop.f32.mrb[22].mxu0 }
 0x295   : > { %v5956_v38 = vadd.f32 %v5617_v13, %v5297_v9  ;;  %v3946_v53 = vpop.f32.mrb[23].mxu0 }
 0x296   : > { %v4147_v3 = vadd.f32 %v4146_v1, %v4116_v57  ;;  %v5957_v20 = vadd.f32 %v3946_v53, %v2728_v40  ;;  %v4079_v61 = vadd.f32 %v5954_v31, %v4078_v36  ;;  %v5300_v35 = vpop.f32.mrb[24].mxu1 }
 0x297   : > { %4050 = vst [vmem:[%s8053_s26 + $0xb8] sm:$0xff] %v5956_v38  ;;  %v2738_v21 = vpop.f32.mrb[25].mxu1  ;;  %v4119_v42 = vmul.f32 %v5956_v38, %v5956_v38 }
 0x298   : > { %4049 = vst [vmem:[%s8053_s26 + $0xb0] sm:$0xff] %v5957_v20  ;;  %v4080_v6 = vadd.f32 %v5957_v20, %v4079_v61  ;;  %v4118_v18 = vmul.f32 %v5957_v20, %v5957_v20  ;;  %v4148_v12 = vadd.f32 %v4147_v3, %v4117_v32  ;;  %v5620_v58 = vpop.f32.mrb[24].mxu0 }
 0x299   : > { %v5958_v19 = vadd.f32 %v5620_v58, %v5300_v35  ;;  %v3956_v48 = vpop.f32.mrb[25].mxu0 }
 0x29a   : > { %v4149_v2 = vadd.f32 %v4148_v12, %v4118_v18  ;;  %v5959_v62 = vadd.f32 %v3956_v48, %v2738_v21  ;;  %v4081_v0 = vadd.f32 %v5956_v38, %v4080_v6  ;;  %v5303_v15 = vpop.f32.mrb[26].mxu1 }
 0x29b   : > { %4052 = vst [vmem:[%s8053_s26 + $0xc8] sm:$0xff] %v5958_v19  ;;  %v2748_v7 = vpop.f32.mrb[27].mxu1  ;;  %v4121_v17 = vmul.f32 %v5958_v19, %v5958_v19 }
 0x29c   : > { %4051 = vst [vmem:[%s8053_s26 + $0xc0] sm:$0xff] %v5959_v62  ;;  %v4082_v29 = vadd.f32 %v5959_v62, %v4081_v0  ;;  %v4120_v5 = vmul.f32 %v5959_v62, %v5959_v62  ;;  %v4150_v55 = vadd.f32 %v4149_v2, %v4119_v42  ;;  %v5623_v59 = vpop.f32.mrb[26].mxu0 }
 0x29d   : > { %v5960_v49 = vadd.f32 %v5623_v59, %v5303_v15  ;;  %v3966_v4 = vpop.f32.mrb[27].mxu0 }
 0x29e   : > { %v4151_v30 = vadd.f32 %v4150_v55, %v4120_v5  ;;  %v5961_v54 = vadd.f32 %v3966_v4, %v2748_v7  ;;  %v4083_v41 = vadd.f32 %v5958_v19, %v4082_v29  ;;  %v5306_v39 = vpop.f32.mrb[28].mxu1 }
 0x29f   : > { %4054 = vst [vmem:[%s8053_s26 + $0xd8] sm:$0xff] %v5960_v49  ;;  %v2758_v45 = vpop.f32.mrb[29].mxu1  ;;  %v4123_v16 = vmul.f32 %v5960_v49, %v5960_v49 }
 0x2a0   : > { %4053 = vst [vmem:[%s8053_s26 + $0xd0] sm:$0xff] %v5961_v54  ;;  %v4084_v8 = vadd.f32 %v5961_v54, %v4083_v41  ;;  %v4122_v52 = vmul.f32 %v5961_v54, %v5961_v54  ;;  %v4152_v46 = vadd.f32 %v4151_v30, %v4121_v17  ;;  %v5626_v50 = vpop.f32.mrb[28].mxu0 }
 0x2a1   : > { %v5962_v25 = vadd.f32 %v5626_v50, %v5306_v39  ;;  %v3976_v56 = vpop.f32.mrb[29].mxu0 }
 0x2a2   : > { %v4153_v11 = vadd.f32 %v4152_v46, %v4122_v52  ;;  %v5963_v37 = vadd.f32 %v3976_v56, %v2758_v45  ;;  %v4085_v23 = vadd.f32 %v5960_v49, %v4084_v8  ;;  %v5309_v27 = vpop.f32.mrb[30].mxu1 }
 0x2a3   : > { %4056 = vst [vmem:[%s8053_s26 + $0xe8] sm:$0xff] %v5962_v25  ;;  %v2768_v28 = vpop.f32.mrb[31].mxu1  ;;  %v4125_v24 = vmul.f32 %v5962_v25, %v5962_v25 }
 0x2a4   : > { %4055 = vst [vmem:[%s8053_s26 + $0xe0] sm:$0xff] %v5963_v37  ;;  %v4086_v14 = vadd.f32 %v5963_v37, %v4085_v23  ;;  %v4124_v34 = vmul.f32 %v5963_v37, %v5963_v37  ;;  %v4154_v43 = vadd.f32 %v4153_v11, %v4123_v16  ;;  %v5629_v26 = vpop.f32.mrb[30].mxu0 }
 0x2a5   : > { %v5964_v10 = vadd.f32 %v5629_v26, %v5309_v27  ;;  %v3986_v33 = vpop.f32.mrb[31].mxu0 }
 0x2a6   : > { %v4155_v22 = vadd.f32 %v4154_v43, %v4124_v34  ;;  %v5965_v31 = vadd.f32 %v3986_v33, %v2768_v28  ;;  %v4087_v47 = vadd.f32 %v5962_v25, %v4086_v14 }
 0x2a7   : > { %4058 = vst [vmem:[%s8053_s26 + $0xf8] sm:$0xff] %v5964_v10 }
 0x2a8   : > { %4057 = vst [vmem:[%s8053_s26 + $0xf0] sm:$0xff] %v5965_v31  ;;  %v4088_v51 = vadd.f32 %v5965_v31, %v4087_v47  ;;  %v4126_v60 = vmul.f32 %v5965_v31, %v5965_v31  ;;  %v4156_v63 = vadd.f32 %v4155_v22, %v4125_v24 }
 0x2a9   : > { %6422 = shalt.err (!%p6419_p0)
}
 0x2aa   : > { %s6423_s17 = scalar_lea.hbm %s8095_s27, 4096  ;;  %s6427_s9 = scalar_lea.hbm %s8184_s4, 8192 }
 0x2ab   : > { %p6424_p4 = scmp.ne.s32.totalorder %s8095_s27, %s6423_s17  ;;  %p6428_p12 = scmp.lt.u32.totalorder %s8095_s27, %s8184_s4 }
 0x2ac   : > { %p6429_p1 = scmp.lt.u32.totalorder %s6427_s9, %s6423_s17  ;;  %p6431_p13 = scmp.lt.u32.totalorder %s6423_s17, %s8095_s27 }
 0x2ad   : > { %p6425_p2 = pnand %p6424_p4, %p6729_p10 }
 0x2ae   : > { %p6430_p11 = por %p6429_p1, %p6428_p12 }
 0x2af   : > { %p6426_p8 = pneg %p6425_p2 }
 0x2b0   : > { %p6432_p6 = por %p6431_p13, %p6430_p11 }
 0x2b2   : > { %p6433_p3 = pnand %p6432_p6, %p6426_p8 }
 0x2b4   : > { %6436 = shalt.err (!%p6433_p3)
}
 0x2b5   : > { %s6541_s28 = smov 128   ;;  %s6542_s11 = smov 8   ;;  %v4127_v44 = vmul.f32 %v5964_v10, %v5964_v10  ;;  %v4089_v9 = vadd.f32 %v5964_v10, %v4088_v51  ;;  %v4157_v36 = vadd.f32 %v4156_v63, %v4126_v60  ;;  %vm8775_vm11 = vcmask 1040384  }
 0x2b6   : > { %6204 = dma.vmem_to_hbm [thread:$0]  (%p6729_p10), %s8097_s30, 4096, %s8095_s27, %s4168_s10, %s6541_s28, %s6541_s28, %s6542_s11  }
 0x2b7   : > { %v4090_v57 = vrot.slane %v4089_v9, 4  ;;  %v4158_v1 = vadd.f32 %v4157_v36, %v4127_v44  ;;  %s4368_s13 = sshll.u32 %s6790_s24, 1  ;;  %s4473_s29 = sshll.u32 %s6523_s21, 5 }
 0x2b8   : > { %s309_s30 = scalar_lea.vmem [#allocation11], %s4368_s13  ;;  %s8130_s16 = scalar_lea.hbm %s8185_s5, %s4473_s29 }
 0x2b9   : > { %v4091_v13 = vadd.f32 %v4090_v57, %v4089_v9  ;;  %v4159_v40 = vrot.slane %v4158_v1, 4  ;;  %s4205_s27 = sshll.u32 %s309_s30, 4  ;;  %s4173_s14 = scalar_lea.sflag [#allocation12], %s6790_s24  ;;  %s8132_s27 = int_to_ptr.vmem [resolvable:$true] %s4205_s27 }
 0x2ba   : > { %s6437_s17 = scalar_lea.vmem %s8132_s27, 32  ;;  %s6543_s21 = smov [#allocation11]  }
 0x2bb   : > { %v4092_v38 = vrot.slane %v4091_v13, 2  ;;  %v4160_v53 = vadd.f32 %v4159_v40, %v4158_v1  ;;  %p6438_p5 = scmp.ne.s32.totalorder %s8132_s27, %s6437_s17  ;;  %s6441_s12 = sshll.u32 %s6543_s21, 4  ;;  %s6442_s12 = int_to_ptr.vmem [resolvable:$false] %s6441_s12 }
 0x2bc   : > { %s6443_s25 = scalar_lea.vmem %s6442_s12, 64  ;;  %p6444_p0 = scmp.lt.s32.totalorder %s8132_s27, %s6442_s12 }
 0x2bd   : > { %v4093_v32 = vadd.f32 %v4092_v38, %v4091_v13  ;;  %v4161_v3 = vrot.slane %v4160_v53, 2  ;;  %p6439_p7 = pnand %p6438_p5, %p6729_p10  ;;  %p6445_p4 = scmp.lt.s32.totalorder %s6443_s25, %s6437_s17 }
 0x2bf   : > { %v4094_v20 = vrot.slane %v4093_v32, 1  ;;  %v4162_v61 = vadd.f32 %v4161_v3, %v4160_v53  ;;  %p6440_p9 = pneg %p6439_p7  ;;  %p6446_p2 = por %p6445_p4, %p6444_p0 }
 0x2c1   : > { %v4163_v35 = vrot.slane %v4162_v61, 1  ;;  %v4095_v6 = vadd.f32 %v4094_v20, %v4093_v32  ;;  %p6447_p8 = pnand %p6446_p2, %p6440_p9 }
 0x2c3   : > { %v4164_v18 = vadd.f32 %v4163_v35, %v4162_v61 }
 0x2c5   : > { %v4165_v12 = vsel %vm8775_vm11, %v4095_v6, %v4164_v18 }
 0x2c6   : > { %4166 = vst [vmem:[%s309_s30] sm:$0x3] %v4165_v12 }
 0x2c7   : > { %6450 = shalt.err (!%p6447_p8)
}
 0x2c8   : > { %s6451_s24 = scalar_lea.hbm %s8130_s16, 32  ;;  %s6455_s26 = scalar_lea.hbm %s8185_s5, 64 }
 0x2c9   : > { %p6452_p12 = scmp.ne.s32.totalorder %s8130_s16, %s6451_s24  ;;  %p6456_p13 = scmp.lt.u32.totalorder %s8130_s16, %s8185_s5 }
 0x2ca   : > { %p6457_p6 = scmp.lt.u32.totalorder %s6455_s26, %s6451_s24  ;;  %p6459_p5 = scmp.lt.u32.totalorder %s6451_s24, %s8130_s16 }
 0x2cb   : > { %p6453_p1 = pnand %p6452_p12, %p6729_p10 }
 0x2cc   : > { %p6458_p3 = por %p6457_p6, %p6456_p13 }
 0x2cd   : > { %p6454_p11 = pneg %p6453_p1 }
 0x2ce   : > { %p6460_p7 = por %p6459_p5, %p6458_p3 }
 0x2d0   : > { %p6461_p9 = pnand %p6460_p7, %p6454_p11 }
 0x2d2   : > { %6464 = shalt.err (!%p6461_p9)
}
 0x2d3   : > { %6205 = dma.vmem_to_hbm [thread:$0]  (%p6729_p10), %s8132_s27, 32, %s8130_s16, %s4173_s14  }
 0x2d4 PF: > { %s8776_s13 = sld [smem:[#allocation18_spill]]  ;;  %s8777_s29 = sld [smem:[#allocation19_spill]] }
 0x2d5   : > { %p8779_p4 = scmp.ge.s32.totalorder %s6531_s23, 2 }
 0x2da   : > { %s4217_s30 = sand.u32 1, %s8776_s13   ;;  %p8778_p0 = scmp.ne.s32.totalorder %s8777_s29, 0 }
 0x2db   : > { %s4218_s10 = scalar_lea.sflag [#allocation4], %s4217_s30 }
 0x2dc   : > { %p6223_p2 = pnand %p8779_p4, %p8778_p0 }
 0x2de   : > { %6502 = dma.done.wait (!%p6223_p2), %s4218_s10, 4096  }
 0x2df   : > { %6504 = vsyncadd (!%p6223_p2), %s4218_s10, 4294963200  ;;  %s4227_s7 = scalar_lea.sflag [#allocation12], %s4217_s30 }
 0x2e0   : > { %6506 = dma.done.wait (!%p6223_p2), %s4227_s7, 32  }
 0x2e1   : > { %6508 = vsyncadd (!%p6223_p2), %s4227_s7, 4294967264  ;;  %s27_s23 = sadd.s32 1, %s6531_s23   ;;  %s8780_s18 = smov %s6515_s19 }
 0x2e2   : > { %p24_p8 = scmp.ge.s32.totalorder %s27_s23, 4   ;;  %s8781_s19 = smov %s6519_s20 }
 0x2e3   : > { %s8782_s20 = smov %s6741_s6  ;;  %s8783_s21 = smov %s6527_s22 }
 0x2e4   : > { %s8784_s22 = smov %s8786_s15  ;;  %26 = sbr.rel (!%p24_p8) target bundleno = 10 (0xa), region = 121 }
 0x2eb   :  { %4232 = vsyncpa [#allocation3], 1 }
 0x2ec   :  { %4234 = vsyncpa [#allocation3 + $0x1], 1 }
 0x2ed   :  { %4235 = vsyncpa [#allocation6], 1 }
 0x2ee   :  { %4236 = vsyncpa [#allocation9], 1 }
 0x2ef   :  { %4237 = vsyncpa [#allocation4], 1 }
 0x2f0   :  { %4239 = vsyncpa [#allocation4 + $0x1], 1 }
 0x2f1   :  { %4240 = vsyncpa [#allocation12], 1 }
 0x2f2   :  { %4242 = vsyncpa [#allocation12 + $0x1], 1 }

</bundles_post_ra>
